<compile_context>
chip_gen: v6e
topology: v6e:2x2x1
jax: 0.10.0
libtpu: 0.0.40
codegen_flags: <defaults>
</compile_context>

<pallas_src>
import functools

import jax
import jax.numpy as jnp
from jax.experimental import pallas as pl
from jax.experimental.pallas import tpu as pltpu


# ---------------------------------------------------------------------------
# Helpers
# ---------------------------------------------------------------------------
def _pick_tile(dim, preferred, align):
    """Largest tile <= preferred that divides `dim` and is a multiple of
    `align`; falls back to the full dimension (block == full dim is always
    legal w.r.t. the (8, 128) constraint)."""
    if dim <= preferred:
        return dim
    t = (preferred // align) * align
    while t >= align:
        if dim % t == 0:
            return t
        t -= align
    return dim


def _round_up(n, m):
    return -(-n // m) * m


@functools.lru_cache(maxsize=None)
def _vmem_limit():
    """VMEM budget with headroom for the compiler's internal scratch and
    double buffering.  v5e/v6e: 128 MiB physical -> 96 MiB; v7x: 64 MiB
    physical -> 48 MiB.  Falls back to the conservative 48 MiB if the
    hardware query is unavailable."""
    try:
        cap = pltpu.get_tpu_info().vmem_capacity_bytes
    except Exception:  # pragma: no cover - query not available in some modes
        cap = 64 * 1024 * 1024
    return min(int(cap * 3 // 4), 96 * 1024 * 1024)


# ---------------------------------------------------------------------------
# Kernel 1 & 3: tiled dense linear  y = x @ W + b
# ---------------------------------------------------------------------------
def _linear_kernel(x_ref, w_ref, b_ref, o_ref, acc_ref):
    k = pl.program_id(2)

    @pl.when(k == 0)
    def _init():
        acc_ref[...] = jnp.zeros_like(acc_ref)

    acc_ref[...] += jnp.dot(
        x_ref[...].astype(w_ref.dtype), w_ref[...],
        preferred_element_type=jnp.float32)

    @pl.when(k == pl.num_programs(2) - 1)
    def _flush():
        o_ref[...] = (acc_ref[...] + b_ref[...].astype(jnp.float32)).astype(o_ref.dtype)


def pallas_linear(x2d, w, b2d, *, out_dtype=None,
                  tm_pref=512, tn_pref=512, tk_pref=512):
    """x2d: (M, K) activations, w: (K, N) (bf16 ok), b2d: (1, N) f32 -> (M, N).

    Tiles are 512-preferred for v6e/v7x's 256x256 MXU; M is padded up to a
    multiple of 8 so blocks stay sublane-aligned for any sequence length."""
    M, K = x2d.shape
    K2, Nc = w.shape
    assert K == K2
    out_dtype = out_dtype or x2d.dtype

    Mp = _round_up(M, 8)
    if Mp != M:
        x2d = jnp.pad(x2d, ((0, Mp - M), (0, 0)))

    tm = _pick_tile(Mp, tm_pref, 8)
    tn = _pick_tile(Nc, tn_pref, 128)
    tk = _pick_tile(K, tk_pref, 128)
    grid = (Mp // tm, Nc // tn, K // tk)

    bytes_accessed = (x2d.dtype.itemsize * Mp * K + w.dtype.itemsize * K * Nc
                      + jnp.dtype(out_dtype).itemsize * Mp * Nc
                      + b2d.dtype.itemsize * Nc)
    out = pl.pallas_call(
        _linear_kernel,
        out_shape=jax.ShapeDtypeStruct((Mp, Nc), out_dtype),
        grid_spec=pltpu.PrefetchScalarGridSpec(
            num_scalar_prefetch=0,
            grid=grid,
            in_specs=[
                pl.BlockSpec((tm, tk), lambda i, j, k: (i, k)),
                pl.BlockSpec((tk, tn), lambda i, j, k: (k, j)),
                pl.BlockSpec((1, tn), lambda i, j, k: (0, j)),
            ],
            out_specs=pl.BlockSpec((tm, tn), lambda i, j, k: (i, j)),
            scratch_shapes=[pltpu.VMEM((tm, tn), jnp.float32)]),
        compiler_params=pltpu.CompilerParams(
            dimension_semantics=("parallel", "parallel", "arbitrary"),
            vmem_limit_bytes=_vmem_limit()),
        cost_estimate=pl.CostEstimate(
            flops=2 * Mp * Nc * K, transcendentals=0,
            bytes_accessed=bytes_accessed),
    )(x2d, w, b2d)
    if Mp != M:
        out = out[:M]
    return out


# ---------------------------------------------------------------------------
# Kernel 2: flash-style multi-head attention.  All heads of one
# (batch, q-tile) per grid step; kv axis tiled last with online softmax kept
# in lane-dense VMEM scratch ((tq, E) accumulator, heads on lane columns).
# ---------------------------------------------------------------------------
def _flash_mha_kernel(q_ref, k_ref, v_ref, o_ref, m_ref, l_ref, acc_ref,
                      *, num_heads, kv_len, needs_mask):
    ki = pl.program_id(2)
    tq = q_ref.shape[1]
    tkv = k_ref.shape[1]
    E = q_ref.shape[2]
    D = E // num_heads

    @pl.when(ki == 0)
    def _init():
        m_ref[...] = jnp.full(m_ref.shape, -jnp.inf, dtype=m_ref.dtype)
        l_ref[...] = jnp.zeros(l_ref.shape, dtype=l_ref.dtype)
        acc_ref[...] = jnp.zeros(acc_ref.shape, dtype=acc_ref.dtype)

    # Lane-dense bf16 loads (softmax scale already folded into the q columns).
    q = q_ref[0]        # (tq,  E)
    k = k_ref[0]        # (tkv, E)
    v = v_ref[0]        # (tkv, E)

    if needs_mask:
        col = jax.lax.broadcasted_iota(jnp.int32, (tq, tkv), 1) + ki * tkv
        kv_mask = col < kv_len
    else:
        kv_mask = None

    m_prev_all = m_ref[...]       # (tq, H)
    l_prev_all = l_ref[...]       # (tq, H)

    m_cols, l_cols, alpha_cols, pv_cols = [], [], [], []
    # Static unroll over heads: per-head 2-D matmuls on the MXU.
    # TODO(synk): for very small head_dim a head-batched dot_general over a
    #             (H, tq, D) layout could fill the MXU contraction better.
    for h in range(num_heads):
        sl = slice(h * D, (h + 1) * D)
        qh, kh, vh = q[:, sl], k[:, sl], v[:, sl]

        # energy_h = q_h @ k_h^T expressed directly (no explicit transpose).
        s = jax.lax.dot_general(
            qh, kh, dimension_numbers=(((1,), (1,)), ((), ())),
            preferred_element_type=jnp.float32)              # (tq, tkv) f32
        if kv_mask is not None:
            s = jnp.where(kv_mask, s, -jnp.inf)

        m_prev = m_prev_all[:, h:h + 1]                      # (tq, 1)
        m_new = jnp.maximum(m_prev, jnp.max(s, axis=-1, keepdims=True))
        alpha = jnp.exp(m_prev - m_new)                      # (tq, 1)
        p = jnp.exp(s - m_new)                               # (tq, tkv) f32
        l_new = alpha * l_prev_all[:, h:h + 1] + jnp.sum(p, axis=-1, keepdims=True)

        pv = jax.lax.dot_general(
            p.astype(v.dtype), vh,
            dimension_numbers=(((1,), (0,)), ((), ())),
            preferred_element_type=jnp.float32)              # (tq, D) f32

        m_cols.append(m_new)
        l_cols.append(l_new)
        alpha_cols.append(jnp.broadcast_to(alpha, (tq, D)))
        pv_cols.append(pv)

    # Single full-width (lane-dense) scratch updates instead of per-head
    # masked read-modify-writes.
    m_ref[...] = jnp.concatenate(m_cols, axis=1)
    l_ref[...] = jnp.concatenate(l_cols, axis=1)
    alpha_full = jnp.concatenate(alpha_cols, axis=1)         # (tq, E)
    pv_full = jnp.concatenate(pv_cols, axis=1)               # (tq, E)
    acc_ref[...] = alpha_full * acc_ref[...] + pv_full

    @pl.when(ki == pl.num_programs(2) - 1)
    def _flush():
        inv_l = pl.reciprocal(l_ref[...], approx=True)       # (tq, H), EUP slot
        inv_full = jnp.concatenate(
            [jnp.broadcast_to(inv_l[:, h:h + 1], (tq, D)) for h in range(num_heads)],
            axis=1)                                          # (tq, E)
        # One unmasked, lane-dense (tq, E) store.
        o_ref[0] = (acc_ref[...] * inv_full).astype(o_ref.dtype)


def pallas_flash_attention(qkv3, num_heads, *, tq_pref=256, tkv_pref=512,
                           out_dtype=None):
    """qkv3: (B, N, 3E), columns ordered (q|k|v, h, d)  ->  (B, N, E) attention
    output already laid out as 'b n (h d)' (no transpose needed afterwards).

    tq_pref=256 / tkv_pref=512 target v6e/v7x; on v5e tq_pref=128 is a better
    fit for its 128-tall MXU."""
    B, N, threeE = qkv3.shape
    E = threeE // 3
    out_dtype = out_dtype or qkv3.dtype

    # Pad the sequence so tiles stay (8,128)-aligned and software pipelining
    # / the parallel grid survive e.g. ViT's N=197.
    align = 128 if N >= 128 else 8
    N_pad = _round_up(N, align)
    if N_pad != N:
        qkv3 = jnp.pad(qkv3, ((0, 0), (0, N_pad - N), (0, 0)))
    needs_mask = (N_pad != N)

    tq = _pick_tile(N_pad, tq_pref, 8)
    tkv = _pick_tile(N_pad, tkv_pref, 8)

    if E % 128 == 0:
        # Read q/k/v straight out of the fused qkv tensor via block-index
        # offsets on the last axis (0 -> q cols, 1 -> k cols, 2 -> v cols).
        q_in = k_in = v_in = qkv3
        q_spec = pl.BlockSpec((1, tq, E), lambda b, qi, ki: (b, qi, 0))
        k_spec = pl.BlockSpec((1, tkv, E), lambda b, qi, ki: (b, ki, 1))
        v_spec = pl.BlockSpec((1, tkv, E), lambda b, qi, ki: (b, ki, 2))
    else:
        # TODO(synk): pad E to a lane-aligned width in prepare_params instead;
        #             these XLA slices materialize extra HBM copies of q/k/v.
        q_in = qkv3[:, :, 0:E]
        k_in = qkv3[:, :, E:2 * E]
        v_in = qkv3[:, :, 2 * E:3 * E]
        q_spec = pl.BlockSpec((1, tq, E), lambda b, qi, ki: (b, qi, 0))
        k_spec = pl.BlockSpec((1, tkv, E), lambda b, qi, ki: (b, ki, 0))
        v_spec = pl.BlockSpec((1, tkv, E), lambda b, qi, ki: (b, ki, 0))

    kernel = functools.partial(_flash_mha_kernel, num_heads=num_heads,
                               kv_len=N, needs_mask=needs_mask)
    itemsize = qkv3.dtype.itemsize
    out = pl.pallas_call(
        kernel,
        out_shape=jax.ShapeDtypeStruct((B, N_pad, E), out_dtype),
        grid_spec=pltpu.PrefetchScalarGridSpec(
            num_scalar_prefetch=0,
            grid=(B, N_pad // tq, N_pad // tkv),
            in_specs=[q_spec, k_spec, v_spec],
            out_specs=pl.BlockSpec((1, tq, E), lambda b, qi, ki: (b, qi, 0)),
            scratch_shapes=[
                pltpu.VMEM((tq, num_heads), jnp.float32),    # running max m
                pltpu.VMEM((tq, num_heads), jnp.float32),    # running sum l
                pltpu.VMEM((tq, E), jnp.float32),            # lane-dense acc
            ]),
        compiler_params=pltpu.CompilerParams(
            dimension_semantics=("parallel", "parallel", "arbitrary"),
            vmem_limit_bytes=_vmem_limit()),
        cost_estimate=pl.CostEstimate(
            flops=4 * B * N_pad * N_pad * E,
            transcendentals=B * num_heads * N_pad * N_pad,
            bytes_accessed=itemsize * 4 * B * N_pad * E),
    )(q_in, k_in, v_in)
    if N_pad != N:
        out = out[:, :N, :]
    return out


# ---------------------------------------------------------------------------
# Parameter preparation (one-time, free): fold the qkv rearrange into a column
# permutation of w_qkv/b_qkv and fold the softmax scale into the q columns.
# ---------------------------------------------------------------------------
def prepare_params(params, emb_size, num_heads, *, compute_dtype=jnp.bfloat16):
    E, H = emb_size, num_heads
    D = E // H
    # torch layout of the 3E output columns:  c  = h*(D*3) + d*3 + qkv   (qkv fastest)
    # pallas layout:                          c' = qkv*E + h*D + d       (q | k | v blocks)
    qkv_i = jnp.arange(3).reshape(3, 1, 1)
    h_i = jnp.arange(H).reshape(1, H, 1)
    d_i = jnp.arange(D).reshape(1, 1, D)
    perm = ((h_i * D + d_i) * 3 + qkv_i).reshape(-1)
    w_qkv = params["w_qkv"][:, perm]
    b_qkv = params["b_qkv"][:, perm]
    # softmax scale (module quirk: sqrt(emb_size), not sqrt(head_dim)) folded into q.
    inv_scale = 1.0 / (float(E) ** 0.5)
    col_scale = jnp.concatenate([
        jnp.full((E,), inv_scale, dtype=w_qkv.dtype),
        jnp.ones((2 * E,), dtype=w_qkv.dtype)])
    w_qkv = w_qkv * col_scale[None, :]
    b_qkv = b_qkv * col_scale[None, :]
    return {
        "w_qkv": w_qkv.astype(compute_dtype),     # bf16 MXU operands
        "b_qkv": b_qkv.astype(jnp.float32),       # bias added in f32
        "w_proj": params["w_proj"].astype(compute_dtype),
        "b_proj": params["b_proj"].astype(jnp.float32),
    }


# ---------------------------------------------------------------------------
# Full module forward
# ---------------------------------------------------------------------------
def multi_head_attention_forward(x, prepared_params, num_heads,
                                 *, compute_dtype=jnp.bfloat16):
    B, N, E = x.shape
    # fused qkv projection: columns already ordered (q|k|v, h, d); bf16 output
    # halves HBM traffic and feeds the MXU directly in the attention kernel.
    qkv = pallas_linear(x.reshape(B * N, E),
                        prepared_params["w_qkv"], prepared_params["b_qkv"],
                        out_dtype=compute_dtype)
    qkv = qkv.reshape(B, N, 3 * E)                      # free reshape
    # attention output is already 'b n (h d)' -> no transpose needed
    ctx = pallas_flash_attention(qkv, num_heads, out_dtype=compute_dtype)
    out = pallas_linear(ctx.reshape(B * N, E),
                        prepared_params["w_proj"], prepared_params["b_proj"],
                        out_dtype=x.dtype)
    return out.reshape(B, N, E)


# Pure-JAX reference (mirror of the torch forward, original params/layout).
def reference_forward(x, params, num_heads):
    B, N, E = x.shape
    D = E // num_heads
    qkv = x @ params["w_qkv"] + params["b_qkv"][0]
    qkv = qkv.reshape(B, N, num_heads, D, 3)
    qkv = jnp.transpose(qkv, (4, 0, 2, 1, 3))
    q, k, v = qkv[0], qkv[1], qkv[2]
    energy = jnp.einsum("bhqd,bhkd->bhqk", q, k)
    attn = jax.nn.softmax(energy / (float(E) ** 0.5), axis=-1)
    out = jnp.einsum("bhal,bhlv->bhav", attn, v)
    out = jnp.transpose(out, (0, 2, 1, 3)).reshape(B, N, E)
    return out @ params["w_proj"] + params["b_proj"][0]


def init_params(key, emb_size):
    k1, k2, k3, k4 = jax.random.split(key, 4)
    scale = 0.02
    return {
        "w_qkv": scale * jax.random.normal(k1, (emb_size, 3 * emb_size), jnp.float32),
        "b_qkv": scale * jax.random.normal(k2, (1, 3 * emb_size), jnp.float32),
        "w_proj": scale * jax.random.normal(k3, (emb_size, emb_size), jnp.float32),
        "b_proj": scale * jax.random.normal(k4, (1, emb_size), jnp.float32),
    }


if __name__ == "__main__":
    # Small ViT-like shapes: batch=2, seq=128, emb=256, 4 heads (head_dim=64).
    B, N, E, H = 2, 128, 256, 4

    key = jax.random.PRNGKey(0)
    kx, kp = jax.random.split(key)
    x = jax.random.normal(kx, (B, N, E), jnp.float32)
    params = init_params(kp, E)
    prepared = prepare_params(params, E, H)

    fwd = jax.jit(functools.partial(multi_head_attention_forward, num_heads=H))
    out = jax.block_until_ready(fwd(x, prepared))

    ref = reference_forward(x, params, H)
    assert out.shape == (B, N, E)
    max_err = float(jnp.max(jnp.abs(out - ref)))
    assert jnp.allclose(out, ref, rtol=2e-2, atol=2e-2), f"mismatch vs reference ({max_err})"

    print("KERNEL_OK")
</pallas_src>

<mosaic_0001>
module attributes {stable_mosaic.version = 11 : i64} {
  func.func @_linear_kernel(%arg0: i32, %arg1: i32, %arg2: i32, %arg3: memref<256x256xf32, #tpu.memory_space<vmem>>, %arg4: memref<256x384xbf16, #tpu.memory_space<vmem>>, %arg5: memref<1x384xf32, #tpu.memory_space<vmem>>, %arg6: memref<256x384xbf16, #tpu.memory_space<vmem>>, %arg7: memref<256x384xf32, #tpu.memory_space<vmem>>) attributes {dimension_semantics = [#tpu.dimension_semantics<parallel>, #tpu.dimension_semantics<parallel>, #tpu.dimension_semantics<arbitrary>], iteration_bounds = array<i64: 1, 2, 1>, scalar_prefetch = 0 : i64, scratch_operands = 1 : i64, tpu.core_type = #tpu.core_type<tc>, window_params = [{transform_indices = @transform_0, window_bounds = array<i64: 256, 256>}, {transform_indices = @transform_1, window_bounds = array<i64: 256, 384>}, {transform_indices = @transform_2, window_bounds = array<i64: 1, 384>}, {transform_indices = @transform_3, window_bounds = array<i64: 256, 384>}]} {
    %c0_i32 = arith.constant 0 : i32
    %0 = arith.cmpi eq, %arg2, %c0_i32 : i32
    %1 = arith.extui %0 : i1 to i32
    %c0_i32_0 = arith.constant 0 : i32
    %2 = arith.cmpi ne, %1, %c0_i32_0 : i32
    scf.if %2 {
      %cst_10 = arith.constant 0.000000e+00 : f32
      %13 = vector.broadcast %cst_10 : f32 to vector<256x384xf32>
      %c0_11 = arith.constant 0 : index
      %c0_12 = arith.constant 0 : index
      %14 = vector.load %arg7[%c0_11, %c0_12] : memref<256x384xf32, #tpu.memory_space<vmem>>, vector<256x384xf32>
      tpu.vector_store %arg7[%c0_11, %c0_12], %13 {strides = array<i32>} : memref<256x384xf32, #tpu.memory_space<vmem>>, vector<256x384xf32>,
    } else {
    }
    %c0 = arith.constant 0 : index
    %c0_1 = arith.constant 0 : index
    %3 = vector.load %arg7[%c0, %c0_1] : memref<256x384xf32, #tpu.memory_space<vmem>>, vector<256x384xf32>
    %c0_2 = arith.constant 0 : index
    %c0_3 = arith.constant 0 : index
    %4 = vector.load %arg3[%c0_2, %c0_3] : memref<256x256xf32, #tpu.memory_space<vmem>>, vector<256x256xf32>
    %5 = arith.truncf %4 : vector<256x256xf32> to vector<256x256xbf16>
    %c0_4 = arith.constant 0 : index
    %c0_5 = arith.constant 0 : index
    %6 = vector.load %arg4[%c0_4, %c0_5] : memref<256x384xbf16, #tpu.memory_space<vmem>>, vector<256x384xbf16>
    %cst = arith.constant dense<0.000000e+00> : vector<256x384xf32>
    %7 = tpu.matmul %5, %6, %cst {dimension_numbers = #tpu.dot_dimension_numbers<[1], [0], [0], [1], [0, 0, 1, 1], [], []>} : vector<256x256xbf16>, vector<256x384xbf16>, vector<256x384xf32> -> vector<256x384xf32>
    %8 = arith.addf %3, %7 : vector<256x384xf32>
    %c0_6 = arith.constant 0 : index
    %c0_7 = arith.constant 0 : index
    %9 = vector.load %arg7[%c0_6, %c0_7] : memref<256x384xf32, #tpu.memory_space<vmem>>, vector<256x384xf32>
    tpu.vector_store %arg7[%c0_6, %c0_7], %8 {strides = array<i32>} : memref<256x384xf32, #tpu.memory_space<vmem>>, vector<256x384xf32>,
    %c0_i32_8 = arith.constant 0 : i32
    %10 = arith.cmpi eq, %arg2, %c0_i32_8 : i32
    %11 = arith.extui %10 : i1 to i32
    %c0_i32_9 = arith.constant 0 : i32
    %12 = arith.cmpi ne, %11, %c0_i32_9 : i32
    scf.if %12 {
      %c0_10 = arith.constant 0 : index
      %c0_11 = arith.constant 0 : index
      %13 = vector.load %arg7[%c0_10, %c0_11] : memref<256x384xf32, #tpu.memory_space<vmem>>, vector<256x384xf32>
      %c0_12 = arith.constant 0 : index
      %c0_13 = arith.constant 0 : index
      %14 = vector.load %arg5[%c0_12, %c0_13] : memref<1x384xf32, #tpu.memory_space<vmem>>, vector<1x384xf32>
      %15 = vector.broadcast %14 : vector<1x384xf32> to vector<256x384xf32>
      %16 = arith.addf %13, %15 : vector<256x384xf32>
      %17 = arith.truncf %16 : vector<256x384xf32> to vector<256x384xbf16>
      %c0_14 = arith.constant 0 : index
      %c0_15 = arith.constant 0 : index
      %18 = vector.load %arg6[%c0_14, %c0_15] : memref<256x384xbf16, #tpu.memory_space<vmem>>, vector<256x384xbf16>
      tpu.vector_store %arg6[%c0_14, %c0_15], %17 {strides = array<i32>} : memref<256x384xbf16, #tpu.memory_space<vmem>>, vector<256x384xbf16>,
    } else {
    }
    return
  }
  func.func @transform_0(%arg0: i32, %arg1: i32, %arg2: i32) -> (i32, i32) {
    %c0_i32 = arith.constant 0 : i32
    return %arg0, %arg2 : i32, i32
  }
  func.func @transform_1(%arg0: i32, %arg1: i32, %arg2: i32) -> (i32, i32) {
    %c0_i32 = arith.constant 0 : i32
    return %arg2, %arg1 : i32, i32
  }
  func.func @transform_2(%arg0: i32, %arg1: i32, %arg2: i32) -> (i32, i32) {
    %c0_i32 = arith.constant 0 : i32
    %c0_i32_0 = arith.constant 0 : i32
    return %c0_i32, %arg1 : i32, i32
  }
  func.func @transform_3(%arg0: i32, %arg1: i32, %arg2: i32) -> (i32, i32) {
    %c0_i32 = arith.constant 0 : i32
    return %arg0, %arg1 : i32, i32
  }
}

module attributes {stable_mosaic.version = 11 : i64} {
  func.func @_linear_kernel(%arg0: i32, %arg1: i32, %arg2: i32, %arg3: memref<256x256xbf16, #tpu.memory_space<vmem>>, %arg4: memref<256x256xbf16, #tpu.memory_space<vmem>>, %arg5: memref<1x256xf32, #tpu.memory_space<vmem>>, %arg6: memref<256x256xf32, #tpu.memory_space<vmem>>, %arg7: memref<256x256xf32, #tpu.memory_space<vmem>>) attributes {dimension_semantics = [#tpu.dimension_semantics<parallel>, #tpu.dimension_semantics<parallel>, #tpu.dimension_semantics<arbitrary>], iteration_bounds = array<i64: 1, 1, 1>, scalar_prefetch = 0 : i64, scratch_operands = 1 : i64, tpu.core_type = #tpu.core_type<tc>, window_params = [{transform_indices = @transform_0, window_bounds = array<i64: 256, 256>}, {transform_indices = @transform_1, window_bounds = array<i64: 256, 256>}, {transform_indices = @transform_2, window_bounds = array<i64: 1, 256>}, {transform_indices = @transform_3, window_bounds = array<i64: 256, 256>}]} {
    %c0_i32 = arith.constant 0 : i32
    %0 = arith.cmpi eq, %arg2, %c0_i32 : i32
    %1 = arith.extui %0 : i1 to i32
    %c0_i32_0 = arith.constant 0 : i32
    %2 = arith.cmpi ne, %1, %c0_i32_0 : i32
    scf.if %2 {
      %cst_10 = arith.constant 0.000000e+00 : f32
      %12 = vector.broadcast %cst_10 : f32 to vector<256x256xf32>
      %c0_11 = arith.constant 0 : index
      %c0_12 = arith.constant 0 : index
      %13 = vector.load %arg7[%c0_11, %c0_12] : memref<256x256xf32, #tpu.memory_space<vmem>>, vector<256x256xf32>
      tpu.vector_store %arg7[%c0_11, %c0_12], %12 {strides = array<i32>} : memref<256x256xf32, #tpu.memory_space<vmem>>, vector<256x256xf32>,
    } else {
    }
    %c0 = arith.constant 0 : index
    %c0_1 = arith.constant 0 : index
    %3 = vector.load %arg7[%c0, %c0_1] : memref<256x256xf32, #tpu.memory_space<vmem>>, vector<256x256xf32>
    %c0_2 = arith.constant 0 : index
    %c0_3 = arith.constant 0 : index
    %4 = vector.load %arg3[%c0_2, %c0_3] : memref<256x256xbf16, #tpu.memory_space<vmem>>, vector<256x256xbf16>
    %c0_4 = arith.constant 0 : index
    %c0_5 = arith.constant 0 : index
    %5 = vector.load %arg4[%c0_4, %c0_5] : memref<256x256xbf16, #tpu.memory_space<vmem>>, vector<256x256xbf16>
    %cst = arith.constant dense<0.000000e+00> : vector<256x256xf32>
    %6 = tpu.matmul %4, %5, %cst {dimension_numbers = #tpu.dot_dimension_numbers<[1], [0], [0], [1], [0, 0, 1, 1], [], []>} : vector<256x256xbf16>, vector<256x256xbf16>, vector<256x256xf32> -> vector<256x256xf32>
    %7 = arith.addf %3, %6 : vector<256x256xf32>
    %c0_6 = arith.constant 0 : index
    %c0_7 = arith.constant 0 : index
    %8 = vector.load %arg7[%c0_6, %c0_7] : memref<256x256xf32, #tpu.memory_space<vmem>>, vector<256x256xf32>
    tpu.vector_store %arg7[%c0_6, %c0_7], %7 {strides = array<i32>} : memref<256x256xf32, #tpu.memory_space<vmem>>, vector<256x256xf32>,
    %c0_i32_8 = arith.constant 0 : i32
    %9 = arith.cmpi eq, %arg2, %c0_i32_8 : i32
    %10 = arith.extui %9 : i1 to i32
    %c0_i32_9 = arith.constant 0 : i32
    %11 = arith.cmpi ne, %10, %c0_i32_9 : i32
    scf.if %11 {
      %c0_10 = arith.constant 0 : index
      %c0_11 = arith.constant 0 : index
      %12 = vector.load %arg7[%c0_10, %c0_11] : memref<256x256xf32, #tpu.memory_space<vmem>>, vector<256x256xf32>
      %c0_12 = arith.constant 0 : index
      %c0_13 = arith.constant 0 : index
      %13 = vector.load %arg5[%c0_12, %c0_13] : memref<1x256xf32, #tpu.memory_space<vmem>>, vector<1x256xf32>
      %14 = vector.broadcast %13 : vector<1x256xf32> to vector<256x256xf32>
      %15 = arith.addf %12, %14 : vector<256x256xf32>
      %c0_14 = arith.constant 0 : index
      %c0_15 = arith.constant 0 : index
      %16 = vector.load %arg6[%c0_14, %c0_15] : memref<256x256xf32, #tpu.memory_space<vmem>>, vector<256x256xf32>
      tpu.vector_store %arg6[%c0_14, %c0_15], %15 {strides = array<i32>} : memref<256x256xf32, #tpu.memory_space<vmem>>, vector<256x256xf32>,
    } else {
    }
    return
  }
  func.func @transform_0(%arg0: i32, %arg1: i32, %arg2: i32) -> (i32, i32) {
    %c0_i32 = arith.constant 0 : i32
    return %arg0, %arg2 : i32, i32
  }
  func.func @transform_1(%arg0: i32, %arg1: i32, %arg2: i32) -> (i32, i32) {
    %c0_i32 = arith.constant 0 : i32
    return %arg2, %arg1 : i32, i32
  }
  func.func @transform_2(%arg0: i32, %arg1: i32, %arg2: i32) -> (i32, i32) {
    %c0_i32 = arith.constant 0 : i32
    %c0_i32_0 = arith.constant 0 : i32
    return %c0_i32, %arg1 : i32, i32
  }
  func.func @transform_3(%arg0: i32, %arg1: i32, %arg2: i32) -> (i32, i32) {
    %c0_i32 = arith.constant 0 : i32
    return %arg0, %arg1 : i32, i32
  }
}

module attributes {stable_mosaic.version = 11 : i64} {
  func.func @_flash_mha_kernel(%arg0: i32, %arg1: i32, %arg2: i32, %arg3: memref<1x128x256xbf16, #tpu.memory_space<vmem>>, %arg4: memref<1x128x256xbf16, #tpu.memory_space<vmem>>, %arg5: memref<1x128x256xbf16, #tpu.memory_space<vmem>>, %arg6: memref<1x128x256xbf16, #tpu.memory_space<vmem>>, %arg7: memref<128x4xf32, #tpu.memory_space<vmem>>, %arg8: memref<128x4xf32, #tpu.memory_space<vmem>>, %arg9: memref<128x256xf32, #tpu.memory_space<vmem>>) attributes {dimension_semantics = [#tpu.dimension_semantics<parallel>, #tpu.dimension_semantics<parallel>, #tpu.dimension_semantics<arbitrary>], iteration_bounds = array<i64: 2, 1, 1>, scalar_prefetch = 0 : i64, scratch_operands = 3 : i64, tpu.core_type = #tpu.core_type<tc>, window_params = [{transform_indices = @transform_0, window_bounds = array<i64: 1, 128, 256>}, {transform_indices = @transform_1, window_bounds = array<i64: 1, 128, 256>}, {transform_indices = @transform_2, window_bounds = array<i64: 1, 128, 256>}, {transform_indices = @transform_3, window_bounds = array<i64: 1, 128, 256>}]} {
    %c0_i32 = arith.constant 0 : i32
    %0 = arith.cmpi eq, %arg2, %c0_i32 : i32
    %1 = arith.extui %0 : i1 to i32
    %c0_i32_0 = arith.constant 0 : i32
    %2 = arith.cmpi ne, %1, %c0_i32_0 : i32
    scf.if %2 {
      %cst_38 = arith.constant 0xFF800000 : f32
      %112 = vector.broadcast %cst_38 : f32 to vector<128x4xf32>
      %c0_39 = arith.constant 0 : index
      %c0_40 = arith.constant 0 : index
      %113 = vector.load %arg7[%c0_39, %c0_40] : memref<128x4xf32, #tpu.memory_space<vmem>>, vector<128x4xf32>
      tpu.vector_store %arg7[%c0_39, %c0_40], %112 {strides = array<i32>} : memref<128x4xf32, #tpu.memory_space<vmem>>, vector<128x4xf32>,
      %cst_41 = arith.constant 0.000000e+00 : f32
      %114 = vector.broadcast %cst_41 : f32 to vector<128x4xf32>
      %c0_42 = arith.constant 0 : index
      %c0_43 = arith.constant 0 : index
      %115 = vector.load %arg8[%c0_42, %c0_43] : memref<128x4xf32, #tpu.memory_space<vmem>>, vector<128x4xf32>
      tpu.vector_store %arg8[%c0_42, %c0_43], %114 {strides = array<i32>} : memref<128x4xf32, #tpu.memory_space<vmem>>, vector<128x4xf32>,
      %cst_44 = arith.constant 0.000000e+00 : f32
      %116 = vector.broadcast %cst_44 : f32 to vector<128x256xf32>
      %c0_45 = arith.constant 0 : index
      %c0_46 = arith.constant 0 : index
      %117 = vector.load %arg9[%c0_45, %c0_46] : memref<128x256xf32, #tpu.memory_space<vmem>>, vector<128x256xf32>
      tpu.vector_store %arg9[%c0_45, %c0_46], %116 {strides = array<i32>} : memref<128x256xf32, #tpu.memory_space<vmem>>, vector<128x256xf32>,
    } else {
    }
    %c0 = arith.constant 0 : index
    %c0_1 = arith.constant 0 : index
    %c0_2 = arith.constant 0 : index
    %3 = vector.load %arg3[%c0, %c0_1, %c0_2] : memref<1x128x256xbf16, #tpu.memory_space<vmem>>, vector<1x128x256xbf16>
    %4 = vector.shape_cast %3 : vector<1x128x256xbf16> to vector<128x256xbf16>
    %c0_3 = arith.constant 0 : index
    %c0_4 = arith.constant 0 : index
    %c0_5 = arith.constant 0 : index
    %5 = vector.load %arg4[%c0_3, %c0_4, %c0_5] : memref<1x128x256xbf16, #tpu.memory_space<vmem>>, vector<1x128x256xbf16>
    %6 = vector.shape_cast %5 : vector<1x128x256xbf16> to vector<128x256xbf16>
    %c0_6 = arith.constant 0 : index
    %c0_7 = arith.constant 0 : index
    %c0_8 = arith.constant 0 : index
    %7 = vector.load %arg5[%c0_6, %c0_7, %c0_8] : memref<1x128x256xbf16, #tpu.memory_space<vmem>>, vector<1x128x256xbf16>
    %8 = vector.shape_cast %7 : vector<1x128x256xbf16> to vector<128x256xbf16>
    %c0_9 = arith.constant 0 : index
    %c0_10 = arith.constant 0 : index
    %9 = vector.load %arg7[%c0_9, %c0_10] : memref<128x4xf32, #tpu.memory_space<vmem>>, vector<128x4xf32>
    %c0_11 = arith.constant 0 : index
    %c0_12 = arith.constant 0 : index
    %10 = vector.load %arg8[%c0_11, %c0_12] : memref<128x4xf32, #tpu.memory_space<vmem>>, vector<128x4xf32>
    %11 = vector.extract_strided_slice %4 {offsets = [0, 0], sizes = [128, 64], strides = [1, 1]} : vector<128x256xbf16> to vector<128x64xbf16>
    %12 = vector.extract_strided_slice %6 {offsets = [0, 0], sizes = [128, 64], strides = [1, 1]} : vector<128x256xbf16> to vector<128x64xbf16>
    %13 = vector.extract_strided_slice %8 {offsets = [0, 0], sizes = [128, 64], strides = [1, 1]} : vector<128x256xbf16> to vector<128x64xbf16>
    %cst = arith.constant dense<0.000000e+00> : vector<128x128xf32>
    %14 = tpu.matmul %11, %12, %cst {dimension_numbers = #tpu.dot_dimension_numbers<[1], [1], [0], [0], [0, 0, 1, 0], [], []>} : vector<128x64xbf16>, vector<128x64xbf16>, vector<128x128xf32> -> vector<128x128xf32>
    %15 = vector.extract_strided_slice %9 {offsets = [0, 0], sizes = [128, 1], strides = [1, 1]} : vector<128x4xf32> to vector<128x1xf32>
    %cst_13 = arith.constant dense<0xFF800000> : vector<128xf32>
    %16 = vector.multi_reduction <maximumf>, %14, %cst_13 [1] : vector<128x128xf32> to vector<128xf32>
    %17 = vector.shape_cast %16 : vector<128xf32> to vector<128x1xf32>
    %18 = arith.maximumf %15, %17 : vector<128x1xf32>
    %19 = arith.subf %15, %18 : vector<128x1xf32>
    %20 = math.exp %19 : vector<128x1xf32>
    %21 = vector.broadcast %18 : vector<128x1xf32> to vector<128x128xf32>
    %22 = arith.subf %14, %21 : vector<128x128xf32>
    %23 = math.exp %22 : vector<128x128xf32>
    %24 = vector.extract_strided_slice %10 {offsets = [0, 0], sizes = [128, 1], strides = [1, 1]} : vector<128x4xf32> to vector<128x1xf32>
    %25 = arith.mulf %20, %24 : vector<128x1xf32>
    %cst_14 = arith.constant dense<0.000000e+00> : vector<128xf32>
    %26 = vector.multi_reduction <add>, %23, %cst_14 [1] : vector<128x128xf32> to vector<128xf32>
    %27 = vector.shape_cast %26 : vector<128xf32> to vector<128x1xf32>
    %28 = arith.addf %25, %27 : vector<128x1xf32>
    %29 = arith.truncf %23 : vector<128x128xf32> to vector<128x128xbf16>
    %cst_15 = arith.constant dense<0.000000e+00> : vector<128x64xf32>
    %30 = tpu.matmul %29, %13, %cst_15 {dimension_numbers = #tpu.dot_dimension_numbers<[1], [0], [0], [1], [0, 0, 1, 1], [], []>} : vector<128x128xbf16>, vector<128x64xbf16>, vector<128x64xf32> -> vector<128x64xf32>
    %31 = vector.shape_cast %20 : vector<128x1xf32> to vector<128x1xf32>
    %32 = vector.broadcast %31 : vector<128x1xf32> to vector<128x64xf32>
    %33 = vector.extract_strided_slice %4 {offsets = [0, 64], sizes = [128, 64], strides = [1, 1]} : vector<128x256xbf16> to vector<128x64xbf16>
    %34 = vector.extract_strided_slice %6 {offsets = [0, 64], sizes = [128, 64], strides = [1, 1]} : vector<128x256xbf16> to vector<128x64xbf16>
    %35 = vector.extract_strided_slice %8 {offsets = [0, 64], sizes = [128, 64], strides = [1, 1]} : vector<128x256xbf16> to vector<128x64xbf16>
    %cst_16 = arith.constant dense<0.000000e+00> : vector<128x128xf32>
    %36 = tpu.matmul %33, %34, %cst_16 {dimension_numbers = #tpu.dot_dimension_numbers<[1], [1], [0], [0], [0, 0, 1, 0], [], []>} : vector<128x64xbf16>, vector<128x64xbf16>, vector<128x128xf32> -> vector<128x128xf32>
    %37 = vector.extract_strided_slice %9 {offsets = [0, 1], sizes = [128, 1], strides = [1, 1]} : vector<128x4xf32> to vector<128x1xf32>
    %cst_17 = arith.constant dense<0xFF800000> : vector<128xf32>
    %38 = vector.multi_reduction <maximumf>, %36, %cst_17 [1] : vector<128x128xf32> to vector<128xf32>
    %39 = vector.shape_cast %38 : vector<128xf32> to vector<128x1xf32>
    %40 = arith.maximumf %37, %39 : vector<128x1xf32>
    %41 = arith.subf %37, %40 : vector<128x1xf32>
    %42 = math.exp %41 : vector<128x1xf32>
    %43 = vector.broadcast %40 : vector<128x1xf32> to vector<128x128xf32>
    %44 = arith.subf %36, %43 : vector<128x128xf32>
    %45 = math.exp %44 : vector<128x128xf32>
    %46 = vector.extract_strided_slice %10 {offsets = [0, 1], sizes = [128, 1], strides = [1, 1]} : vector<128x4xf32> to vector<128x1xf32>
    %47 = arith.mulf %42, %46 : vector<128x1xf32>
    %cst_18 = arith.constant dense<0.000000e+00> : vector<128xf32>
    %48 = vector.multi_reduction <add>, %45, %cst_18 [1] : vector<128x128xf32> to vector<128xf32>
    %49 = vector.shape_cast %48 : vector<128xf32> to vector<128x1xf32>
    %50 = arith.addf %47, %49 : vector<128x1xf32>
    %51 = arith.truncf %45 : vector<128x128xf32> to vector<128x128xbf16>
    %cst_19 = arith.constant dense<0.000000e+00> : vector<128x64xf32>
    %52 = tpu.matmul %51, %35, %cst_19 {dimension_numbers = #tpu.dot_dimension_numbers<[1], [0], [0], [1], [0, 0, 1, 1], [], []>} : vector<128x128xbf16>, vector<128x64xbf16>, vector<128x64xf32> -> vector<128x64xf32>
    %53 = vector.shape_cast %42 : vector<128x1xf32> to vector<128x1xf32>
    %54 = vector.broadcast %53 : vector<128x1xf32> to vector<128x64xf32>
    %55 = vector.extract_strided_slice %4 {offsets = [0, 128], sizes = [128, 64], strides = [1, 1]} : vector<128x256xbf16> to vector<128x64xbf16>
    %56 = vector.extract_strided_slice %6 {offsets = [0, 128], sizes = [128, 64], strides = [1, 1]} : vector<128x256xbf16> to vector<128x64xbf16>
    %57 = vector.extract_strided_slice %8 {offsets = [0, 128], sizes = [128, 64], strides = [1, 1]} : vector<128x256xbf16> to vector<128x64xbf16>
    %cst_20 = arith.constant dense<0.000000e+00> : vector<128x128xf32>
    %58 = tpu.matmul %55, %56, %cst_20 {dimension_numbers = #tpu.dot_dimension_numbers<[1], [1], [0], [0], [0, 0, 1, 0], [], []>} : vector<128x64xbf16>, vector<128x64xbf16>, vector<128x128xf32> -> vector<128x128xf32>
    %59 = vector.extract_strided_slice %9 {offsets = [0, 2], sizes = [128, 1], strides = [1, 1]} : vector<128x4xf32> to vector<128x1xf32>
    %cst_21 = arith.constant dense<0xFF800000> : vector<128xf32>
    %60 = vector.multi_reduction <maximumf>, %58, %cst_21 [1] : vector<128x128xf32> to vector<128xf32>
    %61 = vector.shape_cast %60 : vector<128xf32> to vector<128x1xf32>
    %62 = arith.maximumf %59, %61 : vector<128x1xf32>
    %63 = arith.subf %59, %62 : vector<128x1xf32>
    %64 = math.exp %63 : vector<128x1xf32>
    %65 = vector.broadcast %62 : vector<128x1xf32> to vector<128x128xf32>
    %66 = arith.subf %58, %65 : vector<128x128xf32>
    %67 = math.exp %66 : vector<128x128xf32>
    %68 = vector.extract_strided_slice %10 {offsets = [0, 2], sizes = [128, 1], strides = [1, 1]} : vector<128x4xf32> to vector<128x1xf32>
    %69 = arith.mulf %64, %68 : vector<128x1xf32>
    %cst_22 = arith.constant dense<0.000000e+00> : vector<128xf32>
    %70 = vector.multi_reduction <add>, %67, %cst_22 [1] : vector<128x128xf32> to vector<128xf32>
    %71 = vector.shape_cast %70 : vector<128xf32> to vector<128x1xf32>
    %72 = arith.addf %69, %71 : vector<128x1xf32>
    %73 = arith.truncf %67 : vector<128x128xf32> to vector<128x128xbf16>
    %cst_23 = arith.constant dense<0.000000e+00> : vector<128x64xf32>
    %74 = tpu.matmul %73, %57, %cst_23 {dimension_numbers = #tpu.dot_dimension_numbers<[1], [0], [0], [1], [0, 0, 1, 1], [], []>} : vector<128x128xbf16>, vector<128x64xbf16>, vector<128x64xf32> -> vector<128x64xf32>
    %75 = vector.shape_cast %64 : vector<128x1xf32> to vector<128x1xf32>
    %76 = vector.broadcast %75 : vector<128x1xf32> to vector<128x64xf32>
    %77 = vector.extract_strided_slice %4 {offsets = [0, 192], sizes = [128, 64], strides = [1, 1]} : vector<128x256xbf16> to vector<128x64xbf16>
    %78 = vector.extract_strided_slice %6 {offsets = [0, 192], sizes = [128, 64], strides = [1, 1]} : vector<128x256xbf16> to vector<128x64xbf16>
    %79 = vector.extract_strided_slice %8 {offsets = [0, 192], sizes = [128, 64], strides = [1, 1]} : vector<128x256xbf16> to vector<128x64xbf16>
    %cst_24 = arith.constant dense<0.000000e+00> : vector<128x128xf32>
    %80 = tpu.matmul %77, %78, %cst_24 {dimension_numbers = #tpu.dot_dimension_numbers<[1], [1], [0], [0], [0, 0, 1, 0], [], []>} : vector<128x64xbf16>, vector<128x64xbf16>, vector<128x128xf32> -> vector<128x128xf32>
    %81 = vector.extract_strided_slice %9 {offsets = [0, 3], sizes = [128, 1], strides = [1, 1]} : vector<128x4xf32> to vector<128x1xf32>
    %cst_25 = arith.constant dense<0xFF800000> : vector<128xf32>
    %82 = vector.multi_reduction <maximumf>, %80, %cst_25 [1] : vector<128x128xf32> to vector<128xf32>
    %83 = vector.shape_cast %82 : vector<128xf32> to vector<128x1xf32>
    %84 = arith.maximumf %81, %83 : vector<128x1xf32>
    %85 = arith.subf %81, %84 : vector<128x1xf32>
    %86 = math.exp %85 : vector<128x1xf32>
    %87 = vector.broadcast %84 : vector<128x1xf32> to vector<128x128xf32>
    %88 = arith.subf %80, %87 : vector<128x128xf32>
    %89 = math.exp %88 : vector<128x128xf32>
    %90 = vector.extract_strided_slice %10 {offsets = [0, 3], sizes = [128, 1], strides = [1, 1]} : vector<128x4xf32> to vector<128x1xf32>
    %91 = arith.mulf %86, %90 : vector<128x1xf32>
    %cst_26 = arith.constant dense<0.000000e+00> : vector<128xf32>
    %92 = vector.multi_reduction <add>, %89, %cst_26 [1] : vector<128x128xf32> to vector<128xf32>
    %93 = vector.shape_cast %92 : vector<128xf32> to vector<128x1xf32>
    %94 = arith.addf %91, %93 : vector<128x1xf32>
    %95 = arith.truncf %89 : vector<128x128xf32> to vector<128x128xbf16>
    %cst_27 = arith.constant dense<0.000000e+00> : vector<128x64xf32>
    %96 = tpu.matmul %95, %79, %cst_27 {dimension_numbers = #tpu.dot_dimension_numbers<[1], [0], [0], [1], [0, 0, 1, 1], [], []>} : vector<128x128xbf16>, vector<128x64xbf16>, vector<128x64xf32> -> vector<128x64xf32>
    %97 = vector.shape_cast %86 : vector<128x1xf32> to vector<128x1xf32>
    %98 = vector.broadcast %97 : vector<128x1xf32> to vector<128x64xf32>
    %99 = tpu.concatenate %18, %40, %62, %84 in 1 : vector<128x1xf32>, vector<128x1xf32>, vector<128x1xf32>, vector<128x1xf32> -> vector<128x4xf32>
    %c0_28 = arith.constant 0 : index
    %c0_29 = arith.constant 0 : index
    %100 = vector.load %arg7[%c0_28, %c0_29] : memref<128x4xf32, #tpu.memory_space<vmem>>, vector<128x4xf32>
    tpu.vector_store %arg7[%c0_28, %c0_29], %99 {strides = array<i32>} : memref<128x4xf32, #tpu.memory_space<vmem>>, vector<128x4xf32>,
    %101 = tpu.concatenate %28, %50, %72, %94 in 1 : vector<128x1xf32>, vector<128x1xf32>, vector<128x1xf32>, vector<128x1xf32> -> vector<128x4xf32>
    %c0_30 = arith.constant 0 : index
    %c0_31 = arith.constant 0 : index
    %102 = vector.load %arg8[%c0_30, %c0_31] : memref<128x4xf32, #tpu.memory_space<vmem>>, vector<128x4xf32>
    tpu.vector_store %arg8[%c0_30, %c0_31], %101 {strides = array<i32>} : memref<128x4xf32, #tpu.memory_space<vmem>>, vector<128x4xf32>,
    %103 = tpu.concatenate %32, %54, %76, %98 in 1 : vector<128x64xf32>, vector<128x64xf32>, vector<128x64xf32>, vector<128x64xf32> -> vector<128x256xf32>
    %104 = tpu.concatenate %30, %52, %74, %96 in 1 : vector<128x64xf32>, vector<128x64xf32>, vector<128x64xf32>, vector<128x64xf32> -> vector<128x256xf32>
    %c0_32 = arith.constant 0 : index
    %c0_33 = arith.constant 0 : index
    %105 = vector.load %arg9[%c0_32, %c0_33] : memref<128x256xf32, #tpu.memory_space<vmem>>, vector<128x256xf32>
    %106 = arith.mulf %103, %105 : vector<128x256xf32>
    %107 = arith.addf %106, %104 : vector<128x256xf32>
    %c0_34 = arith.constant 0 : index
    %c0_35 = arith.constant 0 : index
    %108 = vector.load %arg9[%c0_34, %c0_35] : memref<128x256xf32, #tpu.memory_space<vmem>>, vector<128x256xf32>
    tpu.vector_store %arg9[%c0_34, %c0_35], %107 {strides = array<i32>} : memref<128x256xf32, #tpu.memory_space<vmem>>, vector<128x256xf32>,
    %c0_i32_36 = arith.constant 0 : i32
    %109 = arith.cmpi eq, %arg2, %c0_i32_36 : i32
    %110 = arith.extui %109 : i1 to i32
    %c0_i32_37 = arith.constant 0 : i32
    %111 = arith.cmpi ne, %110, %c0_i32_37 : i32
    scf.if %111 {
      %c0_38 = arith.constant 0 : index
      %c0_39 = arith.constant 0 : index
      %112 = vector.load %arg8[%c0_38, %c0_39] : memref<128x4xf32, #tpu.memory_space<vmem>>, vector<128x4xf32>
      %113 = tpu.reciprocal %112 {approx = true} : vector<128x4xf32> -> vector<128x4xf32>
      %114 = vector.extract_strided_slice %113 {offsets = [0, 0], sizes = [128, 1], strides = [1, 1]} : vector<128x4xf32> to vector<128x1xf32>
      %115 = vector.shape_cast %114 : vector<128x1xf32> to vector<128x1xf32>
      %116 = vector.broadcast %115 : vector<128x1xf32> to vector<128x64xf32>
      %117 = vector.extract_strided_slice %113 {offsets = [0, 1], sizes = [128, 1], strides = [1, 1]} : vector<128x4xf32> to vector<128x1xf32>
      %118 = vector.shape_cast %117 : vector<128x1xf32> to vector<128x1xf32>
      %119 = vector.broadcast %118 : vector<128x1xf32> to vector<128x64xf32>
      %120 = vector.extract_strided_slice %113 {offsets = [0, 2], sizes = [128, 1], strides = [1, 1]} : vector<128x4xf32> to vector<128x1xf32>
      %121 = vector.shape_cast %120 : vector<128x1xf32> to vector<128x1xf32>
      %122 = vector.broadcast %121 : vector<128x1xf32> to vector<128x64xf32>
      %123 = vector.extract_strided_slice %113 {offsets = [0, 3], sizes = [128, 1], strides = [1, 1]} : vector<128x4xf32> to vector<128x1xf32>
      %124 = vector.shape_cast %123 : vector<128x1xf32> to vector<128x1xf32>
      %125 = vector.broadcast %124 : vector<128x1xf32> to vector<128x64xf32>
      %126 = tpu.concatenate %116, %119, %122, %125 in 1 : vector<128x64xf32>, vector<128x64xf32>, vector<128x64xf32>, vector<128x64xf32> -> vector<128x256xf32>
      %c0_40 = arith.constant 0 : index
      %c0_41 = arith.constant 0 : index
      %127 = vector.load %arg9[%c0_40, %c0_41] : memref<128x256xf32, #tpu.memory_space<vmem>>, vector<128x256xf32>
      %128 = arith.mulf %127, %126 : vector<128x256xf32>
      %129 = arith.truncf %128 : vector<128x256xf32> to vector<128x256xbf16>
      %c0_42 = arith.constant 0 : index
      %c0_43 = arith.constant 0 : index
      %c0_44 = arith.constant 0 : index
      %130 = vector.load %arg6[%c0_42, %c0_43, %c0_44] : memref<1x128x256xbf16, #tpu.memory_space<vmem>>, vector<1x128x256xbf16>
      %131 = vector.shape_cast %130 : vector<1x128x256xbf16> to vector<128x256xbf16>
      %132 = vector.shape_cast %129 : vector<128x256xbf16> to vector<1x128x256xbf16>
      tpu.vector_store %arg6[%c0_42, %c0_43, %c0_44], %132 {strides = array<i32>} : memref<1x128x256xbf16, #tpu.memory_space<vmem>>, vector<1x128x256xbf16>,
    } else {
    }
    return
  }
  func.func @transform_0(%arg0: i32, %arg1: i32, %arg2: i32) -> (i32, i32, i32) {
    %c0_i32 = arith.constant 0 : i32
    %c0_i32_0 = arith.constant 0 : i32
    return %arg0, %arg1, %c0_i32 : i32, i32, i32
  }
  func.func @transform_1(%arg0: i32, %arg1: i32, %arg2: i32) -> (i32, i32, i32) {
    %c1_i32 = arith.constant 1 : i32
    %c0_i32 = arith.constant 0 : i32
    return %arg0, %arg2, %c1_i32 : i32, i32, i32
  }
  func.func @transform_2(%arg0: i32, %arg1: i32, %arg2: i32) -> (i32, i32, i32) {
    %c2_i32 = arith.constant 2 : i32
    %c0_i32 = arith.constant 0 : i32
    return %arg0, %arg2, %c2_i32 : i32, i32, i32
  }
  func.func @transform_3(%arg0: i32, %arg1: i32, %arg2: i32) -> (i32, i32, i32) {
    %c0_i32 = arith.constant 0 : i32
    %c0_i32_0 = arith.constant 0 : i32
    return %arg0, %arg1, %c0_i32 : i32, i32, i32
  }
}

</mosaic_0001>

<bundles_post_ra>
// kernel: multi_head_attention_forward.5
= control target key start
LH: loop header
LB: loop body
LE: loop exit
PB: predicated region body
PF: predicated region fallthrough
CT: control target
= control target key end

     0   :  { %s1581_s0 = inlined_call_operand.vmem [shape: bf16[256,256], index: 0, kind: input, shape index: {}]   ;;  %s1582_s1 = inlined_call_operand.vmem [shape: bf16[256,256], index: 1, kind: input, shape index: {}]   ;;  %s1583_s2 = inlined_call_operand.vmem [shape: f32[1,256], index: 2, kind: input, shape index: {}]   ;;  %s1584_s3 = inlined_call_operand.hbm [shape: f32[256,256], index: 3, kind: output, shape index: {}]  }
   0x1   :  { %v1174_v0 = vld [vmem:[%s1582_s1 + $0x74] ss:$8 sps:$4 sm:$0xff]   ;;  %v1176_v1 = vld [vmem:[%s1582_s1 + $0x70] ss:$8 sps:$4 sm:$0xff]   ;;  %v1177_v2 = vld [vmem:[%s1582_s1 + $0x64] ss:$8 sps:$4 sm:$0xff]  }
   0x2   :  { %531 = vmatprep.subr.bf16.mxu0 %v1174_v0  ;;  %1139 = vmatprep.subr.bf16.mxu1 %v1174_v0  ;;  %v1179_v3 = vld [vmem:[%s1582_s1 + $0x60] ss:$8 sps:$4 sm:$0xff]   ;;  %v1180_v4 = vld [vmem:[%s1582_s1 + $0x54] ss:$8 sps:$4 sm:$0xff]   ;;  %v1182_v5 = vld [vmem:[%s1582_s1 + $0x50] ss:$8 sps:$4 sm:$0xff]  }
   0x3   :  { %532 = vmatpush1.bf16.msra.mxu0 %v1176_v1  ;;  %1155 = vmatpush1.bf16.msra.mxu1 %v1176_v1  ;;  %v1183_v6 = vld [vmem:[%s1582_s1 + $0x44] ss:$8 sps:$4 sm:$0xff]   ;;  %v1185_v7 = vld [vmem:[%s1582_s1 + $0x40] ss:$8 sps:$4 sm:$0xff]   ;;  %v1186_v8 = vld [vmem:[%s1582_s1 + $0x34] ss:$8 sps:$4 sm:$0xff]  }
   0x4   :  { %533 = vmatprep.subr.bf16.mxu0 %v1177_v2  ;;  %1140 = vmatprep.subr.bf16.mxu1 %v1177_v2  ;;  %v1188_v9 = vld [vmem:[%s1582_s1 + $0x30] ss:$8 sps:$4 sm:$0xff]   ;;  %v1189_v10 = vld [vmem:[%s1582_s1 + $0x24] ss:$8 sps:$4 sm:$0xff]   ;;  %v1191_v11 = vld [vmem:[%s1582_s1 + $0x20] ss:$8 sps:$4 sm:$0xff]  }
   0x5   :  { %v1192_v12 = vld [vmem:[%s1582_s1 + $0x14] ss:$8 sps:$4 sm:$0xff]   ;;  %v1224_v13 = vld [vmem:[%s1581_s0 + $0x4] ss:$8 sps:$4 sm:$0xff]   ;;  %v1194_v14 = vld [vmem:[%s1582_s1 + $0x10] ss:$8 sps:$4 sm:$0xff]  }
   0x6   :  { %v1227_v15 = vld [vmem:[%s1581_s0 + $0x84] ss:$8 sps:$4 sm:$0xff]   ;;  %563 = vmatprep.mubr.bf16.mxu0 %v1224_v13  ;;  %v1197_v17 = vld [vmem:[%s1582_s1] ss:$8 sps:$4 sm:$0xff]   ;;  %v1198_v18 = vld [vmem:[%s1582_s1 + $0xf4] ss:$8 sps:$4 sm:$0xff]  }
   0x7   :  { %534 = vmatpush1.bf16.msra.mxu0 %v1179_v3  ;;  %1156 = vmatpush1.bf16.msra.mxu1 %v1179_v3  ;;  %v1195_v16 = vld [vmem:[%s1582_s1 + $0x4] ss:$8 sps:$4 sm:$0xff]   ;;  %v1200_v19 = vld [vmem:[%s1582_s1 + $0xf0] ss:$8 sps:$4 sm:$0xff]   ;;  %v1203_v21 = vld [vmem:[%s1582_s1 + $0xe0] ss:$8 sps:$4 sm:$0xff]  }
   0x8   :  { %535 = vmatprep.subr.bf16.mxu0 %v1180_v4  ;;  %1141 = vmatprep.subr.bf16.mxu1 %v1180_v4  ;;  %v1201_v20 = vld [vmem:[%s1582_s1 + $0xe4] ss:$8 sps:$4 sm:$0xff]   ;;  %v1204_v22 = vld [vmem:[%s1582_s1 + $0xd4] ss:$8 sps:$4 sm:$0xff]   ;;  %v1206_v23 = vld [vmem:[%s1582_s1 + $0xd0] ss:$8 sps:$4 sm:$0xff]  }
   0x9   :  { %643 = vmatprep.mubr.bf16.mxu1 %v1227_v15  ;;  %v1207_v24 = vld [vmem:[%s1582_s1 + $0xc4] ss:$8 sps:$4 sm:$0xff]  }
   0xb   :  { %536 = vmatpush1.bf16.msra.mxu0 %v1182_v5  ;;  %1157 = vmatpush1.bf16.msra.mxu1 %v1182_v5 }
   0xc   :  { %537 = vmatprep.subr.bf16.mxu0 %v1183_v6  ;;  %1142 = vmatprep.subr.bf16.mxu1 %v1183_v6 }
   0xf   :  { %538 = vmatpush1.bf16.msra.mxu0 %v1185_v7  ;;  %1158 = vmatpush1.bf16.msra.mxu1 %v1185_v7 }
  0x10   :  { %539 = vmatprep.subr.bf16.mxu0 %v1186_v8  ;;  %1143 = vmatprep.subr.bf16.mxu1 %v1186_v8 }
  0x13   :  { %540 = vmatpush1.bf16.msra.mxu0 %v1188_v9  ;;  %1159 = vmatpush1.bf16.msra.mxu1 %v1188_v9 }
  0x14   :  { %541 = vmatprep.subr.bf16.mxu0 %v1189_v10  ;;  %1144 = vmatprep.subr.bf16.mxu1 %v1189_v10 }
  0x17   :  { %542 = vmatpush1.bf16.msra.mxu0 %v1191_v11  ;;  %1160 = vmatpush1.bf16.msra.mxu1 %v1191_v11 }
  0x18   :  { %543 = vmatprep.subr.bf16.mxu0 %v1192_v12  ;;  %1145 = vmatprep.subr.bf16.mxu1 %v1192_v12 }
  0x1b   :  { %544 = vmatpush1.bf16.msra.mxu0 %v1194_v14  ;;  %1161 = vmatpush1.bf16.msra.mxu1 %v1194_v14 }
  0x1c   :  { %545 = vmatprep.subr.bf16.mxu0 %v1195_v16  ;;  %1146 = vmatprep.subr.bf16.mxu1 %v1195_v16 }
  0x1f   :  { %546 = vmatpush1.bf16.msra.mxu0 %v1197_v17  ;;  %1162 = vmatpush1.bf16.msra.mxu1 %v1197_v17 }
  0x20   :  { %547 = vmatprep.subr.bf16.mxu0 %v1198_v18  ;;  %1147 = vmatprep.subr.bf16.mxu1 %v1198_v18 }
  0x23   :  { %548 = vmatpush2.bf16.msra.mxu0 %v1200_v19  ;;  %1163 = vmatpush2.bf16.msra.mxu1 %v1200_v19 }
  0x24   :  { %549 = vmatprep.subr.bf16.mxu0 %v1201_v20  ;;  %1148 = vmatprep.subr.bf16.mxu1 %v1201_v20 }
  0x27   :  { %550 = vmatpush2.bf16.msra.mxu0 %v1203_v21  ;;  %1164 = vmatpush2.bf16.msra.mxu1 %v1203_v21 }
  0x28   :  { %551 = vmatprep.subr.bf16.mxu0 %v1204_v22  ;;  %1149 = vmatprep.subr.bf16.mxu1 %v1204_v22 }
  0x29   :  { %8 = vsyncpa [#allocation4], 0  ;;  %v1209_v25 = vld [vmem:[%s1582_s1 + $0xc0] ss:$8 sps:$4 sm:$0xff]   ;;  %v1210_v26 = vld [vmem:[%s1582_s1 + $0xb4] ss:$8 sps:$4 sm:$0xff]   ;;  %v921_v0 = vlaneseq }
  0x2a   :  { %v1212_v27 = vld [vmem:[%s1582_s1 + $0xb0] ss:$8 sps:$4 sm:$0xff]   ;;  %v1213_v28 = vld [vmem:[%s1582_s1 + $0xa4] ss:$8 sps:$4 sm:$0xff]   ;;  %v1215_v29 = vld [vmem:[%s1582_s1 + $0xa0] ss:$8 sps:$4 sm:$0xff]  }
  0x2b   :  { %552 = vmatpush2.bf16.msra.mxu0 %v1206_v23  ;;  %1165 = vmatpush2.bf16.msra.mxu1 %v1206_v23  ;;  %v1216_v30 = vld [vmem:[%s1582_s1 + $0x94] ss:$8 sps:$4 sm:$0xff]   ;;  %v1218_v31 = vld [vmem:[%s1582_s1 + $0x90] ss:$8 sps:$4 sm:$0xff]   ;;  %v1219_v32 = vld [vmem:[%s1582_s1 + $0x84] ss:$8 sps:$4 sm:$0xff]  }
  0x2c   :  { %553 = vmatprep.subr.bf16.mxu0 %v1207_v24  ;;  %1150 = vmatprep.subr.bf16.mxu1 %v1207_v24  ;;  %v1221_v33 = vld [vmem:[%s1582_s1 + $0x80] ss:$8 sps:$4 sm:$0xff]   ;;  %v1228_v36 = vld [vmem:[%s1581_s0 + $0x14] ss:$8 sps:$4 sm:$0xff]   ;;  %v1232_v38 = vld [vmem:[%s1581_s0 + $0x10] ss:$8 sps:$4 sm:$0xff]  }
  0x2d   :  { %v1222_v34 = vld [vmem:[%s1581_s0] ss:$8 sps:$4 sm:$0xff]   ;;  %v1230_v37 = vld [vmem:[%s1581_s0 + $0x94] ss:$8 sps:$4 sm:$0xff]   ;;  %v1233_v39 = vld [vmem:[%s1581_s0 + $0x90] ss:$8 sps:$4 sm:$0xff]  }
  0x2e   :  { %v1225_v35 = vld [vmem:[%s1581_s0 + $0x80] ss:$8 sps:$4 sm:$0xff]   ;;  %v1234_v40 = vld [vmem:[%s1581_s0 + $0x24] ss:$8 sps:$4 sm:$0xff]   ;;  %v1240_v44 = vld [vmem:[%s1581_s0 + $0x34] ss:$8 sps:$4 sm:$0xff]  }
  0x2f   :  { %554 = vmatpush2.bf16.msra.mxu0 %v1209_v25  ;;  %1166 = vmatpush2.bf16.msra.mxu1 %v1209_v25  ;;  %v1236_v41 = vld [vmem:[%s1581_s0 + $0xa4] ss:$8 sps:$4 sm:$0xff]   ;;  %v1238_v42 = vld [vmem:[%s1581_s0 + $0x20] ss:$8 sps:$4 sm:$0xff]   ;;  %v1242_v45 = vld [vmem:[%s1581_s0 + $0xb4] ss:$8 sps:$4 sm:$0xff]  }
  0x30   :  { %555 = vmatprep.subr.bf16.mxu0 %v1210_v26  ;;  %1151 = vmatprep.subr.bf16.mxu1 %v1210_v26  ;;  %v1239_v43 = vld [vmem:[%s1581_s0 + $0xa0] ss:$8 sps:$4 sm:$0xff]   ;;  %v1244_v46 = vld [vmem:[%s1581_s0 + $0x30] ss:$8 sps:$4 sm:$0xff]   ;;  %v1246_v48 = vld [vmem:[%s1581_s0 + $0x44] ss:$8 sps:$4 sm:$0xff]  }
  0x31   :  { %v1245_v47 = vld [vmem:[%s1581_s0 + $0xb0] ss:$8 sps:$4 sm:$0xff]   ;;  %v1248_v49 = vld [vmem:[%s1581_s0 + $0xc4] ss:$8 sps:$4 sm:$0xff]   ;;  %v1250_v50 = vld [vmem:[%s1581_s0 + $0x40] ss:$8 sps:$4 sm:$0xff]  }
  0x32   :  { %v1251_v51 = vld [vmem:[%s1581_s0 + $0xc0] ss:$8 sps:$4 sm:$0xff]   ;;  %v1252_v52 = vld [vmem:[%s1581_s0 + $0x54] ss:$8 sps:$4 sm:$0xff]   ;;  %v1256_v54 = vld [vmem:[%s1581_s0 + $0x50] ss:$8 sps:$4 sm:$0xff]  }
  0x33   :  { %556 = vmatpush2.bf16.msra.mxu0 %v1212_v27  ;;  %1167 = vmatpush2.bf16.msra.mxu1 %v1212_v27  ;;  %v1254_v53 = vld [vmem:[%s1581_s0 + $0xd4] ss:$8 sps:$4 sm:$0xff]   ;;  %v1257_v55 = vld [vmem:[%s1581_s0 + $0xd0] ss:$8 sps:$4 sm:$0xff]   ;;  %v1258_v56 = vld [vmem:[%s1581_s0 + $0x64] ss:$8 sps:$4 sm:$0xff]  }
  0x34   :  { %557 = vmatprep.subr.bf16.mxu0 %v1213_v28  ;;  %1152 = vmatprep.subr.bf16.mxu1 %v1213_v28  ;;  %v1260_v57 = vld [vmem:[%s1581_s0 + $0xe4] ss:$8 sps:$4 sm:$0xff]   ;;  %v1262_v58 = vld [vmem:[%s1581_s0 + $0x60] ss:$8 sps:$4 sm:$0xff]   ;;  %v1264_v60 = vld [vmem:[%s1581_s0 + $0x74] ss:$8 sps:$4 sm:$0xff]  }
  0x35   :  { %v1263_v59 = vld [vmem:[%s1581_s0 + $0xe0] ss:$8 sps:$4 sm:$0xff]   ;;  %v1266_v61 = vld [vmem:[%s1581_s0 + $0xf4] ss:$8 sps:$4 sm:$0xff]   ;;  %v1268_v62 = vld [vmem:[%s1581_s0 + $0x70] ss:$8 sps:$4 sm:$0xff]  }
  0x36   :  { %v1269_v63 = vld [vmem:[%s1581_s0 + $0xf0] ss:$8 sps:$4 sm:$0xff]   ;;  %v922_v1 = vshrl.u32 %v921_v0, 7  ;;  %v919_v3 = vld [vmem:[%s1583_s2] sm:$0x3]  ;;  %s1292_s0 = smov [#allocation3]  }
  0x37   :  { %558 = vmatpush2.bf16.msra.mxu0 %v1215_v29  ;;  %1168 = vmatpush2.bf16.msra.mxu1 %v1215_v29  ;;  %s1064_s2 = sshll.u32 %s1292_s0, 4  ;;  %s1065_s2 = int_to_ptr.vmem [resolvable:$true] %s1064_s2 }
  0x38   :  { %559 = vmatprep.subr.bf16.mxu0 %v1216_v30  ;;  %1153 = vmatprep.subr.bf16.mxu1 %v1216_v30  ;;  %v923_v2 = vsub.s32 0, %v922_v1  ;;  %v927_v4 = vsub.s32 1, %v922_v1  ;;  %s1270_s5 = scalar_lea.vmem %s1065_s2, 8192  ;;  %p1275_p1 = scmp.lt.s32.totalorder %s1065_s2, %s1065_s2 }
  0x39   :  { %p1271_p0 = scmp.ne.s32.totalorder %s1065_s2, %s1270_s5  ;;  %p1276_p2 = scmp.lt.s32.totalorder %s1270_s5, %s1270_s5 }
  0x3a   :  { %v1510_v5 = vrot.slane %v919_v3, %v923_v2  ;;  %v1512_v6 = vrot.slane %v919_v3, %v927_v4 }
  0x3b   :  { %560 = vmatpush2.bf16.msra.mxu0 %v1218_v31  ;;  %1169 = vmatpush2.bf16.msra.mxu1 %v1218_v31  ;;  %p1277_p3 = por %p1276_p2, %p1275_p1 }
  0x3c   :  { %561 = vmatprep.subr.bf16.mxu0 %v1219_v32  ;;  %1154 = vmatprep.subr.bf16.mxu1 %v1219_v32 }
  0x3d   :  { %p1278_p4 = pnand %p1277_p3, %p1271_p0 }
  0x3f   :  { %562 = vmatpush2.bf16.msra.mxu0 %v1221_v33  ;;  %1170 = vmatpush2.bf16.msra.mxu1 %v1221_v33 }
  0x42   :  { %564 = vmatmul.mubr.bf16.vlgmr.msra.gmra.mxu0 %v1222_v34  ;;  %644 = vmatmul.mubr.bf16.vlgmr.msra.gmra.mxu1 %v1225_v35 }
  0x43   :  { %573 = vmatprep.mubr.bf16.mxu0 %v1228_v36  ;;  %653 = vmatprep.mubr.bf16.mxu1 %v1230_v37 }
  0x4a   :  { %574 = vmatmul.mubr.bf16.gmra.mxu0 %v1232_v38  ;;  %654 = vmatmul.mubr.bf16.gmra.mxu1 %v1233_v39 }
  0x4b   :  { %583 = vmatprep.mubr.bf16.mxu0 %v1234_v40  ;;  %663 = vmatprep.mubr.bf16.mxu1 %v1236_v41 }
  0x52   :  { %584 = vmatmul.mubr.bf16.gmra.mxu0 %v1238_v42  ;;  %664 = vmatmul.mubr.bf16.gmra.mxu1 %v1239_v43 }
  0x53   :  { %593 = vmatprep.mubr.bf16.mxu0 %v1240_v44  ;;  %673 = vmatprep.mubr.bf16.mxu1 %v1242_v45 }
  0x5a   :  { %594 = vmatmul.mubr.bf16.gmra.mxu0 %v1244_v46  ;;  %674 = vmatmul.mubr.bf16.gmra.mxu1 %v1245_v47 }
  0x5b   :  { %603 = vmatprep.mubr.bf16.mxu0 %v1246_v48  ;;  %683 = vmatprep.mubr.bf16.mxu1 %v1248_v49 }
  0x62   :  { %604 = vmatmul.mubr.bf16.gmra.mxu0 %v1250_v50  ;;  %684 = vmatmul.mubr.bf16.gmra.mxu1 %v1251_v51 }
  0x63   :  { %613 = vmatprep.mubr.bf16.mxu0 %v1252_v52  ;;  %693 = vmatprep.mubr.bf16.mxu1 %v1254_v53 }
  0x6a   :  { %614 = vmatmul.mubr.bf16.gmra.mxu0 %v1256_v54  ;;  %694 = vmatmul.mubr.bf16.gmra.mxu1 %v1257_v55 }
  0x6b   :  { %623 = vmatprep.mubr.bf16.mxu0 %v1258_v56  ;;  %703 = vmatprep.mubr.bf16.mxu1 %v1260_v57 }
  0x72   :  { %624 = vmatmul.mubr.bf16.gmra.mxu0 %v1262_v58  ;;  %704 = vmatmul.mubr.bf16.gmra.mxu1 %v1263_v59 }
  0x73   :  { %633 = vmatprep.mubr.bf16.mxu0 %v1264_v60  ;;  %713 = vmatprep.mubr.bf16.mxu1 %v1266_v61 }
  0x7a   :  { %634 = vmatmul.mubr.bf16.gmra.mxu0 %v1268_v62  ;;  %714 = vmatmul.mubr.bf16.gmra.mxu1 %v1269_v63 }
 0x102   :  { %v565_v7 = vpop.f32.mrf.mxu0  ;;  %v645_v8 = vpop.f32.mrf.mxu1 }
 0x103   :  { %v931_v9 = vadd.f32 %v1510_v5, %v565_v7  ;;  %v963_v10 = vadd.f32 %v1510_v5, %v645_v8 }
 0x104   :  { %v567_v11 = vpop.f32.mrf.mxu0  ;;  %v647_v12 = vpop.f32.mrf.mxu1 }
 0x105   :  { %995 = vst [vmem:[#allocation3] sm:$0xff] %v931_v9  ;;  %1027 = vst [vmem:[#allocation3 + $0x100] sm:$0xff] %v963_v10  ;;  %v932_v13 = vadd.f32 %v1512_v6, %v567_v11  ;;  %v964_v14 = vadd.f32 %v1512_v6, %v647_v12 }
 0x106   :  { %v569_v15 = vpop.f32.mrf.mxu0  ;;  %v649_v16 = vpop.f32.mrf.mxu1 }
 0x107   :  { %996 = vst [vmem:[#allocation3 + $0x8] sm:$0xff] %v932_v13  ;;  %1028 = vst [vmem:[#allocation3 + $0x108] sm:$0xff] %v964_v14  ;;  %v933_v17 = vadd.f32 %v1510_v5, %v569_v15  ;;  %v965_v18 = vadd.f32 %v1510_v5, %v649_v16 }
 0x108   :  { %v571_v19 = vpop.f32.mrf.mxu0  ;;  %v651_v20 = vpop.f32.mrf.mxu1 }
 0x109   :  { %997 = vst [vmem:[#allocation3 + $0x10] sm:$0xff] %v933_v17  ;;  %1029 = vst [vmem:[#allocation3 + $0x110] sm:$0xff] %v965_v18  ;;  %v934_v21 = vadd.f32 %v1512_v6, %v571_v19  ;;  %v966_v22 = vadd.f32 %v1512_v6, %v651_v20 }
 0x10a   :  { %v575_v23 = vpop.f32.mrf.mxu0  ;;  %v655_v24 = vpop.f32.mrf.mxu1 }
 0x10b   :  { %998 = vst [vmem:[#allocation3 + $0x18] sm:$0xff] %v934_v21  ;;  %1030 = vst [vmem:[#allocation3 + $0x118] sm:$0xff] %v966_v22  ;;  %v935_v25 = vadd.f32 %v1510_v5, %v575_v23  ;;  %v967_v26 = vadd.f32 %v1510_v5, %v655_v24 }
 0x10c   :  { %v577_v27 = vpop.f32.mrf.mxu0  ;;  %v657_v28 = vpop.f32.mrf.mxu1 }
 0x10d   :  { %999 = vst [vmem:[#allocation3 + $0x20] sm:$0xff] %v935_v25  ;;  %1031 = vst [vmem:[#allocation3 + $0x120] sm:$0xff] %v967_v26  ;;  %v936_v29 = vadd.f32 %v1512_v6, %v577_v27  ;;  %v968_v30 = vadd.f32 %v1512_v6, %v657_v28 }
 0x10e   :  { %v579_v31 = vpop.f32.mrf.mxu0  ;;  %v659_v32 = vpop.f32.mrf.mxu1 }
 0x10f   :  { %1000 = vst [vmem:[#allocation3 + $0x28] sm:$0xff] %v936_v29  ;;  %1032 = vst [vmem:[#allocation3 + $0x128] sm:$0xff] %v968_v30  ;;  %v937_v33 = vadd.f32 %v1510_v5, %v579_v31  ;;  %v969_v34 = vadd.f32 %v1510_v5, %v659_v32 }
 0x110   :  { %v581_v35 = vpop.f32.mrf.mxu0  ;;  %v661_v36 = vpop.f32.mrf.mxu1 }
 0x111   :  { %1001 = vst [vmem:[#allocation3 + $0x30] sm:$0xff] %v937_v33  ;;  %1033 = vst [vmem:[#allocation3 + $0x130] sm:$0xff] %v969_v34  ;;  %v938_v37 = vadd.f32 %v1512_v6, %v581_v35  ;;  %v970_v38 = vadd.f32 %v1512_v6, %v661_v36 }
 0x112   :  { %v585_v39 = vpop.f32.mrf.mxu0  ;;  %v665_v40 = vpop.f32.mrf.mxu1 }
 0x113   :  { %1002 = vst [vmem:[#allocation3 + $0x38] sm:$0xff] %v938_v37  ;;  %1034 = vst [vmem:[#allocation3 + $0x138] sm:$0xff] %v970_v38  ;;  %v939_v41 = vadd.f32 %v1510_v5, %v585_v39  ;;  %v971_v42 = vadd.f32 %v1510_v5, %v665_v40 }
 0x114   :  { %v587_v43 = vpop.f32.mrf.mxu0  ;;  %v667_v44 = vpop.f32.mrf.mxu1 }
 0x115   :  { %1003 = vst [vmem:[#allocation3 + $0x40] sm:$0xff] %v939_v41  ;;  %1035 = vst [vmem:[#allocation3 + $0x140] sm:$0xff] %v971_v42  ;;  %v940_v45 = vadd.f32 %v1512_v6, %v587_v43  ;;  %v972_v46 = vadd.f32 %v1512_v6, %v667_v44 }
 0x116   :  { %v589_v47 = vpop.f32.mrf.mxu0  ;;  %v669_v48 = vpop.f32.mrf.mxu1 }
 0x117   :  { %1004 = vst [vmem:[#allocation3 + $0x48] sm:$0xff] %v940_v45  ;;  %1036 = vst [vmem:[#allocation3 + $0x148] sm:$0xff] %v972_v46  ;;  %v941_v49 = vadd.f32 %v1510_v5, %v589_v47  ;;  %v973_v50 = vadd.f32 %v1510_v5, %v669_v48 }
 0x118   :  { %v591_v51 = vpop.f32.mrf.mxu0  ;;  %v671_v52 = vpop.f32.mrf.mxu1 }
 0x119   :  { %1005 = vst [vmem:[#allocation3 + $0x50] sm:$0xff] %v941_v49  ;;  %1037 = vst [vmem:[#allocation3 + $0x150] sm:$0xff] %v973_v50  ;;  %v942_v53 = vadd.f32 %v1512_v6, %v591_v51  ;;  %v974_v54 = vadd.f32 %v1512_v6, %v671_v52 }
 0x11a   :  { %v595_v55 = vpop.f32.mrf.mxu0  ;;  %v675_v56 = vpop.f32.mrf.mxu1 }
 0x11b   :  { %1006 = vst [vmem:[#allocation3 + $0x58] sm:$0xff] %v942_v53  ;;  %1038 = vst [vmem:[#allocation3 + $0x158] sm:$0xff] %v974_v54  ;;  %v943_v57 = vadd.f32 %v1510_v5, %v595_v55  ;;  %v975_v58 = vadd.f32 %v1510_v5, %v675_v56 }
 0x11c   :  { %v597_v59 = vpop.f32.mrf.mxu0  ;;  %v677_v60 = vpop.f32.mrf.mxu1 }
 0x11d   :  { %1007 = vst [vmem:[#allocation3 + $0x60] sm:$0xff] %v943_v57  ;;  %1039 = vst [vmem:[#allocation3 + $0x160] sm:$0xff] %v975_v58  ;;  %v944_v61 = vadd.f32 %v1512_v6, %v597_v59  ;;  %v976_v62 = vadd.f32 %v1512_v6, %v677_v60 }
 0x11e   :  { %v599_v63 = vpop.f32.mrf.mxu0  ;;  %v679_v0 = vpop.f32.mrf.mxu1 }
 0x11f   :  { %1008 = vst [vmem:[#allocation3 + $0x68] sm:$0xff] %v944_v61  ;;  %1040 = vst [vmem:[#allocation3 + $0x168] sm:$0xff] %v976_v62  ;;  %v945_v1 = vadd.f32 %v1510_v5, %v599_v63  ;;  %v977_v2 = vadd.f32 %v1510_v5, %v679_v0 }
 0x120   :  { %v601_v3 = vpop.f32.mrf.mxu0  ;;  %v681_v4 = vpop.f32.mrf.mxu1 }
 0x121   :  { %1009 = vst [vmem:[#allocation3 + $0x70] sm:$0xff] %v945_v1  ;;  %1041 = vst [vmem:[#allocation3 + $0x170] sm:$0xff] %v977_v2  ;;  %v946_v7 = vadd.f32 %v1512_v6, %v601_v3  ;;  %v978_v8 = vadd.f32 %v1512_v6, %v681_v4 }
 0x122   :  { %v605_v9 = vpop.f32.mrf.mxu0  ;;  %v685_v10 = vpop.f32.mrf.mxu1 }
 0x123   :  { %1010 = vst [vmem:[#allocation3 + $0x78] sm:$0xff] %v946_v7  ;;  %1042 = vst [vmem:[#allocation3 + $0x178] sm:$0xff] %v978_v8  ;;  %v947_v11 = vadd.f32 %v1510_v5, %v605_v9  ;;  %v979_v12 = vadd.f32 %v1510_v5, %v685_v10 }
 0x124   :  { %v607_v13 = vpop.f32.mrf.mxu0  ;;  %v687_v14 = vpop.f32.mrf.mxu1 }
 0x125   :  { %1011 = vst [vmem:[#allocation3 + $0x80] sm:$0xff] %v947_v11  ;;  %1043 = vst [vmem:[#allocation3 + $0x180] sm:$0xff] %v979_v12  ;;  %v948_v15 = vadd.f32 %v1512_v6, %v607_v13  ;;  %v980_v16 = vadd.f32 %v1512_v6, %v687_v14 }
 0x126   :  { %v609_v17 = vpop.f32.mrf.mxu0  ;;  %v689_v18 = vpop.f32.mrf.mxu1 }
 0x127   :  { %1012 = vst [vmem:[#allocation3 + $0x88] sm:$0xff] %v948_v15  ;;  %1044 = vst [vmem:[#allocation3 + $0x188] sm:$0xff] %v980_v16  ;;  %v949_v19 = vadd.f32 %v1510_v5, %v609_v17  ;;  %v981_v20 = vadd.f32 %v1510_v5, %v689_v18 }
 0x128   :  { %v611_v21 = vpop.f32.mrf.mxu0  ;;  %v691_v22 = vpop.f32.mrf.mxu1 }
 0x129   :  { %1013 = vst [vmem:[#allocation3 + $0x90] sm:$0xff] %v949_v19  ;;  %1045 = vst [vmem:[#allocation3 + $0x190] sm:$0xff] %v981_v20  ;;  %v950_v23 = vadd.f32 %v1512_v6, %v611_v21  ;;  %v982_v24 = vadd.f32 %v1512_v6, %v691_v22 }
 0x12a   :  { %v615_v25 = vpop.f32.mrf.mxu0  ;;  %v695_v26 = vpop.f32.mrf.mxu1 }
 0x12b   :  { %1014 = vst [vmem:[#allocation3 + $0x98] sm:$0xff] %v950_v23  ;;  %1046 = vst [vmem:[#allocation3 + $0x198] sm:$0xff] %v982_v24  ;;  %v951_v27 = vadd.f32 %v1510_v5, %v615_v25  ;;  %v983_v28 = vadd.f32 %v1510_v5, %v695_v26 }
 0x12c   :  { %v617_v29 = vpop.f32.mrf.mxu0  ;;  %v697_v30 = vpop.f32.mrf.mxu1 }
 0x12d   :  { %1015 = vst [vmem:[#allocation3 + $0xa0] sm:$0xff] %v951_v27  ;;  %1047 = vst [vmem:[#allocation3 + $0x1a0] sm:$0xff] %v983_v28  ;;  %v952_v31 = vadd.f32 %v1512_v6, %v617_v29  ;;  %v984_v32 = vadd.f32 %v1512_v6, %v697_v30 }
 0x12e   :  { %v619_v33 = vpop.f32.mrf.mxu0  ;;  %v699_v34 = vpop.f32.mrf.mxu1 }
 0x12f   :  { %1016 = vst [vmem:[#allocation3 + $0xa8] sm:$0xff] %v952_v31  ;;  %1048 = vst [vmem:[#allocation3 + $0x1a8] sm:$0xff] %v984_v32  ;;  %v953_v35 = vadd.f32 %v1510_v5, %v619_v33  ;;  %v985_v36 = vadd.f32 %v1510_v5, %v699_v34 }
 0x130   :  { %v621_v37 = vpop.f32.mrf.mxu0  ;;  %v701_v38 = vpop.f32.mrf.mxu1 }
 0x131   :  { %1017 = vst [vmem:[#allocation3 + $0xb0] sm:$0xff] %v953_v35  ;;  %1049 = vst [vmem:[#allocation3 + $0x1b0] sm:$0xff] %v985_v36  ;;  %v954_v39 = vadd.f32 %v1512_v6, %v621_v37  ;;  %v986_v40 = vadd.f32 %v1512_v6, %v701_v38 }
 0x132   :  { %v625_v41 = vpop.f32.mrf.mxu0  ;;  %v705_v42 = vpop.f32.mrf.mxu1 }
 0x133   :  { %1018 = vst [vmem:[#allocation3 + $0xb8] sm:$0xff] %v954_v39  ;;  %1050 = vst [vmem:[#allocation3 + $0x1b8] sm:$0xff] %v986_v40  ;;  %v955_v43 = vadd.f32 %v1510_v5, %v625_v41  ;;  %v987_v44 = vadd.f32 %v1510_v5, %v705_v42 }
 0x134   :  { %v627_v45 = vpop.f32.mrf.mxu0  ;;  %v707_v46 = vpop.f32.mrf.mxu1 }
 0x135   :  { %1019 = vst [vmem:[#allocation3 + $0xc0] sm:$0xff] %v955_v43  ;;  %1051 = vst [vmem:[#allocation3 + $0x1c0] sm:$0xff] %v987_v44  ;;  %v956_v47 = vadd.f32 %v1512_v6, %v627_v45  ;;  %v988_v48 = vadd.f32 %v1512_v6, %v707_v46 }
 0x136   :  { %v629_v49 = vpop.f32.mrf.mxu0  ;;  %v709_v50 = vpop.f32.mrf.mxu1 }
 0x137   :  { %1020 = vst [vmem:[#allocation3 + $0xc8] sm:$0xff] %v956_v47  ;;  %1052 = vst [vmem:[#allocation3 + $0x1c8] sm:$0xff] %v988_v48  ;;  %v957_v51 = vadd.f32 %v1510_v5, %v629_v49  ;;  %v989_v52 = vadd.f32 %v1510_v5, %v709_v50 }
 0x138   :  { %v631_v53 = vpop.f32.mrf.mxu0  ;;  %v711_v54 = vpop.f32.mrf.mxu1 }
 0x139   :  { %1021 = vst [vmem:[#allocation3 + $0xd0] sm:$0xff] %v957_v51  ;;  %1053 = vst [vmem:[#allocation3 + $0x1d0] sm:$0xff] %v989_v52  ;;  %v958_v55 = vadd.f32 %v1512_v6, %v631_v53  ;;  %v990_v56 = vadd.f32 %v1512_v6, %v711_v54 }
 0x13a   :  { %v635_v57 = vpop.f32.mrf.mxu0  ;;  %v715_v58 = vpop.f32.mrf.mxu1 }
 0x13b   :  { %1022 = vst [vmem:[#allocation3 + $0xd8] sm:$0xff] %v958_v55  ;;  %1054 = vst [vmem:[#allocation3 + $0x1d8] sm:$0xff] %v990_v56  ;;  %v959_v59 = vadd.f32 %v1510_v5, %v635_v57  ;;  %v991_v60 = vadd.f32 %v1510_v5, %v715_v58 }
 0x13c   :  { %v637_v61 = vpop.f32.mrf.mxu0  ;;  %v717_v62 = vpop.f32.mrf.mxu1 }
 0x13d   :  { %1023 = vst [vmem:[#allocation3 + $0xe0] sm:$0xff] %v959_v59  ;;  %1055 = vst [vmem:[#allocation3 + $0x1e0] sm:$0xff] %v991_v60  ;;  %v960_v63 = vadd.f32 %v1512_v6, %v637_v61  ;;  %v992_v0 = vadd.f32 %v1512_v6, %v717_v62 }
 0x13e   :  { %v639_v1 = vpop.f32.mrf.mxu0  ;;  %v719_v2 = vpop.f32.mrf.mxu1 }
 0x13f   :  { %1024 = vst [vmem:[#allocation3 + $0xe8] sm:$0xff] %v960_v63  ;;  %1056 = vst [vmem:[#allocation3 + $0x1e8] sm:$0xff] %v992_v0  ;;  %v961_v3 = vadd.f32 %v1510_v5, %v639_v1  ;;  %v993_v4 = vadd.f32 %v1510_v5, %v719_v2 }
 0x140   :  { %v641_v7 = vpop.f32.mrf.mxu0  ;;  %v721_v8 = vpop.f32.mrf.mxu1 }
 0x141   :  { %1025 = vst [vmem:[#allocation3 + $0xf0] sm:$0xff] %v961_v3  ;;  %1057 = vst [vmem:[#allocation3 + $0x1f0] sm:$0xff] %v993_v4  ;;  %v962_v9 = vadd.f32 %v1512_v6, %v641_v7  ;;  %v994_v10 = vadd.f32 %v1512_v6, %v721_v8 }
 0x143   :  { %1026 = vst [vmem:[#allocation3 + $0xf8] sm:$0xff] %v962_v9  ;;  %1058 = vst [vmem:[#allocation3 + $0x1f8] sm:$0xff] %v994_v10 }
 0x144   :  { %1281 = shalt.err (!%p1278_p4)
}
 0x145   :  { %s1293_s6 = smov 256   ;;  %s1294_s1 = smov 16  }
 0x146   :  { %1070 = dma.vmem_to_hbm [thread:$0]  %s1065_s2, 8192, %s1584_s3, [#allocation4], %s1293_s6, %s1293_s6, %s1294_s1  }
 0x147   :  { %1290 = dma.done.wait [#allocation4], 8192  }
 0x148   :  { %1291 = vsyncadd [#allocation4], 4294959104 }
 0x149   :  { %1074 = vsyncpa [#allocation4], 1 }

// kernel: multi_head_attention_forward.3
= control target key start
LH: loop header
LB: loop body
LE: loop exit
PB: predicated region body
PF: predicated region fallthrough
CT: control target
= control target key end

     0   :  { %s3512_s0 = inlined_call_operand.hbm [shape: f32[256,256], index: 0, kind: input, shape index: {}]   ;;  %s3513_s1 = inlined_call_operand.hbm [shape: bf16[256,768], index: 1, kind: input, shape index: {}]   ;;  %s3514_s2 = inlined_call_operand.hbm [shape: f32[1,768], index: 2, kind: input, shape index: {}]   ;;  %s3515_s3 = inlined_call_operand.vmem [shape: bf16[256,768], index: 3, kind: output, shape index: {}]  }
   0x1   :  { %3518 = sst [smem:[#allocation12_spill]] %s3513_s1 }
   0x2   :  { %8 = vsyncpa [#allocation4], 0 }
   0x3   :  { %9 = vsyncpa [#allocation6], 0 }
   0x4   :  { %11 = vsyncpa [#allocation6 + $0x1], 0  ;;  %s2999_s12 = smov 0   ;;  %s3001_s13 = smov 0  }
   0x5   :  { %s3003_s14 = smov 0   ;;  %s3005_s15 = smov 0  }
   0x6   :  { %s3007_s16 = smov 0   ;;  %s3009_s17 = smov 0  }
   0x7 LB: > { %s32_s18 = sadd.s32 1, %s2965_s16  ;;  %s73_s19 = sadd.s32 1, %s2957_s14  ;;  %s2969_s17 = sphi %s3009_s17, %s17_s17   ;;  %s2965_s16 = sphi %s3007_s16, %s3533_s16   ;;  %s2961_s15 = sphi %s3005_s15, %s3532_s15   ;;  %s2957_s14 = sphi %s3003_s14, %s3531_s14   ;;  %s2953_s13 = sphi %s3001_s13, %s3530_s13   ;;  %s2949_s12 = sphi %s2999_s12, %s3529_s12  }
   0x8   : > { %p34_p0 = scmp.ge.s32.totalorder %s32_s18, 2  ;;  %p80_p1 = scmp.ne.s32.totalorder %s2957_s14, %s2953_s13 }
   0x9   : > { %p81_p2 = scmp.eq.s32.totalorder %s2969_s17, 0  ;;  %p2713_p4 = scmp.lt.s32.totalorder %s2969_s17, 2 }
   0xa   : > { %s3535_s18 = smov (%p34_p0, %s32_s18), 0  ;;  %s183_s21 = sand.u32 1, %s2969_s17  }
   0xb   : > { %3519 = sst [smem:[#allocation11_spill]] %s3535_s18  ;;  %p82_p3 = por %p81_p2, %p80_p1 }
   0xc   : > { %s69_s20 = ssub.s32 %s2965_s16, %s3535_s18  ;;  %s185_s22 = sand.u32 1, %s2957_s14  }
   0xd   : > { %p71_p5 = scmp.eq.s32.totalorder %s69_s20, 0  ;;  %s2510_s23 = smul.u32 192, %s2965_s16 }
   0xe   : > { %s2689_s25 = smul.u32 384, %s185_s22  ;;  %s3520_s1 = sld [smem:[#allocation12_spill]] }
   0xf   : > { %s3046_s24 = scalar_select %p71_p5, %s2957_s14, %s73_s19  }
  0x10   : > { %p3053_p6 = pnand %p2713_p4, %p82_p3  ;;  %s187_s30 = scalar_lea.vmem [#allocation5], %s2689_s25 }
  0x11   : > { %s197_s4 = sshll.u32 %s187_s30, 4  ;;  %s3057_s5 = scalar_lea.sflag [#allocation6], %s183_s21  ;;  %s198_s4 = int_to_ptr.vmem [resolvable:$true] %s197_s4 }
  0x12   : > { %p3516_p7 = pneg %p3053_p6  ;;  %s2846_s6 = scalar_lea.vmem %s198_s4, 6144 }
  0x13   : > { %p2847_p8 = scmp.ne.s32.totalorder %s198_s4, %s2846_s6  ;;  %s2971_s7 = smov [#allocation5]  }
  0x14   : > { %s196_s28 = scalar_lea.hbm %s3520_s1, %s2510_s23  ;;  %s2851_s8 = sshll.u32 %s2971_s7, 4  ;;  %s2852_s8 = int_to_ptr.vmem [resolvable:$false] %s2851_s8 }
  0x15   : > { %p2849_p9 = pnand %p2847_p8, %p3516_p7  ;;  %s2853_s9 = scalar_lea.vmem %s2852_s8, 12288 }
  0x16   : > { %p2854_p11 = scmp.lt.s32.totalorder %s198_s4, %s2852_s8  ;;  %p2855_p12 = scmp.lt.s32.totalorder %s2853_s9, %s2846_s6 }
  0x17   : > { %p2850_p10 = pneg %p2849_p9 }
  0x18   : > { %p2856_p13 = por %p2855_p12, %p2854_p11 }
  0x1a   : > { %p2857_p0 = pnand %p2856_p13, %p2850_p10 }
  0x1c   : > { %2860 = shalt.err (!%p2857_p0)
}
  0x1d   : > { %s2972_s10 = smov 384   ;;  %s2973_s11 = smov 192  }
  0x1e   : > { %s2974_s19 = smov 12   ;;  %s3068_s20 = sadd.s32 4294967295, %s2969_s17  }
  0x1f   : > { %2708 = dma.hbm_to_vmem [thread:$0]  (!%p3053_p6), %s196_s28, 6144, %s198_s4, %s3057_s5, %s2972_s10, %s2973_s11, %s2974_s19  }
  0x20   : > { %p86_p2 = scmp.ne.s32.totalorder %s2953_s13, %s2949_s12  ;;  %p87_p3 = scmp.eq.s32.totalorder %s3068_s20, 0 }
  0x21   : > { %p138_p4 = scmp.eq.s32.totalorder %s3068_s20, 1  ;;  %p2324_p5 = scmp.ge.s32.totalorder %s2969_s17, 1 }
  0x22   : > { %p151_p8 = scmp.lt.s32.totalorder %s2969_s17, 3  ;;  %p3078_p9 = por %p87_p3, %p86_p2 }
  0x23   : > { %p3085_p10 = por %p138_p4, %p80_p1  ;;  %s2975_s12 = smov [#allocation3]  }
  0x24   : > { %p3089_p11 = pnand %p2324_p5, %p151_p8  ;;  %s169_s26 = sshll.u32 %s2975_s12, 4  ;;  %s170_s26 = int_to_ptr.vmem [resolvable:$true] %s169_s26 }
  0x25   : > { %s3523_s23 = scalar_select %p3085_p10, 1, 0 }
  0x26   : > { %p2701_p12 = pneg %p3089_p11  ;;  %s2690_s28 = smul.u32 3, %s185_s22 }
  0x27   : > { %s2511_s30 = smul.u32 48, %s2965_s16  ;;  %s2872_s4 = scalar_lea.vmem %s170_s26, 8192 }
  0x28   : > { %p3097_p13 = pnand %p2701_p12, %p87_p3  ;;  %p2873_p0 = scmp.ne.s32.totalorder %s170_s26, %s2872_s4 }
  0x29   : > { %p2880_p5 = scmp.lt.s32.totalorder %s170_s26, %s170_s26  ;;  %p2881_p8 = scmp.lt.s32.totalorder %s2872_s4, %s2872_s4 }
  0x2a   : > { %p2863_p1 = pneg %p3097_p13 }
  0x2b   : > { %p2882_p7 = por %p2881_p8, %p2880_p5 }
  0x2c   : > { %p2875_p2 = pnand %p2873_p0, %p2863_p1 }
  0x2e   : > { %p2876_p4 = pneg %p2875_p2 }
  0x30   : > { %p2883_p10 = pnand %p2882_p7, %p2876_p4 }
  0x32   : > { %2886 = shalt.err (!%p2883_p10)
}
  0x33   : > { %s2976_s6 = smov 256   ;;  %s2977_s7 = smov 16  }
  0x34   : > { %2704 = dma.hbm_to_vmem [thread:$0]  (!%p3097_p13), %s3512_s0, 8192, %s170_s26, [#allocation4], %s2976_s6, %s2976_s6, %s2977_s7  }
  0x35   : > { %s217_s11 = scalar_lea.hbm %s3514_s2, %s2511_s30  ;;  %s211_s19 = scalar_lea.vmem [#allocation7], %s2690_s28 }
  0x36   : > { %s219_s12 = sshll.u32 %s211_s19, 4  ;;  %p3526_p7 = pneg %p3053_p6  ;;  %s220_s12 = int_to_ptr.vmem [resolvable:$true] %s219_s12 }
  0x37   : > { %s2900_s4 = scalar_lea.vmem %s220_s12, 48  ;;  %s2978_s1 = smov [#allocation7]  }
  0x38   : > { %p2901_p12 = scmp.ne.s32.totalorder %s220_s12, %s2900_s4  ;;  %s2905_s18 = sshll.u32 %s2978_s1, 4  ;;  %s2906_s18 = int_to_ptr.vmem [resolvable:$false] %s2905_s18 }
  0x39   : > { %s2907_s27 = scalar_lea.vmem %s2906_s18, 96  ;;  %p2908_p0 = scmp.lt.s32.totalorder %s220_s12, %s2906_s18 }
  0x3a   : > { %p2903_p10 = pnand %p2901_p12, %p3526_p7  ;;  %p2909_p2 = scmp.lt.s32.totalorder %s2907_s27, %s2900_s4 }
  0x3c   : > { %p2904_p1 = pneg %p2903_p10  ;;  %p2910_p13 = por %p2909_p2, %p2908_p0 }
  0x3e   : > { %p2911_p4 = pnand %p2910_p13, %p2904_p1 }
  0x40   : > { %2914 = shalt.err (!%p2911_p4)
}
  0x41   : > { %2711 = dma.hbm_to_vmem [thread:$0]  (!%p3053_p6), %s217_s11, 48, %s220_s12, %s3057_s5  }
  0x42   : > { %228 = sbr.rel (%p3089_p11) target bundleno = 474 (0x1da), region = 32 }
  0x47   : > { %2940 = dma.done.wait (%p87_p3), [#allocation4], 8192  }
  0x48   : > { %2942 = vsyncadd (%p87_p3), [#allocation4], 4294959104  ;;  %s234_s1 = sand.u32 1, %s3068_s20   ;;  %s236_s18 = sand.u32 1, %s2953_s13  }
  0x49   : > { %s3130_s26 = smul.u32 384, %s236_s18  ;;  %s235_s29 = scalar_lea.sflag [#allocation6], %s234_s1 }
  0x4b   : > { %s3133_s5 = scalar_lea.vmem [#allocation5], %s3130_s26 }
  0x4c   : > { %2944 = dma.done.wait (%p3078_p9), %s235_s29, 6192  }
  0x4d   : > { %2946 = vsyncadd (%p3078_p9), %s235_s29, 4294961104  ;;  %v2769_v0 = vld [vmem:[%s3133_s5 + $0xac] ss:$12 sps:$4 sm:$0xff]   ;;  %v2771_v1 = vld [vmem:[%s3133_s5 + $0xa8] ss:$12 sps:$4 sm:$0xff]   ;;  %s2692_s20 = smul.u32 3, %s236_s18 }
  0x4e   : > { %894 = vmatprep.subr.bf16.mxu0 %v2769_v0  ;;  %v2772_v2 = vld [vmem:[%s3133_s5 + $0x94] ss:$12 sps:$4 sm:$0xff]   ;;  %v2774_v3 = vld [vmem:[%s3133_s5 + $0x90] ss:$12 sps:$4 sm:$0xff]   ;;  %v2777_v5 = vld [vmem:[%s3133_s5 + $0x78] ss:$12 sps:$4 sm:$0xff]  }
  0x4f   : > { %895 = vmatpush1.bf16.msra.mxu0 %v2771_v1  ;;  %v2775_v4 = vld [vmem:[%s3133_s5 + $0x7c] ss:$12 sps:$4 sm:$0xff]   ;;  %v2778_v6 = vld [vmem:[%s3133_s5 + $0x64] ss:$12 sps:$4 sm:$0xff]   ;;  %v2780_v8 = vld [vmem:[%s3133_s5 + $0x60] ss:$12 sps:$4 sm:$0xff]  }
  0x50   : > { %896 = vmatprep.subr.bf16.mxu0 %v2772_v2  ;;  %v2789_v7 = vld [vmem:[%s3133_s5 + $0x170] ss:$12 sps:$4 sm:$0xff]   ;;  %v2781_v10 = vld [vmem:[%s3133_s5 + $0x4c] ss:$12 sps:$4 sm:$0xff]   ;;  %v2783_v13 = vld [vmem:[%s3133_s5 + $0x48] ss:$12 sps:$4 sm:$0xff]  }
  0x51   : > { %2577 = vmatprep.subr.bf16.mxu1 %v2789_v7  ;;  %v2791_v9 = vld [vmem:[%s3133_s5 + $0xb0] ss:$12 sps:$4 sm:$0xff]   ;;  %v2794_v11 = vld [vmem:[%s3133_s5 + $0x158] ss:$12 sps:$4 sm:$0xff]   ;;  %v2784_v14 = vld [vmem:[%s3133_s5 + $0x34] ss:$12 sps:$4 sm:$0xff]  }
  0x52   : > { %2578 = vmatpush3.bf16.msra.mxu1 %v2791_v9  ;;  %v2796_v12 = vld [vmem:[%s3133_s5 + $0x98] ss:$12 sps:$4 sm:$0xff]   ;;  %v2799_v15 = vld [vmem:[%s3133_s5 + $0x140] ss:$12 sps:$4 sm:$0xff]   ;;  %v2786_v17 = vld [vmem:[%s3133_s5 + $0x30] ss:$12 sps:$4 sm:$0xff]  }
  0x53   : > { %897 = vmatpush1.bf16.msra.mxu0 %v2774_v3  ;;  %2579 = vmatprep.subr.bf16.mxu1 %v2794_v11  ;;  %v2801_v16 = vld [vmem:[%s3133_s5 + $0x80] ss:$12 sps:$4 sm:$0xff]   ;;  %v2804_v18 = vld [vmem:[%s3133_s5 + $0x128] ss:$12 sps:$4 sm:$0xff]   ;;  %v2790_v21 = vld [vmem:[%s3133_s5 + $0x18] ss:$12 sps:$4 sm:$0xff]  }
  0x54   : > { %898 = vmatprep.subr.bf16.mxu0 %v2775_v4  ;;  %v2787_v19 = vld [vmem:[%s3133_s5 + $0x1c] ss:$12 sps:$4 sm:$0xff]   ;;  %v2792_v23 = vld [vmem:[%s3133_s5 + $0x4] ss:$12 sps:$4 sm:$0xff]   ;;  %v2795_v26 = vld [vmem:[%s3133_s5] ss:$12 sps:$4 sm:$0xff]  }
  0x55   : > { %v2806_v20 = vld [vmem:[%s3133_s5 + $0x68] ss:$12 sps:$4 sm:$0xff]   ;;  %v2809_v22 = vld [vmem:[%s3133_s5 + $0x110] ss:$12 sps:$4 sm:$0xff]   ;;  %v2814_v25 = vld [vmem:[%s3133_s5 + $0xf8] ss:$12 sps:$4 sm:$0xff]  }
  0x56   : > { %2580 = vmatpush3.bf16.msra.mxu1 %v2796_v12  ;;  %v2811_v24 = vld [vmem:[%s3133_s5 + $0x50] ss:$12 sps:$4 sm:$0xff]   ;;  %v2797_v27 = vld [vmem:[%s3133_s5 + $0x16c] ss:$12 sps:$4 sm:$0xff]   ;;  %v2800_v30 = vld [vmem:[%s3133_s5 + $0x168] ss:$12 sps:$4 sm:$0xff]  }
  0x57   : > { %899 = vmatpush1.bf16.msra.mxu0 %v2777_v5  ;;  %2581 = vmatprep.subr.bf16.mxu1 %v2799_v15  ;;  %v2816_v28 = vld [vmem:[%s3133_s5 + $0x38] ss:$12 sps:$4 sm:$0xff]   ;;  %v2819_v29 = vld [vmem:[%s3133_s5 + $0xe0] ss:$12 sps:$4 sm:$0xff]   ;;  %v2805_v32 = vld [vmem:[%s3133_s5 + $0x150] ss:$12 sps:$4 sm:$0xff]  }
  0x58   : > { %900 = vmatprep.subr.bf16.mxu0 %v2778_v6  ;;  %v2802_v31 = vld [vmem:[%s3133_s5 + $0x154] ss:$12 sps:$4 sm:$0xff]   ;;  %v479_v35 = vld [vmem:[#allocation3 + $0x8] sm:$0xff]  ;;  %v481_v36 = vld [vmem:[#allocation3 + $0x18] sm:$0xff]  ;;  %s247_s21 = scalar_lea.vmem [#allocation7], %s2692_s20  ;;  %s3193_s25 = scalar_lea.vmem [#allocation8], %s3130_s26 }
  0x59   : > { %v2821_v33 = vld [vmem:[%s3133_s5 + $0x20] ss:$12 sps:$4 sm:$0xff]   ;;  %v2824_v34 = vld [vmem:[%s3133_s5 + $0xc8] ss:$12 sps:$4 sm:$0xff]   ;;  %v543_v39 = vpack.c.bf16 %v481_v36, %v479_v35  ;;  %v2810_v43 = vld [vmem:[%s3133_s5 + $0x138] ss:$12 sps:$4 sm:$0xff]  }
  0x5a   : > { %2582 = vmatpush3.bf16.msra.mxu1 %v2801_v16  ;;  %v2807_v37 = vld [vmem:[%s3133_s5 + $0x13c] ss:$12 sps:$4 sm:$0xff]   ;;  %v478_v40 = vld [vmem:[#allocation3] sm:$0xff]  ;;  %v480_v41 = vld [vmem:[#allocation3 + $0x10] sm:$0xff]  ;;  %p3527_p6 = scmp.ne.s32.totalorder %s3523_s23, 0 }
  0x5b   : > { %901 = vmatpush1.bf16.msra.mxu0 %v2780_v8  ;;  %2583 = vmatprep.subr.bf16.mxu1 %v2804_v18  ;;  %v2826_v38 = vld [vmem:[%s3133_s5 + $0x8] ss:$12 sps:$4 sm:$0xff]   ;;  %v485_v44 = vld [vmem:[#allocation3 + $0x38] sm:$0xff]  ;;  %v2812_v45 = vld [vmem:[%s3133_s5 + $0x124] ss:$12 sps:$4 sm:$0xff]   ;;  %v542_v46 = vpack.c.bf16 %v480_v41, %v478_v40  ;;  %s2576_s28 = smul.u32 (%p3527_p6), 12, %s2961_s15 }
  0x5c   : > { %902 = vmatprep.subr.bf16.mxu0 %v2781_v10  ;;  %1119 = vmatprep.mubr.bf16.mxu1 %v543_v39  ;;  %v483_v42 = vld [vmem:[#allocation3 + $0x28] sm:$0xff]  ;;  %v482_v50 = vld [vmem:[#allocation3 + $0x20] sm:$0xff]  ;;  %v484_v51 = vld [vmem:[#allocation3 + $0x30] sm:$0xff] }
  0x5d   : > { %926 = vmatprep.mubr.bf16.mxu0 %v543_v39  ;;  %v545_v47 = vpack.c.bf16 %v485_v44, %v483_v42  ;;  %v2815_v48 = vld [vmem:[%s3133_s5 + $0x120] ss:$12 sps:$4 sm:$0xff]   ;;  %v489_v53 = vld [vmem:[#allocation3 + $0x58] sm:$0xff]  ;;  %v2820_v54 = vld [vmem:[%s3133_s5 + $0x108] ss:$12 sps:$4 sm:$0xff]   ;;  %v544_v56 = vpack.c.bf16 %v484_v51, %v482_v50  ;;  %s3370_s6 = scalar_lea.vmem (%p3527_p6), %s3515_s3, %s2576_s28 }
  0x5e   : > { %2584 = vmatpush3.bf16.msra.mxu1 %v2806_v20  ;;  %v2817_v49 = vld [vmem:[%s3133_s5 + $0x10c] ss:$12 sps:$4 sm:$0xff]   ;;  %v2822_v55 = vld [vmem:[%s3133_s5 + $0xf4] ss:$12 sps:$4 sm:$0xff]   ;;  %v2825_v58 = vld [vmem:[%s3133_s5 + $0xf0] ss:$12 sps:$4 sm:$0xff]  }
  0x5f   : > { %903 = vmatpush1.bf16.msra.mxu0 %v2783_v13  ;;  %2585 = vmatprep.subr.bf16.mxu1 %v2809_v22  ;;  %v487_v52 = vld [vmem:[#allocation3 + $0x48] sm:$0xff]  ;;  %v486_v60 = vld [vmem:[#allocation3 + $0x40] sm:$0xff]  ;;  %v488_v61 = vld [vmem:[#allocation3 + $0x50] sm:$0xff] }
  0x60   : > { %904 = vmatprep.subr.bf16.mxu0 %v2784_v14  ;;  %v547_v57 = vpack.c.bf16 %v489_v53, %v487_v52  ;;  %v2827_v59 = vld [vmem:[%s3133_s5 + $0xdc] ss:$12 sps:$4 sm:$0xff]   ;;  %v2829_v0 = vld [vmem:[%s3133_s5 + $0xd8] ss:$12 sps:$4 sm:$0xff]   ;;  %v546_v2 = vpack.c.bf16 %v488_v61, %v486_v60  ;;  %v2832_v4 = vld [vmem:[%s3133_s5 + $0xc0] ss:$12 sps:$4 sm:$0xff]  }
  0x61   : > { %v491_v62 = vld [vmem:[#allocation3 + $0x68] sm:$0xff]  ;;  %v493_v63 = vld [vmem:[#allocation3 + $0x78] sm:$0xff]  ;;  %v2830_v1 = vld [vmem:[%s3133_s5 + $0xc4] ss:$12 sps:$4 sm:$0xff]  }
  0x62   : > { %2586 = vmatpush3.bf16.msra.mxu1 %v2811_v24  ;;  %v549_v3 = vpack.c.bf16 %v493_v63, %v491_v62  ;;  %v490_v5 = vld [vmem:[#allocation3 + $0x60] sm:$0xff]  ;;  %v492_v6 = vld [vmem:[#allocation3 + $0x70] sm:$0xff]  ;;  %v495_v7 = vld [vmem:[#allocation3 + $0x88] sm:$0xff] }
  0x63   : > { %905 = vmatpush1.bf16.msra.mxu0 %v2786_v17  ;;  %2587 = vmatprep.subr.bf16.mxu1 %v2814_v25  ;;  %v497_v8 = vld [vmem:[#allocation3 + $0x98] sm:$0xff]  ;;  %v548_v9 = vpack.c.bf16 %v492_v6, %v490_v5  ;;  %v494_v11 = vld [vmem:[#allocation3 + $0x80] sm:$0xff]  ;;  %v496_v12 = vld [vmem:[#allocation3 + $0x90] sm:$0xff] }
  0x64   : > { %906 = vmatprep.subr.bf16.mxu0 %v2787_v19  ;;  %v551_v10 = vpack.c.bf16 %v497_v8, %v495_v7  ;;  %v499_v13 = vld [vmem:[#allocation3 + $0xa8] sm:$0xff]  ;;  %v501_v14 = vld [vmem:[#allocation3 + $0xb8] sm:$0xff]  ;;  %v550_v15 = vpack.c.bf16 %v496_v12, %v494_v11  ;;  %v498_v17 = vld [vmem:[#allocation3 + $0xa0] sm:$0xff] }
  0x65   : > { %v553_v16 = vpack.c.bf16 %v501_v14, %v499_v13  ;;  %v500_v18 = vld [vmem:[#allocation3 + $0xb0] sm:$0xff]  ;;  %v503_v19 = vld [vmem:[#allocation3 + $0xc8] sm:$0xff]  ;;  %v505_v20 = vld [vmem:[#allocation3 + $0xd8] sm:$0xff] }
  0x66   : > { %2588 = vmatpush3.bf16.msra.mxu1 %v2816_v28  ;;  %v555_v22 = vpack.c.bf16 %v505_v20, %v503_v19  ;;  %v504_v24 = vld [vmem:[#allocation3 + $0xd0] sm:$0xff]  ;;  %v507_v25 = vld [vmem:[#allocation3 + $0xe8] sm:$0xff]  ;;  %v510_v35 = vld [vmem:[#allocation3 + $0x100] sm:$0xff] }
  0x67   : > { %907 = vmatpush1.bf16.msra.mxu0 %v2790_v21  ;;  %2589 = vmatprep.subr.bf16.mxu1 %v2819_v29  ;;  %v552_v21 = vpack.c.bf16 %v500_v18, %v498_v17  ;;  %v506_v29 = vld [vmem:[#allocation3 + $0xe0] sm:$0xff]  ;;  %v512_v36 = vld [vmem:[#allocation3 + $0x110] sm:$0xff]  ;;  %v521_v44 = vld [vmem:[#allocation3 + $0x158] sm:$0xff] }
  0x68   : > { %908 = vmatprep.subr.bf16.mxu0 %v2792_v23  ;;  %v502_v23 = vld [vmem:[#allocation3 + $0xc0] sm:$0xff]  ;;  %v558_v39 = vpack.c.bf16 %v512_v36, %v510_v35  ;;  %v516_v42 = vld [vmem:[#allocation3 + $0x130] sm:$0xff]  ;;  %v525_v50 = vld [vmem:[#allocation3 + $0x178] sm:$0xff] }
  0x69   : > { %v514_v41 = vld [vmem:[#allocation3 + $0x120] sm:$0xff]  ;;  %v528_v60 = vld [vmem:[#allocation3 + $0x190] sm:$0xff]  ;;  %v531_v61 = vld [vmem:[#allocation3 + $0x1a8] sm:$0xff] }
  0x6a   : > { %2590 = vmatpush3.bf16.msra.mxu1 %v2821_v33  ;;  %v522_v53 = vld [vmem:[#allocation3 + $0x160] sm:$0xff]  ;;  %v533_v62 = vld [vmem:[#allocation3 + $0x1b8] sm:$0xff]  ;;  %v536_v8 = vld [vmem:[#allocation3 + $0x1d0] sm:$0xff] }
  0x6b   : > { %909 = vmatpush1.bf16.msra.mxu0 %v2795_v26  ;;  %2591 = vmatprep.subr.bf16.mxu1 %v2824_v34  ;;  %v509_v26 = vld [vmem:[#allocation3 + $0xf8] sm:$0xff]  ;;  %v534_v7 = vld [vmem:[#allocation3 + $0x1c0] sm:$0xff]  ;;  %v540_v14 = vld [vmem:[#allocation3 + $0x1f0] sm:$0xff] }
  0x6c   : > { %910 = vmatprep.subr.bf16.mxu0 %v2797_v27  ;;  %v554_v27 = vpack.c.bf16 %v504_v24, %v502_v23  ;;  %v557_v28 = vpack.c.bf16 %v509_v26, %v507_v25  ;;  %v570_v11 = vpack.c.bf16 %v536_v8, %v534_v7  ;;  %v538_v13 = vld [vmem:[#allocation3 + $0x1e0] sm:$0xff] }
  0x6d   : > { %v1539_v19 = vld [vmem:[%s247_s21] sm:$0x7] }
  0x6e   : > { %2592 = vmatpush3.bf16.msra.mxu1 %v2826_v38  ;;  %v517_v38 = vld [vmem:[#allocation3 + $0x138] sm:$0xff] }
  0x6f   : > { %911 = vmatpush2.bf16.msra.mxu0 %v2800_v30  ;;  %v508_v30 = vld [vmem:[#allocation3 + $0xf0] sm:$0xff] }
  0x70   : > { %912 = vmatprep.subr.bf16.mxu0 %v2802_v31  ;;  %v511_v31 = vld [vmem:[#allocation3 + $0x108] sm:$0xff]  ;;  %v556_v33 = vpack.c.bf16 %v508_v30, %v506_v29 }
  0x71   : > { %1120 = vmatmul.mubr.bf16.vlgmr.msra.gmra.mxu1 %v542_v46 }
  0x72   : > { %1127 = vmatprep.mubr.bf16.mxu1 %v545_v47 }
  0x73   : > { %913 = vmatpush2.bf16.msra.mxu0 %v2805_v32  ;;  %v513_v32 = vld [vmem:[#allocation3 + $0x118] sm:$0xff] }
  0x74   : > { %914 = vmatprep.subr.bf16.mxu0 %v2807_v37  ;;  %v559_v34 = vpack.c.bf16 %v513_v32, %v511_v31  ;;  %v515_v37 = vld [vmem:[#allocation3 + $0x128] sm:$0xff] }
  0x75   : > { %v561_v40 = vpack.c.bf16 %v517_v38, %v515_v37 }
  0x77   : > { %915 = vmatpush2.bf16.msra.mxu0 %v2810_v43  ;;  %v519_v43 = vld [vmem:[#allocation3 + $0x148] sm:$0xff] }
  0x78   : > { %916 = vmatprep.subr.bf16.mxu0 %v2812_v45  ;;  %v560_v45 = vpack.c.bf16 %v516_v42, %v514_v41 }
  0x79   : > { %1128 = vmatmul.mubr.bf16.gmra.mxu1 %v544_v56 }
  0x7a   : > { %1135 = vmatprep.mubr.bf16.mxu1 %v547_v57 }
  0x7b   : > { %917 = vmatpush2.bf16.msra.mxu0 %v2815_v48  ;;  %v520_v48 = vld [vmem:[#allocation3 + $0x150] sm:$0xff] }
  0x7c   : > { %918 = vmatprep.subr.bf16.mxu0 %v2817_v49  ;;  %v523_v49 = vld [vmem:[#allocation3 + $0x168] sm:$0xff] }
  0x7d   : > { %v565_v52 = vpack.c.bf16 %v525_v50, %v523_v49 }
  0x7f   : > { %919 = vmatpush2.bf16.msra.mxu0 %v2820_v54  ;;  %v524_v54 = vld [vmem:[#allocation3 + $0x170] sm:$0xff] }
  0x80   : > { %920 = vmatprep.subr.bf16.mxu0 %v2822_v55  ;;  %v527_v55 = vld [vmem:[#allocation3 + $0x188] sm:$0xff] }
  0x81   : > { %1136 = vmatmul.mubr.bf16.gmra.mxu1 %v546_v2 }
  0x82   : > { %1143 = vmatprep.mubr.bf16.mxu1 %v549_v3 }
  0x83   : > { %921 = vmatpush2.bf16.msra.mxu0 %v2825_v58 }
  0x84   : > { %922 = vmatprep.subr.bf16.mxu0 %v2827_v59  ;;  %v526_v59 = vld [vmem:[#allocation3 + $0x180] sm:$0xff] }
  0x85   : > { %v566_v63 = vpack.c.bf16 %v528_v60, %v526_v59 }
  0x87   : > { %923 = vmatpush2.bf16.msra.mxu0 %v2829_v0  ;;  %v569_v0 = vpack.c.bf16 %v533_v62, %v531_v61 }
  0x88   : > { %924 = vmatprep.subr.bf16.mxu0 %v2830_v1  ;;  %v530_v1 = vld [vmem:[#allocation3 + $0x1a0] sm:$0xff] }
  0x89   : > { %1144 = vmatmul.mubr.bf16.gmra.mxu1 %v548_v9 }
  0x8a   : > { %1151 = vmatprep.mubr.bf16.mxu1 %v551_v10 }
  0x8b   : > { %925 = vmatpush2.bf16.msra.mxu0 %v2832_v4  ;;  %v537_v4 = vld [vmem:[#allocation3 + $0x1d8] sm:$0xff] }
  0x8e   : > { %927 = vmatmul.mubr.bf16.vlgmr.msra.gmra.mxu0 %v542_v46  ;;  %v563_v46 = vpack.c.bf16 %v521_v44, %v519_v43 }
  0x8f   : > { %936 = vmatprep.mubr.bf16.mxu0 %v545_v47  ;;  %v518_v47 = vld [vmem:[#allocation3 + $0x140] sm:$0xff] }
  0x90   : > { %v562_v51 = vpack.c.bf16 %v520_v48, %v518_v47 }
  0x91   : > { %1152 = vmatmul.mubr.bf16.gmra.mxu1 %v550_v15 }
  0x92   : > { %1159 = vmatprep.mubr.bf16.mxu1 %v553_v16 }
  0x96   : > { %937 = vmatmul.mubr.bf16.gmra.mxu0 %v544_v56  ;;  %v529_v56 = vld [vmem:[#allocation3 + $0x198] sm:$0xff] }
  0x97   : > { %946 = vmatprep.mubr.bf16.mxu0 %v547_v57  ;;  %v564_v57 = vpack.c.bf16 %v524_v54, %v522_v53  ;;  %v567_v58 = vpack.c.bf16 %v529_v56, %v527_v55 }
  0x99   : > { %1160 = vmatmul.mubr.bf16.gmra.mxu1 %v552_v21 }
  0x9a   : > { %1167 = vmatprep.mubr.bf16.mxu1 %v555_v22 }
  0x9e   : > { %947 = vmatmul.mubr.bf16.gmra.mxu0 %v546_v2  ;;  %v532_v2 = vld [vmem:[#allocation3 + $0x1b0] sm:$0xff] }
  0x9f   : > { %956 = vmatprep.mubr.bf16.mxu0 %v549_v3  ;;  %v535_v3 = vld [vmem:[#allocation3 + $0x1c8] sm:$0xff]  ;;  %v568_v5 = vpack.c.bf16 %v532_v2, %v530_v1 }
  0xa0   : > { %v571_v6 = vpack.c.bf16 %v537_v4, %v535_v3 }
  0xa1   : > { %1168 = vmatmul.mubr.bf16.gmra.mxu1 %v554_v27 }
  0xa2   : > { %1175 = vmatprep.mubr.bf16.mxu1 %v557_v28 }
  0xa6   : > { %957 = vmatmul.mubr.bf16.gmra.mxu0 %v548_v9  ;;  %v539_v9 = vld [vmem:[#allocation3 + $0x1e8] sm:$0xff] }
  0xa7   : > { %966 = vmatprep.mubr.bf16.mxu0 %v551_v10  ;;  %v541_v10 = vld [vmem:[#allocation3 + $0x1f8] sm:$0xff] }
  0xa8   : > { %v573_v12 = vpack.c.bf16 %v541_v10, %v539_v9 }
  0xa9   : > { %1176 = vmatmul.mubr.bf16.gmra.mxu1 %v556_v33 }
  0xaa   : > { %1183 = vmatprep.mubr.bf16.mxu1 %v559_v34 }
  0xae   : > { %967 = vmatmul.mubr.bf16.gmra.mxu0 %v550_v15  ;;  %v572_v15 = vpack.c.bf16 %v540_v14, %v538_v13 }
  0xaf   : > { %976 = vmatprep.mubr.bf16.mxu0 %v553_v16  ;;  %v1541_v16 = vlaneseq }
  0xb1   : > { %1184 = vmatmul.mubr.bf16.gmra.mxu1 %v558_v39  ;;  %v1542_v17 = vshrl.u32 %v1541_v16, 7 }
  0xb2   : > { %1191 = vmatprep.mubr.bf16.mxu1 %v561_v40 }
  0xb3   : > { %v1551_v18 = vsub.s32 2, %v1542_v17  ;;  %v1547_v41 = vsub.s32 1, %v1542_v17 }
  0xb5   : > { %v3203_v48 = vrot.slane %v1539_v19, %v1547_v41 }
  0xb6   : > { %977 = vmatmul.mubr.bf16.gmra.mxu0 %v552_v21  ;;  %v3189_v21 = vrot.slane %v1539_v19, %v1551_v18 }
  0xb7   : > { %986 = vmatprep.mubr.bf16.mxu0 %v555_v22 }
  0xb9   : > { %1192 = vmatmul.mubr.bf16.gmra.mxu1 %v560_v45 }
  0xba   : > { %1199 = vmatprep.mubr.bf16.mxu1 %v563_v46 }
  0xbe   : > { %987 = vmatmul.mubr.bf16.gmra.mxu0 %v554_v27 }
  0xbf   : > { %996 = vmatprep.mubr.bf16.mxu0 %v557_v28 }
  0xc1   : > { %1200 = vmatmul.mubr.bf16.gmra.mxu1 %v562_v51 }
  0xc2   : > { %1207 = vmatprep.mubr.bf16.mxu1 %v565_v52 }
  0xc6   : > { %997 = vmatmul.mubr.bf16.gmra.mxu0 %v556_v33 }
  0xc7   : > { %1006 = vmatprep.mubr.bf16.mxu0 %v559_v34 }
  0xc9   : > { %1208 = vmatmul.mubr.bf16.gmra.mxu1 %v564_v57 }
  0xca   : > { %1215 = vmatprep.mubr.bf16.mxu1 %v567_v58 }
  0xce   : > { %1007 = vmatmul.mubr.bf16.gmra.mxu0 %v558_v39 }
  0xcf   : > { %1016 = vmatprep.mubr.bf16.mxu0 %v561_v40  ;;  %v1543_v40 = vsub.s32 0, %v1542_v17 }
  0xd1   : > { %1216 = vmatmul.mubr.bf16.gmra.mxu1 %v566_v63  ;;  %v3201_v47 = vrot.slane %v1539_v19, %v1543_v40 }
  0xd2   : > { %1223 = vmatprep.mubr.bf16.mxu1 %v569_v0 }
  0xd6   : > { %1017 = vmatmul.mubr.bf16.gmra.mxu0 %v560_v45 }
  0xd7   : > { %1026 = vmatprep.mubr.bf16.mxu0 %v563_v46 }
  0xd9   : > { %1224 = vmatmul.mubr.bf16.gmra.mxu1 %v568_v5 }
  0xda   : > { %1231 = vmatprep.mubr.bf16.mxu1 %v571_v6 }
  0xde   : > { %1027 = vmatmul.mubr.bf16.gmra.mxu0 %v562_v51 }
  0xdf   : > { %1036 = vmatprep.mubr.bf16.mxu0 %v565_v52 }
  0xe1   : > { %1232 = vmatmul.mubr.bf16.gmra.mxu1 %v570_v11 }
  0xe2   : > { %1239 = vmatprep.mubr.bf16.mxu1 %v573_v12 }
  0xe6   : > { %1037 = vmatmul.mubr.bf16.gmra.mxu0 %v564_v57 }
  0xe7   : > { %1046 = vmatprep.mubr.bf16.mxu0 %v567_v58 }
  0xe9   : > { %1240 = vmatmul.mubr.bf16.gmra.mxu1 %v572_v15 }
  0xee   : > { %1047 = vmatmul.mubr.bf16.gmra.mxu0 %v566_v63 }
  0xef   : > { %1056 = vmatprep.mubr.bf16.mxu0 %v569_v0 }
  0xf6   : > { %1057 = vmatmul.mubr.bf16.gmra.mxu0 %v568_v5 }
  0xf7   : > { %1066 = vmatprep.mubr.bf16.mxu0 %v571_v6 }
  0xfe   : > { %1067 = vmatmul.mubr.bf16.gmra.mxu0 %v570_v11 }
  0xff   : > { %1076 = vmatprep.mubr.bf16.mxu0 %v573_v12 }
 0x106   : > { %1077 = vmatmul.mubr.bf16.gmra.mxu0 %v572_v15 }
 0x131   : > { %v2593_v20 = vpop.f32.mrf.mxu1 }
 0x133   : > { %v2594_v22 = vpop.f32.mrf.mxu1 }
 0x134   : > { %v2595_v23 = vadd.f32 %v2594_v22, %v2593_v20 }
 0x135   : > { %v2596_v24 = vpop.f32.mrf.mxu1 }
 0x136   : > { %v1558_v25 = vadd.f32 %v2595_v23, %v3189_v21 }
 0x137   : > { %v2597_v26 = vpop.f32.mrf.mxu1 }
 0x138   : > { %v2513_v27 = vpack.c.bf16 %v1558_v25, %v1558_v25  ;;  %v2598_v28 = vadd.f32 %v2597_v26, %v2596_v24 }
 0x139   : > { %v2599_v29 = vpop.f32.mrf.mxu1 }
 0x13a   : > { %1973 = vst [vmem:[%s3193_s25 + $0x8] sm:$0xf] %v2513_v27  ;;  %v1561_v30 = vadd.f32 %v2598_v28, %v3189_v21 }
 0x13b   : > { %v2600_v31 = vpop.f32.mrf.mxu1 }
 0x13c   : > { %v2515_v32 = vpack.c.bf16 %v1561_v30, %v1561_v30  ;;  %v2601_v33 = vadd.f32 %v2600_v31, %v2599_v29 }
 0x13d   : > { %v2602_v34 = vpop.f32.mrf.mxu1 }
 0x13e   : > { %1975 = vst [vmem:[%s3193_s25 + $0x14] sm:$0xf] %v2515_v32  ;;  %v1564_v35 = vadd.f32 %v2601_v33, %v3189_v21 }
 0x13f   : > { %v2603_v36 = vpop.f32.mrf.mxu1 }
 0x140   : > { %v2517_v37 = vpack.c.bf16 %v1564_v35, %v1564_v35  ;;  %v2604_v38 = vadd.f32 %v2603_v36, %v2602_v34 }
 0x141   : > { %v2605_v39 = vpop.f32.mrf.mxu1 }
 0x142   : > { %1977 = vst [vmem:[%s3193_s25 + $0x20] sm:$0xf] %v2517_v37  ;;  %v1567_v42 = vadd.f32 %v2604_v38, %v3189_v21 }
 0x143   : > { %v2606_v43 = vpop.f32.mrf.mxu1 }
 0x144   : > { %v2519_v44 = vpack.c.bf16 %v1567_v42, %v1567_v42  ;;  %v2607_v45 = vadd.f32 %v2606_v43, %v2605_v39 }
 0x145   : > { %v2608_v46 = vpop.f32.mrf.mxu1 }
 0x146   : > { %1979 = vst [vmem:[%s3193_s25 + $0x2c] sm:$0xf] %v2519_v44  ;;  %v1570_v49 = vadd.f32 %v2607_v45, %v3189_v21 }
 0x147   : > { %v2609_v51 = vpop.f32.mrf.mxu1 }
 0x148   : > { %v2521_v52 = vpack.c.bf16 %v1570_v49, %v1570_v49  ;;  %v2610_v53 = vadd.f32 %v2609_v51, %v2608_v46 }
 0x149   : > { %v2611_v55 = vpop.f32.mrf.mxu1 }
 0x14a   : > { %1981 = vst [vmem:[%s3193_s25 + $0x38] sm:$0xf] %v2521_v52  ;;  %v1573_v58 = vadd.f32 %v2610_v53, %v3189_v21 }
 0x14b   : > { %v2612_v60 = vpop.f32.mrf.mxu1 }
 0x14c   : > { %v2523_v62 = vpack.c.bf16 %v1573_v58, %v1573_v58  ;;  %v2613_v63 = vadd.f32 %v2612_v60, %v2611_v55 }
 0x14d   : > { %v2614_v1 = vpop.f32.mrf.mxu1 }
 0x14e   : > { %v928_v50 = vpop.f32.mrf.mxu0  ;;  %1983 = vst [vmem:[%s3193_s25 + $0x44] sm:$0xf] %v2523_v62  ;;  %v1576_v4 = vadd.f32 %v2613_v63, %v3189_v21 }
 0x14f   : > { %v1556_v56 = vadd.f32 %v3201_v47, %v928_v50  ;;  %v2615_v6 = vpop.f32.mrf.mxu1 }
 0x150   : > { %v930_v54 = vpop.f32.mrf.mxu0  ;;  %v2525_v8 = vpack.c.bf16 %v1576_v4, %v1576_v4  ;;  %v2616_v9 = vadd.f32 %v2615_v6, %v2614_v1 }
 0x151   : > { %v1557_v57 = vadd.f32 %v3203_v48, %v930_v54  ;;  %v2617_v11 = vpop.f32.mrf.mxu1 }
 0x152   : > { %v932_v59 = vpop.f32.mrf.mxu0  ;;  %1985 = vst [vmem:[%s3193_s25 + $0x50] sm:$0xf] %v2525_v8  ;;  %v1579_v14 = vadd.f32 %v2616_v9, %v3189_v21 }
 0x153   : > { %v2512_v61 = vpack.c.bf16 %v1557_v57, %v1556_v56  ;;  %v1559_v2 = vadd.f32 %v3201_v47, %v932_v59  ;;  %v2618_v16 = vpop.f32.mrf.mxu1 }
 0x154   : > { %v934_v0 = vpop.f32.mrf.mxu0  ;;  %v2527_v18 = vpack.c.bf16 %v1579_v14, %v1579_v14  ;;  %v2619_v19 = vadd.f32 %v2618_v16, %v2617_v11 }
 0x155   : > { %1972 = vst [vmem:[%s3193_s25] sm:$0xff] %v2512_v61  ;;  %v1560_v3 = vadd.f32 %v3203_v48, %v934_v0  ;;  %v2620_v22 = vpop.f32.mrf.mxu1 }
 0x156   : > { %v938_v5 = vpop.f32.mrf.mxu0  ;;  %1987 = vst [vmem:[%s3193_s25 + $0x5c] sm:$0xf] %v2527_v18  ;;  %v1582_v25 = vadd.f32 %v2619_v19, %v3189_v21 }
 0x157   : > { %v2514_v7 = vpack.c.bf16 %v1560_v3, %v1559_v2  ;;  %v1562_v12 = vadd.f32 %v3201_v47, %v938_v5  ;;  %v2621_v27 = vpop.f32.mrf.mxu1 }
 0x158   : > { %v940_v10 = vpop.f32.mrf.mxu0  ;;  %v2529_v29 = vpack.c.bf16 %v1582_v25, %v1582_v25  ;;  %v2622_v30 = vadd.f32 %v2621_v27, %v2620_v22 }
 0x159   : > { %1974 = vst [vmem:[%s3193_s25 + $0xc] sm:$0xff] %v2514_v7  ;;  %v1563_v13 = vadd.f32 %v3203_v48, %v940_v10  ;;  %v2623_v32 = vpop.f32.mrf.mxu1 }
 0x15a   : > { %v942_v15 = vpop.f32.mrf.mxu0  ;;  %1989 = vst [vmem:[%s3193_s25 + $0x68] sm:$0xf] %v2529_v29  ;;  %v1585_v35 = vadd.f32 %v2622_v30, %v3189_v21 }
 0x15b   : > { %v2516_v17 = vpack.c.bf16 %v1563_v13, %v1562_v12  ;;  %v1565_v23 = vadd.f32 %v3201_v47, %v942_v15  ;;  %v2624_v37 = vpop.f32.mrf.mxu1 }
 0x15c   : > { %v944_v20 = vpop.f32.mrf.mxu0  ;;  %v2531_v39 = vpack.c.bf16 %v1585_v35, %v1585_v35  ;;  %v2625_v40 = vadd.f32 %v2624_v37, %v2623_v32 }
 0x15d   : > { %1976 = vst [vmem:[%s3193_s25 + $0x18] sm:$0xff] %v2516_v17  ;;  %v1566_v24 = vadd.f32 %v3203_v48, %v944_v20  ;;  %v2626_v42 = vpop.f32.mrf.mxu1 }
 0x15e   : > { %v948_v26 = vpop.f32.mrf.mxu0  ;;  %1991 = vst [vmem:[%s3193_s25 + $0x74] sm:$0xf] %v2531_v39  ;;  %v1588_v45 = vadd.f32 %v2625_v40, %v3189_v21 }
 0x15f   : > { %v2518_v28 = vpack.c.bf16 %v1566_v24, %v1565_v23  ;;  %v1568_v33 = vadd.f32 %v3201_v47, %v948_v26  ;;  %v2627_v49 = vpop.f32.mrf.mxu1 }
 0x160   : > { %v950_v31 = vpop.f32.mrf.mxu0  ;;  %v2533_v51 = vpack.c.bf16 %v1588_v45, %v1588_v45  ;;  %v2628_v52 = vadd.f32 %v2627_v49, %v2626_v42 }
 0x161   : > { %1978 = vst [vmem:[%s3193_s25 + $0x24] sm:$0xff] %v2518_v28  ;;  %v1569_v34 = vadd.f32 %v3203_v48, %v950_v31  ;;  %v2629_v54 = vpop.f32.mrf.mxu1 }
 0x162   : > { %v952_v36 = vpop.f32.mrf.mxu0  ;;  %1993 = vst [vmem:[%s3193_s25 + $0x80] sm:$0xf] %v2533_v51  ;;  %v1591_v57 = vadd.f32 %v2628_v52, %v3189_v21 }
 0x163   : > { %v2520_v38 = vpack.c.bf16 %v1569_v34, %v1568_v33  ;;  %v1571_v43 = vadd.f32 %v3201_v47, %v952_v36  ;;  %v2630_v59 = vpop.f32.mrf.mxu1 }
 0x164   : > { %v954_v41 = vpop.f32.mrf.mxu0  ;;  %v2535_v61 = vpack.c.bf16 %v1591_v57, %v1591_v57  ;;  %v2631_v62 = vadd.f32 %v2630_v59, %v2629_v54 }
 0x165   : > { %1980 = vst [vmem:[%s3193_s25 + $0x30] sm:$0xff] %v2520_v38  ;;  %v1572_v44 = vadd.f32 %v3203_v48, %v954_v41  ;;  %v2632_v0 = vpop.f32.mrf.mxu1 }
 0x166   : > { %v958_v46 = vpop.f32.mrf.mxu0  ;;  %1995 = vst [vmem:[%s3193_s25 + $0x8c] sm:$0xf] %v2535_v61  ;;  %v1594_v3 = vadd.f32 %v2631_v62, %v3189_v21 }
 0x167   : > { %v2522_v50 = vpack.c.bf16 %v1572_v44, %v1571_v43  ;;  %v1574_v55 = vadd.f32 %v3201_v47, %v958_v46  ;;  %v2633_v5 = vpop.f32.mrf.mxu1 }
 0x168   : > { %v960_v53 = vpop.f32.mrf.mxu0  ;;  %v2537_v7 = vpack.c.bf16 %v1594_v3, %v1594_v3  ;;  %v2634_v8 = vadd.f32 %v2633_v5, %v2632_v0 }
 0x169   : > { %1982 = vst [vmem:[%s3193_s25 + $0x3c] sm:$0xff] %v2522_v50  ;;  %v1575_v56 = vadd.f32 %v3203_v48, %v960_v53  ;;  %v2635_v10 = vpop.f32.mrf.mxu1 }
 0x16a   : > { %v962_v58 = vpop.f32.mrf.mxu0  ;;  %1997 = vst [vmem:[%s3193_s25 + $0x98] sm:$0xf] %v2537_v7  ;;  %v1597_v13 = vadd.f32 %v2634_v8, %v3189_v21 }
 0x16b   : > { %v2524_v60 = vpack.c.bf16 %v1575_v56, %v1574_v55  ;;  %v1577_v1 = vadd.f32 %v3201_v47, %v962_v58  ;;  %v2636_v15 = vpop.f32.mrf.mxu1 }
 0x16c   : > { %v964_v63 = vpop.f32.mrf.mxu0  ;;  %v2539_v17 = vpack.c.bf16 %v1597_v13, %v1597_v13  ;;  %v2637_v18 = vadd.f32 %v2636_v15, %v2635_v10 }
 0x16d   : > { %1984 = vst [vmem:[%s3193_s25 + $0x48] sm:$0xff] %v2524_v60  ;;  %v1578_v2 = vadd.f32 %v3203_v48, %v964_v63  ;;  %v2638_v20 = vpop.f32.mrf.mxu1 }
 0x16e   : > { %v968_v4 = vpop.f32.mrf.mxu0  ;;  %1999 = vst [vmem:[%s3193_s25 + $0xa4] sm:$0xf] %v2539_v17  ;;  %v1600_v24 = vadd.f32 %v2637_v18, %v3189_v21 }
 0x16f   : > { %v2526_v6 = vpack.c.bf16 %v1578_v2, %v1577_v1  ;;  %v1580_v11 = vadd.f32 %v3201_v47, %v968_v4  ;;  %v2639_v26 = vpop.f32.mrf.mxu1 }
 0x170   : > { %v970_v9 = vpop.f32.mrf.mxu0  ;;  %v2541_v28 = vpack.c.bf16 %v1600_v24, %v1600_v24  ;;  %v2640_v29 = vadd.f32 %v2639_v26, %v2638_v20 }
 0x171   : > { %1986 = vst [vmem:[%s3193_s25 + $0x54] sm:$0xff] %v2526_v6  ;;  %v1581_v12 = vadd.f32 %v3203_v48, %v970_v9  ;;  %v2641_v31 = vpop.f32.mrf.mxu1 }
 0x172   : > { %v972_v14 = vpop.f32.mrf.mxu0  ;;  %2001 = vst [vmem:[%s3193_s25 + $0xb0] sm:$0xf] %v2541_v28  ;;  %v1603_v34 = vadd.f32 %v2640_v29, %v3189_v21 }
 0x173   : > { %v2528_v16 = vpack.c.bf16 %v1581_v12, %v1580_v11  ;;  %v1583_v22 = vadd.f32 %v3201_v47, %v972_v14  ;;  %v2642_v36 = vpop.f32.mrf.mxu1 }
 0x174   : > { %v974_v19 = vpop.f32.mrf.mxu0  ;;  %v2543_v38 = vpack.c.bf16 %v1603_v34, %v1603_v34  ;;  %v2643_v39 = vadd.f32 %v2642_v36, %v2641_v31 }
 0x175   : > { %1988 = vst [vmem:[%s3193_s25 + $0x60] sm:$0xff] %v2528_v16  ;;  %v1584_v23 = vadd.f32 %v3203_v48, %v974_v19  ;;  %v2644_v41 = vpop.f32.mrf.mxu1 }
 0x176   : > { %v978_v25 = vpop.f32.mrf.mxu0  ;;  %2003 = vst [vmem:[%s3193_s25 + $0xbc] sm:$0xf] %v2543_v38  ;;  %v1606_v44 = vadd.f32 %v2643_v39, %v3189_v21 }
 0x177   : > { %v2530_v27 = vpack.c.bf16 %v1584_v23, %v1583_v22  ;;  %v1586_v32 = vadd.f32 %v3201_v47, %v978_v25  ;;  %v2645_v46 = vpop.f32.mrf.mxu1 }
 0x178   : > { %v980_v30 = vpop.f32.mrf.mxu0  ;;  %v2545_v50 = vpack.c.bf16 %v1606_v44, %v1606_v44  ;;  %v2646_v51 = vadd.f32 %v2645_v46, %v2644_v41 }
 0x179   : > { %1990 = vst [vmem:[%s3193_s25 + $0x6c] sm:$0xff] %v2530_v27  ;;  %v1587_v33 = vadd.f32 %v3203_v48, %v980_v30  ;;  %v2647_v53 = vpop.f32.mrf.mxu1 }
 0x17a   : > { %v982_v35 = vpop.f32.mrf.mxu0  ;;  %2005 = vst [vmem:[%s3193_s25 + $0xc8] sm:$0xf] %v2545_v50  ;;  %v1609_v56 = vadd.f32 %v2646_v51, %v3189_v21 }
 0x17b   : > { %v2532_v37 = vpack.c.bf16 %v1587_v33, %v1586_v32  ;;  %v1589_v42 = vadd.f32 %v3201_v47, %v982_v35  ;;  %v2648_v58 = vpop.f32.mrf.mxu1 }
 0x17c   : > { %v984_v40 = vpop.f32.mrf.mxu0  ;;  %v2547_v60 = vpack.c.bf16 %v1609_v56, %v1609_v56  ;;  %v2649_v61 = vadd.f32 %v2648_v58, %v2647_v53 }
 0x17d   : > { %1992 = vst [vmem:[%s3193_s25 + $0x78] sm:$0xff] %v2532_v37  ;;  %v1590_v43 = vadd.f32 %v3203_v48, %v984_v40  ;;  %v2650_v63 = vpop.f32.mrf.mxu1 }
 0x17e   : > { %v988_v45 = vpop.f32.mrf.mxu0  ;;  %2007 = vst [vmem:[%s3193_s25 + $0xd4] sm:$0xf] %v2547_v60  ;;  %v1612_v2 = vadd.f32 %v2649_v61, %v3189_v21 }
 0x17f   : > { %v2534_v49 = vpack.c.bf16 %v1590_v43, %v1589_v42  ;;  %v1592_v54 = vadd.f32 %v3201_v47, %v988_v45  ;;  %v2651_v4 = vpop.f32.mrf.mxu1 }
 0x180   : > { %v990_v52 = vpop.f32.mrf.mxu0  ;;  %v2549_v6 = vpack.c.bf16 %v1612_v2, %v1612_v2  ;;  %v2652_v7 = vadd.f32 %v2651_v4, %v2650_v63 }
 0x181   : > { %1994 = vst [vmem:[%s3193_s25 + $0x84] sm:$0xff] %v2534_v49  ;;  %v1593_v55 = vadd.f32 %v3203_v48, %v990_v52  ;;  %v2653_v9 = vpop.f32.mrf.mxu1 }
 0x182   : > { %v992_v57 = vpop.f32.mrf.mxu0  ;;  %2009 = vst [vmem:[%s3193_s25 + $0xe0] sm:$0xf] %v2549_v6  ;;  %v1615_v12 = vadd.f32 %v2652_v7, %v3189_v21 }
 0x183   : > { %v2536_v59 = vpack.c.bf16 %v1593_v55, %v1592_v54  ;;  %v1595_v0 = vadd.f32 %v3201_v47, %v992_v57  ;;  %v2654_v14 = vpop.f32.mrf.mxu1 }
 0x184   : > { %v994_v62 = vpop.f32.mrf.mxu0  ;;  %v2551_v16 = vpack.c.bf16 %v1615_v12, %v1615_v12  ;;  %v2655_v17 = vadd.f32 %v2654_v14, %v2653_v9 }
 0x185   : > { %1996 = vst [vmem:[%s3193_s25 + $0x90] sm:$0xff] %v2536_v59  ;;  %v1596_v1 = vadd.f32 %v3203_v48, %v994_v62  ;;  %v2656_v19 = vpop.f32.mrf.mxu1 }
 0x186   : > { %v998_v3 = vpop.f32.mrf.mxu0  ;;  %2011 = vst [vmem:[%s3193_s25 + $0xec] sm:$0xf] %v2551_v16  ;;  %v1618_v23 = vadd.f32 %v2655_v17, %v3189_v21 }
 0x187   : > { %v2538_v5 = vpack.c.bf16 %v1596_v1, %v1595_v0  ;;  %v1598_v10 = vadd.f32 %v3201_v47, %v998_v3  ;;  %v2657_v25 = vpop.f32.mrf.mxu1 }
 0x188   : > { %v1000_v8 = vpop.f32.mrf.mxu0  ;;  %v2553_v27 = vpack.c.bf16 %v1618_v23, %v1618_v23  ;;  %v2658_v28 = vadd.f32 %v2657_v25, %v2656_v19 }
 0x189   : > { %1998 = vst [vmem:[%s3193_s25 + $0x9c] sm:$0xff] %v2538_v5  ;;  %v1599_v11 = vadd.f32 %v3203_v48, %v1000_v8  ;;  %v2659_v30 = vpop.f32.mrf.mxu1 }
 0x18a   : > { %v1002_v13 = vpop.f32.mrf.mxu0  ;;  %2013 = vst [vmem:[%s3193_s25 + $0xf8] sm:$0xf] %v2553_v27  ;;  %v1621_v33 = vadd.f32 %v2658_v28, %v3189_v21 }
 0x18b   : > { %v2540_v15 = vpack.c.bf16 %v1599_v11, %v1598_v10  ;;  %v1601_v20 = vadd.f32 %v3201_v47, %v1002_v13  ;;  %v2660_v35 = vpop.f32.mrf.mxu1 }
 0x18c   : > { %v1004_v18 = vpop.f32.mrf.mxu0  ;;  %v2555_v37 = vpack.c.bf16 %v1621_v33, %v1621_v33  ;;  %v2661_v38 = vadd.f32 %v2660_v35, %v2659_v30 }
 0x18d   : > { %2000 = vst [vmem:[%s3193_s25 + $0xa8] sm:$0xff] %v2540_v15  ;;  %v1602_v22 = vadd.f32 %v3203_v48, %v1004_v18  ;;  %v2662_v40 = vpop.f32.mrf.mxu1 }
 0x18e   : > { %v1008_v24 = vpop.f32.mrf.mxu0  ;;  %2015 = vst [vmem:[%s3193_s25 + $0x104] sm:$0xf] %v2555_v37  ;;  %v1624_v43 = vadd.f32 %v2661_v38, %v3189_v21 }
 0x18f   : > { %v2542_v26 = vpack.c.bf16 %v1602_v22, %v1601_v20  ;;  %v1604_v31 = vadd.f32 %v3201_v47, %v1008_v24  ;;  %v2663_v45 = vpop.f32.mrf.mxu1 }
 0x190   : > { %v1010_v29 = vpop.f32.mrf.mxu0  ;;  %v2557_v49 = vpack.c.bf16 %v1624_v43, %v1624_v43  ;;  %v2664_v50 = vadd.f32 %v2663_v45, %v2662_v40 }
 0x191   : > { %2002 = vst [vmem:[%s3193_s25 + $0xb4] sm:$0xff] %v2542_v26  ;;  %v1605_v32 = vadd.f32 %v3203_v48, %v1010_v29  ;;  %v2665_v52 = vpop.f32.mrf.mxu1 }
 0x192   : > { %v1012_v34 = vpop.f32.mrf.mxu0  ;;  %2017 = vst [vmem:[%s3193_s25 + $0x110] sm:$0xf] %v2557_v49  ;;  %v1627_v55 = vadd.f32 %v2664_v50, %v3189_v21 }
 0x193   : > { %v2544_v36 = vpack.c.bf16 %v1605_v32, %v1604_v31  ;;  %v1607_v41 = vadd.f32 %v3201_v47, %v1012_v34  ;;  %v2666_v57 = vpop.f32.mrf.mxu1 }
 0x194   : > { %v1014_v39 = vpop.f32.mrf.mxu0  ;;  %v2559_v59 = vpack.c.bf16 %v1627_v55, %v1627_v55  ;;  %v2667_v60 = vadd.f32 %v2666_v57, %v2665_v52 }
 0x195   : > { %2004 = vst [vmem:[%s3193_s25 + $0xc0] sm:$0xff] %v2544_v36  ;;  %v1608_v42 = vadd.f32 %v3203_v48, %v1014_v39  ;;  %v2668_v62 = vpop.f32.mrf.mxu1 }
 0x196   : > { %v1018_v44 = vpop.f32.mrf.mxu0  ;;  %2019 = vst [vmem:[%s3193_s25 + $0x11c] sm:$0xf] %v2559_v59  ;;  %v1630_v1 = vadd.f32 %v2667_v60, %v3189_v21 }
 0x197   : > { %v2546_v46 = vpack.c.bf16 %v1608_v42, %v1607_v41  ;;  %v1610_v53 = vadd.f32 %v3201_v47, %v1018_v44  ;;  %v2669_v3 = vpop.f32.mrf.mxu1 }
 0x198   : > { %v1020_v51 = vpop.f32.mrf.mxu0  ;;  %v2561_v5 = vpack.c.bf16 %v1630_v1, %v1630_v1  ;;  %v2670_v6 = vadd.f32 %v2669_v3, %v2668_v62 }
 0x199   : > { %2006 = vst [vmem:[%s3193_s25 + $0xcc] sm:$0xff] %v2546_v46  ;;  %v1611_v54 = vadd.f32 %v3203_v48, %v1020_v51  ;;  %v2671_v8 = vpop.f32.mrf.mxu1 }
 0x19a   : > { %v1022_v56 = vpop.f32.mrf.mxu0  ;;  %2021 = vst [vmem:[%s3193_s25 + $0x128] sm:$0xf] %v2561_v5  ;;  %v1633_v11 = vadd.f32 %v2670_v6, %v3189_v21 }
 0x19b   : > { %v2548_v58 = vpack.c.bf16 %v1611_v54, %v1610_v53  ;;  %v1613_v63 = vadd.f32 %v3201_v47, %v1022_v56  ;;  %v2672_v13 = vpop.f32.mrf.mxu1 }
 0x19c   : > { %v1024_v61 = vpop.f32.mrf.mxu0  ;;  %v2563_v15 = vpack.c.bf16 %v1633_v11, %v1633_v11  ;;  %v2673_v16 = vadd.f32 %v2672_v13, %v2671_v8 }
 0x19d   : > { %2008 = vst [vmem:[%s3193_s25 + $0xd8] sm:$0xff] %v2548_v58  ;;  %v1614_v0 = vadd.f32 %v3203_v48, %v1024_v61  ;;  %v2674_v18 = vpop.f32.mrf.mxu1 }
 0x19e   : > { %v1028_v2 = vpop.f32.mrf.mxu0  ;;  %2023 = vst [vmem:[%s3193_s25 + $0x134] sm:$0xf] %v2563_v15  ;;  %v1636_v22 = vadd.f32 %v2673_v16, %v3189_v21 }
 0x19f   : > { %v2550_v4 = vpack.c.bf16 %v1614_v0, %v1613_v63  ;;  %v1616_v9 = vadd.f32 %v3201_v47, %v1028_v2  ;;  %v2675_v24 = vpop.f32.mrf.mxu1 }
 0x1a0   : > { %v1030_v7 = vpop.f32.mrf.mxu0  ;;  %v2565_v26 = vpack.c.bf16 %v1636_v22, %v1636_v22  ;;  %v2676_v27 = vadd.f32 %v2675_v24, %v2674_v18 }
 0x1a1   : > { %2010 = vst [vmem:[%s3193_s25 + $0xe4] sm:$0xff] %v2550_v4  ;;  %v1617_v10 = vadd.f32 %v3203_v48, %v1030_v7  ;;  %v2677_v29 = vpop.f32.mrf.mxu1 }
 0x1a2   : > { %v1032_v12 = vpop.f32.mrf.mxu0  ;;  %2025 = vst [vmem:[%s3193_s25 + $0x140] sm:$0xf] %v2565_v26  ;;  %v1639_v32 = vadd.f32 %v2676_v27, %v3189_v21 }
 0x1a3   : > { %v2552_v14 = vpack.c.bf16 %v1617_v10, %v1616_v9  ;;  %v1619_v19 = vadd.f32 %v3201_v47, %v1032_v12  ;;  %v2678_v34 = vpop.f32.mrf.mxu1 }
 0x1a4   : > { %v1034_v17 = vpop.f32.mrf.mxu0  ;;  %v2567_v36 = vpack.c.bf16 %v1639_v32, %v1639_v32  ;;  %v2679_v37 = vadd.f32 %v2678_v34, %v2677_v29 }
 0x1a5   : > { %2012 = vst [vmem:[%s3193_s25 + $0xf0] sm:$0xff] %v2552_v14  ;;  %v1620_v20 = vadd.f32 %v3203_v48, %v1034_v17  ;;  %v2680_v39 = vpop.f32.mrf.mxu1 }
 0x1a6   : > { %v1038_v23 = vpop.f32.mrf.mxu0  ;;  %2027 = vst [vmem:[%s3193_s25 + $0x14c] sm:$0xf] %v2567_v36  ;;  %v1642_v42 = vadd.f32 %v2679_v37, %v3189_v21  ;;  %v2063_v37 = vld [vmem:[%s3193_s25] sm:$0xff] (%p3527_p6) }
 0x1a7   : > { %v2554_v25 = vpack.c.bf16 %v1620_v20, %v1619_v19  ;;  %v1622_v30 = vadd.f32 %v3201_v47, %v1038_v23  ;;  %v2681_v44 = vpop.f32.mrf.mxu1  ;;  %2064 = vst [vmem:[%s3370_s6] sm:$0xff] (%p3527_p6), %v2063_v37 }
 0x1a8   : > { %v1040_v28 = vpop.f32.mrf.mxu0  ;;  %v2569_v46 = vpack.c.bf16 %v1642_v42, %v1642_v42  ;;  %v2682_v49 = vadd.f32 %v2681_v44, %v2680_v39  ;;  %v2071_v39 = vld [vmem:[%s3193_s25 + $0x30] sm:$0xff] (%p3527_p6) }
 0x1a9   : > { %2014 = vst [vmem:[%s3193_s25 + $0xfc] sm:$0xff] %v2554_v25  ;;  %v1623_v31 = vadd.f32 %v3203_v48, %v1040_v28  ;;  %v2683_v51 = vpop.f32.mrf.mxu1  ;;  %v2077_v42 = vld [vmem:[%s3193_s25 + $0x54] sm:$0xff] (%p3527_p6)  ;;  %2072 = vst [vmem:[%s3370_s6 + $0x60] sm:$0xff] (%p3527_p6), %v2071_v39  ;;  %v2081_v44 = vld [vmem:[%s3193_s25 + $0x6c] sm:$0xff] (%p3527_p6) }
 0x1aa   : > { %v1042_v33 = vpop.f32.mrf.mxu0  ;;  %2029 = vst [vmem:[%s3193_s25 + $0x158] sm:$0xf] %v2569_v46  ;;  %v1645_v54 = vadd.f32 %v2682_v49, %v3189_v21  ;;  %2078 = vst [vmem:[%s3370_s6 + $0xa8] sm:$0xff] (%p3527_p6), %v2077_v42  ;;  %v2085_v46 = vld [vmem:[%s3193_s25 + $0x84] sm:$0xff] (%p3527_p6)  ;;  %v2087_v49 = vld [vmem:[%s3193_s25 + $0x90] sm:$0xff] (%p3527_p6) }
 0x1ab   : > { %v2556_v35 = vpack.c.bf16 %v1623_v31, %v1622_v30  ;;  %v1625_v40 = vadd.f32 %v3201_v47, %v1042_v33  ;;  %v2684_v56 = vpop.f32.mrf.mxu1  ;;  %2082 = vst [vmem:[%s3370_s6 + $0xd8] sm:$0xff] (%p3527_p6), %v2081_v44  ;;  %2086 = vst [vmem:[%s3370_s6 + $0x108] sm:$0xff] (%p3527_p6), %v2085_v46 }
 0x1ac   : > { %v1044_v38 = vpop.f32.mrf.mxu0  ;;  %v2571_v58 = vpack.c.bf16 %v1645_v54, %v1645_v54  ;;  %v2685_v59 = vadd.f32 %v2684_v56, %v2683_v51  ;;  %v2091_v51 = vld [vmem:[%s3193_s25 + $0xa8] sm:$0xff] (%p3527_p6)  ;;  %2088 = vst [vmem:[%s3370_s6 + $0x120] sm:$0xff] (%p3527_p6), %v2087_v49 }
 0x1ad   : > { %2016 = vst [vmem:[%s3193_s25 + $0x108] sm:$0xff] %v2556_v35  ;;  %v1626_v41 = vadd.f32 %v3203_v48, %v1044_v38  ;;  %v2686_v61 = vpop.f32.mrf.mxu1  ;;  %v2067_v38 = vld [vmem:[%s3193_s25 + $0x18] sm:$0xff] (%p3527_p6)  ;;  %2092 = vst [vmem:[%s3370_s6 + $0x150] sm:$0xff] (%p3527_p6), %v2091_v51  ;;  %v2097_v54 = vld [vmem:[%s3193_s25 + $0xcc] sm:$0xff] (%p3527_p6) }
 0x1ae   : > { %v1048_v43 = vpop.f32.mrf.mxu0  ;;  %2031 = vst [vmem:[%s3193_s25 + $0x164] sm:$0xf] %v2571_v58  ;;  %v1648_v0 = vadd.f32 %v2685_v59, %v3189_v21  ;;  %2068 = vst [vmem:[%s3370_s6 + $0x30] sm:$0xff] (%p3527_p6), %v2067_v38  ;;  %v2101_v56 = vld [vmem:[%s3193_s25 + $0xe4] sm:$0xff] (%p3527_p6) }
 0x1af   : > { %v2558_v45 = vpack.c.bf16 %v1626_v41, %v1625_v40  ;;  %v1628_v52 = vadd.f32 %v3201_v47, %v1048_v43  ;;  %v2687_v2 = vpop.f32.mrf.mxu1  ;;  %v2073_v40 = vld [vmem:[%s3193_s25 + $0x3c] sm:$0xff] (%p3527_p6)  ;;  %v2075_v41 = vld [vmem:[%s3193_s25 + $0x48] sm:$0xff] (%p3527_p6)  ;;  %2098 = vst [vmem:[%s3370_s6 + $0x198] sm:$0xff] (%p3527_p6), %v2097_v54  ;;  %2102 = vst [vmem:[%s3370_s6 + $0x1c8] sm:$0xff] (%p3527_p6), %v2101_v56 }
 0x1b0   : > { %v1050_v50 = vpop.f32.mrf.mxu0  ;;  %v2573_v4 = vpack.c.bf16 %v1648_v0, %v1648_v0  ;;  %v2688_v5 = vadd.f32 %v2687_v2, %v2686_v61  ;;  %v2079_v43 = vld [vmem:[%s3193_s25 + $0x60] sm:$0xff] (%p3527_p6)  ;;  %2074 = vst [vmem:[%s3370_s6 + $0x78] sm:$0xff] (%p3527_p6), %v2073_v40  ;;  %2076 = vst [vmem:[%s3370_s6 + $0x90] sm:$0xff] (%p3527_p6), %v2075_v41 }
 0x1b1   : > { %2018 = vst [vmem:[%s3193_s25 + $0x114] sm:$0xff] %v2558_v45  ;;  %v1629_v53 = vadd.f32 %v3203_v48, %v1050_v50  ;;  %2080 = vst [vmem:[%s3370_s6 + $0xc0] sm:$0xff] (%p3527_p6), %v2079_v43  ;;  %v2083_v45 = vld [vmem:[%s3193_s25 + $0x78] sm:$0xff] (%p3527_p6) }
 0x1b2   : > { %v1052_v55 = vpop.f32.mrf.mxu0  ;;  %2033 = vst [vmem:[%s3193_s25 + $0x170] sm:$0xf] %v2573_v4  ;;  %v1651_v9 = vadd.f32 %v2688_v5, %v3189_v21  ;;  %2084 = vst [vmem:[%s3370_s6 + $0xf0] sm:$0xff] (%p3527_p6), %v2083_v45  ;;  %v2089_v50 = vld [vmem:[%s3193_s25 + $0x9c] sm:$0xff] (%p3527_p6)  ;;  %v2444_v5 = vld [vmem:[%s3193_s25 + $0x8] sm:$0xf] (%p3527_p6) }
 0x1b3   : > { %v2560_v57 = vpack.c.bf16 %v1629_v53, %v1628_v52  ;;  %v1631_v62 = vadd.f32 %v3201_v47, %v1052_v55  ;;  %2090 = vst [vmem:[%s3370_s6 + $0x138] sm:$0xff] (%p3527_p6), %v2089_v50  ;;  %v2093_v52 = vld [vmem:[%s3193_s25 + $0xb4] sm:$0xff] (%p3527_p6)  ;;  %v2095_v53 = vld [vmem:[%s3193_s25 + $0xc0] sm:$0xff] (%p3527_p6)  ;;  %2445 = vst [vmem:[%s3370_s6 + $0x8] sm:$0xf] (%p3527_p6), %v2444_v5 }
 0x1b4   : > { %v1054_v60 = vpop.f32.mrf.mxu0  ;;  %v2575_v12 = vpack.c.bf16 %v1651_v9, %v1651_v9  ;;  %2094 = vst [vmem:[%s3370_s6 + $0x168] sm:$0xff] (%p3527_p6), %v2093_v52  ;;  %2096 = vst [vmem:[%s3370_s6 + $0x180] sm:$0xff] (%p3527_p6), %v2095_v53  ;;  %v2099_v55 = vld [vmem:[%s3193_s25 + $0xd8] sm:$0xff] (%p3527_p6)  ;;  %v2107_v59 = vld [vmem:[%s3193_s25 + $0x108] sm:$0xff] (%p3527_p6) }
 0x1b5   : > { %2020 = vst [vmem:[%s3193_s25 + $0x120] sm:$0xff] %v2560_v57  ;;  %v1632_v63 = vadd.f32 %v3203_v48, %v1054_v60  ;;  %v2103_v57 = vld [vmem:[%s3193_s25 + $0xf0] sm:$0xff] (%p3527_p6)  ;;  %2100 = vst [vmem:[%s3370_s6 + $0x1b0] sm:$0xff] (%p3527_p6), %v2099_v55  ;;  %v2105_v58 = vld [vmem:[%s3193_s25 + $0xfc] sm:$0xff] (%p3527_p6) }
 0x1b6   : > { %v1058_v1 = vpop.f32.mrf.mxu0  ;;  %2035 = vst [vmem:[%s3193_s25 + $0x17c] sm:$0xf] %v2575_v12  ;;  %2104 = vst [vmem:[%s3370_s6 + $0x1e0] sm:$0xff] (%p3527_p6), %v2103_v57  ;;  %v2452_v9 = vld [vmem:[%s3193_s25 + $0x38] sm:$0xf] (%p3527_p6) }
 0x1b7   : > { %v2562_v3 = vpack.c.bf16 %v1632_v63, %v1631_v62  ;;  %v1634_v7 = vadd.f32 %v3201_v47, %v1058_v1  ;;  %2106 = vst [vmem:[%s3370_s6 + $0x1f8] sm:$0xff] (%p3527_p6), %v2105_v58  ;;  %2108 = vst [vmem:[%s3370_s6 + $0x210] sm:$0xff] (%p3527_p6), %v2107_v59  ;;  %v2458_v12 = vld [vmem:[%s3193_s25 + $0x5c] sm:$0xf] (%p3527_p6) }
 0x1b8   : > { %v1060_v6 = vpop.f32.mrf.mxu0  ;;  %v2109_v60 = vld [vmem:[%s3193_s25 + $0x114] sm:$0xff] (%p3527_p6)  ;;  %2453 = vst [vmem:[%s3370_s6 + $0x68] sm:$0xf] (%p3527_p6), %v2452_v9  ;;  %2459 = vst [vmem:[%s3370_s6 + $0xb0] sm:$0xf] (%p3527_p6), %v2458_v12 }
 0x1b9   : > { %2022 = vst [vmem:[%s3193_s25 + $0x12c] sm:$0xff] %v2562_v3  ;;  %v1635_v8 = vadd.f32 %v3203_v48, %v1060_v6  ;;  %2110 = vst [vmem:[%s3370_s6 + $0x228] sm:$0xff] (%p3527_p6), %v2109_v60  ;;  %v2446_v6 = vld [vmem:[%s3193_s25 + $0x14] sm:$0xf] (%p3527_p6) }
 0x1ba   : > { %v1062_v10 = vpop.f32.mrf.mxu0  ;;  %2447 = vst [vmem:[%s3370_s6 + $0x20] sm:$0xf] (%p3527_p6), %v2446_v6 }
 0x1bb   : > { %v2564_v11 = vpack.c.bf16 %v1635_v8, %v1634_v7  ;;  %v1637_v14 = vadd.f32 %v3201_v47, %v1062_v10  ;;  %v2448_v7 = vld [vmem:[%s3193_s25 + $0x20] sm:$0xf] (%p3527_p6)  ;;  %v2450_v8 = vld [vmem:[%s3193_s25 + $0x2c] sm:$0xf] (%p3527_p6)  ;;  %v2454_v10 = vld [vmem:[%s3193_s25 + $0x44] sm:$0xf] (%p3527_p6) }
 0x1bc   : > { %v1064_v13 = vpop.f32.mrf.mxu0  ;;  %v2111_v61 = vld [vmem:[%s3193_s25 + $0x120] sm:$0xff] (%p3527_p6)  ;;  %2449 = vst [vmem:[%s3370_s6 + $0x38] sm:$0xf] (%p3527_p6), %v2448_v7  ;;  %2451 = vst [vmem:[%s3370_s6 + $0x50] sm:$0xf] (%p3527_p6), %v2450_v8 }
 0x1bd   : > { %2024 = vst [vmem:[%s3193_s25 + $0x138] sm:$0xff] %v2564_v11  ;;  %v1638_v15 = vadd.f32 %v3203_v48, %v1064_v13  ;;  %2112 = vst [vmem:[%s3370_s6 + $0x240] sm:$0xff] (%p3527_p6), %v2111_v61  ;;  %v2456_v11 = vld [vmem:[%s3193_s25 + $0x50] sm:$0xf] (%p3527_p6)  ;;  %v2460_v13 = vld [vmem:[%s3193_s25 + $0x68] sm:$0xf] (%p3527_p6) }
 0x1be   : > { %v1068_v16 = vpop.f32.mrf.mxu0  ;;  %2455 = vst [vmem:[%s3370_s6 + $0x80] sm:$0xf] (%p3527_p6), %v2454_v10  ;;  %2457 = vst [vmem:[%s3370_s6 + $0x98] sm:$0xf] (%p3527_p6), %v2456_v11 }
 0x1bf   : > { %v2566_v17 = vpack.c.bf16 %v1638_v15, %v1637_v14  ;;  %v1640_v19 = vadd.f32 %v3201_v47, %v1068_v16  ;;  %v2462_v14 = vld [vmem:[%s3193_s25 + $0x74] sm:$0xf] (%p3527_p6)  ;;  %2461 = vst [vmem:[%s3370_s6 + $0xc8] sm:$0xf] (%p3527_p6), %v2460_v13  ;;  %v2464_v15 = vld [vmem:[%s3193_s25 + $0x80] sm:$0xf] (%p3527_p6) }
 0x1c0   : > { %v1070_v18 = vpop.f32.mrf.mxu0  ;;  %v2113_v62 = vld [vmem:[%s3193_s25 + $0x12c] sm:$0xff] (%p3527_p6)  ;;  %2463 = vst [vmem:[%s3370_s6 + $0xe0] sm:$0xf] (%p3527_p6), %v2462_v14  ;;  %2465 = vst [vmem:[%s3370_s6 + $0xf8] sm:$0xf] (%p3527_p6), %v2464_v15 }
 0x1c1   : > { %2026 = vst [vmem:[%s3193_s25 + $0x144] sm:$0xff] %v2566_v17  ;;  %v1641_v21 = vadd.f32 %v3203_v48, %v1070_v18  ;;  %2114 = vst [vmem:[%s3370_s6 + $0x258] sm:$0xff] (%p3527_p6), %v2113_v62  ;;  %v2466_v16 = vld [vmem:[%s3193_s25 + $0x8c] sm:$0xf] (%p3527_p6)  ;;  %v2468_v17 = vld [vmem:[%s3193_s25 + $0x98] sm:$0xf] (%p3527_p6) }
 0x1c2   : > { %v1072_v20 = vpop.f32.mrf.mxu0  ;;  %2467 = vst [vmem:[%s3370_s6 + $0x110] sm:$0xf] (%p3527_p6), %v2466_v16  ;;  %2469 = vst [vmem:[%s3370_s6 + $0x128] sm:$0xf] (%p3527_p6), %v2468_v17  ;;  %v2470_v18 = vld [vmem:[%s3193_s25 + $0xa4] sm:$0xf] (%p3527_p6) }
 0x1c3   : > { %v2568_v22 = vpack.c.bf16 %v1641_v21, %v1640_v19  ;;  %v1643_v24 = vadd.f32 %v3201_v47, %v1072_v20  ;;  %v2472_v19 = vld [vmem:[%s3193_s25 + $0xb0] sm:$0xf] (%p3527_p6)  ;;  %v2474_v21 = vld [vmem:[%s3193_s25 + $0xbc] sm:$0xf] (%p3527_p6)  ;;  %2471 = vst [vmem:[%s3370_s6 + $0x140] sm:$0xf] (%p3527_p6), %v2470_v18 }
 0x1c4   : > { %v1074_v23 = vpop.f32.mrf.mxu0  ;;  %v2115_v63 = vld [vmem:[%s3193_s25 + $0x138] sm:$0xff] (%p3527_p6)  ;;  %2473 = vst [vmem:[%s3370_s6 + $0x158] sm:$0xf] (%p3527_p6), %v2472_v19  ;;  %2475 = vst [vmem:[%s3370_s6 + $0x170] sm:$0xf] (%p3527_p6), %v2474_v21 }
 0x1c5   : > { %2028 = vst [vmem:[%s3193_s25 + $0x150] sm:$0xff] %v2568_v22  ;;  %v1644_v25 = vadd.f32 %v3203_v48, %v1074_v23  ;;  %2116 = vst [vmem:[%s3370_s6 + $0x270] sm:$0xff] (%p3527_p6), %v2115_v63  ;;  %v2476_v20 = vld [vmem:[%s3193_s25 + $0xc8] sm:$0xf] (%p3527_p6)  ;;  %v2478_v22 = vld [vmem:[%s3193_s25 + $0xd4] sm:$0xf] (%p3527_p6) }
 0x1c6   : > { %v1078_v26 = vpop.f32.mrf.mxu0  ;;  %v2480_v23 = vld [vmem:[%s3193_s25 + $0xe0] sm:$0xf] (%p3527_p6)  ;;  %2477 = vst [vmem:[%s3370_s6 + $0x188] sm:$0xf] (%p3527_p6), %v2476_v20  ;;  %2479 = vst [vmem:[%s3370_s6 + $0x1a0] sm:$0xf] (%p3527_p6), %v2478_v22 }
 0x1c7   : > { %v2570_v27 = vpack.c.bf16 %v1644_v25, %v1643_v24  ;;  %v1646_v29 = vadd.f32 %v3201_v47, %v1078_v26  ;;  %2481 = vst [vmem:[%s3370_s6 + $0x1b8] sm:$0xf] (%p3527_p6), %v2480_v23  ;;  %v2482_v24 = vld [vmem:[%s3193_s25 + $0xec] sm:$0xf] (%p3527_p6)  ;;  %v2484_v25 = vld [vmem:[%s3193_s25 + $0xf8] sm:$0xf] (%p3527_p6) }
 0x1c8   : > { %v1080_v28 = vpop.f32.mrf.mxu0  ;;  %v2117_v0 = vld [vmem:[%s3193_s25 + $0x144] sm:$0xff] (%p3527_p6)  ;;  %2483 = vst [vmem:[%s3370_s6 + $0x1d0] sm:$0xf] (%p3527_p6), %v2482_v24  ;;  %2485 = vst [vmem:[%s3370_s6 + $0x1e8] sm:$0xf] (%p3527_p6), %v2484_v25 }
 0x1c9   : > { %2030 = vst [vmem:[%s3193_s25 + $0x15c] sm:$0xff] %v2570_v27  ;;  %v1647_v30 = vadd.f32 %v3203_v48, %v1080_v28  ;;  %2118 = vst [vmem:[%s3370_s6 + $0x288] sm:$0xff] (%p3527_p6), %v2117_v0  ;;  %v2486_v26 = vld [vmem:[%s3193_s25 + $0x104] sm:$0xf] (%p3527_p6)  ;;  %v2488_v27 = vld [vmem:[%s3193_s25 + $0x110] sm:$0xf] (%p3527_p6) }
 0x1ca   : > { %v1082_v31 = vpop.f32.mrf.mxu0  ;;  %2487 = vst [vmem:[%s3370_s6 + $0x200] sm:$0xf] (%p3527_p6), %v2486_v26  ;;  %v2490_v28 = vld [vmem:[%s3193_s25 + $0x11c] sm:$0xf] (%p3527_p6)  ;;  %2489 = vst [vmem:[%s3370_s6 + $0x218] sm:$0xf] (%p3527_p6), %v2488_v27 }
 0x1cb   : > { %v2572_v32 = vpack.c.bf16 %v1647_v30, %v1646_v29  ;;  %v1649_v34 = vadd.f32 %v3201_v47, %v1082_v31  ;;  %v2065_v47 = vld [vmem:[%s3193_s25 + $0xc] sm:$0xff] (%p3527_p6)  ;;  %v2492_v29 = vld [vmem:[%s3193_s25 + $0x128] sm:$0xf] (%p3527_p6)  ;;  %2491 = vst [vmem:[%s3370_s6 + $0x230] sm:$0xf] (%p3527_p6), %v2490_v28 }
 0x1cc   : > { %v1084_v33 = vpop.f32.mrf.mxu0  ;;  %2066 = vst [vmem:[%s3370_s6 + $0x18] sm:$0xff] (%p3527_p6), %v2065_v47  ;;  %v2119_v1 = vld [vmem:[%s3193_s25 + $0x150] sm:$0xff] (%p3527_p6)  ;;  %2493 = vst [vmem:[%s3370_s6 + $0x248] sm:$0xf] (%p3527_p6), %v2492_v29  ;;  %v2496_v31 = vld [vmem:[%s3193_s25 + $0x140] sm:$0xf] (%p3527_p6) }
 0x1cd   : > { %2032 = vst [vmem:[%s3193_s25 + $0x168] sm:$0xff] %v2572_v32  ;;  %v1650_v35 = vadd.f32 %v3203_v48, %v1084_v33  ;;  %2042 = sbr.rel (!%p3527_p6) target bundleno = 474 (0x1da), region = 56  ;;  %v2069_v48 = vld [vmem:[%s3193_s25 + $0x24] sm:$0xff] (%p3527_p6)  ;;  %2120 = vst [vmem:[%s3370_s6 + $0x2a0] sm:$0xff] (%p3527_p6), %v2119_v1  ;;  %v2494_v30 = vld [vmem:[%s3193_s25 + $0x134] sm:$0xf] (%p3527_p6) }
 0x1ce   : > { %2070 = vst [vmem:[%s3370_s6 + $0x48] sm:$0xff] (%p3527_p6), %v2069_v48  ;;  %v2498_v32 = vld [vmem:[%s3193_s25 + $0x14c] sm:$0xf] (%p3527_p6)  ;;  %2495 = vst [vmem:[%s3370_s6 + $0x260] sm:$0xf] (%p3527_p6), %v2494_v30 }
 0x1cf   : > { %v2574_v36 = vpack.c.bf16 %v1650_v35, %v1649_v34  ;;  %2497 = vst [vmem:[%s3370_s6 + $0x278] sm:$0xf] (%p3527_p6), %v2496_v31  ;;  %2499 = vst [vmem:[%s3370_s6 + $0x290] sm:$0xf] (%p3527_p6), %v2498_v32  ;;  %v2500_v33 = vld [vmem:[%s3193_s25 + $0x158] sm:$0xf] (%p3527_p6) }
 0x1d0   : > { %v2121_v2 = vld [vmem:[%s3193_s25 + $0x15c] sm:$0xff] (%p3527_p6)  ;;  %v2502_v34 = vld [vmem:[%s3193_s25 + $0x164] sm:$0xf] (%p3527_p6)  ;;  %v2504_v35 = vld [vmem:[%s3193_s25 + $0x170] sm:$0xf] (%p3527_p6) }
 0x1d1   : > { %2034 = vst [vmem:[%s3193_s25 + $0x174] sm:$0xff] %v2574_v36  ;;  %2122 = vst [vmem:[%s3370_s6 + $0x2b8] sm:$0xff] (%p3527_p6), %v2121_v2  ;;  %v2506_v36 = vld [vmem:[%s3193_s25 + $0x17c] sm:$0xf] (%p3527_p6) }
 0x1d2   : > { %2501 = vst [vmem:[%s3370_s6 + $0x2a8] sm:$0xf] %v2500_v33  ;;  %2503 = vst [vmem:[%s3370_s6 + $0x2c0] sm:$0xf] %v2502_v34 }
 0x1d3   : > { %2505 = vst [vmem:[%s3370_s6 + $0x2d8] sm:$0xf] %v2504_v35  ;;  %2507 = vst [vmem:[%s3370_s6 + $0x2f0] sm:$0xf] %v2506_v36 }
 0x1d4   : > { %v2123_v3 = vld [vmem:[%s3193_s25 + $0x168] sm:$0xff] }
 0x1d5   : > { %2124 = vst [vmem:[%s3370_s6 + $0x2d0] sm:$0xff] %v2123_v3 }
 0x1d8   : > { %v2125_v4 = vld [vmem:[%s3193_s25 + $0x174] sm:$0xff] }
 0x1d9   : > { %2126 = vst [vmem:[%s3370_s6 + $0x2e8] sm:$0xff] %v2125_v4 }
 0x1da PF: > { %s17_s17 = sadd.s32 1, %s2969_s17   ;;  %s3528_s7 = sld [smem:[#allocation11_spill]] }
 0x1db   : > { %p14_p3 = scmp.ge.s32.totalorder %s17_s17, 4   ;;  %s3529_s12 = smov %s2953_s13 }
 0x1dc   : > { %s3530_s13 = smov %s2957_s14  ;;  %s3531_s14 = smov %s3046_s24 }
 0x1dd   : > { %s3532_s15 = smov %s2965_s16  ;;  %16 = sbr.rel (!%p14_p3) target bundleno = 7 (0x7), region = 129 }
 0x1e0   : > { %s3533_s16 = smov %s3528_s7 }
 0x1e2   :  { %2214 = vsyncpa [#allocation4], 1 }
 0x1e3   :  { %2216 = vsyncpa [#allocation4 + $0x1], 1 }
 0x1e4   :  { %2217 = vsyncpa [#allocation6], 1 }
 0x1e5   :  { %2219 = vsyncpa [#allocation6 + $0x1], 1 }

// kernel: multi_head_attention_forward.4
= control target key start
LH: loop header
LB: loop body
LE: loop exit
PB: predicated region body
PF: predicated region fallthrough
CT: control target
= control target key end

     0   :  { %s5754_s12 = smov 0   ;;  %s5756_s13 = smov 0   ;;  %s8564_s0 = inlined_call_operand.vmem [shape: bf16[2,128,768], index: 0, kind: input, shape index: {}, may-alias: {0,1,2}]   ;;  %s8565_s1 = inlined_call_operand.vmem [shape: bf16[2,128,768], index: 1, kind: input, shape index: {}, may-alias: {0,1,2}]   ;;  %s8566_s2 = inlined_call_operand.vmem [shape: bf16[2,128,768], index: 2, kind: input, shape index: {}, may-alias: {0,1,2}]   ;;  %s8567_s3 = inlined_call_operand.vmem [shape: bf16[2,128,256], index: 3, kind: output, shape index: {}]  }
   0x1   :  { %s5758_s14 = smov 0   ;;  %s5760_s15 = smov 0  }
   0x2   :  { %s5762_s16 = smov 0  }
   0x3 LB: > { %s32_s17 = sadd.s32 1, %s5721_s15  ;;  %p48_p1 = scmp.ne.s32.totalorder %s5713_s13, %s5709_s12  ;;  %s5725_s16 = sphi %s5762_s16, %s13_s16   ;;  %s5721_s15 = sphi %s5760_s15, %s9217_s15   ;;  %s5717_s14 = sphi %s5758_s14, %s9216_s14   ;;  %s5713_s13 = sphi %s5756_s13, %s9215_s13   ;;  %s5709_s12 = sphi %s5754_s12, %s9214_s12  }
   0x4   : > { %p34_p0 = scmp.ge.s32.totalorder %s32_s17, 2  ;;  %p49_p2 = scmp.eq.s32.totalorder %s5725_s16, 0 }
   0x5   : > { %s41_s20 = sadd.s32 1, %s5713_s13  ;;  %p4607_p5 = scmp.ge.s32.totalorder %s5725_s16, 2 }
   0x6   : > { %s9219_s17 = smov (%p34_p0, %s32_s17), 0  ;;  %p5785_p3 = por %p49_p2, %p48_p1 }
   0x7   : > { %s36_s19 = ssub.s32 %s5721_s15, %s9219_s17  ;;  %158 = sbr.rel (%p4607_p5) target bundleno = 51 (0x33), region = 16 }
   0x8   : > { %p39_p4 = scmp.eq.s32.totalorder %s36_s19, 0 }
   0xa   : > { %s5793_s21 = scalar_select %p39_p4, %s5713_s13, %s41_s20  }
   0xc   : > { %161 = sbr.rel (!%p5785_p3) target bundleno = 25 (0x19), region = 20  ;;  %s163_s22 = sand.u32 (%p5785_p3), 1, %s5713_s13  }
   0xd   : > { %s5183_s23 = smul.u32 (%p5785_p3), 384, %s5721_s15  ;;  %s4608_s24 = sshll.u32 (%p5785_p3), %s163_s22, 7 }
   0xe   : > { %s165_s28 = scalar_lea.vmem (%p5785_p3), [#allocation5], %s4608_s24 }
   0xf   : > { %s5803_s27 = scalar_lea.vmem (%p5785_p3), %s8564_s0, %s5183_s23 }
  0x10   : > { %v230_v0 = vld [vmem:[%s5803_s27] sm:$0xff] (%p5785_p3)  ;;  %v232_v1 = vld [vmem:[%s5803_s27 + $0x18] sm:$0xff] (%p5785_p3)  ;;  %v234_v2 = vld [vmem:[%s5803_s27 + $0x30] sm:$0xff] (%p5785_p3) }
  0x11   : > { %231 = vst [vmem:[%s165_s28] sm:$0xff] %v230_v0  ;;  %233 = vst [vmem:[%s165_s28 + $0x8] sm:$0xff] %v232_v1  ;;  %v236_v3 = vld [vmem:[%s5803_s27 + $0x48] sm:$0xff]  ;;  %v238_v4 = vld [vmem:[%s5803_s27 + $0x60] sm:$0xff] }
  0x12   : > { %235 = vst [vmem:[%s165_s28 + $0x10] sm:$0xff] %v234_v2  ;;  %v240_v5 = vld [vmem:[%s5803_s27 + $0x78] sm:$0xff]  ;;  %237 = vst [vmem:[%s165_s28 + $0x18] sm:$0xff] %v236_v3  ;;  %v242_v6 = vld [vmem:[%s5803_s27 + $0x90] sm:$0xff] }
  0x13   : > { %239 = vst [vmem:[%s165_s28 + $0x20] sm:$0xff] %v238_v4  ;;  %241 = vst [vmem:[%s165_s28 + $0x28] sm:$0xff] %v240_v5  ;;  %v244_v7 = vld [vmem:[%s5803_s27 + $0xa8] sm:$0xff]  ;;  %v246_v8 = vld [vmem:[%s5803_s27 + $0xc0] sm:$0xff] }
  0x14   : > { %243 = vst [vmem:[%s165_s28 + $0x30] sm:$0xff] %v242_v6  ;;  %245 = vst [vmem:[%s165_s28 + $0x38] sm:$0xff] %v244_v7  ;;  %v248_v9 = vld [vmem:[%s5803_s27 + $0xd8] sm:$0xff]  ;;  %v250_v10 = vld [vmem:[%s5803_s27 + $0xf0] sm:$0xff] }
  0x15   : > { %247 = vst [vmem:[%s165_s28 + $0x40] sm:$0xff] %v246_v8  ;;  %v252_v11 = vld [vmem:[%s5803_s27 + $0x108] sm:$0xff]  ;;  %249 = vst [vmem:[%s165_s28 + $0x48] sm:$0xff] %v248_v9  ;;  %v254_v12 = vld [vmem:[%s5803_s27 + $0x120] sm:$0xff] }
  0x16   : > { %251 = vst [vmem:[%s165_s28 + $0x50] sm:$0xff] %v250_v10  ;;  %253 = vst [vmem:[%s165_s28 + $0x58] sm:$0xff] %v252_v11  ;;  %v256_v13 = vld [vmem:[%s5803_s27 + $0x138] sm:$0xff]  ;;  %v258_v14 = vld [vmem:[%s5803_s27 + $0x150] sm:$0xff] }
  0x17   : > { %255 = vst [vmem:[%s165_s28 + $0x60] sm:$0xff] %v254_v12  ;;  %257 = vst [vmem:[%s165_s28 + $0x68] sm:$0xff] %v256_v13  ;;  %v260_v15 = vld [vmem:[%s5803_s27 + $0x168] sm:$0xff] }
  0x18   : > { %259 = vst [vmem:[%s165_s28 + $0x70] sm:$0xff] %v258_v14  ;;  %261 = vst [vmem:[%s165_s28 + $0x78] sm:$0xff] %v260_v15 }
  0x19 PF: > { %267 = sbr.rel (!%p5785_p3) target bundleno = 38 (0x26), region = 58  ;;  %s269_s29 = sand.u32 (%p5785_p3), 1, %s5713_s13  }
  0x1a   : > { %s4611_s30 = smul.u32 (%p5785_p3), 384, %s5721_s15  ;;  %s4610_s4 = sshll.u32 (%p5785_p3), %s269_s29, 7 }
  0x1b   : > { %s271_s8 = scalar_lea.vmem (%p5785_p3), [#allocation6], %s4610_s4 }
  0x1c   : > { %s5828_s7 = scalar_lea.vmem (%p5785_p3), %s8565_s1, %s4611_s30 }
  0x1d   : > { %v4612_v16 = vld [vmem:[%s5828_s7 + $0x8] sm:$0xff] (%p5785_p3)  ;;  %v4613_v17 = vld [vmem:[%s5828_s7 + $0x20] sm:$0xff] (%p5785_p3)  ;;  %v4614_v18 = vld [vmem:[%s5828_s7 + $0x38] sm:$0xff] (%p5785_p3) }
  0x1e   : > { %338 = vst [vmem:[%s271_s8] sm:$0xff] %v4612_v16  ;;  %340 = vst [vmem:[%s271_s8 + $0x8] sm:$0xff] %v4613_v17  ;;  %v4615_v19 = vld [vmem:[%s5828_s7 + $0x50] sm:$0xff]  ;;  %v4616_v20 = vld [vmem:[%s5828_s7 + $0x68] sm:$0xff] }
  0x1f   : > { %342 = vst [vmem:[%s271_s8 + $0x10] sm:$0xff] %v4614_v18  ;;  %v4617_v21 = vld [vmem:[%s5828_s7 + $0x80] sm:$0xff]  ;;  %344 = vst [vmem:[%s271_s8 + $0x18] sm:$0xff] %v4615_v19  ;;  %v4618_v22 = vld [vmem:[%s5828_s7 + $0x98] sm:$0xff] }
  0x20   : > { %346 = vst [vmem:[%s271_s8 + $0x20] sm:$0xff] %v4616_v20  ;;  %348 = vst [vmem:[%s271_s8 + $0x28] sm:$0xff] %v4617_v21  ;;  %v4619_v23 = vld [vmem:[%s5828_s7 + $0xb0] sm:$0xff]  ;;  %v4620_v24 = vld [vmem:[%s5828_s7 + $0xc8] sm:$0xff] }
  0x21   : > { %350 = vst [vmem:[%s271_s8 + $0x30] sm:$0xff] %v4618_v22  ;;  %352 = vst [vmem:[%s271_s8 + $0x38] sm:$0xff] %v4619_v23  ;;  %v4621_v25 = vld [vmem:[%s5828_s7 + $0xe0] sm:$0xff]  ;;  %v4622_v26 = vld [vmem:[%s5828_s7 + $0xf8] sm:$0xff] }
  0x22   : > { %354 = vst [vmem:[%s271_s8 + $0x40] sm:$0xff] %v4620_v24  ;;  %v4623_v27 = vld [vmem:[%s5828_s7 + $0x110] sm:$0xff]  ;;  %356 = vst [vmem:[%s271_s8 + $0x48] sm:$0xff] %v4621_v25  ;;  %v4624_v28 = vld [vmem:[%s5828_s7 + $0x128] sm:$0xff] }
  0x23   : > { %358 = vst [vmem:[%s271_s8 + $0x50] sm:$0xff] %v4622_v26  ;;  %360 = vst [vmem:[%s271_s8 + $0x58] sm:$0xff] %v4623_v27  ;;  %v4625_v29 = vld [vmem:[%s5828_s7 + $0x140] sm:$0xff]  ;;  %v4626_v30 = vld [vmem:[%s5828_s7 + $0x158] sm:$0xff] }
  0x24   : > { %362 = vst [vmem:[%s271_s8 + $0x60] sm:$0xff] %v4624_v28  ;;  %364 = vst [vmem:[%s271_s8 + $0x68] sm:$0xff] %v4625_v29  ;;  %v4627_v31 = vld [vmem:[%s5828_s7 + $0x170] sm:$0xff] }
  0x25   : > { %366 = vst [vmem:[%s271_s8 + $0x70] sm:$0xff] %v4626_v30  ;;  %368 = vst [vmem:[%s271_s8 + $0x78] sm:$0xff] %v4627_v31 }
  0x26 PF: > { %374 = sbr.rel (!%p5785_p3) target bundleno = 51 (0x33), region = 96  ;;  %s376_s9 = sand.u32 (%p5785_p3), 1, %s5713_s13  }
  0x27   : > { %s4629_s10 = smul.u32 (%p5785_p3), 384, %s5721_s15  ;;  %s4628_s11 = sshll.u32 (%p5785_p3), %s376_s9, 7 }
  0x28   : > { %s378_s18 = scalar_lea.vmem (%p5785_p3), [#allocation7], %s4628_s11 }
  0x29   : > { %s5853_s22 = scalar_lea.vmem (%p5785_p3), %s8566_s2, %s4629_s10 }
  0x2a   : > { %v4630_v32 = vld [vmem:[%s5853_s22 + $0x10] sm:$0xff] (%p5785_p3)  ;;  %v4631_v33 = vld [vmem:[%s5853_s22 + $0x28] sm:$0xff] (%p5785_p3)  ;;  %v4632_v34 = vld [vmem:[%s5853_s22 + $0x40] sm:$0xff] (%p5785_p3) }
  0x2b   : > { %445 = vst [vmem:[%s378_s18] sm:$0xff] %v4630_v32  ;;  %447 = vst [vmem:[%s378_s18 + $0x8] sm:$0xff] %v4631_v33  ;;  %v4633_v35 = vld [vmem:[%s5853_s22 + $0x58] sm:$0xff]  ;;  %v4634_v36 = vld [vmem:[%s5853_s22 + $0x70] sm:$0xff] }
  0x2c   : > { %449 = vst [vmem:[%s378_s18 + $0x10] sm:$0xff] %v4632_v34  ;;  %v4635_v37 = vld [vmem:[%s5853_s22 + $0x88] sm:$0xff]  ;;  %451 = vst [vmem:[%s378_s18 + $0x18] sm:$0xff] %v4633_v35  ;;  %v4636_v38 = vld [vmem:[%s5853_s22 + $0xa0] sm:$0xff] }
  0x2d   : > { %453 = vst [vmem:[%s378_s18 + $0x20] sm:$0xff] %v4634_v36  ;;  %455 = vst [vmem:[%s378_s18 + $0x28] sm:$0xff] %v4635_v37  ;;  %v4637_v39 = vld [vmem:[%s5853_s22 + $0xb8] sm:$0xff]  ;;  %v4638_v40 = vld [vmem:[%s5853_s22 + $0xd0] sm:$0xff] }
  0x2e   : > { %457 = vst [vmem:[%s378_s18 + $0x30] sm:$0xff] %v4636_v38  ;;  %459 = vst [vmem:[%s378_s18 + $0x38] sm:$0xff] %v4637_v39  ;;  %v4639_v41 = vld [vmem:[%s5853_s22 + $0xe8] sm:$0xff]  ;;  %v4640_v42 = vld [vmem:[%s5853_s22 + $0x100] sm:$0xff] }
  0x2f   : > { %461 = vst [vmem:[%s378_s18 + $0x40] sm:$0xff] %v4638_v40  ;;  %v4641_v43 = vld [vmem:[%s5853_s22 + $0x118] sm:$0xff]  ;;  %463 = vst [vmem:[%s378_s18 + $0x48] sm:$0xff] %v4639_v41  ;;  %v4642_v44 = vld [vmem:[%s5853_s22 + $0x130] sm:$0xff] }
  0x30   : > { %465 = vst [vmem:[%s378_s18 + $0x50] sm:$0xff] %v4640_v42  ;;  %467 = vst [vmem:[%s378_s18 + $0x58] sm:$0xff] %v4641_v43  ;;  %v4643_v45 = vld [vmem:[%s5853_s22 + $0x148] sm:$0xff]  ;;  %v4644_v46 = vld [vmem:[%s5853_s22 + $0x160] sm:$0xff] }
  0x31   : > { %469 = vst [vmem:[%s378_s18 + $0x60] sm:$0xff] %v4642_v44  ;;  %471 = vst [vmem:[%s378_s18 + $0x68] sm:$0xff] %v4643_v45  ;;  %v4645_v47 = vld [vmem:[%s5853_s22 + $0x178] sm:$0xff] }
  0x32   : > { %473 = vst [vmem:[%s378_s18 + $0x70] sm:$0xff] %v4644_v46  ;;  %475 = vst [vmem:[%s378_s18 + $0x78] sm:$0xff] %v4645_v47 }
  0x33 PF: > { %p4646_p6 = scmp.ge.s32.totalorder %s5725_s16, 1  ;;  %p480_p7 = scmp.lt.s32.totalorder %s5725_s16, 3 }
  0x35   : > { %p481_p8 = pnand %p4646_p6, %p480_p7 }
  0x37   : > { %484 = sbr.rel (%p481_p8) target bundleno = 2787 (0xae3), region = 134 }
  0x3c   : > { %s487_s23 = sand.u32 1, %s5709_s12   ;;  %vm781_vm0 = vcmask 523264   ;;  %vm556_vm1 = vcmask 31744   ;;  %v5727_v8 = vmov -inf   ;;  %v8568_v16 = vmov 0   ;;  %s5730_s27 = smov 64  }
  0x3d   : > { %s5874_s24 = sshll.u32 %s487_s23, 7  ;;  %559 = vst.msk [vmem:[#allocation2 + $0x10] sm:$0xff] %vm556_vm1, %v5727_v8  ;;  %557 = vst.msk [vmem:[#allocation2] sm:$0xff] %vm556_vm1, %v5727_v8  ;;  %5232 = vset.pattern.permute.xlu1 %v8568_v16  ;;  %5231 = vset.pattern.permute.xlu0 %v8568_v16  ;;  %v5729_v23 = vmov 0.0   ;;  %vm3494_vm2 = vcmask 7168   ;;  %vm3511_vm3 = vcmask 15360  }
  0x3e   : > { %s5877_s25 = scalar_lea.vmem [#allocation6], %s5874_s24  ;;  %s5897_s12 = scalar_lea.vmem [#allocation5], %s5874_s24  ;;  %558 = vst.msk [vmem:[#allocation2 + $0x8] sm:$0xff] %vm556_vm1, %v5727_v8  ;;  %560 = vst.msk [vmem:[#allocation2 + $0x18] sm:$0xff] %vm556_vm1, %v5727_v8  ;;  %vm3528_vm4 = vcmask 23552  }
  0x3f   : > { %v5880_v48 = vld [vmem:[%s5877_s25 + $0x70] ss:$8 sps:$4 sm:$0xff]   ;;  %v5887_v50 = vld [vmem:[%s5877_s25 + $0x60] ss:$8 sps:$4 sm:$0xff]   ;;  %561 = vst.msk [vmem:[#allocation2 + $0x20] sm:$0xff] %vm556_vm1, %v5727_v8  ;;  %562 = vst.msk [vmem:[#allocation2 + $0x28] sm:$0xff] %vm556_vm1, %v5727_v8 }
  0x40   : > { %5151 = vmatprep.subr.msk.bf16.mxu0 %vm781_vm0, %v5880_v48  ;;  %v828_v49 = vsel %vm781_vm0, %v5880_v48, 0  ;;  %v825_v51 = vsel %vm781_vm0, %v5887_v50, 0  ;;  %v5894_v52 = vld [vmem:[%s5877_s25 + $0x50] ss:$8 sps:$4 sm:$0xff]   ;;  %v5900_v53 = vld [vmem:[%s5897_s12] ss:$8 sps:$4 sm:$0xff]  }
  0x41   : > { %4896 = vmatpush3.bf16.xpose.msra.mxu0 %v828_v49  ;;  %4911 = vmatprep.mubr.msk.bf16.mxu0 %vm781_vm0, %v5900_v53  ;;  %v822_v54 = vsel %vm781_vm0, %v5894_v52, 0  ;;  %v5909_v55 = vld [vmem:[%s5877_s25 + $0x40] ss:$8 sps:$4 sm:$0xff]   ;;  %v5916_v57 = vld [vmem:[%s5877_s25 + $0x30] ss:$8 sps:$4 sm:$0xff]   ;;  %563 = vst.msk [vmem:[#allocation2 + $0x30] sm:$0xff] %vm556_vm1, %v5727_v8 }
  0x42   : > { %5152 = vmatprep.subr.msk.bf16.mxu0 %vm781_vm0, %v5887_v50  ;;  %v819_v56 = vsel %vm781_vm0, %v5909_v55, 0  ;;  %v816_v58 = vsel %vm781_vm0, %v5916_v57, 0  ;;  %v5923_v59 = vld [vmem:[%s5877_s25 + $0x20] ss:$8 sps:$4 sm:$0xff]   ;;  %v5930_v61 = vld [vmem:[%s5877_s25 + $0x10] ss:$8 sps:$4 sm:$0xff]  }
  0x43   : > { %v813_v60 = vsel %vm781_vm0, %v5923_v59, 0  ;;  %v810_v62 = vsel %vm781_vm0, %v5930_v61, 0  ;;  %v5937_v63 = vld [vmem:[%s5877_s25] ss:$8 sps:$4 sm:$0xff]   ;;  %v5944_v1 = vld [vmem:[%s5897_s12 + $0x10] ss:$8 sps:$4 sm:$0xff]  }
  0x44   : > { %v807_v0 = vsel %vm781_vm0, %v5937_v63, 0  ;;  %v5947_v2 = vld [vmem:[%s5897_s12 + $0x20] ss:$8 sps:$4 sm:$0xff]   ;;  %v5954_v3 = vld [vmem:[%s5897_s12 + $0x30] ss:$8 sps:$4 sm:$0xff]   ;;  %564 = vst.msk [vmem:[#allocation2 + $0x38] sm:$0xff] %vm556_vm1, %v5727_v8 }
  0x45   : > { %v5957_v4 = vld [vmem:[%s5897_s12 + $0x40] ss:$8 sps:$4 sm:$0xff]   ;;  %v5964_v5 = vld [vmem:[%s5897_s12 + $0x50] ss:$8 sps:$4 sm:$0xff]   ;;  %565 = vst.msk [vmem:[#allocation2 + $0x40] sm:$0xff] %vm556_vm1, %v5727_v8  ;;  %566 = vst.msk [vmem:[#allocation2 + $0x48] sm:$0xff] %vm556_vm1, %v5727_v8 }
  0x46   : > { %v5967_v6 = vld [vmem:[%s5897_s12 + $0x60] ss:$8 sps:$4 sm:$0xff]   ;;  %v5974_v7 = vld [vmem:[%s5897_s12 + $0x70] ss:$8 sps:$4 sm:$0xff]   ;;  %567 = vst.msk [vmem:[#allocation2 + $0x50] sm:$0xff] %vm556_vm1, %v5727_v8  ;;  %568 = vst.msk [vmem:[#allocation2 + $0x58] sm:$0xff] %vm556_vm1, %v5727_v8 }
  0x47   : > { %569 = vst.msk [vmem:[#allocation2 + $0x60] sm:$0xff] %vm556_vm1, %v5727_v8  ;;  %570 = vst.msk [vmem:[#allocation2 + $0x68] sm:$0xff] %vm556_vm1, %v5727_v8  ;;  %s6061_s26 = scalar_lea.vmem [#allocation7], %s5874_s24  ;;  %v6086_v32 = vld [vmem:[#allocation2 + $0x10] sm:$0xff]  ;;  %v6089_v34 = vld [vmem:[#allocation2] sm:$0xff]  ;;  %p541_p9 = scmp.lt.s32.totalorder %s5717_s14, 1 }
  0x48   : > { %571 = vst.msk [vmem:[#allocation2 + $0x70] sm:$0xff] %vm556_vm1, %v5727_v8  ;;  %572 = vst.msk [vmem:[#allocation2 + $0x78] sm:$0xff] %vm556_vm1, %v5727_v8  ;;  %v6064_v27 = vld [vmem:[%s6061_s26 + $0x70] ss:$8 sps:$4 sm:$0xff]   ;;  %v6068_v28 = vld [vmem:[%s6061_s26 + $0x60] ss:$8 sps:$4 sm:$0xff]  }
  0x49   : > { %4898 = vmatpush3.bf16.xpose.msra.mxu0 %v825_v51  ;;  %573 = vst.msk [vmem:[#allocation3] sm:$0xff] %vm556_vm1, %v5729_v23  ;;  %574 = vst.msk [vmem:[#allocation3 + $0x8] sm:$0xff] %vm556_vm1, %v5729_v23  ;;  %4927 = vmatprep.subr.bf16.mxu1 %v6064_v27  ;;  %v6073_v29 = vld [vmem:[%s6061_s26 + $0x50] ss:$8 sps:$4 sm:$0xff]   ;;  %v6078_v30 = vld [vmem:[%s6061_s26 + $0x40] ss:$8 sps:$4 sm:$0xff]  }
  0x4a   : > { %5153 = vmatprep.subr.msk.bf16.mxu0 %vm781_vm0, %v5894_v52  ;;  %575 = vst.msk [vmem:[#allocation3 + $0x10] sm:$0xff] %vm556_vm1, %v5729_v23  ;;  %576 = vst.msk [vmem:[#allocation3 + $0x18] sm:$0xff] %vm556_vm1, %v5729_v23  ;;  %4928 = vmatpush3.bf16.msra.mxu1 %v6064_v27  ;;  %v6084_v31 = vld [vmem:[%s6061_s26 + $0x30] ss:$8 sps:$4 sm:$0xff]   ;;  %v6096_v36 = vld [vmem:[%s6061_s26 + $0x20] ss:$8 sps:$4 sm:$0xff]  }
  0x4b   : > { %577 = vst.msk [vmem:[#allocation3 + $0x20] sm:$0xff] %vm556_vm1, %v5729_v23  ;;  %578 = vst.msk [vmem:[#allocation3 + $0x28] sm:$0xff] %vm556_vm1, %v5729_v23  ;;  %4929 = vmatprep.subr.bf16.mxu1 %v6068_v28  ;;  %v6103_v39 = vld [vmem:[#allocation2 + $0x8] sm:$0xff]  ;;  %v6108_v40 = vld [vmem:[%s6061_s26 + $0x10] ss:$8 sps:$4 sm:$0xff]   ;;  %s9221_s14 = smov (!%p541_p9, %s5717_s14), 1 }
  0x4c   : > { %579 = vst.msk [vmem:[#allocation3 + $0x30] sm:$0xff] %vm556_vm1, %v5729_v23  ;;  %580 = vst.msk [vmem:[#allocation3 + $0x38] sm:$0xff] %vm556_vm1, %v5729_v23  ;;  %v6114_v43 = vld [vmem:[#allocation2 + $0x18] sm:$0xff]  ;;  %v6119_v45 = vld [vmem:[%s6061_s26] ss:$8 sps:$4 sm:$0xff]   ;;  %s4750_s28 = sshll.u32 %s9221_s14, 7 }
  0x4d   : > { %581 = vst.msk [vmem:[#allocation3 + $0x40] sm:$0xff] %vm556_vm1, %v5729_v23  ;;  %582 = vst.msk [vmem:[#allocation3 + $0x48] sm:$0xff] %vm556_vm1, %v5729_v23  ;;  %v6121_v47 = vld [vmem:[#allocation2 + $0x38] sm:$0xff]  ;;  %s8337_s30 = scalar_lea.vmem %s8567_s3, %s4750_s28 }
  0x4e   : > { %583 = vst.msk [vmem:[#allocation3 + $0x50] sm:$0xff] %vm556_vm1, %v5729_v23  ;;  %584 = vst.msk [vmem:[#allocation3 + $0x58] sm:$0xff] %vm556_vm1, %v5729_v23  ;;  %4930 = vmatpush3.bf16.msra.mxu1 %v6068_v28 }
  0x4f   : > { %585 = vst.msk [vmem:[#allocation3 + $0x60] sm:$0xff] %vm556_vm1, %v5729_v23  ;;  %586 = vst.msk [vmem:[#allocation3 + $0x68] sm:$0xff] %vm556_vm1, %v5729_v23  ;;  %4931 = vmatprep.subr.bf16.mxu1 %v6073_v29  ;;  %v6168_v16 = vld [vmem:[#allocation2 + $0x78] sm:$0xff] }
  0x50   : > { %587 = vst.msk [vmem:[#allocation3 + $0x70] sm:$0xff] %vm556_vm1, %v5729_v23  ;;  %588 = vst.msk [vmem:[#allocation3 + $0x78] sm:$0xff] %vm556_vm1, %v5729_v23  ;;  %v6140_v23 = vld [vmem:[#allocation2 + $0x40] sm:$0xff] }
  0x51   : > { %4900 = vmatpush3.bf16.xpose.msra.mxu0 %v822_v54 }
  0x52   : > { %5154 = vmatprep.subr.msk.bf16.mxu0 %vm781_vm0, %v5909_v55  ;;  %4932 = vmatpush3.bf16.msra.mxu1 %v6073_v29 }
  0x53   : > { %4933 = vmatprep.subr.bf16.mxu1 %v6078_v30 }
  0x56   : > { %4934 = vmatpush3.bf16.msra.mxu1 %v6078_v30 }
  0x57   : > { %4935 = vmatprep.subr.bf16.mxu1 %v6084_v31 }
  0x59   : > { %4902 = vmatpush3.bf16.xpose.msra.mxu0 %v819_v56 }
  0x5a   : > { %5155 = vmatprep.subr.msk.bf16.mxu0 %vm781_vm0, %v5916_v57  ;;  %4936 = vmatpush3.bf16.msra.mxu1 %v6084_v31 }
  0x5b   : > { %4937 = vmatprep.subr.bf16.mxu1 %v6096_v36 }
  0x5e   : > { %4938 = vmatpush3.bf16.msra.mxu1 %v6096_v36 }
  0x5f   : > { %4939 = vmatprep.subr.bf16.mxu1 %v6108_v40 }
  0x61   : > { %4904 = vmatpush3.bf16.xpose.msra.mxu0 %v816_v58 }
  0x62   : > { %5156 = vmatprep.subr.msk.bf16.mxu0 %vm781_vm0, %v5923_v59  ;;  %4940 = vmatpush3.bf16.msra.mxu1 %v6108_v40 }
  0x63   : > { %4941 = vmatprep.subr.bf16.mxu1 %v6119_v45 }
  0x66   : > { %4942 = vmatpush3.bf16.msra.mxu1 %v6119_v45 }
  0x69   : > { %4906 = vmatpush3.bf16.xpose.msra.mxu0 %v813_v60  ;;  %v6133_v60 = vld [vmem:[#allocation2 + $0x50] sm:$0xff] }
  0x6a   : > { %5157 = vmatprep.subr.msk.bf16.mxu0 %vm781_vm0, %v5930_v61 }
  0x71   : > { %4908 = vmatpush3.bf16.xpose.msra.mxu0 %v810_v62 }
  0x72   : > { %5158 = vmatprep.subr.msk.bf16.mxu0 %vm781_vm0, %v5937_v63 }
  0x79   : > { %4910 = vmatpush3.bf16.xpose.msra.mxu0 %v807_v0 }
  0x80   : > { %4912 = vmatmul.mubr.msk.bf16.vlgmr.msra.gmra.mxu0 %vm781_vm0, %v5944_v1 }
  0x81   : > { %4915 = vmatprep.mubr.msk.bf16.mxu0 %vm781_vm0, %v5947_v2 }
  0x88   : > { %4916 = vmatmul.mubr.msk.bf16.gmra.mxu0 %vm781_vm0, %v5954_v3 }
  0x89   : > { %4919 = vmatprep.mubr.msk.bf16.mxu0 %vm781_vm0, %v5957_v4 }
  0x90   : > { %4920 = vmatmul.mubr.msk.bf16.gmra.mxu0 %vm781_vm0, %v5964_v5 }
  0x91   : > { %4923 = vmatprep.mubr.msk.bf16.mxu0 %vm781_vm0, %v5967_v6 }
  0x98   : > { %4924 = vmatmul.mubr.msk.bf16.gmra.mxu0 %vm781_vm0, %v5974_v7 }
 0x140   : > { %v5994_v9 = vpop.f32.mrf.mxu0 }
 0x141   : > { %931 = vmax.xlane.f32.xlu1 %v5994_v9 }
 0x142   : > { %v5997_v10 = vpop.f32.mrf.mxu0 }
 0x143   : > { %927 = vmax.xlane.f32.xlu0 %v5997_v10 }
 0x144   : > { %v6000_v11 = vpop.f32.mrf.mxu0 }
 0x145   : > { %933 = vmax.xlane.f32.xlu1 %v6000_v11 }
 0x146   : > { %v6003_v12 = vpop.f32.mrf.mxu0 }
 0x147   : > { %929 = vmax.xlane.f32.xlu0 %v6003_v12 }
 0x148   : > { %v6006_v13 = vpop.f32.mrf.mxu0 }
 0x14a   : > { %v6008_v14 = vpop.f32.mrf.mxu0 }
 0x14b   : > { %939 = vmax.xlane.f32.xlu0 %v6006_v13 }
 0x14c   : > { %v6011_v15 = vpop.f32.mrf.mxu0 }
 0x14d   : > { %941 = vmax.xlane.f32.xlu1 %v6011_v15 }
 0x14e   : > { %v6016_v17 = vpop.f32.mrf.mxu0 }
 0x14f   : > { %935 = vmax.xlane.f32.xlu0 %v6008_v14 }
 0x150   : > { %v6019_v18 = vpop.f32.mrf.mxu0 }
 0x151   : > { %937 = vmax.xlane.f32.xlu1 %v6016_v17 }
 0x152   : > { %v6022_v19 = vpop.f32.mrf.mxu0 }
 0x153   : > { %947 = vmax.xlane.f32.xlu0 %v6019_v18 }
 0x154   : > { %v6025_v20 = vpop.f32.mrf.mxu0 }
 0x155   : > { %949 = vmax.xlane.f32.xlu1 %v6025_v20 }
 0x156   : > { %v6028_v21 = vpop.f32.mrf.mxu0 }
 0x157   : > { %943 = vmax.xlane.f32.xlu0 %v6022_v19 }
 0x158   : > { %v6031_v22 = vpop.f32.mrf.mxu0 }
 0x159   : > { %945 = vmax.xlane.f32.xlu1 %v6028_v21 }
 0x15a   : > { %v6050_v24 = vpop.f32.mrf.mxu0 }
 0x15b   : > { %955 = vmax.xlane.f32.xlu0 %v6031_v22 }
 0x15c   : > { %v6053_v25 = vpop.f32.mrf.mxu0 }
 0x15d   : > { %957 = vmax.xlane.f32.xlu1 %v6053_v25 }
 0x15e   : > { %v6056_v26 = vpop.f32.mrf.mxu0 }
 0x15f   : > { %951 = vmax.xlane.f32.xlu0 %v6050_v24 }
 0x161   : > { %953 = vmax.xlane.f32.xlu1 %v6056_v26 }
 0x1ca   : > { %v932_v33 = vpop.xlane.xlu1 %931 }
 0x1cb   : > { %v6093_v35 = vmax.f32 %v6086_v32, %v932_v33  ;;  %v6145_v33 = vld [vmem:[#allocation2 + $0x30] sm:$0xff] }
 0x1cc   : > { %v928_v37 = vpop.xlane.xlu0 %927 }
 0x1cd   : > { %v6099_v38 = vmax.f32 %v6089_v34, %v928_v37  ;;  %1035 = vperm.xlu1 %5232, %v6093_v35  }
 0x1ce   : > { %v934_v44 = vpop.xlane.xlu1 %933 }
 0x1cf   : > { %8676 = vst [vmem:[#allocation8_spill] sm:$0xff] %v6099_v38  ;;  %1025 = vperm.xlu0 %5231, %v6099_v38   ;;  %v6124_v49 = vmax.f32 %v6114_v43, %v934_v44 }
 0x1d0   : > { %v930_v41 = vpop.xlane.xlu0 %929 }
 0x1d1   : > { %v6111_v42 = vmax.f32 %v6103_v39, %v930_v41 }
 0x1d3   : > { %8677 = vst [vmem:[#allocation9_spill] sm:$0xff] %v6111_v42  ;;  %1030 = vperm.xlu1 %5232, %v6111_v42  }
 0x1d4   : > { %v940_v46 = vpop.xlane.xlu0 %939 }
 0x1d6   : > { %v942_v51 = vpop.xlane.xlu1 %941 }
 0x1d7   : > { %v6129_v54 = vmax.f32 %v6121_v47, %v942_v51  ;;  %1040 = vperm.xlu1 %5232, %v6124_v49   ;;  %v6156_v51 = vld [vmem:[#allocation2 + $0x20] sm:$0xff] }
 0x1d8   : > { %v936_v56 = vpop.xlane.xlu0 %935 }
 0x1d9   : > { %8678 = vst [vmem:[#allocation10_spill] sm:$0xff] %v6129_v54  ;;  %1060 = vperm.xlu0 %5231, %v6129_v54   ;;  %v6187_v54 = vld [vmem:[#allocation2 + $0x48] sm:$0xff] }
 0x1da   : > { %v938_v58 = vpop.xlane.xlu1 %937 }
 0x1db   : > { %1478 = vrot.lane.b32.xlu1 %v5880_v48, %s5730_s27  ;;  %v6151_v48 = vmax.f32 %v6145_v33, %v940_v46  ;;  %v6166_v46 = vld [vmem:[#allocation2 + $0x68] sm:$0xff] }
 0x1dc   : > { %v948_v62 = vpop.xlane.xlu0 %947 }
 0x1dd   : > { %v6138_v0 = vmax.f32 %v6133_v60, %v948_v62  ;;  %8681 = vst [vmem:[#allocation13_spill] sm:$0xff] %v6151_v48 }
 0x1de   : > { %v950_v8 = vpop.xlane.xlu1 %949 }
 0x1df   : > { %8679 = vst [vmem:[#allocation11_spill] sm:$0xff] %v6138_v0  ;;  %1075 = vperm.xlu0 %5231, %v6138_v0   ;;  %1476 = vrot.lane.b32.xlu1 %v5887_v50, %s5730_s27  ;;  %v6159_v50 = vmax.f32 %v6156_v51, %v936_v56  ;;  %v6177_v56 = vld [vmem:[#allocation2 + $0x58] sm:$0xff] }
 0x1e0   : > { %v944_v37 = vpop.xlane.xlu0 %943 }
 0x1e1   : > { %v6148_v41 = vmax.f32 %v6140_v23, %v944_v37  ;;  %v6164_v37 = vld [vmem:[#allocation2 + $0x28] sm:$0xff] }
 0x1e2   : > { %v946_v44 = vpop.xlane.xlu1 %945 }
 0x1e3   : > { %8680 = vst [vmem:[#allocation12_spill] sm:$0xff] %v6148_v41  ;;  %1065 = vperm.xlu0 %5231, %v6148_v41   ;;  %1474 = vrot.lane.b32.xlu1 %v5894_v52, %s5730_s27  ;;  %v6171_v52 = vmax.f32 %v6164_v37, %v938_v58 }
 0x1e4   : > { %v956_v58 = vpop.xlane.xlu0 %955 }
 0x1e6   : > { %v958_v62 = vpop.xlane.xlu1 %957 }
 0x1e7   : > { %1055 = vperm.xlu1 %5232, %v6151_v48   ;;  %1472 = vrot.lane.b32.xlu0 %v5909_v55, %s5730_s27  ;;  %v6180_v38 = vmax.f32 %v6168_v16, %v958_v62  ;;  %v6184_v55 = vmax.f32 %v6177_v56, %v950_v8  ;;  %v6194_v48 = vld [vmem:[#allocation2 + $0x70] sm:$0xff]  ;;  %v6202_v62 = vld [vmem:[#allocation2 + $0x60] sm:$0xff] }
 0x1e8   : > { %v6200_v8 = vmax.f32 %v6194_v48, %v956_v58 }
 0x1e9   : > { %8683 = vst [vmem:[#allocation15_spill] sm:$0xff] %v6180_v38 }
 0x1ea   : > { %v954_v0 = vpop.xlane.xlu1 %953  ;;  %8685 = vst [vmem:[#allocation17_spill] sm:$0xff] %v6200_v8 }
 0x1eb   : > { %v6174_v41 = vmax.f32 %v6166_v46, %v954_v0  ;;  %1045 = vperm.xlu1 %5232, %v6159_v50   ;;  %v6191_v0 = vmax.f32 %v6187_v54, %v946_v44 }
 0x1ed   : > { %8682 = vst [vmem:[#allocation14_spill] sm:$0xff] %v6174_v41  ;;  %1090 = vperm.xlu0 %5231, %v6174_v41   ;;  %8684 = vst [vmem:[#allocation16_spill] sm:$0xff] %v6191_v0  ;;  %v952_v41 = vpop.xlane.xlu0 %951 }
 0x1ee   : > { %v6208_v44 = vmax.f32 %v6202_v62, %v952_v41 }
 0x1ef   : > { %1050 = vperm.xlu1 %5232, %v6171_v52  }
 0x1f0   : > { %8686 = vst [vmem:[#allocation18_spill] sm:$0xff] %v6208_v44 }
 0x1f1   : > { %1100 = vperm.xlu0 %5231, %v6180_v38  }
 0x1f3   : > { %1080 = vperm.xlu1 %5232, %v6184_v55  }
 0x1f5   : > { %1468 = vrot.lane.b32.xlu0 %v5923_v59, %s5730_s27 }
 0x1f7   : > { %1070 = vperm.xlu1 %5232, %v6191_v0  }
 0x1f9   : > { %1464 = vrot.lane.b32.xlu0 %v5937_v63, %s5730_s27 }
 0x1fb   : > { %1095 = vperm.xlu1 %5232, %v6200_v8  }
 0x1fd   : > { %1450 = vrot.lane.b32.xlu0 %v5944_v1, %s5730_s27 }
 0x1ff   : > { %1085 = vperm.xlu1 %5232, %v6208_v44  }
 0x201   : > { %1454 = vrot.lane.b32.xlu0 %v5954_v3, %s5730_s27 }
 0x203   : > { %1470 = vrot.lane.b32.xlu1 %v5916_v57, %s5730_s27 }
 0x205   : > { %1458 = vrot.lane.b32.xlu0 %v5964_v5, %s5730_s27 }
 0x207   : > { %1466 = vrot.lane.b32.xlu1 %v5930_v61, %s5730_s27 }
 0x209   : > { %1462 = vrot.lane.b32.xlu0 %v5974_v7, %s5730_s27 }
 0x20b   : > { %1448 = vrot.lane.b32.xlu1 %v5900_v53, %s5730_s27 }
 0x20f   : > { %1452 = vrot.lane.b32.xlu1 %v5947_v2, %s5730_s27 }
 0x213   : > { %1456 = vrot.lane.b32.xlu1 %v5957_v4, %s5730_s27 }
 0x217   : > { %1460 = vrot.lane.b32.xlu1 %v5967_v6, %s5730_s27 }
 0x21b   : > { %1935 = vrot.lane.b32.xlu1 %v6064_v27, %s5730_s27 }
 0x248   : > { %v1036_v57 = vpop.permute.xlu1 %1035 }
 0x249   : > { %v1105_v1 = vsub.f32 %v5994_v9, %v1036_v57 }
 0x24a   : > { %v1026_v59 = vpop.permute.xlu0 %1025 }
 0x24b   : > { %v1103_v61 = vsub.f32 %v5997_v10, %v1026_v59  ;;  %v1123_v5 = vmul.f32 1.442695, %v1105_v1 }
 0x24d   : > { %v1119_v63 = vmul.f32 1.442695, %v1103_v61 }
 0x24e   : > { %v1031_v53 = vpop.permute.xlu1 %1030 }
 0x24f   : > { %5367 = vpow2.f32 %v1119_v63  ;;  %v1104_v2 = vsub.f32 %v6003_v12, %v1031_v53 }
 0x251   : > { %v1121_v3 = vmul.f32 1.442695, %v1104_v2 }
 0x252   : > { %v1041_v4 = vpop.permute.xlu1 %1040 }
 0x253   : > { %5369 = vpow2.f32 %v1121_v3  ;;  %v1106_v6 = vsub.f32 %v6000_v11, %v1041_v4 }
 0x254   : > { %5371 = vpow2.f32 %v1123_v5  ;;  %v1061_v58 = vpop.permute.xlu0 %1060 }
 0x255   : > { %v1125_v7 = vmul.f32 1.442695, %v1106_v6  ;;  %v1110_v6 = vsub.f32 %v6011_v15, %v1061_v58 }
 0x256   : > { %v1479_v27 = vpop.permute.xlu1 %1478 }
 0x257   : > { %5373 = vpow2.f32 %v1125_v7  ;;  %5159 = vmatprep.subr.msk.bf16.mxu1 %vm781_vm0, %v1479_v27  ;;  %v1526_v4 = vsel %vm781_vm0, %v1479_v27, 0 }
 0x25a   : > { %v1477_v10 = vpop.permute.xlu1 %1476  ;;  %v1076_v12 = vpop.permute.xlu0 %1075 }
 0x25b   : > { %v1523_v15 = vsel %vm781_vm0, %v1477_v10, 0 }
 0x25c   : > { %v5368_v41 = vpop.eup %5367 }
 0x25d   : > { %1167 = vadd.xlane.f32.xlu0 %v5368_v41 }
 0x25e   : > { %v1475_v9 = vpop.permute.xlu1 %1474  ;;  %v1066_v2 = vpop.permute.xlu0 %1065 }
 0x25f   : > { %v1111_v44 = vsub.f32 %v6022_v19, %v1066_v2 }
 0x260   : > { %v6238_v57 = vpop.eup %5369 }
 0x261   : > { %v1215_v59 = vpack.c.bf16 %v6238_v57, %v5368_v41  ;;  %v6241_v63 = vpop.eup %5371 }
 0x262   : > { %v1056_v61 = vpop.permute.xlu1 %1055  ;;  %v1473_v41 = vpop.permute.xlu0 %1472 }
 0x263   : > { %4943 = vmatprep.mubr.bf16.mxu1 %v1215_v59  ;;  %v1109_v1 = vsub.f32 %v6006_v13, %v1056_v61  ;;  %v1133_v61 = vmul.f32 1.442695, %v1110_v6 }
 0x264   : > { %v6243_v11 = vpop.eup %5373 }
 0x265   : > { %v1216_v53 = vpack.c.bf16 %v6243_v11, %v6241_v63  ;;  %v1131_v7 = vmul.f32 1.442695, %v1109_v1  ;;  %v1113_v1 = vsub.f32 %v6019_v18, %v1076_v12  ;;  %v1520_v18 = vsel %vm781_vm0, %v1475_v9, 0 }
 0x266   : > { %v1046_v3 = vpop.permute.xlu1 %1045 }
 0x267   : > { %v1107_v5 = vsub.f32 %v6008_v14, %v1046_v3  ;;  %4944 = vmatmul.mubr.bf16.vlgmr.msra.gmra.mxu1 %v1216_v53  ;;  %5375 = vpow2.f32 %v1131_v7  ;;  %v1135_v53 = vmul.f32 1.442695, %v1111_v44  ;;  %v1139_v2 = vmul.f32 1.442695, %v1113_v1 }
 0x268   : > { %4960 = vmatpush3.bf16.xpose.msra.mxu1 %v1526_v4  ;;  %v1091_v58 = vpop.permute.xlu0 %1090 }
 0x269   : > { %5160 = vmatprep.subr.msk.bf16.mxu1 %vm781_vm0, %v1477_v10  ;;  %v1127_v59 = vmul.f32 1.442695, %v1107_v5 }
 0x26a   : > { %v1051_v8 = vpop.permute.xlu1 %1050 }
 0x26b   : > { %v1108_v13 = vsub.f32 %v6016_v17, %v1051_v8  ;;  %5377 = vpow2.f32 %v1127_v59 }
 0x26d   : > { %v1129_v38 = vmul.f32 1.442695, %v1108_v13 }
 0x26e   : > { %v1081_v14 = vpop.permute.xlu1 %1080 }
 0x26f   : > { %5379 = vpow2.f32 %v1129_v38  ;;  %v1114_v27 = vsub.f32 %v6025_v20, %v1081_v14  ;;  %v1116_v38 = vsub.f32 %v6056_v26, %v1091_v58  ;;  %v1101_v20 = vpop.permute.xlu0 %1100  ;;  %v1517_v14 = vsel %vm781_vm0, %v1473_v41, 0 }
 0x270   : > { %4962 = vmatpush3.bf16.xpose.msra.mxu1 %v1523_v15  ;;  %5381 = vpow2.f32 %v1133_v61  ;;  %v1118_v12 = vsub.f32 %v6053_v25, %v1101_v20 }
 0x271   : > { %5161 = vmatprep.subr.msk.bf16.mxu1 %vm781_vm0, %v1475_v9  ;;  %v1141_v17 = vmul.f32 1.442695, %v1114_v27  ;;  %5383 = vpow2.f32 %v1135_v53  ;;  %v1145_v44 = vmul.f32 1.442695, %v1116_v38 }
 0x272   : > { %v1071_v8 = vpop.permute.xlu1 %1070 }
 0x273   : > { %v1112_v19 = vsub.f32 %v6028_v21, %v1071_v8  ;;  %5385 = vpow2.f32 %v1141_v17  ;;  %v1469_v17 = vpop.permute.xlu0 %1468 }
 0x274   : > { %v6264_v21 = vpop.eup %5375 }
 0x275   : > { %v1137_v3 = vmul.f32 1.442695, %v1112_v19 }
 0x276   : > { %v1096_v10 = vpop.permute.xlu1 %1095 }
 0x277   : > { %5387 = vpow2.f32 %v1137_v3  ;;  %v1117_v5 = vsub.f32 %v6031_v22, %v1096_v10  ;;  %v1149_v22 = vmul.f32 1.442695, %v1118_v12  ;;  %v1511_v10 = vsel %vm781_vm0, %v1469_v17, 0 }
 0x278   : > { %4964 = vmatpush3.bf16.xpose.msra.mxu1 %v1520_v18  ;;  %5389 = vpow2.f32 %v1139_v2  ;;  %v6266_v6 = vpop.eup %5377 }
 0x279   : > { %5162 = vmatprep.subr.msk.bf16.mxu1 %vm781_vm0, %v1473_v41  ;;  %v1147_v4 = vmul.f32 1.442695, %v1117_v5  ;;  %5391 = vpow2.f32 %v1145_v44 }
 0x27a   : > { %v1086_v26 = vpop.permute.xlu1 %1085 }
 0x27b   : > { %v1115_v7 = vsub.f32 %v6050_v24, %v1086_v26  ;;  %5393 = vpow2.f32 %v1147_v4  ;;  %v1465_v4 = vpop.permute.xlu0 %1464 }
 0x27c   : > { %v6269_v59 = vpop.eup %5379  ;;  %v1505_v26 = vsel %vm781_vm0, %v1465_v4, 0 }
 0x27d   : > { %v1143_v9 = vmul.f32 1.442695, %v1115_v7  ;;  %v1217_v13 = vpack.c.bf16 %v6269_v59, %v6266_v6  ;;  %v6273_v61 = vpop.eup %5381  ;;  %v5345_v7 = vld [vmem:[%s6061_s26 + $0x74] ss:$8 sps:$4 sm:$0xff]  }
 0x27e   : > { %v1471_v25 = vpop.permute.xlu1 %1470  ;;  %v1218_v27 = vpack.c.bf16 %v6273_v61, %v6264_v21  ;;  %v6279_v24 = vpop.eup %5383 }
 0x27f   : > { %5395 = vpow2.f32 %v1143_v9  ;;  %4947 = vmatprep.mubr.bf16.mxu1 %v1217_v13  ;;  %v1514_v53 = vsel %vm781_vm0, %v1471_v25, 0  ;;  %v5348_v13 = vld [vmem:[%s6061_s26 + $0x64] ss:$8 sps:$4 sm:$0xff]  }
 0x280   : > { %4966 = vmatpush3.bf16.xpose.msra.mxu1 %v1517_v14  ;;  %5397 = vpow2.f32 %v1149_v22  ;;  %v6281_v15 = vpop.eup %5385  ;;  %v1451_v22 = vpop.permute.xlu0 %1450 }
 0x281   : > { %4948 = vmatmul.mubr.bf16.gmra.mxu1 %v1218_v27  ;;  %5163 = vmatprep.subr.msk.bf16.mxu1 %vm781_vm0, %v1471_v25  ;;  %v5351_v25 = vld [vmem:[%s6061_s26 + $0x54] ss:$8 sps:$4 sm:$0xff]  }
 0x282   : > { %v1467_v38 = vpop.permute.xlu1 %1466 }
 0x283   : > { %v1508_v12 = vsel %vm781_vm0, %v1467_v38, 0 }
 0x284   : > { %v6283_v58 = vpop.eup %5387  ;;  %v1455_v14 = vpop.permute.xlu0 %1454 }
 0x285   : > { %v1219_v1 = vpack.c.bf16 %v6283_v58, %v6279_v24  ;;  %v6288_v41 = vpop.eup %5389 }
 0x286   : > { %v1220_v8 = vpack.c.bf16 %v6281_v15, %v6288_v41  ;;  %v6293_v19 = vpop.eup %5391  ;;  %v1449_v44 = vpop.permute.xlu1 %1448 }
 0x287   : > { %4951 = vmatprep.mubr.bf16.mxu1 %v1219_v1  ;;  %v5354_v1 = vld [vmem:[%s6061_s26 + $0x44] ss:$8 sps:$4 sm:$0xff]  }
 0x288   : > { %4968 = vmatpush3.bf16.xpose.msra.mxu1 %v1514_v53  ;;  %v6295_v2 = vpop.eup %5393  ;;  %v5357_v53 = vld [vmem:[%s6061_s26 + $0x34] ss:$8 sps:$4 sm:$0xff]  }
 0x289   : > { %4952 = vmatmul.mubr.bf16.gmra.mxu1 %v1220_v8  ;;  %5164 = vmatprep.subr.msk.bf16.mxu1 %vm781_vm0, %v1469_v17  ;;  %v1459_v8 = vpop.permute.xlu0 %1458 }
 0x28a   : > { %v1453_v9 = vpop.permute.xlu1 %1452 }
 0x28c   : > { %v6297_v3 = vpop.eup %5395 }
 0x28d   : > { %v1221_v20 = vpack.c.bf16 %v6293_v19, %v6297_v3  ;;  %v6302_v5 = vpop.eup %5397 }
 0x28e   : > { %v1222_v18 = vpack.c.bf16 %v6302_v5, %v6295_v2  ;;  %v1457_v27 = vpop.permute.xlu1 %1456 }
 0x28f   : > { %4955 = vmatprep.mubr.bf16.mxu1 %v1221_v20  ;;  %v5363_v20 = vld [vmem:[%s6061_s26 + $0x14] ss:$8 sps:$4 sm:$0xff]  }
 0x290   : > { %4970 = vmatpush3.bf16.xpose.msra.mxu1 %v1511_v10  ;;  %v1463_v10 = vpop.permute.xlu0 %1462 }
 0x291   : > { %4956 = vmatmul.mubr.bf16.gmra.mxu1 %v1222_v18  ;;  %5165 = vmatprep.subr.msk.bf16.mxu1 %vm781_vm0, %v1467_v38  ;;  %v5360_v38 = vld [vmem:[%s6061_s26 + $0x24] ss:$8 sps:$4 sm:$0xff]  }
 0x292   : > { %4975 = vmatprep.mubr.msk.bf16.mxu1 %vm781_vm0, %v1449_v44  ;;  %v1461_v17 = vpop.permute.xlu1 %1460  ;;  %v5366_v18 = vld [vmem:[%s6061_s26 + $0x4] ss:$8 sps:$4 sm:$0xff]  }
 0x298   : > { %4972 = vmatpush3.bf16.xpose.msra.mxu1 %v1508_v12 }
 0x299   : > { %5166 = vmatprep.subr.msk.bf16.mxu1 %vm781_vm0, %v1465_v4  ;;  %v1936_v4 = vpop.permute.xlu1 %1935 }
 0x29a   : > { %4991 = vmatprep.subr.bf16.mxu0 %v1936_v4 }
 0x29b   : > { %4992 = vmatpush3.bf16.msra.mxu0 %v1936_v4 }
 0x2a0   : > { %4974 = vmatpush3.bf16.xpose.msra.mxu1 %v1505_v26 }
 0x2a1   : > { %5055 = vmatprep.subr.bf16.mxu1 %v5345_v7 }
 0x2a7   : > { %4976 = vmatmul.mubr.msk.bf16.vlgmr.msra.gmra.mxu1 %vm781_vm0, %v1451_v22 }
 0x2a8   : > { %4979 = vmatprep.mubr.msk.bf16.mxu1 %vm781_vm0, %v1453_v9  ;;  %5056 = vmatpush3.bf16.msra.mxu1 %v5345_v7 }
 0x2a9   : > { %5057 = vmatprep.subr.bf16.mxu1 %v5348_v13 }
 0x2ac   : > { %5058 = vmatpush3.bf16.msra.mxu1 %v5348_v13 }
 0x2ad   : > { %5059 = vmatprep.subr.bf16.mxu1 %v5351_v25 }
 0x2af   : > { %4980 = vmatmul.mubr.msk.bf16.gmra.mxu1 %vm781_vm0, %v1455_v14 }
 0x2b0   : > { %4983 = vmatprep.mubr.msk.bf16.mxu1 %vm781_vm0, %v1457_v27  ;;  %5060 = vmatpush3.bf16.msra.mxu1 %v5351_v25 }
 0x2b1   : > { %5061 = vmatprep.subr.bf16.mxu1 %v5354_v1 }
 0x2b4   : > { %5062 = vmatpush3.bf16.msra.mxu1 %v5354_v1 }
 0x2b5   : > { %5063 = vmatprep.subr.bf16.mxu1 %v5357_v53 }
 0x2b7   : > { %4984 = vmatmul.mubr.msk.bf16.gmra.mxu1 %vm781_vm0, %v1459_v8 }
 0x2b8   : > { %4987 = vmatprep.mubr.msk.bf16.mxu1 %vm781_vm0, %v1461_v17  ;;  %5064 = vmatpush3.bf16.msra.mxu1 %v5357_v53 }
 0x2b9   : > { %5065 = vmatprep.subr.bf16.mxu1 %v5360_v38 }
 0x2bc   : > { %5066 = vmatpush3.bf16.msra.mxu1 %v5360_v38 }
 0x2bd   : > { %5067 = vmatprep.subr.bf16.mxu1 %v5363_v20 }
 0x2bf   : > { %4988 = vmatmul.mubr.msk.bf16.gmra.mxu1 %vm781_vm0, %v1463_v10 }
 0x2c0   : > { %5068 = vmatpush3.bf16.msra.mxu1 %v5363_v20 }
 0x2c1   : > { %5069 = vmatprep.subr.bf16.mxu1 %v5366_v18 }
 0x2c4   : > { %5070 = vmatpush3.bf16.msra.mxu1 %v5366_v18 }
 0x327   : > { %v6326_v44 = vpop.f32.mrf.mxu1 }
 0x328   : > { %8687 = vst [vmem:[#allocation19_spill] sm:$0xff] %v6326_v44  ;;  %v6414_v44 = vpop.xlane.xlu0 %1167 }
 0x329   : > { %v6328_v12 = vpop.f32.mrf.mxu1  ;;  %8711 = vst [vmem:[#allocation43_spill] sm:$0xff] %v6414_v44 }
 0x32a   : > { %8688 = vst [vmem:[#allocation20_spill] sm:$0xff] %v6328_v12 }
 0x32b   : > { %v6330_v26 = vpop.f32.mrf.mxu1 }
 0x32c   : > { %8689 = vst [vmem:[#allocation21_spill] sm:$0xff] %v6330_v26 }
 0x32d   : > { %v6332_v7 = vpop.f32.mrf.mxu1 }
 0x32e   : > { %8690 = vst [vmem:[#allocation22_spill] sm:$0xff] %v6332_v7 }
 0x341   : > { %v6334_v22 = vpop.f32.mrf.mxu1 }
 0x342   : > { %8691 = vst [vmem:[#allocation23_spill] sm:$0xff] %v6334_v22 }
 0x343   : > { %v6336_v9 = vpop.f32.mrf.mxu1 }
 0x344   : > { %8692 = vst [vmem:[#allocation24_spill] sm:$0xff] %v6336_v9 }
 0x345   : > { %v6338_v13 = vpop.f32.mrf.mxu1 }
 0x346   : > { %8693 = vst [vmem:[#allocation25_spill] sm:$0xff] %v6338_v13 }
 0x347   : > { %v6340_v25 = vpop.f32.mrf.mxu1 }
 0x348   : > { %8694 = vst [vmem:[#allocation26_spill] sm:$0xff] %v6340_v25 }
 0x349   : > { %v6342_v14 = vpop.f32.mrf.mxu1 }
 0x34a   : > { %8695 = vst [vmem:[#allocation27_spill] sm:$0xff] %v6342_v14 }
 0x34b   : > { %v6344_v27 = vpop.f32.mrf.mxu1 }
 0x34c   : > { %8696 = vst [vmem:[#allocation28_spill] sm:$0xff] %v6344_v27 }
 0x34d   : > { %v6346_v1 = vpop.f32.mrf.mxu1 }
 0x34e   : > { %8697 = vst [vmem:[#allocation29_spill] sm:$0xff] %v6346_v1 }
 0x34f   : > { %v6348_v53 = vpop.f32.mrf.mxu1 }
 0x350   : > { %8698 = vst [vmem:[#allocation30_spill] sm:$0xff] %v6348_v53 }
 0x351   : > { %v6350_v17 = vpop.f32.mrf.mxu1 }
 0x352   : > { %8699 = vst [vmem:[#allocation31_spill] sm:$0xff] %v6350_v17  ;;  %v8588_v17 = vmov 1  }
 0x353   : > { %v6352_v8 = vpop.f32.mrf.mxu1  ;;  %5233 = vset.pattern.permute.xlu0 %v8588_v17  ;;  %5234 = vset.pattern.permute.xlu1 %v8588_v17 }
 0x354   : > { %8700 = vst [vmem:[#allocation32_spill] sm:$0xff] %v6352_v8 }
 0x355   : > { %v6354_v38 = vpop.f32.mrf.mxu1 }
 0x356   : > { %8701 = vst [vmem:[#allocation33_spill] sm:$0xff] %v6354_v38 }
 0x357   : > { %v6356_v20 = vpop.f32.mrf.mxu1 }
 0x358   : > { %8702 = vst [vmem:[#allocation34_spill] sm:$0xff] %v6356_v20 }
 0x367   : > { %v6358_v10 = vpop.f32.mrf.mxu1 }
 0x368   : > { %1629 = vmax.xlane.f32.xlu0 %v6358_v10 }
 0x369   : > { %v6361_v18 = vpop.f32.mrf.mxu1 }
 0x36a   : > { %1625 = vmax.xlane.f32.xlu1 %v6361_v18 }
 0x36b   : > { %v6364_v4 = vpop.f32.mrf.mxu1 }
 0x36d   : > { %v6366_v27 = vpop.f32.mrf.mxu1 }
 0x36e   : > { %1631 = vmax.xlane.f32.xlu1 %v6364_v4  ;;  %1627 = vmax.xlane.f32.xlu0 %v6366_v27 }
 0x36f   : > { %v6376_v8 = vpop.f32.mrf.mxu1 }
 0x371   : > { %v6378_v14 = vpop.f32.mrf.mxu1 }
 0x373   : > { %v6380_v22 = vpop.f32.mrf.mxu1 }
 0x375   : > { %v6382_v38 = vpop.f32.mrf.mxu1 }
 0x377   : > { %v6384_v9 = vpop.f32.mrf.mxu1 }
 0x378   : > { %8703 = vst [vmem:[#allocation35_spill] sm:$0xff] %v6384_v9 }
 0x379   : > { %v6386_v20 = vpop.f32.mrf.mxu1 }
 0x37a   : > { %8704 = vst [vmem:[#allocation36_spill] sm:$0xff] %v6386_v20 }
 0x37b   : > { %v6388_v1 = vpop.f32.mrf.mxu1 }
 0x37c   : > { %8705 = vst [vmem:[#allocation37_spill] sm:$0xff] %v6388_v1 }
 0x37f   : > { %1931 = vrot.lane.b32.xlu1 %v6073_v29, %s5730_s27  ;;  %v6392_v29 = vpop.f32.mrf.mxu1 }
 0x380   : > { %8706 = vst [vmem:[#allocation38_spill] sm:$0xff] %v6392_v29 }
 0x384   : > { %1933 = vrot.lane.b32.xlu0 %v6068_v28, %s5730_s27  ;;  %v6396_v28 = vpop.f32.mrf.mxu1 }
 0x385   : > { %8707 = vst [vmem:[#allocation39_spill] sm:$0xff] %v6396_v28 }
 0x386   : > { %v6400_v17 = vpop.f32.mrf.mxu1 }
 0x387   : > { %8708 = vst [vmem:[#allocation40_spill] sm:$0xff] %v6400_v17 }
 0x388   : > { %v6404_v53 = vpop.f32.mrf.mxu1 }
 0x389   : > { %8709 = vst [vmem:[#allocation41_spill] sm:$0xff] %v6404_v53 }
 0x38a   : > { %v6408_v25 = vpop.f32.mrf.mxu1 }
 0x38b   : > { %8710 = vst [vmem:[#allocation42_spill] sm:$0xff] %v6408_v25 }
 0x3a3   : > { %1637 = vmax.xlane.f32.xlu0 %v6376_v8  ;;  %1639 = vmax.xlane.f32.xlu1 %v6380_v22 }
 0x3a7   : > { %1633 = vmax.xlane.f32.xlu0 %v6378_v14  ;;  %1635 = vmax.xlane.f32.xlu1 %v6382_v38 }
 0x3ab   : > { %1645 = vmax.xlane.f32.xlu0 %v6384_v9  ;;  %1647 = vmax.xlane.f32.xlu1 %v6388_v1 }
 0x3af   : > { %1641 = vmax.xlane.f32.xlu0 %v6386_v20  ;;  %1643 = vmax.xlane.f32.xlu1 %v6392_v29 }
 0x3b3   : > { %1653 = vmax.xlane.f32.xlu0 %v6396_v28  ;;  %1655 = vmax.xlane.f32.xlu1 %v6404_v53 }
 0x3b7   : > { %1649 = vmax.xlane.f32.xlu0 %v6400_v17  ;;  %1651 = vmax.xlane.f32.xlu1 %v6408_v25 }
 0x3c8   : > { %1927 = vrot.lane.b32.xlu1 %v6084_v31, %s5730_s27 }
 0x3f1   : > { %v1630_v12 = vpop.xlane.xlu0 %1629 }
 0x3f2   : > { %v6417_v13 = vmax.f32 %v6086_v32, %v1630_v12 }
 0x3f3   : > { %v1626_v7 = vpop.xlane.xlu1 %1625 }
 0x3f4   : > { %v6420_v26 = vmax.f32 %v6089_v34, %v1626_v7  ;;  %1733 = vperm.xlu0 %5233, %v6417_v13  }
 0x3f6   : > { %1723 = vperm.xlu1 %5234, %v6420_v26  }
 0x3f7   : > { %v1628_v53 = vpop.xlane.xlu0 %1627  ;;  %v1632_v28 = vpop.xlane.xlu1 %1631 }
 0x3f8   : > { %v6425_v17 = vmax.f32 %v6114_v43, %v1632_v28  ;;  %1929 = vrot.lane.b32.xlu0 %v6078_v30, %s5730_s27  ;;  %v6431_v12 = vmax.f32 %v6103_v39, %v1628_v53 }
 0x3fa   : > { %1738 = vperm.xlu1 %5234, %v6425_v17  }
 0x3fb   : > { %v1934_v31 = vpop.permute.xlu0 %1933  ;;  %v1932_v7 = vpop.permute.xlu1 %1931 }
 0x3fc   : > { %4993 = vmatprep.subr.bf16.mxu0 %v1934_v31  ;;  %1925 = vrot.lane.b32.xlu0 %v6096_v36, %s5730_s27 }
 0x3fd   : > { %4994 = vmatpush3.bf16.msra.mxu0 %v1934_v31 }
 0x3fe   : > { %1728 = vperm.xlu1 %5234, %v6431_v12   ;;  %4995 = vmatprep.subr.bf16.mxu0 %v1932_v7 }
 0x400   : > { %1921 = vrot.lane.b32.xlu0 %v6119_v45, %s5730_s27 }
 0x401   : > { %4996 = vmatpush3.bf16.msra.mxu0 %v1932_v7 }
 0x402   : > { %1923 = vrot.lane.b32.xlu1 %v6108_v40, %s5730_s27 }
 0x426   : > { %1169 = vadd.xlane.f32.xlu1 %v6238_v57 }
 0x42c   : > { %v1638_v30 = vpop.xlane.xlu0 %1637  ;;  %v1640_v53 = vpop.xlane.xlu1 %1639 }
 0x42d   : > { %v6442_v28 = vmax.f32 %v6145_v33, %v1638_v30  ;;  %v6450_v7 = vmax.f32 %v6121_v47, %v1640_v53 }
 0x42f   : > { %1753 = vperm.xlu0 %5233, %v6442_v28  }
 0x430   : > { %v1634_v36 = vpop.xlane.xlu0 %1633  ;;  %v1636_v31 = vpop.xlane.xlu1 %1635 }
 0x431   : > { %v6446_v44 = vmax.f32 %v6156_v51, %v1634_v36  ;;  %v6454_v30 = vmax.f32 %v6164_v37, %v1636_v31 }
 0x433   : > { %1743 = vperm.xlu0 %5233, %v6446_v44   ;;  %8712 = vst [vmem:[#allocation44_spill] sm:$0xff] %v6454_v30 }
 0x434   : > { %v1648_v45 = vpop.xlane.xlu1 %1647  ;;  %v1646_v40 = vpop.xlane.xlu0 %1645 }
 0x435   : > { %v6458_v25 = vmax.f32 %v6133_v60, %v1646_v40  ;;  %v6470_v20 = vmax.f32 %v6177_v56, %v1648_v45  ;;  %v8714_v40 = vmov 0  }
 0x437   : > { %1758 = vperm.xlu0 %5233, %v6450_v7  }
 0x438   : > { %v1644_v57 = vpop.xlane.xlu1 %1643  ;;  %v1642_v36 = vpop.xlane.xlu0 %1641 }
 0x439   : > { %v6462_v53 = vmax.f32 %v6140_v23, %v1642_v36 }
 0x43b   : > { %1748 = vperm.xlu0 %5233, %v6454_v30   ;;  %v6475_v30 = vmax.f32 %v6187_v54, %v1644_v57 }
 0x43c   : > { %v1656_v29 = vpop.xlane.xlu1 %1655  ;;  %v1654_v31 = vpop.xlane.xlu0 %1653 }
 0x43d   : > { %8715 = vst [vmem:[#allocation46_spill] sm:$0xff] %v6475_v30  ;;  %v6487_v45 = vmax.f32 %v6168_v16, %v1656_v29 }
 0x43f   : > { %1773 = vperm.xlu0 %5233, %v6458_v25   ;;  %8718 = vst [vmem:[#allocation49_spill] sm:$0xff] %v6487_v45 }
 0x440   : > { %v1652_v9 = vpop.xlane.xlu1 %1651  ;;  %v1650_v36 = vpop.xlane.xlu0 %1649 }
 0x441   : > { %v6465_v1 = vmax.f32 %v6166_v46, %v1652_v9  ;;  %v6479_v9 = vmax.f32 %v6202_v62, %v1650_v36 }
 0x443   : > { %8713 = vst [vmem:[#allocation45_spill] sm:$0xff] %v6465_v1  ;;  %1763 = vperm.xlu0 %5233, %v6462_v53   ;;  %1788 = vperm.xlu1 %5234, %v6465_v1   ;;  %8716 = vst [vmem:[#allocation47_spill] sm:$0xff] %v6479_v9  ;;  %v6483_v1 = vmax.f32 %v6194_v48, %v1654_v31  ;;  %v976_v31 = vsub.f32 %v6103_v39, %v6111_v42 }
 0x444   : > { %v1928_v57 = vpop.permute.xlu1 %1927 }
 0x445   : > { %8717 = vst [vmem:[#allocation48_spill] sm:$0xff] %v6483_v1 }
 0x447   : > { %1778 = vperm.xlu0 %5233, %v6470_v20   ;;  %5236 = vset.pattern.permute.xlu1 %v8714_v40 }
 0x44b   : > { %1768 = vperm.xlu0 %5233, %v6475_v30  }
 0x44f   : > { %1783 = vperm.xlu0 %5233, %v6479_v9  }
 0x453   : > { %1793 = vperm.xlu0 %5233, %v6483_v1  }
 0x457   : > { %1798 = vperm.xlu0 %5233, %v6487_v45  }
 0x45b   : > { %5235 = vset.pattern.permute.xlu0 %v8714_v40 }
 0x467   : > { %1173 = vadd.xlane.f32.xlu1 %v6243_v11 }
 0x46b   : > { %1181 = vadd.xlane.f32.xlu1 %v6273_v61  ;;  %v993_v61 = vmul.f32 1.442695, %v976_v31 }
 0x46d   : > { %5399 = vpow2.f32 %v993_v61 }
 0x46f   : > { %v1734_v36 = vpop.permute.xlu0 %1733  ;;  %1185 = vadd.xlane.f32.xlu1 %v6283_v58 }
 0x470   : > { %v1803_v58 = vsub.f32 %v6358_v10, %v1734_v36  ;;  %v8720_v36 = vld [vmem:[#allocation13_spill] sm:$0xff] }
 0x471   : > { %v1724_v9 = vpop.permute.xlu1 %1723  ;;  %v981_v31 = vsub.f32 %v6145_v33, %v8720_v36 }
 0x472   : > { %v1801_v1 = vsub.f32 %v6361_v18, %v1724_v9  ;;  %v977_v18 = vsub.f32 %v6086_v32, %v6093_v35 }
 0x473   : > { %1189 = vadd.xlane.f32.xlu1 %v6281_v15  ;;  %v1930_v29 = vpop.permute.xlu0 %1929 }
 0x474   : > { %4997 = vmatprep.subr.bf16.mxu0 %v1930_v29  ;;  %v1817_v39 = vmul.f32 1.442695, %v1801_v1  ;;  %v995_v10 = vmul.f32 1.442695, %v977_v18 }
 0x475   : > { %v1739_v45 = vpop.permute.xlu1 %1738  ;;  %4998 = vmatpush3.bf16.msra.mxu0 %v1930_v29 }
 0x476   : > { %v1804_v11 = vsub.f32 %v6364_v4, %v1739_v45  ;;  %1171 = vadd.xlane.f32.xlu0 %v6241_v63  ;;  %4999 = vmatprep.subr.bf16.mxu0 %v1928_v57  ;;  %v1821_v63 = vmul.f32 1.442695, %v1803_v58  ;;  %5401 = vpow2.f32 %v1817_v39  ;;  %v978_v4 = vsub.f32 %v6114_v43, %v6124_v49 }
 0x477   : > { %1193 = vadd.xlane.f32.xlu1 %v6293_v19  ;;  %v1926_v40 = vpop.permute.xlu0 %1925 }
 0x478   : > { %v1823_v42 = vmul.f32 1.442695, %v1804_v11 }
 0x479   : > { %v1729_v15 = vpop.permute.xlu1 %1728  ;;  %5000 = vmatpush3.bf16.msra.mxu0 %v1928_v57  ;;  %v649_v57 = vld [vmem:[%s5877_s25 + $0x60] sm:$0xff] }
 0x47a   : > { %v1802_v9 = vsub.f32 %v6366_v27, %v1729_v15  ;;  %1175 = vadd.xlane.f32.xlu0 %v6266_v6  ;;  %5001 = vmatprep.subr.bf16.mxu0 %v1926_v40  ;;  %5403 = vpow2.f32 %v1823_v42  ;;  %v6511_v6 = vld [vmem:[%s5877_s25 + $0x74] ss:$8 sps:$4 sm:$0xff]   ;;  %v979_v42 = vsub.f32 %v6156_v51, %v6159_v50  ;;  %v6521_v27 = vpop.eup %5399 }
 0x47b   : > { %1197 = vadd.xlane.f32.xlu1 %v6302_v5  ;;  %v1922_v32 = vpop.permute.xlu0 %1921  ;;  %v997_v5 = vmul.f32 1.442695, %v978_v4  ;;  %8719 = vst [vmem:[#allocation50_spill] sm:$0xff] %v6521_v27  ;;  %v2216_v58 = vsel %vm781_vm0, %v6511_v6, 0  ;;  %v8721_v15 = vld [vmem:[#allocation10_spill] sm:$0xff] }
 0x47c   : > { %v1819_v19 = vmul.f32 1.442695, %v1802_v9  ;;  %v999_v43 = vmul.f32 1.442695, %v979_v42  ;;  %v982_v18 = vsub.f32 %v6121_v47, %v8721_v15 }
 0x47d   : > { %5002 = vmatpush3.bf16.msra.mxu0 %v1926_v40  ;;  %v1924_v1 = vpop.permute.xlu1 %1923 }
 0x47e   : > { %5405 = vpow2.f32 %v1819_v19  ;;  %1177 = vadd.xlane.f32.xlu0 %v6269_v59  ;;  %5003 = vmatprep.subr.bf16.mxu0 %v1924_v1  ;;  %v980_v59 = vsub.f32 %v6164_v37, %v6171_v52  ;;  %v1005_v47 = vmul.f32 1.442695, %v982_v18 }
 0x47f   : > { %5407 = vpow2.f32 %v1821_v63  ;;  %v8723_v63 = vld [vmem:[#allocation8_spill] sm:$0xff] }
 0x480   : > { %5409 = vpow2.f32 %v995_v10  ;;  %v1001_v29 = vmul.f32 1.442695, %v980_v59  ;;  %v975_v19 = vsub.f32 %v6089_v34, %v8723_v63  ;;  %v648_v10 = vld [vmem:[%s5877_s25 + $0x58] sm:$0xff]  ;;  %v8725_v59 = vld [vmem:[#allocation12_spill] sm:$0xff] }
 0x481   : > { %5004 = vmatpush3.bf16.msra.mxu0 %v1924_v1  ;;  %5411 = vpow2.f32 %v997_v5  ;;  %v647_v1 = vld [vmem:[%s5877_s25 + $0x50] sm:$0xff]  ;;  %v986_v5 = vsub.f32 %v6177_v56, %v6184_v55 }
 0x482   : > { %1179 = vadd.xlane.f32.xlu0 %v6264_v21  ;;  %5005 = vmatprep.subr.bf16.mxu0 %v1922_v32  ;;  %v650_v21 = vld [vmem:[%s5877_s25 + $0x68] sm:$0xff]  ;;  %5413 = vpow2.f32 %v999_v43  ;;  %v6567_v43 = vcombine.high %v647_v1, %v648_v10 }
 0x483   : > { %v6523_v40 = vpop.eup %5401  ;;  %v6543_v39 = vcombine.high %v649_v57, %v650_v21  ;;  %5415 = vpow2.f32 %v1001_v29  ;;  %v8727_v21 = vld [vmem:[#allocation11_spill] sm:$0xff]  ;;  %v1013_v56 = vmul.f32 1.442695, %v986_v5  ;;  %v645_v29 = vld [vmem:[%s5877_s25 + $0x40] sm:$0xff] }
 0x484   : > { %v2210_v10 = vsel %vm781_vm0, %v6567_v43, 0 }
 0x485   : > { %5006 = vmatpush3.bf16.msra.mxu0 %v1922_v32  ;;  %v991_v32 = vmul.f32 1.442695, %v975_v19  ;;  %v2213_v42 = vsel %vm781_vm0, %v6543_v39, 0  ;;  %v8730_v19 = vld [vmem:[#allocation15_spill] sm:$0xff] }
 0x486   : > { %1183 = vadd.xlane.f32.xlu0 %v6279_v24  ;;  %5167 = vmatprep.subr.msk.bf16.mxu0 %vm781_vm0, %v6511_v6  ;;  %v990_v1 = vsub.f32 %v6168_v16, %v8730_v19  ;;  %v8733_v16 = vld [vmem:[#allocation17_spill] sm:$0xff] }
 0x487   : > { %v6525_v45 = vpop.eup %5403 }
 0x48a   : > { %1187 = vadd.xlane.f32.xlu0 %v6288_v41  ;;  %v1003_v41 = vmul.f32 1.442695, %v981_v31  ;;  %v985_v31 = vsub.f32 %v6133_v60, %v8727_v21 }
 0x48b   : > { %v6532_v37 = vpop.eup %5405 }
 0x48c   : > { %v6534_v24 = vpop.eup %5407  ;;  %1375 = vperm.xlu1 %5236, %v6521_v27   ;;  %v1913_v11 = vpack.c.bf16 %v6532_v37, %v6523_v40  ;;  %5417 = vpow2.f32 %v1003_v41  ;;  %v1011_v18 = vmul.f32 1.442695, %v985_v31 }
 0x48d   : > { %v1914_v61 = vpack.c.bf16 %v6525_v45, %v6534_v24  ;;  %v6548_v9 = vpop.eup %5409  ;;  %5419 = vpow2.f32 %v1005_v47 }
 0x48e   : > { %1191 = vadd.xlane.f32.xlu0 %v6297_v3  ;;  %5007 = vmatprep.mubr.bf16.mxu0 %v1913_v11  ;;  %8722 = vst [vmem:[#allocation13_spill] sm:$0xff] %v6548_v9  ;;  %v984_v3 = vsub.f32 %v6187_v54, %v6191_v0  ;;  %v6560_v4 = vpop.eup %5411  ;;  %v983_v54 = vsub.f32 %v6140_v23, %v8725_v59  ;;  %5421 = vpow2.f32 %v991_v32  ;;  %v646_v11 = vld [vmem:[%s5877_s25 + $0x48] sm:$0xff]  ;;  %v8731_v32 = vld [vmem:[#allocation18_spill] sm:$0xff] }
 0x48f   : > { %5008 = vmatmul.mubr.bf16.vlgmr.msra.gmra.mxu0 %v1914_v61  ;;  %8724 = vst [vmem:[#allocation10_spill] sm:$0xff] %v6560_v4  ;;  %v6571_v57 = vpop.eup %5413  ;;  %v6589_v47 = vcombine.high %v645_v29, %v646_v11  ;;  %v644_v29 = vld [vmem:[%s5877_s25 + $0x38] sm:$0xff] }
 0x490   : > { %1380 = vperm.xlu1 %5236, %v6548_v9   ;;  %5024 = vmatpush3.bf16.xpose.msra.mxu0 %v2216_v58  ;;  %8726 = vst [vmem:[#allocation8_spill] sm:$0xff] %v6571_v57  ;;  %v1007_v61 = vmul.f32 1.442695, %v983_v54  ;;  %v8728_v58 = vld [vmem:[#allocation14_spill] sm:$0xff]  ;;  %v6582_v41 = vpop.eup %5415  ;;  %v989_v54 = vsub.f32 %v6194_v48, %v8733_v16 }
 0x491   : > { %5168 = vmatprep.subr.msk.bf16.mxu0 %vm781_vm0, %v6543_v39  ;;  %v988_v23 = vsub.f32 %v6166_v46, %v8728_v58  ;;  %8729 = vst [vmem:[#allocation12_spill] sm:$0xff] %v6582_v41  ;;  %v987_v46 = vsub.f32 %v6202_v62, %v8731_v32  ;;  %v1673_v62 = vsub.f32 %v6089_v34, %v6420_v26  ;;  %v6609_v48 = vld [vmem:[#allocation2 + $0x10] sm:$0xff] }
 0x492   : > { %1195 = vadd.xlane.f32.xlu0 %v6295_v2  ;;  %v1009_v2 = vmul.f32 1.442695, %v984_v3  ;;  %v1019_v11 = vmul.f32 1.442695, %v989_v54 }
 0x493   : > { %v1017_v3 = vmul.f32 1.442695, %v988_v23  ;;  %v1675_v23 = vsub.f32 %v6609_v48, %v6417_v13  ;;  %v1689_v34 = vmul.f32 1.442695, %v1673_v62 }
 0x494   : > { %1385 = vperm.xlu1 %5236, %v6560_v4   ;;  %5423 = vpow2.f32 %v1009_v2  ;;  %v1015_v2 = vmul.f32 1.442695, %v987_v46 }
 0x495   : > { %5425 = vpow2.f32 %v1013_v56  ;;  %v643_v56 = vld [vmem:[%s5877_s25 + $0x30] sm:$0xff]  ;;  %v1693_v54 = vmul.f32 1.442695, %v1675_v23 }
 0x496   : > { %5427 = vpow2.f32 %v1007_v61 }
 0x497   : > { %5429 = vpow2.f32 %v1011_v18  ;;  %v2207_v18 = vsel %vm781_vm0, %v6589_v47, 0 }
 0x498   : > { %1390 = vperm.xlu1 %5236, %v6571_v57   ;;  %5026 = vmatpush3.bf16.xpose.msra.mxu0 %v2213_v42  ;;  %v1021_v42 = vmul.f32 1.442695, %v990_v1  ;;  %5431 = vpow2.f32 %v1017_v3  ;;  %v6615_v1 = vcombine.high %v643_v56, %v644_v29  ;;  %v6619_v3 = vld [vmem:[#allocation2 + $0x8] sm:$0xff] }
 0x499   : > { %5169 = vmatprep.subr.msk.bf16.mxu0 %vm781_vm0, %v6567_v43  ;;  %v6593_v5 = vpop.eup %5417  ;;  %v1674_v46 = vsub.f32 %v6619_v3, %v6431_v12 }
 0x49a   : > { %8732 = vst [vmem:[#allocation11_spill] sm:$0xff] %v6593_v5  ;;  %v6600_v31 = vpop.eup %5419  ;;  %5433 = vpow2.f32 %v1021_v42  ;;  %8736 = vst [vmem:[#allocation18_spill] sm:$0xff] %v6615_v1 }
 0x49b   : > { %8734 = vst [vmem:[#allocation14_spill] sm:$0xff] %v6600_v31  ;;  %v6607_v61 = vpop.eup %5421  ;;  %5435 = vpow2.f32 %v1015_v2  ;;  %v6627_v2 = vld [vmem:[#allocation2 + $0x18] sm:$0xff] }
 0x49c   : > { %1395 = vperm.xlu1 %5236, %v6582_v41   ;;  %8735 = vst [vmem:[#allocation15_spill] sm:$0xff] %v6607_v61  ;;  %5437 = vpow2.f32 %v1019_v11  ;;  %v1676_v56 = vsub.f32 %v6627_v2, %v6425_v17  ;;  %v641_v41 = vld [vmem:[%s5877_s25 + $0x20] sm:$0xff] }
 0x49d   : > { %5439 = vpow2.f32 %v1689_v34 }
 0x49e   : > { %5441 = vpow2.f32 %v1693_v54  ;;  %v1695_v23 = vmul.f32 1.442695, %v1676_v56  ;;  %v640_v56 = vld [vmem:[%s5877_s25 + $0x18] sm:$0xff] }
 0x4a0   : > { %1400 = vperm.xlu1 %5236, %v6593_v5   ;;  %5028 = vmatpush3.bf16.xpose.msra.mxu0 %v2210_v10  ;;  %v2204_v5 = vsel %vm781_vm0, %v6615_v1, 0 }
 0x4a1   : > { %5170 = vmatprep.subr.msk.bf16.mxu0 %vm781_vm0, %v6589_v47  ;;  %v6617_v10 = vpop.eup %5423 }
 0x4a2   : > { %8737 = vst [vmem:[#allocation17_spill] sm:$0xff] %v6617_v10  ;;  %v6625_v42 = vpop.eup %5425 }
 0x4a3   : > { %8738 = vst [vmem:[#allocation51_spill] sm:$0xff] %v6625_v42  ;;  %v6633_v62 = vpop.eup %5427 }
 0x4a4   : > { %1405 = vperm.xlu1 %5236, %v6600_v31   ;;  %8739 = vst [vmem:[#allocation52_spill] sm:$0xff] %v6633_v62  ;;  %v642_v31 = vld [vmem:[%s5877_s25 + $0x28] sm:$0xff]  ;;  %v6641_v11 = vpop.eup %5429 }
 0x4a5   : > { %8740 = vst [vmem:[#allocation53_spill] sm:$0xff] %v6641_v11  ;;  %v6645_v27 = vcombine.high %v641_v41, %v642_v31  ;;  %v6647_v34 = vpop.eup %5431 }
 0x4a6   : > { %8741 = vst [vmem:[#allocation54_spill] sm:$0xff] %v6647_v34 }
 0x4a7   : > { %v6656_v41 = vpop.eup %5433 }
 0x4a8   : > { %1370 = vperm.xlu0 %5235, %v6607_v61   ;;  %1415 = vperm.xlu1 %5236, %v6617_v10   ;;  %v1691_v10 = vmul.f32 1.442695, %v1674_v46  ;;  %8742 = vst [vmem:[#allocation55_spill] sm:$0xff] %v6656_v41 }
 0x4a9   : > { %5030 = vmatpush3.bf16.xpose.msra.mxu0 %v2207_v18  ;;  %v1683_v18 = vsub.f32 %v6133_v60, %v6458_v25  ;;  %v1677_v60 = vsub.f32 %v6156_v51, %v6446_v44  ;;  %v639_v51 = vld [vmem:[%s5877_s25 + $0x10] sm:$0xff] }
 0x4aa   : > { %v1754_v29 = vpop.permute.xlu0 %1753  ;;  %5171 = vmatprep.subr.msk.bf16.mxu0 %vm781_vm0, %v6615_v1  ;;  %5443 = vpow2.f32 %v1691_v10  ;;  %v6660_v10 = vpop.eup %5435 }
 0x4ab   : > { %v1709_v46 = vmul.f32 1.442695, %v1683_v18  ;;  %5445 = vpow2.f32 %v1695_v23  ;;  %8743 = vst [vmem:[#allocation56_spill] sm:$0xff] %v6660_v10  ;;  %v1697_v18 = vmul.f32 1.442695, %v1677_v60  ;;  %v2201_v60 = vsel %vm781_vm0, %v6645_v27, 0 }
 0x4ac   : > { %1410 = vperm.xlu0 %5235, %v6633_v62   ;;  %1425 = vperm.xlu1 %5236, %v6625_v42   ;;  %v1679_v62 = vsub.f32 %v6145_v33, %v6442_v28 }
 0x4ad   : > { %5447 = vpow2.f32 %v1709_v46  ;;  %v6674_v46 = vcombine.high %v639_v51, %v640_v56 }
 0x4ae   : > { %v1744_v57 = vpop.permute.xlu0 %1743  ;;  %5449 = vpow2.f32 %v1697_v18 }
 0x4af   : > { %v1805_v54 = vsub.f32 %v6378_v14, %v1744_v57  ;;  %v6668_v57 = vld [vmem:[#allocation2 + $0x38] sm:$0xff]  ;;  %8744 = vst [vmem:[#allocation57_spill] sm:$0xff] %v6674_v46 }
 0x4b0   : > { %1420 = vperm.xlu0 %5235, %v6641_v11   ;;  %1435 = vperm.xlu1 %5236, %v6647_v34   ;;  %v1701_v11 = vmul.f32 1.442695, %v1679_v62  ;;  %v1807_v34 = vsub.f32 %v6376_v8, %v1754_v29 }
 0x4b1   : > { %5032 = vmatpush3.bf16.xpose.msra.mxu0 %v2204_v5  ;;  %v1825_v14 = vmul.f32 1.442695, %v1805_v54  ;;  %v1680_v5 = vsub.f32 %v6668_v57, %v6450_v7  ;;  %v8747_v54 = vmov 1  }
 0x4b2   : > { %v1759_v31 = vpop.permute.xlu0 %1758  ;;  %5172 = vmatprep.subr.msk.bf16.mxu0 %vm781_vm0, %v6645_v27  ;;  %5451 = vpow2.f32 %v1701_v11  ;;  %v1829_v62 = vmul.f32 1.442695, %v1807_v34  ;;  %v8749_v11 = vld [vmem:[#allocation44_spill] sm:$0xff] }
 0x4b3   : > { %v1808_v33 = vsub.f32 %v6380_v22, %v1759_v31  ;;  %v6676_v22 = vpop.eup %5437  ;;  %5453 = vpow2.f32 %v1825_v14  ;;  %v1703_v51 = vmul.f32 1.442695, %v1680_v5  ;;  %v638_v14 = vld [vmem:[%s5877_s25 + $0x8] sm:$0xff] }
 0x4b4   : > { %1430 = vperm.xlu0 %5235, %v6660_v10   ;;  %1445 = vperm.xlu1 %5236, %v6656_v41   ;;  %8745 = vst [vmem:[#allocation58_spill] sm:$0xff] %v6676_v22  ;;  %v6679_v29 = vpop.eup %5439  ;;  %v6705_v41 = vpop.xlane.xlu1 %1169 }
 0x4b5   : > { %v1831_v23 = vmul.f32 1.442695, %v1808_v33  ;;  %8746 = vst [vmem:[#allocation59_spill] sm:$0xff] %v6679_v29  ;;  %v637_v33 = vld [vmem:[%s5877_s25] sm:$0xff]  ;;  %8752 = vst [vmem:[#allocation62_spill] sm:$0xff] %v6705_v41 }
 0x4b6   : > { %v1749_v42 = vpop.permute.xlu0 %1748  ;;  %v6709_v10 = vcombine.high %v637_v33, %v638_v14  ;;  %v8755_v33 = vld [vmem:[#allocation37_spill] sm:$0xff] }
 0x4b7   : > { %v1806_v8 = vsub.f32 %v6382_v38, %v1749_v42  ;;  %5455 = vpow2.f32 %v1831_v23  ;;  %v6686_v38 = vpop.eup %5441  ;;  %v6688_v42 = vld [vmem:[#allocation2 + $0x28] sm:$0xff] }
 0x4b8   : > { %1440 = vperm.xlu0 %5235, %v6676_v22   ;;  %5237 = vset.pattern.permute.xlu1 %v8747_v54  ;;  %8748 = vst [vmem:[#allocation60_spill] sm:$0xff] %v6686_v38  ;;  %v1678_v34 = vsub.f32 %v6688_v42, %v8749_v11  ;;  %v6692_v18 = vpop.eup %5443 }
 0x4b9   : > { %v1827_v31 = vmul.f32 1.442695, %v1806_v8  ;;  %2044 = vperm.xlu1 %5237, %v6679_v29   ;;  %5034 = vmatpush3.bf16.xpose.msra.mxu0 %v2201_v60  ;;  %8750 = vst [vmem:[#allocation44_spill] sm:$0xff] %v6692_v18  ;;  %v6699_v23 = vpop.eup %5445  ;;  %v6701_v8 = vld [vmem:[#allocation2 + $0x40] sm:$0xff] }
 0x4ba   : > { %v1774_v56 = vpop.permute.xlu0 %1773  ;;  %5173 = vmatprep.subr.msk.bf16.mxu0 %vm781_vm0, %v6674_v46  ;;  %8751 = vst [vmem:[#allocation61_spill] sm:$0xff] %v6699_v23  ;;  %v1699_v60 = vmul.f32 1.442695, %v1678_v34  ;;  %v6711_v22 = vpop.eup %5447  ;;  %v8754_v34 = vld [vmem:[#allocation36_spill] sm:$0xff] }
 0x4bb   : > { %5457 = vpow2.f32 %v1827_v31  ;;  %v1681_v31 = vsub.f32 %v6701_v8, %v6462_v53  ;;  %8753 = vst [vmem:[#allocation63_spill] sm:$0xff] %v6711_v22  ;;  %v6723_v9 = vpop.eup %5449 }
 0x4bc   : > { %5459 = vpow2.f32 %v1829_v62  ;;  %5238 = vset.pattern.permute.xlu0 %v8747_v54  ;;  %v2198_v62 = vsel %vm781_vm0, %v6674_v46, 0  ;;  %8756 = vst [vmem:[#allocation36_spill] sm:$0xff] %v6723_v9  ;;  %v8757_v46 = vld [vmem:[#allocation35_spill] sm:$0xff] }
 0x4bd   : > { %2049 = vperm.xlu0 %5238, %v6692_v18   ;;  %2054 = vperm.xlu1 %5237, %v6686_v38   ;;  %5461 = vpow2.f32 %v1703_v51  ;;  %v6713_v18 = vld [vmem:[#allocation2 + $0x48] sm:$0xff]  ;;  %v1705_v41 = vmul.f32 1.442695, %v1681_v31  ;;  %v1811_v1 = vsub.f32 %v8757_v46, %v1774_v56 }
 0x4be   : > { %v1764_v5 = vpop.permute.xlu0 %1763  ;;  %v1682_v51 = vsub.f32 %v6713_v18, %v6475_v30  ;;  %5463 = vpow2.f32 %v1699_v60  ;;  %v1789_v29 = vpop.permute.xlu1 %1788  ;;  %v8759_v60 = vld [vmem:[#allocation42_spill] sm:$0xff] }
 0x4bf   : > { %v1809_v4 = vsub.f32 %v8754_v34, %v1764_v5  ;;  %v6726_v5 = vpop.eup %5451  ;;  %v1814_v31 = vsub.f32 %v8759_v60, %v1789_v29  ;;  %5465 = vpow2.f32 %v1705_v41 }
 0x4c0   : > { %v1707_v38 = vmul.f32 1.442695, %v1682_v51  ;;  %8758 = vst [vmem:[#allocation37_spill] sm:$0xff] %v6726_v5  ;;  %v2195_v51 = vsel %vm781_vm0, %v6709_v10, 0 }
 0x4c1   : > { %2094 = vperm.xlu0 %5238, %v6711_v22   ;;  %2059 = vperm.xlu1 %5237, %v6699_v23   ;;  %v1833_v34 = vmul.f32 1.442695, %v1809_v4  ;;  %v6729_v22 = vpop.eup %5453  ;;  %v1837_v4 = vmul.f32 1.442695, %v1811_v1  ;;  %v8762_v1 = vld [vmem:[#allocation40_spill] sm:$0xff] }
 0x4c2   : > { %v1779_v61 = vpop.permute.xlu0 %1778  ;;  %5036 = vmatpush3.bf16.xpose.msra.mxu0 %v2198_v62  ;;  %5467 = vpow2.f32 %v1707_v38 }
 0x4c3   : > { %v1812_v14 = vsub.f32 %v8755_v33, %v1779_v61  ;;  %5174 = vmatprep.subr.msk.bf16.mxu0 %vm781_vm0, %v6709_v10  ;;  %v8760_v33 = vld [vmem:[#allocation38_spill] sm:$0xff]  ;;  %5469 = vpow2.f32 %v1833_v34 }
 0x4c4   : > { %v6732_v61 = vpop.eup %5455 }
 0x4c5   : > { %2064 = vperm.xlu1 %5237, %v6723_v9   ;;  %v1839_v62 = vmul.f32 1.442695, %v1812_v14  ;;  %v1843_v14 = vmul.f32 1.442695, %v1814_v31  ;;  %v8763_v31 = vld [vmem:[#allocation39_spill] sm:$0xff] }
 0x4c6   : > { %v1769_v23 = vpop.permute.xlu0 %1768 }
 0x4c7   : > { %v1810_v0 = vsub.f32 %v8760_v33, %v1769_v23  ;;  %5471 = vpow2.f32 %v1839_v62 }
 0x4c8   : > { %v6737_v46 = vpop.eup %5457 }
 0x4c9   : > { %v6739_v56 = vpop.eup %5459  ;;  %v1835_v9 = vmul.f32 1.442695, %v1810_v0  ;;  %2074 = vperm.xlu1 %5237, %v6726_v5   ;;  %v1915_v29 = vpack.c.bf16 %v6737_v46, %v6729_v22 }
 0x4ca   : > { %v1784_v41 = vpop.permute.xlu0 %1783  ;;  %v1916_v23 = vpack.c.bf16 %v6732_v61, %v6739_v56  ;;  %5038 = vmatpush3.bf16.xpose.msra.mxu0 %v2195_v51  ;;  %v6746_v60 = vpop.eup %5461 }
 0x4cb   : > { %8761 = vst [vmem:[#allocation35_spill] sm:$0xff] %v6746_v60  ;;  %5473 = vpow2.f32 %v1835_v9  ;;  %v1813_v38 = vsub.f32 %v8762_v1, %v1784_v41  ;;  %5011 = vmatprep.mubr.bf16.mxu0 %v1915_v29  ;;  %v6751_v33 = vpop.eup %5463  ;;  %v8765_v9 = vld [vmem:[#allocation41_spill] sm:$0xff] }
 0x4cc   : > { %5475 = vpow2.f32 %v1837_v4  ;;  %5012 = vmatmul.mubr.bf16.gmra.mxu0 %v1916_v23  ;;  %8764 = vst [vmem:[#allocation42_spill] sm:$0xff] %v6751_v33  ;;  %v6755_v41 = vpop.eup %5465 }
 0x4cd   : > { %v1841_v0 = vmul.f32 1.442695, %v1813_v38  ;;  %2079 = vperm.xlu1 %5237, %v6746_v60   ;;  %5477 = vpow2.f32 %v1843_v14  ;;  %8766 = vst [vmem:[#allocation38_spill] sm:$0xff] %v6755_v41 }
 0x4ce   : > { %v1794_v34 = vpop.permute.xlu0 %1793 }
 0x4cf   : > { %5479 = vpow2.f32 %v1841_v0  ;;  %v1815_v62 = vsub.f32 %v8763_v31, %v1794_v34  ;;  %v6757_v4 = vpop.eup %5467 }
 0x4d0   : > { %8767 = vst [vmem:[#allocation40_spill] sm:$0xff] %v6757_v4  ;;  %v5470_v14 = vpop.eup %5469 }
 0x4d1   : > { %2069 = vperm.xlu1 %5237, %v6751_v33   ;;  %v1845_v51 = vmul.f32 1.442695, %v1815_v62  ;;  %v634_v33 = vld [vmem:[%s5897_s12 + $0x68] sm:$0xff] }
 0x4d2   : > { %v1799_v5 = vpop.permute.xlu0 %1798 }
 0x4d3   : > { %v1816_v30 = vsub.f32 %v8765_v9, %v1799_v5  ;;  %5481 = vpow2.f32 %v1845_v51  ;;  %v6763_v9 = vld [vmem:[%s5897_s12 + $0x4] ss:$8 sps:$4 sm:$0xff]  }
 0x4d4   : > { %v5472_v23 = vpop.eup %5471 }
 0x4d5   : > { %v1847_v29 = vmul.f32 1.442695, %v1816_v30  ;;  %2084 = vperm.xlu1 %5237, %v6755_v41  }
 0x4d7   : > { %5483 = vpow2.f32 %v1847_v29 }
 0x4d8   : > { %v5474_v1 = vpop.eup %5473 }
 0x4d9   : > { %v5476_v38 = vpop.eup %5475  ;;  %2089 = vperm.xlu1 %5237, %v6757_v4   ;;  %v1917_v0 = vpack.c.bf16 %v5474_v1, %v5470_v14  ;;  %v630_v4 = vld [vmem:[%s5897_s12 + $0x48] sm:$0xff] }
 0x4da   : > { %v1918_v34 = vpack.c.bf16 %v5472_v23, %v5476_v38  ;;  %v5478_v5 = vpop.eup %5477 }
 0x4db   : > { %5015 = vmatprep.mubr.bf16.mxu0 %v1917_v0  ;;  %v625_v0 = vld [vmem:[%s5897_s12 + $0x20] sm:$0xff] }
 0x4dc   : > { %v5480_v31 = vpop.eup %5479  ;;  %5016 = vmatmul.mubr.bf16.gmra.mxu0 %v1918_v34  ;;  %v626_v34 = vld [vmem:[%s5897_s12 + $0x28] sm:$0xff] }
 0x4dd   : > { %v1919_v30 = vpack.c.bf16 %v5478_v5, %v5480_v31 }
 0x4df   : > { %5019 = vmatprep.mubr.bf16.mxu0 %v1919_v30  ;;  %v6775_v30 = vcombine.high %v625_v0, %v626_v34  ;;  %v631_v0 = vld [vmem:[%s5897_s12 + $0x50] sm:$0xff]  ;;  %v632_v34 = vld [vmem:[%s5897_s12 + $0x58] sm:$0xff] }
 0x4e0   : > { %1869 = vadd.xlane.f32.xlu0 %v6534_v24  ;;  %v5482_v62 = vpop.eup %5481  ;;  %v6772_v24 = vld [vmem:[%s5897_s12 + $0x14] ss:$8 sps:$4 sm:$0xff]   ;;  %v6798_v60 = vcombine.high %v631_v0, %v632_v34 }
 0x4e4   : > { %v5484_v51 = vpop.eup %5483  ;;  %1865 = vadd.xlane.f32.xlu0 %v6523_v40  ;;  %v627_v40 = vld [vmem:[%s5897_s12 + $0x30] sm:$0xff] }
 0x4e5   : > { %v1920_v29 = vpack.c.bf16 %v5484_v51, %v5482_v62 }
 0x4e7   : > { %5020 = vmatmul.mubr.bf16.gmra.mxu0 %v1920_v29  ;;  %v629_v29 = vld [vmem:[%s5897_s12 + $0x40] sm:$0xff] }
 0x4e8   : > { %1871 = vadd.xlane.f32.xlu0 %v6525_v45  ;;  %5039 = vmatprep.mubr.msk.bf16.mxu0 %vm781_vm0, %v6763_v9  ;;  %v628_v45 = vld [vmem:[%s5897_s12 + $0x38] sm:$0xff] }
 0x4e9   : > { %v6786_v41 = vcombine.high %v627_v40, %v628_v45 }
 0x4ec   : > { %1879 = vadd.xlane.f32.xlu0 %v6732_v61  ;;  %v6788_v61 = vcombine.high %v629_v29, %v630_v4  ;;  %v635_v4 = vld [vmem:[%s5897_s12 + $0x70] sm:$0xff] }
 0x4ef   : > { %5040 = vmatmul.mubr.msk.bf16.vlgmr.msra.gmra.mxu0 %vm781_vm0, %v6772_v24 }
 0x4f0   : > { %1875 = vadd.xlane.f32.xlu0 %v6737_v46  ;;  %5043 = vmatprep.mubr.msk.bf16.mxu0 %vm781_vm0, %v6775_v30  ;;  %v633_v46 = vld [vmem:[%s5897_s12 + $0x60] sm:$0xff] }
 0x4f1   : > { %v6800_v40 = vcombine.high %v633_v46, %v634_v33 }
 0x4f4   : > { %1887 = vadd.xlane.f32.xlu0 %v5472_v23  ;;  %v636_v23 = vld [vmem:[%s5897_s12 + $0x78] sm:$0xff] }
 0x4f7   : > { %5044 = vmatmul.mubr.msk.bf16.gmra.mxu0 %vm781_vm0, %v6786_v41 }
 0x4f8   : > { %1883 = vadd.xlane.f32.xlu0 %v5474_v1  ;;  %5047 = vmatprep.mubr.msk.bf16.mxu0 %vm781_vm0, %v6788_v61  ;;  %v6810_v1 = vcombine.high %v635_v4, %v636_v23 }
 0x4fc   : > { %1895 = vadd.xlane.f32.xlu0 %v5484_v51 }
 0x4fd   : > { %1867 = vadd.xlane.f32.xlu1 %v6532_v37  ;;  %v6815_v37 = vpop.xlane.xlu1 %1173 }
 0x4fe   : > { %8768 = vst [vmem:[#allocation39_spill] sm:$0xff] %v6815_v37 }
 0x4ff   : > { %5048 = vmatmul.mubr.msk.bf16.gmra.mxu0 %vm781_vm0, %v6798_v60 }
 0x500   : > { %1891 = vadd.xlane.f32.xlu0 %v5478_v5  ;;  %5051 = vmatprep.mubr.msk.bf16.mxu0 %vm781_vm0, %v6800_v40 }
 0x501   : > { %1877 = vadd.xlane.f32.xlu1 %v6739_v56  ;;  %v6817_v33 = vpop.xlane.xlu1 %1181 }
 0x502   : > { %8769 = vst [vmem:[#allocation41_spill] sm:$0xff] %v6817_v33 }
 0x505   : > { %1873 = vadd.xlane.f32.xlu1 %v6729_v22  ;;  %v6823_v56 = vpop.xlane.xlu1 %1185 }
 0x506   : > { %8772 = vst [vmem:[#allocation66_spill] sm:$0xff] %v6823_v56 }
 0x507   : > { %5052 = vmatmul.mubr.msk.bf16.gmra.mxu0 %vm781_vm0, %v6810_v1 }
 0x509   : > { %1885 = vadd.xlane.f32.xlu1 %v5476_v38  ;;  %v6827_v22 = vpop.xlane.xlu1 %1189 }
 0x50a   : > { %8773 = vst [vmem:[#allocation67_spill] sm:$0xff] %v6827_v22 }
 0x50d   : > { %1881 = vadd.xlane.f32.xlu1 %v5470_v14  ;;  %v6833_v14 = vpop.xlane.xlu1 %1193 }
 0x50e   : > { %8775 = vst [vmem:[#allocation69_spill] sm:$0xff] %v6833_v14 }
 0x511   : > { %1893 = vadd.xlane.f32.xlu1 %v5482_v62  ;;  %v6839_v0 = vpop.xlane.xlu1 %1197 }
 0x512   : > { %8778 = vst [vmem:[#allocation72_spill] sm:$0xff] %v6839_v0 }
 0x515   : > { %1889 = vadd.xlane.f32.xlu1 %v5480_v31  ;;  %v6845_v4 = vpop.permute.xlu1 %1375 }
 0x516   : > { %8781 = vst [vmem:[#allocation75_spill] sm:$0xff] %v6845_v4 }
 0x519   : > { %v6851_v33 = vpop.permute.xlu1 %1380 }
 0x51a   : > { %8784 = vst [vmem:[#allocation78_spill] sm:$0xff] %v6851_v33 }
 0x51d   : > { %v6857_v37 = vpop.permute.xlu1 %1385 }
 0x51e   : > { %8787 = vst [vmem:[#allocation81_spill] sm:$0xff] %v6857_v37 }
 0x521   : > { %v6867_v4 = vpop.permute.xlu1 %1390 }
 0x522   : > { %8792 = vst [vmem:[#allocation86_spill] sm:$0xff] %v6867_v4 }
 0x54f   : > { %v6819_v5 = vpop.f32.mrf.mxu0 }
 0x550   : > { %8770 = vst [vmem:[#allocation64_spill] sm:$0xff] %v6819_v5 }
 0x551   : > { %v6821_v51 = vpop.f32.mrf.mxu0 }
 0x552   : > { %8771 = vst [vmem:[#allocation65_spill] sm:$0xff] %v6821_v51 }
 0x553   : > { %v6825_v45 = vpop.f32.mrf.mxu0 }
 0x555   : > { %v6829_v29 = vpop.f32.mrf.mxu0 }
 0x58c   : > { %v6831_v38 = vpop.f32.mrf.mxu0 }
 0x58d   : > { %8774 = vst [vmem:[#allocation68_spill] sm:$0xff] %v6831_v38 }
 0x58e   : > { %v6835_v31 = vpop.f32.mrf.mxu0 }
 0x58f   : > { %8776 = vst [vmem:[#allocation70_spill] sm:$0xff] %v6835_v31 }
 0x590   : > { %v6837_v62 = vpop.f32.mrf.mxu0 }
 0x591   : > { %8777 = vst [vmem:[#allocation71_spill] sm:$0xff] %v6837_v62 }
 0x592   : > { %v6841_v34 = vpop.f32.mrf.mxu0 }
 0x593   : > { %8779 = vst [vmem:[#allocation73_spill] sm:$0xff] %v6841_v34  ;;  %v8643_v34 = vmov 2  }
 0x594   : > { %5239 = vset.pattern.permute.xlu1 %v8643_v34 }
 0x59c   : > { %v6843_v46 = vpop.f32.mrf.mxu0 }
 0x59d   : > { %8780 = vst [vmem:[#allocation74_spill] sm:$0xff] %v6843_v46  ;;  %v6865_v46 = vpop.xlane.xlu0 %1171 }
 0x59e   : > { %v6847_v23 = vpop.f32.mrf.mxu0  ;;  %8791 = vst [vmem:[#allocation85_spill] sm:$0xff] %v6865_v46 }
 0x59f   : > { %8782 = vst [vmem:[#allocation76_spill] sm:$0xff] %v6847_v23 }
 0x5a0   : > { %v6849_v56 = vpop.f32.mrf.mxu0 }
 0x5a1   : > { %8783 = vst [vmem:[#allocation77_spill] sm:$0xff] %v6849_v56  ;;  %v6877_v37 = vpop.xlane.xlu0 %1175 }
 0x5a2   : > { %v6853_v22 = vpop.f32.mrf.mxu0  ;;  %8795 = vst [vmem:[#allocation89_spill] sm:$0xff] %v6877_v37 }
 0x5a3   : > { %8785 = vst [vmem:[#allocation79_spill] sm:$0xff] %v6853_v22 }
 0x5a5   : > { %v6891_v22 = vpop.xlane.xlu0 %1177 }
 0x5a6   : > { %8798 = vst [vmem:[#allocation92_spill] sm:$0xff] %v6891_v22 }
 0x5a7   : > { %v6855_v14 = vpop.f32.mrf.mxu0 }
 0x5a8   : > { %8786 = vst [vmem:[#allocation80_spill] sm:$0xff] %v6855_v14 }
 0x5a9   : > { %v6859_v38 = vpop.f32.mrf.mxu0  ;;  %v6902_v5 = vpop.xlane.xlu0 %1179 }
 0x5aa   : > { %8788 = vst [vmem:[#allocation82_spill] sm:$0xff] %v6859_v38  ;;  %v6879_v38 = vpop.permute.xlu1 %1395  ;;  %8802 = vst [vmem:[#allocation96_spill] sm:$0xff] %v6902_v5 }
 0x5ab   : > { %v6861_v0 = vpop.f32.mrf.mxu0  ;;  %8796 = vst [vmem:[#allocation90_spill] sm:$0xff] %v6879_v38 }
 0x5ac   : > { %8789 = vst [vmem:[#allocation83_spill] sm:$0xff] %v6861_v0 }
 0x5ad   : > { %v6863_v31 = vpop.f32.mrf.mxu0  ;;  %v6909_v22 = vpop.xlane.xlu0 %1183 }
 0x5ae   : > { %8790 = vst [vmem:[#allocation84_spill] sm:$0xff] %v6863_v31  ;;  %v6883_v31 = vld [vmem:[#allocation2 + $0x58] sm:$0xff]  ;;  %v6894_v37 = vpop.permute.xlu1 %1400  ;;  %8805 = vst [vmem:[#allocation99_spill] sm:$0xff] %v6909_v22 }
 0x5af   : > { %v6869_v23 = vpop.f32.mrf.mxu0  ;;  %v1684_v4 = vsub.f32 %v6883_v31, %v6470_v20  ;;  %8799 = vst [vmem:[#allocation93_spill] sm:$0xff] %v6894_v37 }
 0x5b0   : > { %8793 = vst [vmem:[#allocation87_spill] sm:$0xff] %v6869_v23  ;;  %2319 = vmax.xlane.f32.xlu0 %v6869_v23 }
 0x5b1   : > { %v6872_v33 = vpop.f32.mrf.mxu0  ;;  %v1711_v56 = vmul.f32 1.442695, %v1684_v4 }
 0x5b2   : > { %2315 = vmax.xlane.f32.xlu1 %v6872_v33 }
 0x5b3   : > { %v6875_v14 = vpop.f32.mrf.mxu0  ;;  %5485 = vpow2.f32 %v1711_v56 }
 0x5b4   : > { %8794 = vst [vmem:[#allocation88_spill] sm:$0xff] %v6875_v14 }
 0x5b5   : > { %v6881_v0 = vpop.f32.mrf.mxu0 }
 0x5b6   : > { %2321 = vmax.xlane.f32.xlu1 %v6875_v14  ;;  %2317 = vmax.xlane.f32.xlu0 %v6881_v0  ;;  %v6904_v14 = vpop.permute.xlu1 %1405 }
 0x5b7   : > { %v6889_v46 = vpop.f32.mrf.mxu0  ;;  %8803 = vst [vmem:[#allocation97_spill] sm:$0xff] %v6904_v14  ;;  %v6923_v14 = vpop.xlane.xlu0 %1187 }
 0x5b8   : > { %8797 = vst [vmem:[#allocation91_spill] sm:$0xff] %v6889_v46  ;;  %8811 = vst [vmem:[#allocation105_spill] sm:$0xff] %v6923_v14 }
 0x5b9   : > { %v6896_v38 = vpop.f32.mrf.mxu0 }
 0x5ba   : > { %2327 = vmax.xlane.f32.xlu1 %v6889_v46  ;;  %8800 = vst [vmem:[#allocation94_spill] sm:$0xff] %v6896_v38  ;;  %v6912_v56 = vpop.permute.xlu1 %1415 }
 0x5bb   : > { %v6899_v62 = vpop.f32.mrf.mxu0  ;;  %8806 = vst [vmem:[#allocation100_spill] sm:$0xff] %v6912_v56  ;;  %v8814_v56 = vmov 2  }
 0x5bc   : > { %8801 = vst [vmem:[#allocation95_spill] sm:$0xff] %v6899_v62 }
 0x5bd   : > { %v6907_v4 = vpop.f32.mrf.mxu0 }
 0x5be   : > { %2323 = vmax.xlane.f32.xlu1 %v6896_v38  ;;  %8804 = vst [vmem:[#allocation98_spill] sm:$0xff] %v6907_v4 }
 0x5bf   : > { %v6914_v37 = vpop.f32.mrf.mxu0 }
 0x5c0   : > { %8807 = vst [vmem:[#allocation101_spill] sm:$0xff] %v6914_v37  ;;  %v6919_v34 = vpop.eup %5485 }
 0x5c1   : > { %v6916_v38 = vpop.f32.mrf.mxu0  ;;  %8809 = vst [vmem:[#allocation103_spill] sm:$0xff] %v6919_v34 }
 0x5c2   : > { %2329 = vmax.xlane.f32.xlu1 %v6899_v62  ;;  %8808 = vst [vmem:[#allocation102_spill] sm:$0xff] %v6916_v38  ;;  %v6926_v62 = vpop.permute.xlu1 %1425 }
 0x5c3   : > { %v6921_v5 = vpop.f32.mrf.mxu0  ;;  %8812 = vst [vmem:[#allocation106_spill] sm:$0xff] %v6926_v62 }
 0x5c4   : > { %8810 = vst [vmem:[#allocation104_spill] sm:$0xff] %v6921_v5 }
 0x5c5   : > { %v6929_v22 = vpop.f32.mrf.mxu0 }
 0x5c6   : > { %2325 = vmax.xlane.f32.xlu1 %v6907_v4  ;;  %8813 = vst [vmem:[#allocation107_spill] sm:$0xff] %v6929_v22  ;;  %v6932_v4 = vpop.xlane.xlu0 %1191 }
 0x5c7   : > { %8815 = vst [vmem:[#allocation108_spill] sm:$0xff] %v6932_v4  ;;  %v6937_v46 = vpop.f32.mrf.mxu0 }
 0x5c8   : > { %8817 = vst [vmem:[#allocation110_spill] sm:$0xff] %v6937_v46 }
 0x5c9   : > { %v6940_v14 = vpop.f32.mrf.mxu0 }
 0x5ca   : > { %2335 = vmax.xlane.f32.xlu1 %v6914_v37  ;;  %v6935_v37 = vpop.permute.xlu1 %1435  ;;  %8818 = vst [vmem:[#allocation111_spill] sm:$0xff] %v6940_v14 }
 0x5cb   : > { %8816 = vst [vmem:[#allocation109_spill] sm:$0xff] %v6935_v37 }
 0x5cc   : > { %2099 = vperm.xlu0 %5238, %v6919_v34   ;;  %v6942_v34 = vpop.xlane.xlu0 %1195 }
 0x5cd   : > { %8819 = vst [vmem:[#allocation112_spill] sm:$0xff] %v6942_v34 }
 0x5ce   : > { %2331 = vmax.xlane.f32.xlu1 %v6916_v38  ;;  %v6944_v62 = vpop.permute.xlu1 %1445  ;;  %v6947_v38 = vpop.f32.mrf.mxu0 }
 0x5cf   : > { %8820 = vst [vmem:[#allocation113_spill] sm:$0xff] %v6944_v62  ;;  %8821 = vst [vmem:[#allocation114_spill] sm:$0xff] %v6947_v38 }
 0x5d0   : > { %5240 = vset.pattern.permute.xlu0 %v8814_v56  ;;  %v6949_v51 = vpop.permute.xlu0 %1370  ;;  %v6954_v37 = vpop.f32.mrf.mxu0 }
 0x5d1   : > { %8822 = vst [vmem:[#allocation115_spill] sm:$0xff] %v6949_v51  ;;  %8824 = vst [vmem:[#allocation117_spill] sm:$0xff] %v6954_v37 }
 0x5d2   : > { %2337 = vmax.xlane.f32.xlu1 %v6921_v5  ;;  %v6952_v4 = vpop.permute.xlu1 %2044 }
 0x5d3   : > { %8823 = vst [vmem:[#allocation116_spill] sm:$0xff] %v6952_v4 }
 0x5d6   : > { %2343 = vmax.xlane.f32.xlu1 %v6937_v46  ;;  %v6957_v46 = vpop.permute.xlu0 %1410  ;;  %v6959_v5 = vpop.permute.xlu1 %2054 }
 0x5d7   : > { %8825 = vst [vmem:[#allocation118_spill] sm:$0xff] %v6957_v46  ;;  %8826 = vst [vmem:[#allocation119_spill] sm:$0xff] %v6959_v5 }
 0x5da   : > { %2339 = vmax.xlane.f32.xlu1 %v6940_v14  ;;  %v6961_v34 = vpop.permute.xlu0 %1420  ;;  %v6963_v62 = vpop.permute.xlu1 %2059 }
 0x5db   : > { %8827 = vst [vmem:[#allocation120_spill] sm:$0xff] %v6961_v34  ;;  %8828 = vst [vmem:[#allocation121_spill] sm:$0xff] %v6963_v62 }
 0x5de   : > { %2345 = vmax.xlane.f32.xlu1 %v6947_v38  ;;  %v6966_v14 = vpop.permute.xlu0 %1430  ;;  %v6968_v51 = vpop.permute.xlu1 %2064 }
 0x5df   : > { %8829 = vst [vmem:[#allocation122_spill] sm:$0xff] %v6966_v14  ;;  %8830 = vst [vmem:[#allocation123_spill] sm:$0xff] %v6968_v51 }
 0x5e2   : > { %2341 = vmax.xlane.f32.xlu1 %v6954_v37  ;;  %v6970_v38 = vpop.permute.xlu0 %1440  ;;  %v6972_v4 = vpop.permute.xlu1 %2074 }
 0x5e3   : > { %8831 = vst [vmem:[#allocation124_spill] sm:$0xff] %v6970_v38  ;;  %8832 = vst [vmem:[#allocation125_spill] sm:$0xff] %v6972_v4 }
 0x5e6   : > { %v6974_v23 = vpop.permute.xlu0 %2049  ;;  %v6976_v37 = vpop.permute.xlu1 %2079 }
 0x5e7   : > { %8833 = vst [vmem:[#allocation126_spill] sm:$0xff] %v6974_v23  ;;  %8834 = vst [vmem:[#allocation127_spill] sm:$0xff] %v6976_v37 }
 0x5ea   : > { %v6978_v46 = vpop.permute.xlu0 %2094  ;;  %v6980_v5 = vpop.permute.xlu1 %2069 }
 0x5eb   : > { %2333 = vmax.xlane.f32.xlu0 %v6929_v22  ;;  %8835 = vst [vmem:[#allocation128_spill] sm:$0xff] %v6978_v46  ;;  %8836 = vst [vmem:[#allocation129_spill] sm:$0xff] %v6980_v5 }
 0x5ee   : > { %v6982_v34 = vpop.xlane.xlu0 %1869  ;;  %v6984_v62 = vpop.permute.xlu1 %2084 }
 0x5ef   : > { %8837 = vst [vmem:[#allocation130_spill] sm:$0xff] %v6982_v34  ;;  %8838 = vst [vmem:[#allocation131_spill] sm:$0xff] %v6984_v62 }
 0x5f2   : > { %v6986_v22 = vpop.xlane.xlu0 %1865  ;;  %v6988_v14 = vpop.permute.xlu1 %2089 }
 0x5f3   : > { %8839 = vst [vmem:[#allocation132_spill] sm:$0xff] %v6986_v22  ;;  %8840 = vst [vmem:[#allocation133_spill] sm:$0xff] %v6988_v14 }
 0x5f6   : > { %v6990_v51 = vpop.xlane.xlu0 %1871  ;;  %v6992_v38 = vpop.xlane.xlu1 %1867 }
 0x5f7   : > { %8841 = vst [vmem:[#allocation134_spill] sm:$0xff] %v6990_v51  ;;  %8842 = vst [vmem:[#allocation135_spill] sm:$0xff] %v6992_v38 }
 0x5fa   : > { %v6994_v4 = vpop.xlane.xlu0 %1879  ;;  %v6996_v23 = vpop.xlane.xlu1 %1877 }
 0x5fb   : > { %8843 = vst [vmem:[#allocation136_spill] sm:$0xff] %v6994_v4  ;;  %8844 = vst [vmem:[#allocation137_spill] sm:$0xff] %v6996_v23 }
 0x5fe   : > { %v6998_v37 = vpop.xlane.xlu0 %1875  ;;  %v7000_v46 = vpop.xlane.xlu1 %1873 }
 0x5ff   : > { %8845 = vst [vmem:[#allocation138_spill] sm:$0xff] %v6998_v37  ;;  %8846 = vst [vmem:[#allocation139_spill] sm:$0xff] %v7000_v46 }
 0x602   : > { %v7002_v5 = vpop.xlane.xlu0 %1887  ;;  %v7004_v34 = vpop.xlane.xlu1 %1885 }
 0x603   : > { %8847 = vst [vmem:[#allocation140_spill] sm:$0xff] %v7002_v5  ;;  %8848 = vst [vmem:[#allocation141_spill] sm:$0xff] %v7004_v34 }
 0x606   : > { %v7006_v62 = vpop.xlane.xlu0 %1883  ;;  %v7008_v22 = vpop.xlane.xlu1 %1881 }
 0x607   : > { %8849 = vst [vmem:[#allocation142_spill] sm:$0xff] %v7006_v62  ;;  %8850 = vst [vmem:[#allocation143_spill] sm:$0xff] %v7008_v22  ;;  %v3497_v62 = vsel %vm3494_vm2, %v6093_v35, %v6417_v13 }
 0x60a   : > { %v7010_v14 = vpop.xlane.xlu0 %1895  ;;  %v7012_v51 = vpop.xlane.xlu1 %1893 }
 0x60b   : > { %8851 = vst [vmem:[#allocation144_spill] sm:$0xff] %v7010_v14  ;;  %8852 = vst [vmem:[#allocation145_spill] sm:$0xff] %v7012_v51  ;;  %v7028_v51 = vld [vmem:[#allocation2] sm:$0xff] }
 0x60e   : > { %v7014_v38 = vpop.xlane.xlu0 %1891  ;;  %v7016_v4 = vpop.xlane.xlu1 %1889 }
 0x60f   : > { %8853 = vst [vmem:[#allocation146_spill] sm:$0xff] %v7014_v38  ;;  %8854 = vst [vmem:[#allocation147_spill] sm:$0xff] %v7016_v4  ;;  %v3495_v4 = vsel %vm3494_vm2, %v8723_v63, %v6420_v26  ;;  %v3498_v26 = vsel %vm3494_vm2, %v6124_v49, %v6425_v17  ;;  %v3501_v49 = vsel %vm3494_vm2, %v8720_v36, %v6442_v28 }
 0x639   : > { %v2320_v37 = vpop.xlane.xlu0 %2319 }
 0x63a   : > { %v7019_v46 = vmax.f32 %v6609_v48, %v2320_v37 }
 0x63b   : > { %v2316_v34 = vpop.xlane.xlu1 %2315 }
 0x63c   : > { %v7026_v14 = vsel %vm3511_vm3, %v3497_v62, %v7019_v46  ;;  %v7031_v38 = vmax.f32 %v7028_v51, %v2316_v34  ;;  %v8855_v34 = vld [vmem:[#allocation9_spill] sm:$0xff] }
 0x63d   : > { %v3496_v5 = vsel %vm3494_vm2, %v8855_v34, %v6431_v12  ;;  %v7078_v34 = vld [vmem:[#allocation2 + $0x20] sm:$0xff] }
 0x63e   : > { %v7038_v37 = vsel %vm3511_vm3, %v3495_v4, %v7031_v38  ;;  %2413 = vperm.xlu1 %5239, %v7031_v38  }
 0x63f   : > { %v2318_v35 = vpop.xlane.xlu0 %2317  ;;  %v2322_v13 = vpop.xlane.xlu1 %2321 }
 0x640   : > { %v7042_v62 = vmax.f32 %v6619_v3, %v2318_v35  ;;  %v7045_v22 = vmax.f32 %v6627_v2, %v2322_v13  ;;  %v7063_v13 = vld [vmem:[#allocation2 + $0x30] sm:$0xff] }
 0x642   : > { %v7055_v63 = vsel %vm3511_vm3, %v3496_v5, %v7042_v62  ;;  %2418 = vperm.xlu0 %5240, %v7042_v62   ;;  %2423 = vperm.xlu1 %5239, %v7019_v46   ;;  %v7061_v4 = vsel %vm3511_vm3, %v3498_v26, %v7045_v22 }
 0x643   : > { %v2328_v35 = vpop.xlane.xlu1 %2327 }
 0x644   : > { %v7066_v12 = vmax.f32 %v7063_v13, %v2328_v35  ;;  %v3499_v35 = vsel %vm3494_vm2, %v6159_v50, %v6446_v44 }
 0x646   : > { %v7073_v17 = vsel %vm3511_vm3, %v3501_v49, %v7066_v12  ;;  %2428 = vperm.xlu1 %5239, %v7045_v22   ;;  %2844 = vrot.lane.b32.xlu0 %v6589_v47, %s5730_s27  ;;  %v3502_v49 = vsel %vm3494_vm2, %v8721_v15, %v6450_v7  ;;  %v7116_v15 = vld [vmem:[#allocation2 + $0x50] sm:$0xff] }
 0x647   : > { %v2324_v5 = vpop.xlane.xlu1 %2323 }
 0x648   : > { %v7081_v26 = vmax.f32 %v7078_v34, %v2324_v5 }
 0x64a   : > { %v7088_v28 = vsel %vm3511_vm3, %v3499_v35, %v7081_v26  ;;  %2850 = vrot.lane.b32.xlu1 %v6511_v6, %s5730_s27  ;;  %v3500_v6 = vsel %vm3494_vm2, %v6171_v52, %v8749_v11 }
 0x64b   : > { %8856 = vst [vmem:[#allocation9_spill] sm:$0xff] %v7088_v28  ;;  %v2330_v36 = vpop.xlane.xlu1 %2329  ;;  %v8872_v28 = vld [vmem:[#allocation16_spill] sm:$0xff] }
 0x64c   : > { %v7093_v47 = vmax.f32 %v6668_v57, %v2330_v36  ;;  %v3505_v36 = vsel %vm3494_vm2, %v8727_v21, %v6458_v25 }
 0x64e   : > { %v7100_v5 = vsel %vm3511_vm3, %v3502_v49, %v7093_v47  ;;  %2848 = vrot.lane.b32.xlu1 %v6543_v39, %s5730_s27  ;;  %v3503_v49 = vsel %vm3494_vm2, %v8725_v59, %v6462_v53  ;;  %v7155_v59 = vld [vmem:[#allocation2 + $0x70] sm:$0xff] }
 0x64f   : > { %8857 = vst [vmem:[#allocation148_spill] sm:$0xff] %v7100_v5  ;;  %v2326_v50 = vpop.xlane.xlu1 %2325 }
 0x650   : > { %v7105_v44 = vmax.f32 %v6688_v42, %v2326_v50 }
 0x652   : > { %v7112_v35 = vsel %vm3511_vm3, %v3500_v6, %v7105_v44  ;;  %2846 = vrot.lane.b32.xlu1 %v6567_v43, %s5730_s27  ;;  %v3506_v6 = vsel %vm3494_vm2, %v6184_v55, %v6470_v20 }
 0x653   : > { %8858 = vst [vmem:[#allocation149_spill] sm:$0xff] %v7112_v35  ;;  %v2336_v7 = vpop.xlane.xlu1 %2335 }
 0x654   : > { %v7119_v39 = vmax.f32 %v7116_v15, %v2336_v7 }
 0x656   : > { %v7126_v52 = vsel %vm3511_vm3, %v3505_v36, %v7119_v39  ;;  %2443 = vperm.xlu1 %5239, %v7066_v12   ;;  %2463 = vperm.xlu0 %5240, %v7119_v39  }
 0x657   : > { %8859 = vst [vmem:[#allocation150_spill] sm:$0xff] %v7126_v52  ;;  %v2332_v11 = vpop.xlane.xlu1 %2331  ;;  %v8868_v52 = vld [vmem:[#allocation45_spill] sm:$0xff] }
 0x658   : > { %v7131_v43 = vmax.f32 %v6701_v8, %v2332_v11  ;;  %v8862_v11 = vld [vmem:[#allocation48_spill] sm:$0xff] }
 0x65a   : > { %v7138_v50 = vsel %vm3511_vm3, %v3503_v49, %v7131_v43  ;;  %2433 = vperm.xlu1 %5239, %v7081_v26   ;;  %2453 = vperm.xlu0 %5240, %v7131_v43   ;;  %v3509_v49 = vsel %vm3494_vm2, %v8733_v16, %v8862_v11 }
 0x65b   : > { %8860 = vst [vmem:[#allocation151_spill] sm:$0xff] %v7138_v50  ;;  %v2338_v25 = vpop.xlane.xlu1 %2337  ;;  %v8866_v50 = vld [vmem:[#allocation49_spill] sm:$0xff] }
 0x65c   : > { %v7143_v21 = vmax.f32 %v6883_v31, %v2338_v25  ;;  %v7168_v25 = vld [vmem:[#allocation2 + $0x60] sm:$0xff] }
 0x65e   : > { %v7150_v7 = vsel %vm3511_vm3, %v3506_v6, %v7143_v21  ;;  %2448 = vperm.xlu1 %5239, %v7093_v47   ;;  %2840 = vrot.lane.b32.xlu0 %v6645_v27, %s5730_s27  ;;  %v8864_v6 = vld [vmem:[#allocation47_spill] sm:$0xff] }
 0x65f   : > { %8861 = vst [vmem:[#allocation152_spill] sm:$0xff] %v7150_v7  ;;  %v2344_v53 = vpop.xlane.xlu1 %2343 }
 0x660   : > { %v7158_v36 = vmax.f32 %v7155_v59, %v2344_v53  ;;  %v3507_v53 = vsel %vm3494_vm2, %v8731_v32, %v8864_v6 }
 0x662   : > { %v7165_v55 = vsel %vm3511_vm3, %v3509_v49, %v7158_v36  ;;  %2438 = vperm.xlu1 %5239, %v7105_v44   ;;  %v7181_v49 = vld [vmem:[#allocation2 + $0x78] sm:$0xff] }
 0x663   : > { %8863 = vst [vmem:[#allocation48_spill] sm:$0xff] %v7165_v55  ;;  %v2340_v20 = vpop.xlane.xlu1 %2339 }
 0x664   : > { %v7171_v27 = vmax.f32 %v7168_v25, %v2340_v20  ;;  %v3510_v20 = vsel %vm3494_vm2, %v8730_v19, %v8866_v50 }
 0x666   : > { %v7178_v23 = vsel %vm3511_vm3, %v3507_v53, %v7171_v27  ;;  %2468 = vperm.xlu1 %5239, %v7143_v21   ;;  %v7194_v53 = vld [vmem:[#allocation2 + $0x68] sm:$0xff] }
 0x667   : > { %8865 = vst [vmem:[#allocation47_spill] sm:$0xff] %v7178_v23  ;;  %v2346_v16 = vpop.xlane.xlu1 %2345  ;;  %v1686_v19 = vsub.f32 %v7194_v53, %v8868_v52 }
 0x668   : > { %v7184_v55 = vmax.f32 %v7181_v49, %v2346_v16  ;;  %v3508_v16 = vsel %vm3494_vm2, %v8728_v58, %v8868_v52  ;;  %v2363_v58 = vsub.f32 %v7028_v51, %v7031_v38 }
 0x66a   : > { %v7191_v7 = vsel %vm3511_vm3, %v3510_v20, %v7184_v55  ;;  %2488 = vperm.xlu0 %5240, %v7184_v55   ;;  %v7209_v20 = vpop.permute.xlu0 %2099  ;;  %v2379_v52 = vmul.f32 1.442695, %v2363_v58 }
 0x66b   : > { %8867 = vst [vmem:[#allocation49_spill] sm:$0xff] %v7191_v7  ;;  %v2342_v32 = vpop.xlane.xlu1 %2341  ;;  %8870 = vst [vmem:[#allocation153_spill] sm:$0xff] %v7209_v20 }
 0x66c   : > { %v7197_v23 = vmax.f32 %v7194_v53, %v2342_v32  ;;  %v1715_v32 = vmul.f32 1.442695, %v1686_v19  ;;  %v5672_v19 = vld [vmem:[%s6061_s26 + $0x64] ss:$8 sps:$4 sm:$0xff]  }
 0x66e   : > { %v7204_v35 = vsel %vm3511_vm3, %v3508_v16, %v7197_v23  ;;  %2478 = vperm.xlu0 %5240, %v7197_v23   ;;  %5487 = vpow2.f32 %v1715_v32  ;;  %v5673_v32 = vld [vmem:[%s6061_s26 + $0x54] ss:$8 sps:$4 sm:$0xff]  }
 0x66f   : > { %8869 = vst [vmem:[#allocation45_spill] sm:$0xff] %v7204_v35  ;;  %v8871_v35 = vld [vmem:[#allocation46_spill] sm:$0xff]  ;;  %5489 = vpow2.f32 %v2379_v52  ;;  %v2367_v52 = vsub.f32 %v7078_v34, %v7081_v26  ;;  %v5676_v26 = vld [vmem:[%s6061_s26 + $0x24] ss:$8 sps:$4 sm:$0xff]  }
 0x670   : > { %v3504_v5 = vsel %vm3494_vm2, %v8872_v28, %v8871_v35  ;;  %v1687_v28 = vsub.f32 %v7155_v59, %v8862_v11  ;;  %v5671_v11 = vld [vmem:[%s6061_s26 + $0x74] ss:$8 sps:$4 sm:$0xff]  }
 0x672   : > { %2836 = vrot.lane.b32.xlu0 %v6709_v10, %s5730_s27  ;;  %v1717_v35 = vmul.f32 1.442695, %v1687_v28 }
 0x673   : > { %5242 = vset.pattern.permute.xlu0 %v8747_v54 }
 0x674   : > { %v2334_v7 = vpop.xlane.xlu0 %2333 }
 0x675   : > { %v7217_v16 = vmax.f32 %v6713_v18, %v2334_v7  ;;  %v1688_v7 = vsub.f32 %v7181_v49, %v8866_v50  ;;  %v2365_v50 = vsub.f32 %v6609_v48, %v7019_v46  ;;  %v2374_v48 = vsub.f32 %v6883_v31, %v7143_v21 }
 0x676   : > { %2822 = vrot.lane.b32.xlu0 %v6772_v24, %s5730_s27  ;;  %v8873_v24 = vld [vmem:[#allocation18_spill] sm:$0xff]  ;;  %v2369_v31 = vsub.f32 %v7063_v13, %v7066_v12  ;;  %v2387_v21 = vmul.f32 1.442695, %v2367_v52 }
 0x677   : > { %v7226_v10 = vsel %vm3511_vm3, %v3504_v5, %v7217_v16  ;;  %2458 = vperm.xlu1 %5239, %v7217_v16  }
 0x67a   : > { %2826 = vrot.lane.b32.xlu0 %v6786_v41, %s5730_s27  ;;  %v1685_v41 = vsub.f32 %v7168_v25, %v8864_v6  ;;  %v1719_v6 = vmul.f32 1.442695, %v1688_v7 }
 0x67b   : > { %2483 = vperm.xlu1 %5239, %v7158_v36   ;;  %v7240_v38 = vpop.eup %5487 }
 0x67c   : > { %8874 = vst [vmem:[#allocation46_spill] sm:$0xff] %v7240_v38  ;;  %v7249_v5 = vpop.eup %5489 }
 0x67e   : > { %2830 = vrot.lane.b32.xlu0 %v6798_v60, %s5730_s27  ;;  %v8875_v60 = vld [vmem:[#allocation57_spill] sm:$0xff] }
 0x67f   : > { %2473 = vperm.xlu1 %5239, %v7171_v27  }
 0x682   : > { %2834 = vrot.lane.b32.xlu0 %v6810_v1, %s5730_s27  ;;  %v1713_v1 = vmul.f32 1.442695, %v1685_v41 }
 0x683   : > { %2842 = vrot.lane.b32.xlu1 %v8873_v24, %s5730_s27  ;;  %v5675_v24 = vld [vmem:[%s6061_s26 + $0x34] ss:$8 sps:$4 sm:$0xff]  }
 0x684   : > { %5241 = vset.pattern.permute.xlu1 %v8747_v54  ;;  %5491 = vpow2.f32 %v1713_v1  ;;  %v2391_v1 = vmul.f32 1.442695, %v2369_v31 }
 0x685   : > { %5493 = vpow2.f32 %v1717_v35  ;;  %v2376_v35 = vsub.f32 %v7194_v53, %v7197_v23 }
 0x686   : > { %2109 = vperm.xlu0 %5242, %v7240_v38   ;;  %5495 = vpow2.f32 %v1719_v6  ;;  %v2370_v6 = vsub.f32 %v6668_v57, %v7093_v47  ;;  %v2373_v57 = vsub.f32 %v7116_v15, %v7119_v39 }
 0x687   : > { %2838 = vrot.lane.b32.xlu1 %v8875_v60, %s5730_s27  ;;  %v2378_v60 = vsub.f32 %v7181_v49, %v7184_v55  ;;  %v2405_v55 = vmul.f32 1.442695, %v2376_v35 }
 0x689   : > { %v2409_v12 = vmul.f32 1.442695, %v2378_v60 }
 0x68a   : > { %5243 = vset.pattern.permute.xlu0 %v8814_v56 }
 0x68b   : > { %2820 = vrot.lane.b32.xlu1 %v6763_v9, %s5730_s27  ;;  %2742 = vperm.xlu0 %5243, %v7249_v5   ;;  %v2364_v9 = vsub.f32 %v6619_v3, %v7042_v62  ;;  %v2383_v3 = vmul.f32 1.442695, %v2365_v50  ;;  %v5674_v62 = vld [vmem:[%s6061_s26 + $0x44] ss:$8 sps:$4 sm:$0xff]  }
 0x68f   : > { %2824 = vrot.lane.b32.xlu1 %v6775_v30, %s5730_s27  ;;  %3307 = vrot.lane.b32.xlu0 %v5671_v11, %s5730_s27  ;;  %v2381_v30 = vmul.f32 1.442695, %v2364_v9 }
 0x691   : > { %v7273_v58 = vpop.eup %5491  ;;  %5497 = vpow2.f32 %v2381_v30 }
 0x692   : > { %8876 = vst [vmem:[#allocation16_spill] sm:$0xff] %v7273_v58  ;;  %5499 = vpow2.f32 %v2383_v3 }
 0x693   : > { %2828 = vrot.lane.b32.xlu1 %v6788_v61, %s5730_s27  ;;  %3305 = vrot.lane.b32.xlu0 %v5672_v19, %s5730_s27  ;;  %v2366_v61 = vsub.f32 %v6627_v2, %v7045_v22  ;;  %v2401_v2 = vmul.f32 1.442695, %v2374_v48  ;;  %v2372_v22 = vsub.f32 %v6713_v18, %v7217_v16  ;;  %v5677_v16 = vld [vmem:[%s6061_s26 + $0x14] ss:$8 sps:$4 sm:$0xff]   ;;  %v2393_v19 = vmul.f32 1.442695, %v2370_v6 }
 0x695   : > { %v2385_v46 = vmul.f32 1.442695, %v2366_v61  ;;  %v2397_v28 = vmul.f32 1.442695, %v2372_v22  ;;  %v2399_v61 = vmul.f32 1.442695, %v2373_v57 }
 0x697   : > { %2832 = vrot.lane.b32.xlu1 %v6800_v40, %s5730_s27  ;;  %3303 = vrot.lane.b32.xlu0 %v5673_v32, %s5730_s27  ;;  %v7282_v40 = vpop.eup %5493  ;;  %5501 = vpow2.f32 %v2385_v46 }
 0x698   : > { %8877 = vst [vmem:[#allocation18_spill] sm:$0xff] %v7282_v40  ;;  %v7291_v41 = vpop.eup %5495  ;;  %5503 = vpow2.f32 %v2401_v2 }
 0x699   : > { %8878 = vst [vmem:[#allocation57_spill] sm:$0xff] %v7291_v41  ;;  %5505 = vpow2.f32 %v2387_v21  ;;  %v2377_v21 = vsub.f32 %v7155_v59, %v7158_v36 }
 0x69a   : > { %5507 = vpow2.f32 %v2397_v28  ;;  %v8886_v28 = vld [vmem:[#allocation64_spill] sm:$0xff] }
 0x69b   : > { %2104 = vperm.xlu1 %5241, %v7273_v58   ;;  %3301 = vrot.lane.b32.xlu0 %v5674_v62, %s5730_s27  ;;  %5509 = vpow2.f32 %v2391_v1  ;;  %v5679_v58 = vld [vmem:[#allocation2 + $0x10] sm:$0xff] }
 0x69c   : > { %5511 = vpow2.f32 %v2409_v12  ;;  %v2375_v12 = vsub.f32 %v7168_v25, %v7171_v27 }
 0x69d   : > { %5513 = vpow2.f32 %v2405_v55 }
 0x69e   : > { %v7300_v18 = vpop.eup %5497  ;;  %5515 = vpow2.f32 %v2393_v19  ;;  %v2403_v55 = vmul.f32 1.442695, %v2375_v12 }
 0x69f   : > { %2114 = vperm.xlu1 %5241, %v7282_v40   ;;  %3299 = vrot.lane.b32.xlu0 %v5675_v24, %s5730_s27  ;;  %v7308_v7 = vpop.eup %5499  ;;  %v8883_v24 = vld [vmem:[#allocation87_spill] sm:$0xff] }
 0x6a3   : > { %2119 = vperm.xlu1 %5241, %v7291_v41   ;;  %3297 = vrot.lane.b32.xlu0 %v5676_v26, %s5730_s27  ;;  %v8885_v26 = vld [vmem:[#allocation88_spill] sm:$0xff] }
 0x6a4   : > { %v7313_v11 = vpop.eup %5501 }
 0x6a5   : > { %v7318_v23 = vpop.eup %5503 }
 0x6a6   : > { %8879 = vst [vmem:[#allocation154_spill] sm:$0xff] %v7318_v23  ;;  %v7322_v9 = vpop.eup %5505 }
 0x6a7   : > { %5244 = vset.pattern.permute.xlu1 %v8814_v56  ;;  %3295 = vrot.lane.b32.xlu0 %v5677_v16, %s5730_s27  ;;  %v2407_v16 = vmul.f32 1.442695, %v2377_v21  ;;  %v8894_v21 = vld [vmem:[#allocation95_spill] sm:$0xff] }
 0x6a8   : > { %2747 = vperm.xlu1 %5244, %v7300_v18  }
 0x6ab   : > { %3676 = vrot.lane.b32.xlu0 %v6829_v29, %s5730_s27  ;;  %v7326_v29 = vpop.eup %5507 }
 0x6ac   : > { %2752 = vperm.xlu1 %5244, %v7308_v7   ;;  %8880 = vst [vmem:[#allocation155_spill] sm:$0xff] %v7326_v29  ;;  %v7330_v50 = vpop.eup %5509 }
 0x6ad   : > { %v7336_v30 = vpop.eup %5511 }
 0x6ae   : > { %8881 = vst [vmem:[#allocation156_spill] sm:$0xff] %v7336_v30  ;;  %v7344_v46 = vpop.eup %5513 }
 0x6af   : > { %3680 = vrot.lane.b32.xlu0 %v6825_v45, %s5730_s27  ;;  %v2368_v45 = vsub.f32 %v6688_v42, %v7105_v44  ;;  %v2371_v42 = vsub.f32 %v6701_v8, %v7131_v43  ;;  %v5678_v44 = vld [vmem:[%s6061_s26 + $0x4] ss:$8 sps:$4 sm:$0xff]   ;;  %8882 = vst [vmem:[#allocation157_spill] sm:$0xff] %v7344_v46  ;;  %v7359_v35 = vpop.eup %5515 }
 0x6b0   : > { %2757 = vperm.xlu1 %5244, %v7313_v11   ;;  %v8884_v8 = vld [vmem:[#allocation65_spill] sm:$0xff]  ;;  %8887 = vst [vmem:[#allocation87_spill] sm:$0xff] %v7359_v35 }
 0x6b1   : > { %v2389_v32 = vmul.f32 1.442695, %v2368_v45 }
 0x6b3   : > { %2797 = vperm.xlu0 %5243, %v7318_v23   ;;  %5517 = vpow2.f32 %v2389_v32 }
 0x6b4   : > { %2762 = vperm.xlu1 %5244, %v7322_v9   ;;  %5519 = vpow2.f32 %v2399_v61 }
 0x6b7   : > { %2787 = vperm.xlu0 %5243, %v7326_v29  }
 0x6b8   : > { %2772 = vperm.xlu1 %5244, %v7330_v50  }
 0x6b9   : > { %v2414_v47 = vpop.permute.xlu1 %2413 }
 0x6ba   : > { %v2491_v3 = vsub.f32 %v6872_v33, %v2414_v47  ;;  %v2395_v33 = vmul.f32 1.442695, %v2371_v42 }
 0x6bb   : > { %2817 = vperm.xlu0 %5243, %v7336_v30  }
 0x6bc   : > { %3293 = vrot.lane.b32.xlu1 %v5678_v44, %s5730_s27  ;;  %v2507_v62 = vmul.f32 1.442695, %v2491_v3 }
 0x6bd   : > { %v2419_v39 = vpop.permute.xlu0 %2418  ;;  %v2424_v48 = vpop.permute.xlu1 %2423 }
 0x6be   : > { %v2492_v52 = vsub.f32 %v6881_v0, %v2419_v39  ;;  %v2493_v2 = vsub.f32 %v8883_v24, %v2424_v48  ;;  %5521 = vpow2.f32 %v2507_v62  ;;  %v8891_v62 = vld [vmem:[#allocation91_spill] sm:$0xff] }
 0x6bf   : > { %2807 = vperm.xlu0 %5243, %v7344_v46  }
 0x6c0   : > { %v2509_v22 = vmul.f32 1.442695, %v2492_v52  ;;  %3674 = vrot.lane.b32.xlu1 %v8884_v8, %s5730_s27  ;;  %v2511_v43 = vmul.f32 1.442695, %v2493_v2  ;;  %v7362_v6 = vpop.eup %5517  ;;  %v8893_v8 = vld [vmem:[#allocation94_spill] sm:$0xff] }
 0x6c1   : > { %v2429_v31 = vpop.permute.xlu1 %2428  ;;  %8888 = vst [vmem:[#allocation65_spill] sm:$0xff] %v7362_v6  ;;  %v7365_v19 = vpop.eup %5519 }
 0x6c2   : > { %5523 = vpow2.f32 %v2509_v22  ;;  %v2494_v60 = vsub.f32 %v8885_v26, %v2429_v31  ;;  %8889 = vst [vmem:[#allocation88_spill] sm:$0xff] %v7365_v19  ;;  %v2845_v47 = vpop.permute.xlu0 %2844 }
 0x6c3   : > { %5525 = vpow2.f32 %v2395_v33 }
 0x6c4   : > { %v2513_v0 = vmul.f32 1.442695, %v2494_v60  ;;  %3678 = vrot.lane.b32.xlu1 %v8886_v28, %s5730_s27  ;;  %5527 = vpow2.f32 %v2511_v43  ;;  %v8896_v28 = vld [vmem:[#allocation101_spill] sm:$0xff] }
 0x6c5   : > { %v2851_v1 = vpop.permute.xlu1 %2850 }
 0x6c6   : > { %5529 = vpow2.f32 %v2513_v0  ;;  %5175 = vmatprep.subr.msk.bf16.mxu1 %vm781_vm0, %v2851_v1  ;;  %v2898_v2 = vsel %vm781_vm0, %v2851_v1, 0 }
 0x6c7   : > { %5531 = vpow2.f32 %v2407_v16 }
 0x6c8   : > { %2777 = vperm.xlu1 %5244, %v7359_v35   ;;  %5533 = vpow2.f32 %v2403_v55 }
 0x6c9   : > { %v2849_v36 = vpop.permute.xlu1 %2848 }
 0x6cb   : > { %v5522_v57 = vpop.eup %5521 }
 0x6cc   : > { %2767 = vperm.xlu1 %5244, %v7362_v6  }
 0x6cd   : > { %v2847_v45 = vpop.permute.xlu1 %2846 }
 0x6cf   : > { %v7367_v27 = vpop.eup %5523 }
 0x6d0   : > { %2792 = vperm.xlu1 %5244, %v7365_v19   ;;  %v2603_v32 = vpack.c.bf16 %v7367_v27, %v5522_v57  ;;  %v7371_v3 = vpop.eup %5525  ;;  %v7658_v19 = vld [vmem:[#allocation2 + $0x58] sm:$0xff] }
 0x6d1   : > { %8890 = vst [vmem:[#allocation64_spill] sm:$0xff] %v7371_v3  ;;  %v2444_v61 = vpop.permute.xlu1 %2443  ;;  %v5528_v42 = vpop.eup %5527 }
 0x6d2   : > { %5071 = vmatprep.mubr.bf16.mxu1 %v2603_v32  ;;  %v2497_v39 = vsub.f32 %v8891_v62, %v2444_v61  ;;  %v2464_v52 = vpop.permute.xlu0 %2463  ;;  %v8897_v32 = vld [vmem:[#allocation98_spill] sm:$0xff]  ;;  %v2895_v62 = vsel %vm781_vm0, %v2849_v36, 0 }
 0x6d3   : > { %v5530_v44 = vpop.eup %5529  ;;  %v2501_v16 = vsub.f32 %v8896_v28, %v2464_v52  ;;  %v8899_v28 = vld [vmem:[#allocation104_spill] sm:$0xff] }
 0x6d4   : > { %2782 = vperm.xlu1 %5244, %v7371_v3   ;;  %v2604_v48 = vpack.c.bf16 %v5530_v44, %v5528_v42  ;;  %v7376_v33 = vpop.eup %5531  ;;  %v2519_v22 = vmul.f32 1.442695, %v2497_v39 }
 0x6d5   : > { %v2434_v24 = vpop.permute.xlu1 %2433  ;;  %8892 = vst [vmem:[#allocation91_spill] sm:$0xff] %v7376_v33  ;;  %v7382_v60 = vpop.eup %5533 }
 0x6d6   : > { %5072 = vmatmul.mubr.bf16.vlgmr.msra.gmra.mxu1 %v2604_v48  ;;  %v2495_v43 = vsub.f32 %v8893_v8, %v2434_v24  ;;  %8895 = vst [vmem:[#allocation94_spill] sm:$0xff] %v7382_v60  ;;  %v2454_v0 = vpop.permute.xlu0 %2453  ;;  %5535 = vpow2.f32 %v2519_v22  ;;  %v2527_v48 = vmul.f32 1.442695, %v2501_v16  ;;  %v8898_v24 = vld [vmem:[#allocation102_spill] sm:$0xff]  ;;  %v2889_v16 = vsel %vm781_vm0, %v2845_v47, 0 }
 0x6d7   : > { %5088 = vmatpush3.bf16.xpose.msra.mxu1 %v2898_v2  ;;  %v2499_v2 = vsub.f32 %v8898_v24, %v2454_v0 }
 0x6d8   : > { %5176 = vmatprep.subr.msk.bf16.mxu1 %vm781_vm0, %v2849_v36  ;;  %2812 = vperm.xlu1 %5244, %v7376_v33   ;;  %v2515_v1 = vmul.f32 1.442695, %v2495_v43 }
 0x6d9   : > { %v2449_v31 = vpop.permute.xlu1 %2448  ;;  %v2523_v52 = vmul.f32 1.442695, %v2499_v2 }
 0x6da   : > { %v2498_v26 = vsub.f32 %v8894_v21, %v2449_v31  ;;  %v7388_v39 = vpop.permute.xlu0 %2840  ;;  %5537 = vpow2.f32 %v2515_v1 }
 0x6dc   : > { %2802 = vperm.xlu1 %5244, %v7382_v60   ;;  %v2521_v12 = vmul.f32 1.442695, %v2498_v26 }
 0x6dd   : > { %v2439_v55 = vpop.permute.xlu1 %2438 }
 0x6de   : > { %v2496_v61 = vsub.f32 %v8897_v32, %v2439_v55  ;;  %2559 = vadd.xlane.f32.xlu0 %v5528_v42  ;;  %5539 = vpow2.f32 %v2521_v12  ;;  %v2892_v42 = vsel %vm781_vm0, %v2847_v45, 0 }
 0x6df   : > { %5090 = vmatpush3.bf16.xpose.msra.mxu1 %v2895_v62  ;;  %v8900_v62 = vld [vmem:[#allocation107_spill] sm:$0xff] }
 0x6e0   : > { %v2517_v8 = vmul.f32 1.442695, %v2496_v61  ;;  %5177 = vmatprep.subr.msk.bf16.mxu1 %vm781_vm0, %v2847_v45 }
 0x6e1   : > { %v2469_v31 = vpop.permute.xlu1 %2468 }
 0x6e2   : > { %5541 = vpow2.f32 %v2517_v8  ;;  %2555 = vadd.xlane.f32.xlu0 %v5522_v57  ;;  %v2502_v57 = vsub.f32 %v8899_v28, %v2469_v31  ;;  %v8902_v31 = vld [vmem:[#allocation110_spill] sm:$0xff] }
 0x6e3   : > { %5543 = vpow2.f32 %v2527_v48  ;;  %v5536_v36 = vpop.eup %5535 }
 0x6e4   : > { %5545 = vpow2.f32 %v2523_v52  ;;  %v2529_v32 = vmul.f32 1.442695, %v2502_v57 }
 0x6e5   : > { %v2489_v22 = vpop.permute.xlu0 %2488 }
 0x6e6   : > { %2561 = vadd.xlane.f32.xlu0 %v5530_v44  ;;  %5547 = vpow2.f32 %v2529_v32 }
 0x6e7   : > { %5092 = vmatpush3.bf16.xpose.msra.mxu1 %v2892_v42  ;;  %v5538_v21 = vpop.eup %5537 }
 0x6e8   : > { %5178 = vmatprep.subr.msk.bf16.mxu1 %vm781_vm0, %v2845_v47  ;;  %v8901_v47 = vld [vmem:[#allocation117_spill] sm:$0xff] }
 0x6e9   : > { %v2479_v43 = vpop.permute.xlu0 %2478 }
 0x6ea   : > { %2567 = vadd.xlane.f32.xlu0 %v5536_v36  ;;  %v2504_v52 = vsub.f32 %v8901_v47, %v2479_v43 }
 0x6eb   : > { %v5540_v0 = vpop.eup %5539 }
 0x6ec   : > { %v2606_v55 = vpack.c.bf16 %v5540_v0, %v5536_v36  ;;  %v8903_v36 = vld [vmem:[#allocation114_spill] sm:$0xff] }
 0x6ed   : > { %v7394_v26 = vpop.permute.xlu0 %2836  ;;  %v2506_v28 = vsub.f32 %v8903_v36, %v2489_v22 }
 0x6ee   : > { %2563 = vadd.xlane.f32.xlu0 %v5538_v21 }
 0x6ef   : > { %v5542_v44 = vpop.eup %5541  ;;  %5094 = vmatpush3.bf16.xpose.msra.mxu1 %v2889_v16 }
 0x6f0   : > { %v2605_v45 = vpack.c.bf16 %v5542_v44, %v5538_v21  ;;  %v5544_v1 = vpop.eup %5543 }
 0x6f1   : > { %v7398_v12 = vpop.permute.xlu0 %2822  ;;  %v5546_v24 = vpop.eup %5545 }
 0x6f2   : > { %2575 = vadd.xlane.f32.xlu0 %v5544_v1  ;;  %5075 = vmatprep.mubr.bf16.mxu1 %v2605_v45  ;;  %v2459_v61 = vpop.permute.xlu1 %2458  ;;  %v2533_v45 = vmul.f32 1.442695, %v2504_v52 }
 0x6f3   : > { %v2500_v48 = vsub.f32 %v8900_v62, %v2459_v61  ;;  %5076 = vmatmul.mubr.bf16.gmra.mxu1 %v2606_v55  ;;  %v8904_v55 = vld [vmem:[#allocation111_spill] sm:$0xff]  ;;  %v5548_v52 = vpop.eup %5547 }
 0x6f4   : > { %v2608_v36 = vpack.c.bf16 %v5548_v52, %v5544_v1 }
 0x6f5   : > { %v2525_v2 = vmul.f32 1.442695, %v2500_v48  ;;  %v7401_v8 = vpop.permute.xlu0 %2826  ;;  %v2537_v48 = vmul.f32 1.442695, %v2506_v28 }
 0x6f6   : > { %2571 = vadd.xlane.f32.xlu0 %v5546_v24  ;;  %v2484_v42 = vpop.permute.xlu1 %2483 }
 0x6f7   : > { %5549 = vpow2.f32 %v2525_v2  ;;  %v2505_v21 = vsub.f32 %v8902_v31, %v2484_v42 }
 0x6f9   : > { %v2535_v57 = vmul.f32 1.442695, %v2505_v21  ;;  %v7406_v16 = vpop.permute.xlu0 %2830 }
 0x6fa   : > { %v2474_v61 = vpop.permute.xlu1 %2473 }
 0x6fb   : > { %5551 = vpow2.f32 %v2535_v57  ;;  %v2503_v62 = vsub.f32 %v8904_v55, %v2474_v61 }
 0x6fc   : > { %5553 = vpow2.f32 %v2533_v45 }
 0x6fd   : > { %v2531_v20 = vmul.f32 1.442695, %v2503_v62  ;;  %v7409_v32 = vpop.permute.xlu0 %2834 }
 0x6fe   : > { %v2843_v43 = vpop.permute.xlu1 %2842 }
 0x6ff   : > { %5555 = vpow2.f32 %v2531_v20  ;;  %5179 = vmatprep.subr.msk.bf16.mxu1 %vm781_vm0, %v2843_v43  ;;  %v2886_v2 = vsel %vm781_vm0, %v2843_v43, 0 }
 0x700   : > { %5557 = vpow2.f32 %v2537_v48  ;;  %2557 = vadd.xlane.f32.xlu1 %v7367_v27  ;;  %5096 = vmatpush3.bf16.xpose.msra.mxu1 %v2886_v2  ;;  %v2883_v27 = vsel %vm781_vm0, %v7388_v39, 0 }
 0x701   : > { %v7414_v22 = vpop.permute.xlu0 %2109  ;;  %5180 = vmatprep.subr.msk.bf16.mxu1 %vm781_vm0, %v7388_v39 }
 0x702   : > { %8905 = vst [vmem:[#allocation95_spill] sm:$0xff] %v7414_v22  ;;  %v2839_v47 = vpop.permute.xlu1 %2838 }
 0x703   : > { %v2880_v48 = vsel %vm781_vm0, %v2839_v47, 0 }
 0x704   : > { %v5550_v42 = vpop.eup %5549  ;;  %2569 = vadd.xlane.f32.xlu1 %v5540_v0 }
 0x705   : > { %v2607_v31 = vpack.c.bf16 %v5550_v42, %v5546_v24 }
 0x706   : > { %v7418_v21 = vpop.permute.xlu0 %2742  ;;  %v2821_v20 = vpop.permute.xlu1 %2820 }
 0x707   : > { %8906 = vst [vmem:[#allocation101_spill] sm:$0xff] %v7418_v21  ;;  %5079 = vmatprep.mubr.bf16.mxu1 %v2607_v31 }
 0x708   : > { %v5552_v28 = vpop.eup %5551  ;;  %2565 = vadd.xlane.f32.xlu1 %v5542_v44  ;;  %5080 = vmatmul.mubr.bf16.gmra.mxu1 %v2608_v36 }
 0x709   : > { %5098 = vmatpush3.bf16.xpose.msra.mxu1 %v2883_v27  ;;  %2583 = vadd.xlane.f32.xlu0 %v5552_v28  ;;  %v5554_v61 = vpop.eup %5553 }
 0x70a   : > { %v3308_v57 = vpop.permute.xlu0 %3307  ;;  %v2825_v45 = vpop.permute.xlu1 %2824  ;;  %5181 = vmatprep.subr.msk.bf16.mxu1 %vm781_vm0, %v2839_v47  ;;  %v2877_v47 = vsel %vm781_vm0, %v7394_v26, 0 }
 0x70b   : > { %5119 = vmatprep.subr.bf16.mxu0 %v3308_v57 }
 0x70c   : > { %v5556_v0 = vpop.eup %5555  ;;  %2577 = vadd.xlane.f32.xlu1 %v5548_v52  ;;  %5120 = vmatpush3.bf16.msra.mxu0 %v3308_v57 }
 0x70d   : > { %v5558_v24 = vpop.eup %5557  ;;  %2579 = vadd.xlane.f32.xlu0 %v5556_v0  ;;  %v2609_v1 = vpack.c.bf16 %v5554_v61, %v5556_v0 }
 0x70e   : > { %v3306_v55 = vpop.permute.xlu0 %3305  ;;  %v2829_v44 = vpop.permute.xlu1 %2828  ;;  %v2610_v62 = vpack.c.bf16 %v5558_v24, %v5552_v28 }
 0x70f   : > { %5083 = vmatprep.mubr.bf16.mxu1 %v2609_v1  ;;  %5121 = vmatprep.subr.bf16.mxu0 %v3306_v55 }
 0x710   : > { %2573 = vadd.xlane.f32.xlu1 %v5550_v42  ;;  %5084 = vmatmul.mubr.bf16.gmra.mxu1 %v2610_v62 }
 0x711   : > { %5100 = vmatpush3.bf16.xpose.msra.mxu1 %v2880_v48  ;;  %5103 = vmatprep.mubr.msk.bf16.mxu1 %vm781_vm0, %v2821_v20 }
 0x712   : > { %v3304_v39 = vpop.permute.xlu0 %3303  ;;  %v2833_v43 = vpop.permute.xlu1 %2832  ;;  %5182 = vmatprep.subr.msk.bf16.mxu1 %vm781_vm0, %v7394_v26  ;;  %5122 = vmatpush3.bf16.msra.mxu0 %v3306_v55 }
 0x713   : > { %5123 = vmatprep.subr.bf16.mxu0 %v3304_v39 }
 0x714   : > { %2585 = vadd.xlane.f32.xlu1 %v5558_v24 }
 0x716   : > { %v3302_v2 = vpop.permute.xlu0 %3301  ;;  %v7427_v52 = vpop.permute.xlu1 %2104  ;;  %5124 = vmatpush3.bf16.msra.mxu0 %v3304_v39 }
 0x717   : > { %8907 = vst [vmem:[#allocation98_spill] sm:$0xff] %v7427_v52  ;;  %5125 = vmatprep.subr.bf16.mxu0 %v3302_v2 }
 0x718   : > { %2581 = vadd.xlane.f32.xlu1 %v5554_v61 }
 0x719   : > { %5102 = vmatpush3.bf16.xpose.msra.mxu1 %v2877_v47 }
 0x71a   : > { %v3300_v42 = vpop.permute.xlu0 %3299  ;;  %v7431_v31 = vpop.permute.xlu1 %2114  ;;  %5126 = vmatpush3.bf16.msra.mxu0 %v3302_v2 }
 0x71b   : > { %8908 = vst [vmem:[#allocation102_spill] sm:$0xff] %v7431_v31  ;;  %5127 = vmatprep.subr.bf16.mxu0 %v3300_v42 }
 0x71e   : > { %v3298_v20 = vpop.permute.xlu0 %3297  ;;  %v7433_v36 = vpop.permute.xlu1 %2119  ;;  %5128 = vmatpush3.bf16.msra.mxu0 %v3300_v42 }
 0x71f   : > { %8909 = vst [vmem:[#allocation104_spill] sm:$0xff] %v7433_v36  ;;  %5129 = vmatprep.subr.bf16.mxu0 %v3298_v20 }
 0x720   : > { %5104 = vmatmul.mubr.msk.bf16.vlgmr.msra.gmra.mxu1 %vm781_vm0, %v7398_v12 }
 0x721   : > { %5107 = vmatprep.mubr.msk.bf16.mxu1 %vm781_vm0, %v2825_v45 }
 0x722   : > { %v3296_v26 = vpop.permute.xlu0 %3295  ;;  %5130 = vmatpush3.bf16.msra.mxu0 %v3298_v20 }
 0x723   : > { %v7438_v28 = vpop.permute.xlu1 %2747  ;;  %5131 = vmatprep.subr.bf16.mxu0 %v3296_v26 }
 0x724   : > { %8910 = vst [vmem:[#allocation107_spill] sm:$0xff] %v7438_v28 }
 0x726   : > { %5132 = vmatpush3.bf16.msra.mxu0 %v3296_v26 }
 0x727   : > { %v7440_v27 = vpop.permute.xlu1 %2752 }
 0x728   : > { %8911 = vst [vmem:[#allocation117_spill] sm:$0xff] %v7440_v27  ;;  %5108 = vmatmul.mubr.msk.bf16.gmra.mxu1 %vm781_vm0, %v7401_v8 }
 0x729   : > { %5111 = vmatprep.mubr.msk.bf16.mxu1 %vm781_vm0, %v2829_v44 }
 0x72b   : > { %v7445_v57 = vpop.permute.xlu1 %2757 }
 0x72c   : > { %8912 = vst [vmem:[#allocation110_spill] sm:$0xff] %v7445_v57 }
 0x72f   : > { %v7447_v61 = vpop.permute.xlu1 %2762 }
 0x730   : > { %8913 = vst [vmem:[#allocation114_spill] sm:$0xff] %v7447_v61  ;;  %5112 = vmatmul.mubr.msk.bf16.gmra.mxu1 %vm781_vm0, %v7406_v16 }
 0x731   : > { %5115 = vmatprep.mubr.msk.bf16.mxu1 %vm781_vm0, %v2833_v43 }
 0x733   : > { %v7452_v12 = vpop.permute.xlu1 %2772 }
 0x734   : > { %8914 = vst [vmem:[#allocation111_spill] sm:$0xff] %v7452_v12 }
 0x737   : > { %v3294_v45 = vpop.permute.xlu1 %3293 }
 0x738   : > { %5116 = vmatmul.mubr.msk.bf16.gmra.mxu1 %vm781_vm0, %v7409_v32  ;;  %5133 = vmatprep.subr.bf16.mxu0 %v3294_v45 }
 0x739   : > { %5134 = vmatpush3.bf16.msra.mxu0 %v3294_v45 }
 0x796   : > { %v7456_v8 = vpop.f32.mrf.mxu1 }
 0x797   : > { %8915 = vst [vmem:[#allocation158_spill] sm:$0xff] %v7456_v8  ;;  %v7538_v8 = vpop.permute.xlu0 %3676 }
 0x798   : > { %v7458_v0 = vpop.f32.mrf.mxu1  ;;  %8931 = vst [vmem:[#allocation174_spill] sm:$0xff] %v7538_v8 }
 0x799   : > { %8916 = vst [vmem:[#allocation159_spill] sm:$0xff] %v7458_v0 }
 0x79a   : > { %v7460_v24 = vpop.f32.mrf.mxu1 }
 0x79b   : > { %8917 = vst [vmem:[#allocation160_spill] sm:$0xff] %v7460_v24 }
 0x79c   : > { %v7462_v1 = vpop.f32.mrf.mxu1 }
 0x79d   : > { %8918 = vst [vmem:[#allocation161_spill] sm:$0xff] %v7462_v1 }
 0x7b3   : > { %v7464_v55 = vpop.f32.mrf.mxu1 }
 0x7b4   : > { %8919 = vst [vmem:[#allocation162_spill] sm:$0xff] %v7464_v55 }
 0x7b5   : > { %v7466_v16 = vpop.f32.mrf.mxu1 }
 0x7b6   : > { %8920 = vst [vmem:[#allocation163_spill] sm:$0xff] %v7466_v16 }
 0x7b7   : > { %v7468_v44 = vpop.f32.mrf.mxu1 }
 0x7b8   : > { %8921 = vst [vmem:[#allocation164_spill] sm:$0xff] %v7468_v44 }
 0x7b9   : > { %v7470_v62 = vpop.f32.mrf.mxu1 }
 0x7ba   : > { %8922 = vst [vmem:[#allocation165_spill] sm:$0xff] %v7470_v62  ;;  %v7542_v62 = vpop.permute.xlu0 %3680 }
 0x7bb   : > { %8933 = vst [vmem:[#allocation176_spill] sm:$0xff] %v7542_v62 }
 0x7be   : > { %v7546_v21 = vpop.permute.xlu0 %2797 }
 0x7bf   : > { %8935 = vst [vmem:[#allocation178_spill] sm:$0xff] %v7546_v21 }
 0x7c2   : > { %v7550_v36 = vpop.permute.xlu0 %2787 }
 0x7c3   : > { %8937 = vst [vmem:[#allocation180_spill] sm:$0xff] %v7550_v36 }
 0x7c6   : > { %v7554_v22 = vpop.permute.xlu0 %2817 }
 0x7c7   : > { %8939 = vst [vmem:[#allocation182_spill] sm:$0xff] %v7554_v22 }
 0x7c8   : > { %v7472_v48 = vpop.f32.mrf.mxu1 }
 0x7c9   : > { %8923 = vst [vmem:[#allocation166_spill] sm:$0xff] %v7472_v48  ;;  %v8658_v48 = vmov 3  }
 0x7ca   : > { %v7474_v32 = vpop.f32.mrf.mxu1  ;;  %5245 = vset.pattern.permute.xlu1 %v8658_v48  ;;  %5246 = vset.pattern.permute.xlu0 %v8658_v48  ;;  %v7558_v28 = vpop.permute.xlu0 %2807 }
 0x7cb   : > { %8924 = vst [vmem:[#allocation167_spill] sm:$0xff] %v7474_v32  ;;  %8941 = vst [vmem:[#allocation184_spill] sm:$0xff] %v7558_v28 }
 0x7cc   : > { %v7476_v39 = vpop.f32.mrf.mxu1 }
 0x7cd   : > { %8925 = vst [vmem:[#allocation168_spill] sm:$0xff] %v7476_v39  ;;  %v7540_v39 = vpop.permute.xlu1 %3674 }
 0x7ce   : > { %v7478_v43 = vpop.f32.mrf.mxu1  ;;  %8932 = vst [vmem:[#allocation175_spill] sm:$0xff] %v7540_v39  ;;  %v7562_v39 = vpop.xlane.xlu0 %2559 }
 0x7cf   : > { %8926 = vst [vmem:[#allocation169_spill] sm:$0xff] %v7478_v43 }
 0x7d0   : > { %v7480_v2 = vpop.f32.mrf.mxu1 }
 0x7d1   : > { %8927 = vst [vmem:[#allocation170_spill] sm:$0xff] %v7480_v2  ;;  %v7544_v27 = vpop.permute.xlu1 %3678 }
 0x7d2   : > { %v7482_v47 = vpop.f32.mrf.mxu1  ;;  %8934 = vst [vmem:[#allocation177_spill] sm:$0xff] %v7544_v27  ;;  %v7566_v27 = vpop.xlane.xlu0 %2555 }
 0x7d3   : > { %8928 = vst [vmem:[#allocation171_spill] sm:$0xff] %v7482_v47 }
 0x7d4   : > { %v7484_v42 = vpop.f32.mrf.mxu1 }
 0x7d5   : > { %8929 = vst [vmem:[#allocation172_spill] sm:$0xff] %v7484_v42  ;;  %v7548_v44 = vpop.permute.xlu1 %2777 }
 0x7d6   : > { %v7486_v20 = vpop.f32.mrf.mxu1  ;;  %8936 = vst [vmem:[#allocation179_spill] sm:$0xff] %v7548_v44  ;;  %v7570_v44 = vpop.xlane.xlu0 %2561 }
 0x7d7   : > { %8930 = vst [vmem:[#allocation173_spill] sm:$0xff] %v7486_v20 }
 0x7d9   : > { %v7552_v1 = vpop.permute.xlu1 %2767 }
 0x7da   : > { %8938 = vst [vmem:[#allocation181_spill] sm:$0xff] %v7552_v1  ;;  %v7574_v1 = vpop.xlane.xlu0 %2567 }
 0x7dd   : > { %v7556_v24 = vpop.permute.xlu1 %2792 }
 0x7de   : > { %8940 = vst [vmem:[#allocation183_spill] sm:$0xff] %v7556_v24  ;;  %v7578_v24 = vpop.xlane.xlu0 %2563 }
 0x7e0   : > { %v7488_v26 = vpop.f32.mrf.mxu1 }
 0x7e1   : > { %3001 = vmax.xlane.f32.xlu0 %v7488_v26  ;;  %v7560_v8 = vpop.permute.xlu1 %2782 }
 0x7e2   : > { %v7491_v45 = vpop.f32.mrf.mxu1  ;;  %8942 = vst [vmem:[#allocation185_spill] sm:$0xff] %v7560_v8  ;;  %v7582_v8 = vpop.xlane.xlu0 %2575 }
 0x7e3   : > { %2997 = vmax.xlane.f32.xlu1 %v7491_v45  ;;  %8947 = vst [vmem:[#allocation190_spill] sm:$0xff] %v7582_v8 }
 0x7e4   : > { %v7494_v31 = vpop.f32.mrf.mxu1 }
 0x7e5   : > { %v7564_v62 = vpop.permute.xlu1 %2812 }
 0x7e6   : > { %v7496_v52 = vpop.f32.mrf.mxu1  ;;  %8943 = vst [vmem:[#allocation186_spill] sm:$0xff] %v7564_v62  ;;  %v7586_v62 = vpop.xlane.xlu0 %2571 }
 0x7e7   : > { %3003 = vmax.xlane.f32.xlu1 %v7494_v31  ;;  %2999 = vmax.xlane.f32.xlu0 %v7496_v52  ;;  %8949 = vst [vmem:[#allocation192_spill] sm:$0xff] %v7586_v62 }
 0x7e8   : > { %v7500_v47 = vpop.f32.mrf.mxu1 }
 0x7e9   : > { %v7568_v21 = vpop.permute.xlu1 %2802 }
 0x7ea   : > { %v7502_v2 = vpop.f32.mrf.mxu1  ;;  %8944 = vst [vmem:[#allocation187_spill] sm:$0xff] %v7568_v21  ;;  %v7590_v21 = vpop.xlane.xlu0 %2583 }
 0x7eb   : > { %3009 = vmax.xlane.f32.xlu0 %v7500_v47  ;;  %8951 = vst [vmem:[#allocation194_spill] sm:$0xff] %v7590_v21 }
 0x7ec   : > { %v7505_v32 = vpop.f32.mrf.mxu1 }
 0x7ed   : > { %3011 = vmax.xlane.f32.xlu1 %v7505_v32  ;;  %v7572_v36 = vpop.xlane.xlu1 %2557 }
 0x7ee   : > { %v7510_v16 = vpop.f32.mrf.mxu1  ;;  %v7594_v30 = vpop.xlane.xlu0 %2579 }
 0x7ef   : > { %3005 = vmax.xlane.f32.xlu0 %v7502_v2  ;;  %8953 = vst [vmem:[#allocation196_spill] sm:$0xff] %v7594_v30 }
 0x7f0   : > { %v7513_v20 = vpop.f32.mrf.mxu1 }
 0x7f1   : > { %3007 = vmax.xlane.f32.xlu1 %v7510_v16  ;;  %v7576_v22 = vpop.xlane.xlu1 %2569 }
 0x7f2   : > { %v7516_v42 = vpop.f32.mrf.mxu1  ;;  %8945 = vst [vmem:[#allocation188_spill] sm:$0xff] %v7576_v22 }
 0x7f3   : > { %3017 = vmax.xlane.f32.xlu0 %v7513_v20 }
 0x7f4   : > { %v7519_v55 = vpop.f32.mrf.mxu1 }
 0x7f5   : > { %3019 = vmax.xlane.f32.xlu1 %v7519_v55  ;;  %v7580_v28 = vpop.xlane.xlu1 %2565 }
 0x7f6   : > { %v7522_v61 = vpop.f32.mrf.mxu1  ;;  %8946 = vst [vmem:[#allocation189_spill] sm:$0xff] %v7580_v28 }
 0x7f7   : > { %3013 = vmax.xlane.f32.xlu0 %v7516_v42 }
 0x7f8   : > { %v7525_v48 = vpop.f32.mrf.mxu1 }
 0x7f9   : > { %3015 = vmax.xlane.f32.xlu1 %v7522_v61  ;;  %v7584_v57 = vpop.xlane.xlu1 %2577 }
 0x7fa   : > { %v7528_v0 = vpop.f32.mrf.mxu1  ;;  %8948 = vst [vmem:[#allocation191_spill] sm:$0xff] %v7584_v57 }
 0x7fb   : > { %3025 = vmax.xlane.f32.xlu0 %v7525_v48 }
 0x7fc   : > { %v7531_v43 = vpop.f32.mrf.mxu1 }
 0x7fd   : > { %3027 = vmax.xlane.f32.xlu1 %v7531_v43  ;;  %v7588_v46 = vpop.xlane.xlu1 %2573 }
 0x7fe   : > { %v7534_v12 = vpop.f32.mrf.mxu1  ;;  %8950 = vst [vmem:[#allocation193_spill] sm:$0xff] %v7588_v46 }
 0x7ff   : > { %3021 = vmax.xlane.f32.xlu0 %v7528_v0 }
 0x801   : > { %3023 = vmax.xlane.f32.xlu1 %v7534_v12  ;;  %v7592_v38 = vpop.xlane.xlu1 %2585 }
 0x802   : > { %8952 = vst [vmem:[#allocation195_spill] sm:$0xff] %v7592_v38 }
 0x805   : > { %v7596_v41 = vpop.xlane.xlu1 %2581 }
 0x806   : > { %8954 = vst [vmem:[#allocation197_spill] sm:$0xff] %v7596_v41 }
 0x86a   : > { %v3002_v60 = vpop.xlane.xlu0 %3001 }
 0x86b   : > { %v3031_v33 = vmax.f32 %v5679_v58, %v3002_v60  ;;  %v7606_v60 = vld [vmem:[#allocation2 + $0x8] sm:$0xff] }
 0x86c   : > { %v2998_v40 = vpop.xlane.xlu1 %2997 }
 0x86d   : > { %v3531_v56 = vsel %vm3528_vm4, %v7026_v14, %v3031_v33  ;;  %v3029_v29 = vmax.f32 %v7028_v51, %v2998_v40  ;;  %3105 = vperm.xlu1 %5245, %v3031_v33   ;;  %v5681_v14 = vld [vmem:[#allocation2 + $0x18] sm:$0xff] }
 0x86e   : > { %3548 = vst.msk [vmem:[#allocation2 + $0x10] sm:$0xff] %vm556_vm1, %v3531_v56 }
 0x86f   : > { %v3045_v21 = vsub.f32 %v7028_v51, %v3029_v29  ;;  %v3529_v38 = vsel %vm3528_vm4, %v7038_v37, %v3029_v29  ;;  %3095 = vperm.xlu0 %5246, %v3029_v29  }
 0x870   : > { %3546 = vst.msk [vmem:[#allocation2] sm:$0xff] %vm556_vm1, %v3529_v38  ;;  %v3000_v41 = vpop.xlane.xlu0 %2999  ;;  %v3004_v30 = vpop.xlane.xlu1 %3003 }
 0x871   : > { %v7609_v46 = vmax.f32 %v7606_v60, %v3000_v41  ;;  %v3032_v40 = vmax.f32 %v5681_v14, %v3004_v30  ;;  %v3061_v62 = vmul.f32 1.442695, %v3045_v21 }
 0x873   : > { %v3530_v51 = vsel %vm3528_vm4, %v7055_v63, %v7609_v46  ;;  %3110 = vperm.xlu1 %5245, %v3032_v40   ;;  %v3532_v56 = vsel %vm3528_vm4, %v7061_v4, %v3032_v40  ;;  %5559 = vpow2.f32 %v3061_v62  ;;  %v3048_v29 = vsub.f32 %v5681_v14, %v3032_v40  ;;  %v7624_v63 = vld [vmem:[#allocation2 + $0x38] sm:$0xff]  ;;  %v8956_v40 = vld [vmem:[#allocation9_spill] sm:$0xff] }
 0x874   : > { %3547 = vst.msk [vmem:[#allocation2 + $0x8] sm:$0xff] %vm556_vm1, %v3530_v51  ;;  %v3010_v37 = vpop.xlane.xlu0 %3009  ;;  %3549 = vst.msk [vmem:[#allocation2 + $0x18] sm:$0xff] %vm556_vm1, %v3532_v56  ;;  %v8955_v51 = vld [vmem:[#allocation148_spill] sm:$0xff] }
 0x875   : > { %v7619_v38 = vmax.f32 %v7063_v13, %v3010_v37  ;;  %v3067_v14 = vmul.f32 1.442695, %v3048_v29  ;;  %v8957_v29 = vld [vmem:[#allocation149_spill] sm:$0xff] }
 0x876   : > { %v3012_v41 = vpop.xlane.xlu1 %3011 }
 0x877   : > { %v3535_v30 = vsel %vm3528_vm4, %v7073_v17, %v7619_v38  ;;  %v7627_v21 = vmax.f32 %v7624_v63, %v3012_v41  ;;  %3100 = vperm.xlu1 %5245, %v7609_v46   ;;  %v7643_v41 = vld [vmem:[#allocation2 + $0x28] sm:$0xff]  ;;  %5561 = vpow2.f32 %v3067_v14 }
 0x878   : > { %3552 = vst.msk [vmem:[#allocation2 + $0x30] sm:$0xff] %vm556_vm1, %v3535_v30  ;;  %v3006_v4 = vpop.xlane.xlu0 %3005 }
 0x879   : > { %v3536_v56 = vsel %vm3528_vm4, %v8955_v51, %v7627_v21  ;;  %v7635_v62 = vmax.f32 %v7078_v34, %v3006_v4  ;;  %v3047_v4 = vsub.f32 %v5679_v58, %v3031_v33 }
 0x87a   : > { %3553 = vst.msk [vmem:[#allocation2 + $0x38] sm:$0xff] %vm556_vm1, %v3536_v56  ;;  %v3008_v17 = vpop.xlane.xlu1 %3007 }
 0x87b   : > { %v3533_v37 = vsel %vm3528_vm4, %v8956_v40, %v7635_v62  ;;  %3125 = vperm.xlu1 %5245, %v7619_v38   ;;  %v7646_v30 = vmax.f32 %v7643_v41, %v3008_v17  ;;  %v8958_v40 = vld [vmem:[#allocation150_spill] sm:$0xff]  ;;  %v3065_v33 = vmul.f32 1.442695, %v3047_v4 }
 0x87c   : > { %3550 = vst.msk [vmem:[#allocation2 + $0x20] sm:$0xff] %vm556_vm1, %v3533_v37  ;;  %v3018_v51 = vpop.xlane.xlu0 %3017 }
 0x87d   : > { %v7649_v3 = vmax.f32 %v7116_v15, %v3018_v51  ;;  %v3534_v56 = vsel %vm3528_vm4, %v8957_v29, %v7646_v30  ;;  %v8959_v51 = vld [vmem:[#allocation152_spill] sm:$0xff]  ;;  %5563 = vpow2.f32 %v3065_v33 }
 0x87e   : > { %v3020_v8 = vpop.xlane.xlu1 %3019  ;;  %3551 = vst.msk [vmem:[#allocation2 + $0x28] sm:$0xff] %vm556_vm1, %v3534_v56  ;;  %v7668_v29 = vld [vmem:[#allocation2 + $0x40] sm:$0xff] }
 0x87f   : > { %v3539_v37 = vsel %vm3528_vm4, %v8958_v40, %v7649_v3  ;;  %v7661_v17 = vmax.f32 %v7658_v19, %v3020_v8  ;;  %3115 = vperm.xlu1 %5245, %v7635_v62   ;;  %v8960_v40 = vld [vmem:[#allocation151_spill] sm:$0xff] }
 0x880   : > { %3556 = vst.msk [vmem:[#allocation2 + $0x50] sm:$0xff] %vm556_vm1, %v3539_v37  ;;  %v3014_v58 = vpop.xlane.xlu0 %3013  ;;  %v7679_v4 = vpop.eup %5559 }
 0x881   : > { %v3540_v14 = vsel %vm3528_vm4, %v8959_v51, %v7661_v17  ;;  %v7671_v56 = vmax.f32 %v7668_v29, %v3014_v58  ;;  %3150 = vperm.xlu0 %5246, %v7661_v17   ;;  %v5686_v51 = vld [vmem:[#allocation2 + $0x48] sm:$0xff]  ;;  %v3046_v58 = vsub.f32 %v7606_v60, %v7609_v46  ;;  %v3056_v23 = vsub.f32 %v7658_v19, %v7661_v17 }
 0x882   : > { %3557 = vst.msk [vmem:[#allocation2 + $0x58] sm:$0xff] %vm556_vm1, %v3540_v14  ;;  %v3016_v8 = vpop.xlane.xlu1 %3015  ;;  %v8962_v60 = vld [vmem:[#allocation49_spill] sm:$0xff] }
 0x883   : > { %v3537_v37 = vsel %vm3528_vm4, %v8960_v40, %v7671_v56  ;;  %3130 = vperm.xlu1 %5245, %v7627_v21   ;;  %v3038_v28 = vmax.f32 %v5686_v51, %v3016_v8 }
 0x884   : > { %3554 = vst.msk [vmem:[#allocation2 + $0x40] sm:$0xff] %vm556_vm1, %v3537_v37  ;;  %v3026_v6 = vpop.xlane.xlu0 %3025  ;;  %v8961_v37 = vld [vmem:[#allocation48_spill] sm:$0xff]  ;;  %v7707_v35 = vpop.eup %5561 }
 0x885   : > { %v7685_v14 = vmax.f32 %v7155_v59, %v3026_v6  ;;  %3416 = vperm.xlu0 %5246, %v7679_v4   ;;  %v3538_v40 = vsel %vm3528_vm4, %v7226_v10, %v3038_v28  ;;  %v3063_v6 = vmul.f32 1.442695, %v3046_v58 }
 0x886   : > { %v3028_v22 = vpop.xlane.xlu1 %3027  ;;  %3555 = vst.msk [vmem:[#allocation2 + $0x48] sm:$0xff] %vm556_vm1, %v3538_v40 }
 0x887   : > { %v3543_v8 = vsel %vm3528_vm4, %v8961_v37, %v7685_v14  ;;  %v3044_v33 = vmax.f32 %v7181_v49, %v3028_v22  ;;  %3120 = vperm.xlu1 %5245, %v7646_v30   ;;  %v8963_v37 = vld [vmem:[#allocation47_spill] sm:$0xff]  ;;  %5565 = vpow2.f32 %v3063_v6 }
 0x888   : > { %3560 = vst.msk [vmem:[#allocation2 + $0x70] sm:$0xff] %vm556_vm1, %v3543_v8  ;;  %v3022_v46 = vpop.xlane.xlu0 %3021  ;;  %v8964_v8 = vld [vmem:[#allocation45_spill] sm:$0xff]  ;;  %v8967_v6 = vld [vmem:[#allocation79_spill] sm:$0xff] }
 0x889   : > { %v3544_v57 = vsel %vm3528_vm4, %v8962_v60, %v3044_v33  ;;  %v7700_v10 = vmax.f32 %v7168_v25, %v3022_v46  ;;  %3140 = vperm.xlu0 %5246, %v3038_v28   ;;  %v3060_v17 = vsub.f32 %v7181_v49, %v3044_v33 }
 0x88a   : > { %3561 = vst.msk [vmem:[#allocation2 + $0x78] sm:$0xff] %vm556_vm1, %v3544_v57  ;;  %v3024_v40 = vpop.xlane.xlu1 %3023  ;;  %v8965_v57 = vld [vmem:[#allocation73_spill] sm:$0xff]  ;;  %v7718_v60 = vpop.eup %5563 }
 0x88b   : > { %v3541_v22 = vsel %vm3528_vm4, %v8963_v37, %v7700_v10  ;;  %3145 = vperm.xlu1 %5245, %v7649_v3   ;;  %v3042_v58 = vmax.f32 %v7194_v53, %v3024_v40  ;;  %v8966_v37 = vld [vmem:[#allocation71_spill] sm:$0xff] }
 0x88c   : > { %3558 = vst.msk [vmem:[#allocation2 + $0x60] sm:$0xff] %vm556_vm1, %v3541_v22  ;;  %v3052_v22 = vsub.f32 %v7624_v63, %v7627_v21  ;;  %v8970_v63 = vld [vmem:[#allocation70_spill] sm:$0xff]  ;;  %v3051_v21 = vsub.f32 %v7063_v13, %v7619_v38  ;;  %v8973_v13 = vld [vmem:[#allocation76_spill] sm:$0xff] }
 0x88d   : > { %3431 = vperm.xlu0 %5246, %v7707_v35   ;;  %v3542_v46 = vsel %vm3528_vm4, %v8964_v8, %v3042_v58  ;;  %v8968_v8 = vld [vmem:[#allocation77_spill] sm:$0xff] }
 0x88e   : > { %3559 = vst.msk [vmem:[#allocation2 + $0x68] sm:$0xff] %vm556_vm1, %v3542_v46  ;;  %v3075_v46 = vmul.f32 1.442695, %v3052_v22  ;;  %v8971_v22 = vld [vmem:[#allocation83_spill] sm:$0xff] }
 0x88f   : > { %3135 = vperm.xlu1 %5245, %v7671_v56  }
 0x890   : > { %5567 = vpow2.f32 %v3075_v46  ;;  %v3073_v46 = vmul.f32 1.442695, %v3051_v21 }
 0x891   : > { %3684 = vrot.lane.b32.xlu0 %v8965_v57, %s5730_s27  ;;  %v3050_v57 = vsub.f32 %v7643_v41, %v7646_v30  ;;  %v3083_v41 = vmul.f32 1.442695, %v3056_v23  ;;  %v3054_v30 = vsub.f32 %v5686_v51, %v3038_v28  ;;  %v3055_v23 = vsub.f32 %v7116_v15, %v7649_v3  ;;  %v8975_v15 = vld [vmem:[#allocation82_spill] sm:$0xff] }
 0x892   : > { %v3091_v28 = vmul.f32 1.442695, %v3060_v17  ;;  %v3058_v51 = vsub.f32 %v7194_v53, %v3042_v58 }
 0x893   : > { %3426 = vperm.xlu1 %5245, %v7718_v60   ;;  %v3079_v19 = vmul.f32 1.442695, %v3054_v30  ;;  %v3081_v49 = vmul.f32 1.442695, %v3055_v23 }
 0x894   : > { %v7726_v40 = vpop.eup %5565 }
 0x895   : > { %3688 = vrot.lane.b32.xlu0 %v8966_v37, %s5730_s27  ;;  %v8969_v37 = vld [vmem:[#allocation84_spill] sm:$0xff] }
 0x897   : > { %3165 = vperm.xlu1 %5245, %v7685_v14  }
 0x899   : > { %3692 = vrot.lane.b32.xlu0 %v8967_v6, %s5730_s27  ;;  %v3071_v6 = vmul.f32 1.442695, %v3050_v57  ;;  %v3049_v57 = vsub.f32 %v7078_v34, %v7635_v62  ;;  %v8974_v34 = vld [vmem:[#allocation74_spill] sm:$0xff] }
 0x89b   : > { %3421 = vperm.xlu1 %5245, %v7726_v40   ;;  %5569 = vpow2.f32 %v3071_v6  ;;  %v3069_v38 = vmul.f32 1.442695, %v3049_v57  ;;  %v8976_v6 = vld [vmem:[#allocation80_spill] sm:$0xff]  ;;  %v8977_v57 = vmov 0  }
 0x89c   : > { %5571 = vpow2.f32 %v3083_v41 }
 0x89d   : > { %3696 = vrot.lane.b32.xlu0 %v8968_v8, %s5730_s27  ;;  %v8972_v8 = vld [vmem:[#allocation68_spill] sm:$0xff]  ;;  %5573 = vpow2.f32 %v3073_v46  ;;  %v7758_v62 = vpop.eup %5567 }
 0x89e   : > { %5575 = vpow2.f32 %v3079_v19 }
 0x89f   : > { %3155 = vperm.xlu1 %5245, %v7700_v10   ;;  %5577 = vpow2.f32 %v3069_v38 }
 0x8a0   : > { %5579 = vpow2.f32 %v3091_v28 }
 0x8a1   : > { %3700 = vrot.lane.b32.xlu0 %v8969_v37, %s5730_s27  ;;  %v3087_v37 = vmul.f32 1.442695, %v3058_v51  ;;  %5581 = vpow2.f32 %v3081_v49 }
 0x8a3   : > { %3682 = vrot.lane.b32.xlu1 %v8970_v63, %s5730_s27  ;;  %5583 = vpow2.f32 %v3087_v37  ;;  %v3057_v63 = vsub.f32 %v7168_v25, %v7700_v10 }
 0x8a5   : > { %3704 = vrot.lane.b32.xlu0 %v8971_v22, %s5730_s27 }
 0x8a7   : > { %3686 = vrot.lane.b32.xlu1 %v8972_v8, %s5730_s27 }
 0x8a8   : > { %v7765_v3 = vpop.eup %5569 }
 0x8a9   : > { %3170 = vperm.xlu0 %5246, %v3044_v33   ;;  %v3053_v33 = vsub.f32 %v7668_v29, %v7671_v56  ;;  %v7772_v29 = vpop.eup %5571 }
 0x8aa   : > { %v7777_v21 = vpop.eup %5573 }
 0x8ab   : > { %3690 = vrot.lane.b32.xlu1 %v8973_v13, %s5730_s27  ;;  %v3077_v53 = vmul.f32 1.442695, %v3053_v33 }
 0x8ad   : > { %3160 = vperm.xlu0 %5246, %v3042_v58   ;;  %v3059_v58 = vsub.f32 %v7155_v59, %v7685_v14  ;;  %5585 = vpow2.f32 %v3077_v53  ;;  %v7780_v59 = vpop.eup %5575  ;;  %v3085_v14 = vmul.f32 1.442695, %v3057_v63 }
 0x8ae   : > { %v7783_v22 = vpop.eup %5577 }
 0x8af   : > { %3694 = vrot.lane.b32.xlu1 %v8974_v34, %s5730_s27  ;;  %v3089_v56 = vmul.f32 1.442695, %v3059_v58  ;;  %v7786_v41 = vpop.eup %5579 }
 0x8b0   : > { %v7789_v25 = vpop.eup %5581 }
 0x8b1   : > { %3451 = vperm.xlu0 %5246, %v7758_v62   ;;  %5587 = vpow2.f32 %v3089_v56  ;;  %v7792_v10 = vpop.eup %5583 }
 0x8b2   : > { %5589 = vpow2.f32 %v3085_v14 }
 0x8b3   : > { %3698 = vrot.lane.b32.xlu1 %v8975_v15, %s5730_s27 }
 0x8b5   : > { %3441 = vperm.xlu0 %5246, %v7765_v3  }
 0x8b7   : > { %3702 = vrot.lane.b32.xlu1 %v8976_v6, %s5730_s27 }
 0x8b9   : > { %3471 = vperm.xlu0 %5246, %v7772_v29  }
 0x8ba   : > { %v7795_v30 = vpop.eup %5585 }
 0x8bb   : > { %3446 = vperm.xlu1 %5245, %v7777_v21  }
 0x8bd   : > { %3461 = vperm.xlu0 %5246, %v7780_v59  }
 0x8be   : > { %v7799_v8 = vpop.eup %5587 }
 0x8bf   : > { %3436 = vperm.xlu1 %5245, %v7783_v22   ;;  %v7802_v46 = vpop.eup %5589 }
 0x8c1   : > { %3491 = vperm.xlu0 %5246, %v7786_v41  }
 0x8c3   : > { %3466 = vperm.xlu1 %5245, %v7789_v25  }
 0x8c5   : > { %3481 = vperm.xlu0 %5246, %v7792_v10  }
 0x8c7   : > { %3456 = vperm.xlu1 %5245, %v7795_v30  }
 0x8c9   : > { %5252 = vset.pattern.permute.xlu0 %v8747_v54 }
 0x8cb   : > { %3486 = vperm.xlu1 %5245, %v7799_v8  }
 0x8cf   : > { %3476 = vperm.xlu1 %5245, %v7802_v46  }
 0x8d3   : > { %5247 = vset.pattern.permute.xlu1 %v8977_v57 }
 0x8e8   : > { %v3106_v19 = vpop.permute.xlu1 %3105 }
 0x8e9   : > { %v3175_v17 = vsub.f32 %v7488_v26, %v3106_v19 }
 0x8ea   : > { %v3096_v13 = vpop.permute.xlu0 %3095 }
 0x8eb   : > { %v3193_v38 = vmul.f32 1.442695, %v3175_v17  ;;  %v3173_v23 = vsub.f32 %v7491_v45, %v3096_v13 }
 0x8ed   : > { %5591 = vpow2.f32 %v3193_v38  ;;  %v3189_v28 = vmul.f32 1.442695, %v3173_v23 }
 0x8ee   : > { %v3111_v51 = vpop.permute.xlu1 %3110 }
 0x8ef   : > { %v3176_v34 = vsub.f32 %v7494_v31, %v3111_v51  ;;  %5593 = vpow2.f32 %v3189_v28 }
 0x8f1   : > { %v3195_v49 = vmul.f32 1.442695, %v3176_v34 }
 0x8f2   : > { %v3101_v33 = vpop.permute.xlu1 %3100 }
 0x8f3   : > { %5595 = vpow2.f32 %v3195_v49  ;;  %v3174_v37 = vsub.f32 %v7496_v52, %v3101_v33 }
 0x8f5   : > { %v3191_v15 = vmul.f32 1.442695, %v3174_v37 }
 0x8f6   : > { %v3126_v53 = vpop.permute.xlu1 %3125 }
 0x8f7   : > { %5597 = vpow2.f32 %v3191_v15  ;;  %v3179_v26 = vsub.f32 %v7500_v47, %v3126_v53 }
 0x8f9   : > { %v3201_v58 = vmul.f32 1.442695, %v3179_v26 }
 0x8fa   : > { %v5592_v6 = vpop.eup %5591  ;;  %v3116_v56 = vpop.permute.xlu1 %3115 }
 0x8fb   : > { %5599 = vpow2.f32 %v3201_v58  ;;  %v3177_v45 = vsub.f32 %v7502_v2, %v3116_v56  ;;  %3241 = vadd.xlane.f32.xlu1 %v5592_v6 }
 0x8fc   : > { %v3151_v63 = vpop.permute.xlu0 %3150  ;;  %v5594_v19 = vpop.eup %5593 }
 0x8fd   : > { %v3197_v31 = vmul.f32 1.442695, %v3177_v45  ;;  %v3184_v14 = vsub.f32 %v7519_v55, %v3151_v63 }
 0x8fe   : > { %v3131_v17 = vpop.permute.xlu1 %3130 }
 0x8ff   : > { %5601 = vpow2.f32 %v3197_v31  ;;  %v3211_v52 = vmul.f32 1.442695, %v3184_v14  ;;  %v3180_v13 = vsub.f32 %v7505_v32, %v3131_v17  ;;  %3237 = vadd.xlane.f32.xlu1 %v5594_v19 }
 0x900   : > { %v5596_v38 = vpop.eup %5595  ;;  %v7814_v47 = vpop.permute.xlu0 %3416 }
 0x901   : > { %5603 = vpow2.f32 %v3211_v52  ;;  %v3203_v23 = vmul.f32 1.442695, %v3180_v13  ;;  %3243 = vadd.xlane.f32.xlu0 %v5596_v38  ;;  %v3286_v32 = vpack.c.bf16 %v5596_v38, %v5592_v6 }
 0x902   : > { %v3121_v28 = vpop.permute.xlu1 %3120 }
 0x903   : > { %5605 = vpow2.f32 %v3203_v23  ;;  %v3178_v2 = vsub.f32 %v7510_v16, %v3121_v28 }
 0x904   : > { %v5598_v51 = vpop.eup %5597  ;;  %v3141_v34 = vpop.permute.xlu0 %3140 }
 0x905   : > { %v3199_v55 = vmul.f32 1.442695, %v3178_v2  ;;  %3239 = vadd.xlane.f32.xlu0 %v5598_v51  ;;  %v3285_v49 = vpack.c.bf16 %v5598_v51, %v5594_v19  ;;  %v3182_v33 = vsub.f32 %v7522_v61, %v3141_v34 }
 0x906   : > { %v3146_v37 = vpop.permute.xlu1 %3145 }
 0x907   : > { %5607 = vpow2.f32 %v3199_v55  ;;  %v3183_v15 = vsub.f32 %v7513_v20, %v3146_v37  ;;  %5135 = vmatprep.mubr.bf16.mxu0 %v3285_v49  ;;  %v3207_v16 = vmul.f32 1.442695, %v3182_v33 }
 0x908   : > { %v5600_v53 = vpop.eup %5599  ;;  %v7819_v26 = vpop.permute.xlu0 %3431  ;;  %5136 = vmatmul.mubr.bf16.vlgmr.msra.gmra.mxu0 %v3286_v32 }
 0x909   : > { %v3209_v58 = vmul.f32 1.442695, %v3183_v15  ;;  %3249 = vadd.xlane.f32.xlu0 %v5600_v53 }
 0x90a   : > { %v3136_v56 = vpop.permute.xlu1 %3135 }
 0x90b   : > { %5609 = vpow2.f32 %v3209_v58  ;;  %v3181_v45 = vsub.f32 %v7516_v42, %v3136_v56 }
 0x90c   : > { %v5602_v63 = vpop.eup %5601  ;;  %v7822_v31 = vpop.permute.xlu0 %3684  ;;  %5611 = vpow2.f32 %v3207_v16 }
 0x90d   : > { %v3205_v61 = vmul.f32 1.442695, %v3181_v45  ;;  %3245 = vadd.xlane.f32.xlu0 %v5602_v63 }
 0x90e   : > { %v5604_v6 = vpop.eup %5603  ;;  %v7824_v20 = vpop.permute.xlu1 %3426 }
 0x90f   : > { %5613 = vpow2.f32 %v3205_v61  ;;  %3259 = vadd.xlane.f32.xlu1 %v5604_v6 }
 0x910   : > { %v5606_v14 = vpop.eup %5605  ;;  %v7826_v19 = vpop.permute.xlu0 %3688 }
 0x911   : > { %3251 = vadd.xlane.f32.xlu0 %v5606_v14  ;;  %v3288_v2 = vpack.c.bf16 %v5606_v14, %v5600_v53 }
 0x912   : > { %v3166_v17 = vpop.permute.xlu1 %3165 }
 0x913   : > { %v3187_v52 = vsub.f32 %v7525_v48, %v3166_v17 }
 0x914   : > { %v5608_v13 = vpop.eup %5607  ;;  %v7829_v42 = vpop.permute.xlu0 %3692 }
 0x915   : > { %v3217_v38 = vmul.f32 1.442695, %v3187_v52  ;;  %3247 = vadd.xlane.f32.xlu0 %v5608_v13  ;;  %v3287_v23 = vpack.c.bf16 %v5608_v13, %v5602_v63 }
 0x916   : > { %v7831_v28 = vpop.permute.xlu1 %3421 }
 0x917   : > { %5615 = vpow2.f32 %v3217_v38  ;;  %5139 = vmatprep.mubr.bf16.mxu0 %v3287_v23 }
 0x918   : > { %v5610_v51 = vpop.eup %5609  ;;  %v7833_v34 = vpop.permute.xlu0 %3696  ;;  %5140 = vmatmul.mubr.bf16.gmra.mxu0 %v3288_v2 }
 0x919   : > { %3257 = vadd.xlane.f32.xlu0 %v5610_v51  ;;  %v5612_v49 = vpop.eup %5611  ;;  %v3290_v58 = vpack.c.bf16 %v5604_v6, %v5610_v51 }
 0x91a   : > { %v3156_v55 = vpop.permute.xlu1 %3155 }
 0x91b   : > { %v3185_v48 = vsub.f32 %v7528_v0, %v3156_v55 }
 0x91c   : > { %v5614_v33 = vpop.eup %5613  ;;  %v7836_v37 = vpop.permute.xlu0 %3700 }
 0x91d   : > { %8978 = vst [vmem:[#allocation148_spill] sm:$0xff] %v7836_v37  ;;  %v3213_v32 = vmul.f32 1.442695, %v3185_v48  ;;  %3253 = vadd.xlane.f32.xlu0 %v5614_v33  ;;  %v3289_v15 = vpack.c.bf16 %v5612_v49, %v5614_v33  ;;  %v9003_v37 = vld [vmem:[#allocation134_spill] sm:$0xff] }
 0x91e   : > { %v7842_v23 = vpop.permute.xlu1 %3682 }
 0x91f   : > { %5617 = vpow2.f32 %v3213_v32  ;;  %5143 = vmatprep.mubr.bf16.mxu0 %v3289_v15  ;;  %8980 = vst [vmem:[#allocation149_spill] sm:$0xff] %v7842_v23  ;;  %v9000_v23 = vld [vmem:[#allocation61_spill] sm:$0xff] }
 0x920   : > { %v7838_v53 = vpop.permute.xlu0 %3704  ;;  %5144 = vmatmul.mubr.bf16.gmra.mxu0 %v3290_v58 }
 0x921   : > { %8979 = vst [vmem:[#allocation9_spill] sm:$0xff] %v7838_v53  ;;  %3255 = vadd.xlane.f32.xlu0 %v5612_v49  ;;  %v8999_v53 = vld [vmem:[#allocation132_spill] sm:$0xff] }
 0x924   : > { %v5616_v16 = vpop.eup %5615  ;;  %v3171_v56 = vpop.permute.xlu0 %3170 }
 0x925   : > { %v3188_v45 = vsub.f32 %v7531_v43, %v3171_v56  ;;  %3265 = vadd.xlane.f32.xlu0 %v5616_v16  ;;  %v7844_v43 = vpop.permute.xlu1 %3686 }
 0x926   : > { %8981 = vst [vmem:[#allocation150_spill] sm:$0xff] %v7844_v43  ;;  %v8998_v43 = vld [vmem:[#allocation15_spill] sm:$0xff] }
 0x927   : > { %v3219_v63 = vmul.f32 1.442695, %v3188_v45 }
 0x928   : > { %v3161_v0 = vpop.permute.xlu0 %3160 }
 0x929   : > { %5619 = vpow2.f32 %v3219_v63  ;;  %v3186_v61 = vsub.f32 %v7534_v12, %v3161_v0  ;;  %v7846_v2 = vpop.permute.xlu1 %3690  ;;  %v687_v63 = vld [vmem:[#allocation3 + $0x10] sm:$0xff]  ;;  %v8991_v0 = vld [vmem:[#allocation60_spill] sm:$0xff] }
 0x92a   : > { %8982 = vst [vmem:[#allocation152_spill] sm:$0xff] %v7846_v2 }
 0x92b   : > { %v3215_v14 = vmul.f32 1.442695, %v3186_v61  ;;  %v1851_v61 = vmul.f32 %v8991_v0, %v687_v63  ;;  %v3223_v0 = vmul.f32 %v7718_v60, %v687_v63 }
 0x92c   : > { %v5618_v17 = vpop.eup %5617  ;;  %v7856_v48 = vpop.permute.xlu0 %3451 }
 0x92d   : > { %5621 = vpow2.f32 %v3215_v14  ;;  %3261 = vadd.xlane.f32.xlu0 %v5618_v17  ;;  %v7848_v51 = vpop.permute.xlu1 %3694  ;;  %v2541_v14 = vmul.f32 %v7308_v7, %v687_v63 }
 0x92e   : > { %8983 = vst [vmem:[#allocation151_spill] sm:$0xff] %v7848_v51 }
 0x92f   : > { %v2589_v2 = vadd.f32 %v7562_v39, %v2541_v14  ;;  %v9001_v39 = vld [vmem:[#allocation10_spill] sm:$0xff] }
 0x930   : > { %v7860_v32 = vpop.permute.xlu0 %3441 }
 0x931   : > { %v7850_v12 = vpop.permute.xlu1 %3698 }
 0x932   : > { %8984 = vst [vmem:[#allocation48_spill] sm:$0xff] %v7850_v12 }
 0x934   : > { %v7864_v58 = vpop.permute.xlu0 %3471 }
 0x935   : > { %v7852_v55 = vpop.permute.xlu1 %3702 }
 0x936   : > { %v5620_v6 = vpop.eup %5619  ;;  %8985 = vst [vmem:[#allocation49_spill] sm:$0xff] %v7852_v55  ;;  %v8995_v55 = vld [vmem:[#allocation130_spill] sm:$0xff] }
 0x937   : > { %3267 = vadd.xlane.f32.xlu1 %v5620_v6  ;;  %v3292_v38 = vpack.c.bf16 %v5620_v6, %v5616_v16  ;;  %v1899_v12 = vadd.f32 %v8995_v55, %v1851_v61 }
 0x938   : > { %v7868_v56 = vpop.permute.xlu0 %3461 }
 0x939   : > { %v7854_v49 = vpop.permute.xlu1 %3446 }
 0x93a   : > { %v5622_v52 = vpop.eup %5621  ;;  %8986 = vst [vmem:[#allocation47_spill] sm:$0xff] %v7854_v49 }
 0x93b   : > { %3263 = vadd.xlane.f32.xlu1 %v5622_v52  ;;  %v3291_v13 = vpack.c.bf16 %v5622_v52, %v5618_v17  ;;  %v685_v52 = vld [vmem:[#allocation3] sm:$0xff] }
 0x93c   : > { %v7874_v17 = vpop.permute.xlu0 %3491  ;;  %v1151_v7 = vmul.f32 %v8998_v43, %v685_v52  ;;  %v9002_v43 = vld [vmem:[#allocation43_spill] sm:$0xff] }
 0x93d   : > { %5147 = vmatprep.mubr.bf16.mxu0 %v3291_v13  ;;  %v7858_v33 = vpop.permute.xlu1 %3436  ;;  %8992 = vst [vmem:[#allocation77_spill] sm:$0xff] %v7874_v17  ;;  %v8994_v13 = vld [vmem:[#allocation13_spill] sm:$0xff]  ;;  %v2539_v17 = vmul.f32 %v7249_v5, %v685_v52 }
 0x93e   : > { %5148 = vmatmul.mubr.bf16.gmra.mxu0 %v3292_v38  ;;  %8987 = vst [vmem:[#allocation45_spill] sm:$0xff] %v7858_v33  ;;  %v1153_v38 = vmul.f32 %v8994_v13, %v687_v63  ;;  %v1199_v5 = vadd.f32 %v9002_v43, %v1151_v7  ;;  %v9006_v7 = vld [vmem:[#allocation50_spill] sm:$0xff] }
 0x940   : > { %v7893_v63 = vpop.permute.xlu0 %3481 }
 0x941   : > { %v7862_v15 = vpop.permute.xlu1 %3466 }
 0x942   : > { %8988 = vst [vmem:[#allocation73_spill] sm:$0xff] %v7862_v15  ;;  %v8996_v15 = vld [vmem:[#allocation85_spill] sm:$0xff] }
 0x943   : > { %v1201_v51 = vadd.f32 %v8996_v15, %v1153_v38  ;;  %v686_v38 = vld [vmem:[#allocation3 + $0x8] sm:$0xff] }
 0x945   : > { %v7866_v16 = vpop.permute.xlu1 %3456 }
 0x946   : > { %8989 = vst [vmem:[#allocation71_spill] sm:$0xff] %v7866_v16  ;;  %v688_v16 = vld [vmem:[#allocation3 + $0x18] sm:$0xff] }
 0x947   : > { %v1852_v55 = vmul.f32 %v9000_v23, %v688_v16  ;;  %v1154_v14 = vmul.f32 %v9001_v39, %v688_v16  ;;  %v2542_v60 = vmul.f32 %v7313_v11, %v688_v16  ;;  %v3221_v23 = vmul.f32 %v7679_v4, %v685_v52 }
 0x948   : > { %v2540_v4 = vmul.f32 %v7300_v18, %v686_v38 }
 0x949   : > { %v7870_v45 = vpop.permute.xlu1 %3486 }
 0x94a   : > { %8990 = vst [vmem:[#allocation79_spill] sm:$0xff] %v7870_v45  ;;  %v8997_v45 = vld [vmem:[#allocation59_spill] sm:$0xff]  ;;  %v2588_v43 = vadd.f32 %v7572_v36, %v2540_v4 }
 0x94b   : > { %v1849_v33 = vmul.f32 %v8997_v45, %v685_v52  ;;  %v2587_v45 = vadd.f32 %v7566_v27, %v2539_v17 }
 0x94d   : > { %v7876_v6 = vpop.permute.xlu1 %3476  ;;  %v1897_v13 = vadd.f32 %v8999_v53, %v1849_v33  ;;  %v2590_v33 = vadd.f32 %v7570_v44, %v2542_v60  ;;  %v9007_v44 = vld [vmem:[#allocation135_spill] sm:$0xff] }
 0x94e   : > { %8993 = vst [vmem:[#allocation84_spill] sm:$0xff] %v7876_v6  ;;  %v3564_v6 = vsel %vm3494_vm2, %v1201_v51, %v1899_v12  ;;  %v1900_v51 = vadd.f32 %v9003_v37, %v1852_v55  ;;  %v9004_v12 = vld [vmem:[#allocation44_spill] sm:$0xff]  ;;  %v1152_v37 = vmul.f32 %v9006_v7, %v686_v38 }
 0x94f   : > { %v3580_v15 = vsel %vm3511_vm3, %v3564_v6, %v2589_v2  ;;  %v9005_v2 = vld [vmem:[#allocation39_spill] sm:$0xff]  ;;  %v3562_v17 = vsel %vm3494_vm2, %v1199_v5, %v1897_v13 }
 0x950   : > { %v1202_v11 = vadd.f32 %v9005_v2, %v1154_v14  ;;  %v3578_v55 = vsel %vm3511_vm3, %v3562_v17, %v2587_v45  ;;  %v691_v14 = vld [vmem:[#allocation3 + $0x30] sm:$0xff]  ;;  %v9009_v45 = vld [vmem:[#allocation37_spill] sm:$0xff] }
 0x951   : > { %v1855_v5 = vmul.f32 %v9009_v45, %v691_v14  ;;  %v9011_v2 = vld [vmem:[#allocation137_spill] sm:$0xff] }
 0x984   : > { %v3242_v49 = vpop.xlane.xlu1 %3241 }
 0x985   : > { %v3271_v61 = vadd.f32 %v3242_v49, %v3223_v0  ;;  %v1850_v49 = vmul.f32 %v9004_v12, %v686_v38  ;;  %v3224_v0 = vmul.f32 %v7707_v35, %v688_v16  ;;  %v9008_v35 = vld [vmem:[#allocation62_spill] sm:$0xff]  ;;  %v696_v12 = vld [vmem:[#allocation3 + $0x58] sm:$0xff] }
 0x986   : > { %v1200_v16 = vadd.f32 %v9008_v35, %v1152_v37  ;;  %v9013_v37 = vld [vmem:[#allocation36_spill] sm:$0xff]  ;;  %v9017_v35 = vld [vmem:[#allocation103_spill] sm:$0xff] }
 0x987   : > { %v3596_v53 = vsel %vm3528_vm4, %v3580_v15, %v3271_v61  ;;  %v3565_v61 = vsel %vm3494_vm2, %v1202_v11, %v1900_v51  ;;  %v1898_v39 = vadd.f32 %v9007_v44, %v1850_v49  ;;  %v3222_v51 = vmul.f32 %v7726_v40, %v686_v38  ;;  %v689_v49 = vld [vmem:[#allocation3 + $0x20] sm:$0xff]  ;;  %v692_v40 = vld [vmem:[#allocation3 + $0x38] sm:$0xff] }
 0x988   : > { %3612 = vst.msk [vmem:[#allocation3 + $0x10] sm:$0xff] %vm556_vm1, %v3596_v53  ;;  %v3238_v27 = vpop.xlane.xlu1 %3237  ;;  %v3581_v13 = vsel %vm3511_vm3, %v3565_v61, %v2590_v33  ;;  %v2545_v53 = vmul.f32 %v7330_v50, %v691_v14  ;;  %v9010_v33 = vld [vmem:[#allocation11_spill] sm:$0xff]  ;;  %v1903_v11 = vadd.f32 %v9011_v2, %v1855_v5  ;;  %v9012_v50 = vld [vmem:[#allocation96_spill] sm:$0xff] }
 0x989   : > { %v3269_v6 = vadd.f32 %v3238_v27, %v3221_v23  ;;  %v1157_v27 = vmul.f32 %v9010_v33, %v691_v14  ;;  %v3563_v36 = vsel %vm3494_vm2, %v1200_v16, %v1898_v39  ;;  %v9014_v61 = vld [vmem:[#allocation51_spill] sm:$0xff]  ;;  %v9015_v39 = vld [vmem:[#allocation8_spill] sm:$0xff]  ;;  %v1860_v16 = vmul.f32 %v9017_v35, %v696_v12 }
 0x98a   : > { %v3244_v52 = vpop.xlane.xlu0 %3243  ;;  %v3579_v7 = vsel %vm3511_vm3, %v3563_v36, %v2588_v43  ;;  %v1162_v44 = vmul.f32 %v9014_v61, %v696_v12  ;;  %v9018_v5 = vld [vmem:[#allocation139_spill] sm:$0xff]  ;;  %v9021_v36 = vld [vmem:[#allocation140_spill] sm:$0xff] }
 0x98b   : > { %v3594_v15 = vsel %vm3528_vm4, %v3578_v55, %v3269_v6  ;;  %v3272_v60 = vadd.f32 %v3244_v52, %v3224_v0  ;;  %v2593_v0 = vadd.f32 %v7574_v1, %v2545_v53  ;;  %v1205_v38 = vadd.f32 %v9012_v50, %v1157_v27  ;;  %v9020_v27 = vld [vmem:[#allocation89_spill] sm:$0xff]  ;;  %v9023_v50 = vld [vmem:[#allocation67_spill] sm:$0xff]  ;;  %v9026_v61 = vld [vmem:[#allocation136_spill] sm:$0xff] }
 0x98c   : > { %3610 = vst.msk [vmem:[#allocation3] sm:$0xff] %vm556_vm1, %v3594_v15  ;;  %v1853_v55 = vmul.f32 %v9013_v37, %v689_v49  ;;  %v3227_v52 = vmul.f32 %v7777_v21, %v691_v14  ;;  %v1155_v15 = vmul.f32 %v9015_v39, %v689_v49  ;;  %v2543_v1 = vmul.f32 %v7322_v9, %v689_v49  ;;  %v9024_v37 = vld [vmem:[#allocation87_spill] sm:$0xff] }
 0x98d   : > { %v3597_v18 = vsel %vm3528_vm4, %v3581_v13, %v3272_v60  ;;  %v9016_v60 = vld [vmem:[#allocation35_spill] sm:$0xff]  ;;  %v3568_v45 = vsel %vm3494_vm2, %v1205_v38, %v1903_v11  ;;  %v1908_v2 = vadd.f32 %v9021_v36, %v1860_v16  ;;  %v9022_v11 = vld [vmem:[#allocation14_spill] sm:$0xff]  ;;  %v1210_v38 = vadd.f32 %v9023_v50, %v1162_v44  ;;  %v9029_v16 = vld [vmem:[#allocation188_spill] sm:$0xff] }
 0x98e   : > { %3613 = vst.msk [vmem:[#allocation3 + $0x18] sm:$0xff] %vm556_vm1, %v3597_v18  ;;  %v3240_v23 = vpop.xlane.xlu0 %3239  ;;  %v1856_v13 = vmul.f32 %v9016_v60, %v692_v40  ;;  %v1901_v18 = vadd.f32 %v9018_v5, %v1853_v55  ;;  %v3584_v21 = vsel %vm3511_vm3, %v3568_v45, %v2593_v0  ;;  %v2591_v14 = vadd.f32 %v7578_v24, %v2543_v1  ;;  %v9025_v0 = vld [vmem:[#allocation191_spill] sm:$0xff] }
 0x98f   : > { %v3951_v17 = vld [vmem:[#allocation3 + $0x10] sm:$0xff]  ;;  %v3270_v6 = vadd.f32 %v3240_v23, %v3222_v51  ;;  %v1203_v9 = vadd.f32 %v9020_v27, %v1155_v15  ;;  %v2546_v55 = vmul.f32 %v9024_v37, %v692_v40  ;;  %v3232_v1 = vmul.f32 %v7772_v29, %v696_v12 }
 0x990   : > { %5623 = vrcp.f32 %v3951_v17  ;;  %v9019_v23 = vld [vmem:[#allocation154_spill] sm:$0xff]  ;;  %v1904_v39 = vadd.f32 %v9026_v61, %v1856_v13  ;;  %v3228_v13 = vmul.f32 %v7758_v62, %v692_v40  ;;  %v9036_v61 = vld [vmem:[#allocation88_spill] sm:$0xff] }
 0x991   : > { %v3595_v4 = vsel %vm3528_vm4, %v3579_v7, %v3270_v6  ;;  %v2550_v33 = vmul.f32 %v9019_v23, %v696_v12  ;;  %v3225_v6 = vmul.f32 %v7783_v22, %v689_v49  ;;  %v1158_v7 = vmul.f32 %v9022_v11, %v692_v40  ;;  %v9027_v22 = vld [vmem:[#allocation41_spill] sm:$0xff]  ;;  %v695_v11 = vld [vmem:[#allocation3 + $0x50] sm:$0xff] }
 0x992   : > { %3611 = vst.msk [vmem:[#allocation3 + $0x8] sm:$0xff] %vm556_vm1, %v3595_v4  ;;  %v3250_v43 = vpop.xlane.xlu0 %3249  ;;  %v3566_v15 = vsel %vm3494_vm2, %v1203_v9, %v1901_v18  ;;  %v2594_v45 = vadd.f32 %v9029_v16, %v2546_v55  ;;  %v9030_v18 = vld [vmem:[#allocation12_spill] sm:$0xff]  ;;  %v9032_v9 = vld [vmem:[#allocation138_spill] sm:$0xff]  ;;  %v9033_v40 = vld [vmem:[#allocation189_spill] sm:$0xff] }
 0x993   : > { %v3949_v51 = vld [vmem:[#allocation3] sm:$0xff]  ;;  %v3275_v53 = vadd.f32 %v3250_v43, %v3227_v52  ;;  %v2598_v4 = vadd.f32 %v9025_v0, %v2550_v33  ;;  %v690_v52 = vld [vmem:[#allocation3 + $0x28] sm:$0xff]  ;;  %v1206_v49 = vadd.f32 %v9027_v22, %v1158_v7  ;;  %v9028_v43 = vld [vmem:[#allocation42_spill] sm:$0xff]  ;;  %v3582_v44 = vsel %vm3511_vm3, %v3566_v15, %v2591_v14 }
 0x994   : > { %5625 = vrcp.f32 %v3949_v51  ;;  %v1854_v35 = vmul.f32 %v9028_v43, %v690_v52  ;;  %v3573_v51 = vsel %vm3494_vm2, %v1210_v38, %v1908_v2  ;;  %v1156_v23 = vmul.f32 %v9030_v18, %v690_v52  ;;  %v9031_v33 = vld [vmem:[#allocation65_spill] sm:$0xff]  ;;  %v9034_v38 = vld [vmem:[#allocation92_spill] sm:$0xff]  ;;  %v9035_v55 = vld [vmem:[#allocation63_spill] sm:$0xff] }
 0x995   : > { %v3600_v17 = vsel %vm3528_vm4, %v3584_v21, %v3275_v53  ;;  %v2544_v29 = vmul.f32 %v9031_v33, %v690_v52  ;;  %v3589_v12 = vsel %vm3511_vm3, %v3573_v51, %v2598_v4  ;;  %v3569_v14 = vsel %vm3494_vm2, %v1206_v49, %v1904_v39  ;;  %v9038_v49 = vld [vmem:[#allocation141_spill] sm:$0xff]  ;;  %v9039_v16 = vld [vmem:[#allocation190_spill] sm:$0xff] }
 0x996   : > { %3616 = vst.msk [vmem:[#allocation3 + $0x30] sm:$0xff] %vm556_vm1, %v3600_v17  ;;  %v3246_v24 = vpop.xlane.xlu0 %3245  ;;  %v1902_v36 = vadd.f32 %v9032_v9, %v1854_v35  ;;  %v3952_v17 = vld [vmem:[#allocation3 + $0x18] sm:$0xff]  ;;  %v3585_v62 = vsel %vm3511_vm3, %v3569_v14, %v2594_v45  ;;  %v1204_v37 = vadd.f32 %v9034_v38, %v1156_v23  ;;  %v1859_v0 = vmul.f32 %v9035_v55, %v695_v11  ;;  %v9042_v23 = vld [vmem:[#allocation64_spill] sm:$0xff] }
 0x997   : > { %v3273_v60 = vadd.f32 %v3246_v24, %v3225_v6  ;;  %v2592_v7 = vadd.f32 %v9033_v40, %v2544_v29  ;;  %v3226_v24 = vmul.f32 %v7765_v3, %v690_v52  ;;  %v2549_v39 = vmul.f32 %v9036_v61, %v695_v11  ;;  %v9049_v61 = vld [vmem:[#allocation155_spill] sm:$0xff] }
 0x998   : > { %v3260_v5 = vpop.xlane.xlu1 %3259  ;;  %5627 = vrcp.f32 %v3952_v17  ;;  %v3567_v22 = vsel %vm3494_vm2, %v1204_v37, %v1902_v36  ;;  %v1907_v43 = vadd.f32 %v9038_v49, %v1859_v0  ;;  %v3231_v18 = vmul.f32 %v7789_v25, %v695_v11  ;;  %v9044_v36 = vld [vmem:[#allocation143_spill] sm:$0xff] }
 0x999   : > { %v3598_v53 = vsel %vm3528_vm4, %v3582_v44, %v3273_v60  ;;  %v3280_v21 = vadd.f32 %v3260_v5, %v3232_v1  ;;  %v9037_v60 = vld [vmem:[#allocation53_spill] sm:$0xff]  ;;  %v693_v44 = vld [vmem:[#allocation3 + $0x40] sm:$0xff]  ;;  %v2597_v45 = vadd.f32 %v9039_v16, %v2549_v39  ;;  %v3583_v3 = vsel %vm3511_vm3, %v3567_v22, %v2592_v7  ;;  %v699_v16 = vld [vmem:[#allocation3 + $0x70] sm:$0xff] }
 0x99a   : > { %3614 = vst.msk [vmem:[#allocation3 + $0x20] sm:$0xff] %vm556_vm1, %v3598_v53  ;;  %v3252_v27 = vpop.xlane.xlu0 %3251  ;;  %v1161_v1 = vmul.f32 %v9037_v60, %v695_v11  ;;  %v9040_v5 = vld [vmem:[#allocation105_spill] sm:$0xff]  ;;  %v9041_v53 = vld [vmem:[#allocation38_spill] sm:$0xff]  ;;  %v2547_v33 = vmul.f32 %v9042_v23, %v693_v44  ;;  %v9047_v7 = vld [vmem:[#allocation40_spill] sm:$0xff]  ;;  %v3229_v0 = vmul.f32 %v7795_v30, %v693_v44  ;;  %v9050_v60 = vmov 3  }
 0x99b   : > { %v3605_v2 = vsel %vm3528_vm4, %v3589_v12, %v3280_v21  ;;  %v3276_v6 = vadd.f32 %v3252_v27, %v3228_v13  ;;  %v1857_v21 = vmul.f32 %v9041_v53, %v693_v44  ;;  %v694_v12 = vld [vmem:[#allocation3 + $0x48] sm:$0xff]  ;;  %v9043_v27 = vld [vmem:[#allocation52_spill] sm:$0xff] }
 0x99c   : > { %3621 = vst.msk [vmem:[#allocation3 + $0x58] sm:$0xff] %vm556_vm1, %v3605_v2  ;;  %v1209_v51 = vadd.f32 %v9040_v5, %v1161_v1  ;;  %v1159_v14 = vmul.f32 %v9043_v27, %v693_v44  ;;  %v1858_v38 = vmul.f32 %v9047_v7, %v694_v12  ;;  %v3950_v37 = vld [vmem:[#allocation3 + $0x8] sm:$0xff]  ;;  %v2548_v39 = vmul.f32 %v9049_v61, %v694_v12  ;;  %v9051_v1 = vld [vmem:[#allocation142_spill] sm:$0xff] }
 0x99d   : > { %v7969_v50 = vpop.eup %5623  ;;  %v3601_v4 = vsel %vm3528_vm4, %v3585_v62, %v3276_v6  ;;  %v1905_v17 = vadd.f32 %v9044_v36, %v1857_v21  ;;  %v9045_v6 = vld [vmem:[#allocation192_spill] sm:$0xff]  ;;  %v9046_v62 = vld [vmem:[#allocation99_spill] sm:$0xff]  ;;  %v9053_v44 = vld [vmem:[#allocation193_spill] sm:$0xff]  ;;  %5629 = vrcp.f32 %v3950_v37 }
 0x99e   : > { %3617 = vst.msk [vmem:[#allocation3 + $0x38] sm:$0xff] %vm556_vm1, %v3601_v4  ;;  %v3248_v15 = vpop.xlane.xlu0 %3247  ;;  %3993 = vperm.xlu1 %5247, %v7969_v50   ;;  %v3572_v9 = vsel %vm3494_vm2, %v1209_v51, %v1907_v43  ;;  %v2595_v11 = vadd.f32 %v9045_v6, %v2547_v33  ;;  %v1207_v40 = vadd.f32 %v9046_v62, %v1159_v14  ;;  %v9048_v4 = vld [vmem:[#allocation17_spill] sm:$0xff]  ;;  %v9055_v51 = vld [vmem:[#allocation18_spill] sm:$0xff] }
 0x99f   : > { %v3274_v35 = vadd.f32 %v3248_v15, %v3226_v24  ;;  %v3588_v25 = vsel %vm3511_vm3, %v3572_v9, %v2597_v45  ;;  %v1160_v24 = vmul.f32 %v9048_v4, %v694_v12  ;;  %v1906_v22 = vadd.f32 %v9051_v1, %v1858_v38  ;;  %v9057_v27 = vld [vmem:[#allocation58_spill] sm:$0xff]  ;;  %v9058_v36 = vld [vmem:[#allocation145_spill] sm:$0xff] }
 0x9a0   : > { %v3570_v49 = vsel %vm3494_vm2, %v1207_v40, %v1905_v17  ;;  %v2596_v45 = vadd.f32 %v9053_v44, %v2548_v39  ;;  %v1863_v53 = vmul.f32 %v9055_v51, %v699_v16  ;;  %v1165_v14 = vmul.f32 %v9057_v27, %v699_v16  ;;  %v3955_v37 = vld [vmem:[#allocation3 + $0x30] sm:$0xff]  ;;  %v9066_v44 = vld [vmem:[#allocation108_spill] sm:$0xff] }
 0x9a1   : > { %v7983_v52 = vpop.eup %5625  ;;  %v3599_v13 = vsel %vm3528_vm4, %v3583_v3, %v3274_v35  ;;  %v9052_v35 = vmov 2   ;;  %v3586_v30 = vsel %vm3511_vm3, %v3570_v49, %v2595_v11  ;;  %v9054_v3 = vld [vmem:[#allocation66_spill] sm:$0xff]  ;;  %v3235_v40 = vmul.f32 %v7799_v8, %v699_v16  ;;  %v9068_v27 = vld [vmem:[#allocation156_spill] sm:$0xff] }
 0x9a2   : > { %3615 = vst.msk [vmem:[#allocation3 + $0x28] sm:$0xff] %vm556_vm1, %v3599_v13  ;;  %v3258_v29 = vpop.xlane.xlu0 %3257  ;;  %5248 = vset.pattern.permute.xlu1 %v8747_v54  ;;  %4062 = vperm.xlu0 %5252, %v7983_v52   ;;  %v1208_v5 = vadd.f32 %v9054_v3, %v1160_v24  ;;  %v3230_v13 = vmul.f32 %v7780_v59, %v694_v12  ;;  %v9060_v12 = vld [vmem:[#allocation112_spill] sm:$0xff]  ;;  %v9062_v8 = vld [vmem:[#allocation94_spill] sm:$0xff]  ;;  %5631 = vrcp.f32 %v3955_v37 }
 0x9a3   : > { %v3279_v2 = vadd.f32 %v3258_v29, %v3231_v18  ;;  %4070 = vperm.xlu1 %5248, %v7969_v50   ;;  %v9056_v18 = vld [vmem:[#allocation91_spill] sm:$0xff]  ;;  %v1911_v17 = vadd.f32 %v9058_v36, %v1863_v53  ;;  %v1213_v11 = vadd.f32 %v9060_v12, %v1165_v14  ;;  %v9061_v24 = vld [vmem:[#allocation16_spill] sm:$0xff] }
 0x9a4   : > { %v2553_v23 = vmul.f32 %v9056_v18, %v699_v16  ;;  %v3571_v9 = vsel %vm3494_vm2, %v1208_v5, %v1906_v22  ;;  %v9064_v22 = vld [vmem:[#allocation147_spill] sm:$0xff]  ;;  %v9070_v36 = vld [vmem:[#allocation144_spill] sm:$0xff] }
 0x9a5   : > { %v3604_v55 = vsel %vm3528_vm4, %v3588_v25, %v3279_v2  ;;  %v8020_v29 = vpop.eup %5627  ;;  %v9059_v25 = vld [vmem:[#allocation194_spill] sm:$0xff]  ;;  %v3587_v59 = vsel %vm3511_vm3, %v3571_v9, %v2596_v45  ;;  %v3576_v38 = vsel %vm3494_vm2, %v1213_v11, %v1911_v17  ;;  %v9072_v12 = vld [vmem:[#allocation72_spill] sm:$0xff] }
 0x9a6   : > { %3620 = vst.msk [vmem:[#allocation3 + $0x50] sm:$0xff] %vm556_vm1, %v3604_v55  ;;  %v3254_v15 = vpop.xlane.xlu0 %3253  ;;  %5254 = vset.pattern.permute.xlu0 %v9050_v60  ;;  %v2601_v6 = vadd.f32 %v9059_v25, %v2553_v23  ;;  %v700_v23 = vld [vmem:[#allocation3 + $0x78] sm:$0xff] }
 0x9a7   : > { %v3277_v43 = vadd.f32 %v3254_v15, %v3229_v0  ;;  %5249 = vset.pattern.permute.xlu1 %v9052_v35  ;;  %4190 = vperm.xlu0 %5254, %v7983_v52   ;;  %v697_v0 = vld [vmem:[#allocation3 + $0x60] sm:$0xff]  ;;  %v2554_v14 = vmul.f32 %v9068_v27, %v700_v23  ;;  %v9071_v25 = vld [vmem:[#allocation195_spill] sm:$0xff] }
 0x9a8   : > { %4134 = vperm.xlu1 %5249, %v7969_v50   ;;  %v3592_v4 = vsel %vm3511_vm3, %v3576_v38, %v2601_v6  ;;  %v1861_v61 = vmul.f32 %v9061_v24, %v697_v0  ;;  %v9063_v15 = vld [vmem:[#allocation56_spill] sm:$0xff]  ;;  %v3233_v3 = vmul.f32 %v7802_v46, %v697_v0  ;;  %v9067_v46 = vld [vmem:[#allocation57_spill] sm:$0xff] }
 0x9a9   : > { %v3602_v21 = vsel %vm3528_vm4, %v3586_v30, %v3277_v43  ;;  %v1163_v1 = vmul.f32 %v9063_v15, %v697_v0  ;;  %v9065_v43 = vld [vmem:[#allocation196_spill] sm:$0xff]  ;;  %v2602_v6 = vadd.f32 %v9071_v25, %v2554_v14  ;;  %v9074_v38 = vld [vmem:[#allocation157_spill] sm:$0xff] }
 0x9aa   : > { %3618 = vst.msk [vmem:[#allocation3 + $0x40] sm:$0xff] %vm556_vm1, %v3602_v21  ;;  %v3256_v33 = vpop.xlane.xlu0 %3255  ;;  %v1909_v49 = vadd.f32 %v9064_v22, %v1861_v61  ;;  %v5630_v30 = vpop.eup %5629  ;;  %v9076_v61 = vld [vmem:[#allocation146_spill] sm:$0xff]  ;;  %v9077_v15 = vld [vmem:[#allocation197_spill] sm:$0xff] }
 0x9ab   : > { %v3278_v2 = vadd.f32 %v3256_v33, %v3230_v13  ;;  %5256 = vset.pattern.permute.xlu0 %v8747_v54  ;;  %v1211_v45 = vadd.f32 %v9066_v44, %v1163_v1  ;;  %v3953_v13 = vld [vmem:[#allocation3 + $0x20] sm:$0xff]  ;;  %v1864_v33 = vmul.f32 %v9067_v46, %v700_v23 }
 0x9ac   : > { %5250 = vset.pattern.permute.xlu1 %v9050_v60  ;;  %4074 = vperm.xlu0 %5256, %v8020_v29   ;;  %5633 = vrcp.f32 %v3953_v13 }
 0x9ad   : > { %v3603_v62 = vsel %vm3528_vm4, %v3587_v59, %v3278_v2  ;;  %4198 = vperm.xlu1 %5250, %v7969_v50   ;;  %v2551_v50 = vmul.f32 %v9062_v8, %v697_v0  ;;  %v3574_v51 = vsel %vm3494_vm2, %v1211_v45, %v1909_v49  ;;  %v1912_v17 = vadd.f32 %v9070_v36, %v1864_v33  ;;  %v698_v2 = vld [vmem:[#allocation3 + $0x68] sm:$0xff]  ;;  %v9075_v0 = vld [vmem:[#allocation54_spill] sm:$0xff]  ;;  %v3956_v49 = vld [vmem:[#allocation3 + $0x38] sm:$0xff] }
 0x9ae   : > { %3619 = vst.msk [vmem:[#allocation3 + $0x48] sm:$0xff] %vm556_vm1, %v3603_v62  ;;  %v3266_v7 = vpop.xlane.xlu0 %3265  ;;  %v9073_v62 = vld [vmem:[#allocation46_spill] sm:$0xff]  ;;  %v2552_v37 = vmul.f32 %v9074_v38, %v698_v2  ;;  %5635 = vrcp.f32 %v3956_v49 }
 0x9af   : > { %v3283_v55 = vadd.f32 %v3266_v7, %v3235_v40  ;;  %v2599_v16 = vadd.f32 %v9065_v43, %v2551_v50  ;;  %v5632_v59 = vpop.eup %5631  ;;  %v1862_v40 = vmul.f32 %v9073_v62, %v698_v2  ;;  %v3236_v7 = vmul.f32 %v7786_v41, %v700_v23  ;;  %v9078_v41 = vld [vmem:[#allocation69_spill] sm:$0xff] }
 0x9b0   : > { %5258 = vset.pattern.permute.xlu0 %v9050_v60  ;;  %v2600_v1 = vadd.f32 %v9077_v15, %v2552_v37 }
 0x9b1   : > { %v3608_v39 = vsel %vm3528_vm4, %v3592_v4, %v3283_v55  ;;  %5251 = vset.pattern.permute.xlu1 %v8977_v57  ;;  %4202 = vperm.xlu0 %5258, %v8020_v29   ;;  %v3590_v21 = vsel %vm3511_vm3, %v3574_v51, %v2599_v16  ;;  %v1164_v4 = vmul.f32 %v9075_v0, %v698_v2  ;;  %v3954_v51 = vld [vmem:[#allocation3 + $0x28] sm:$0xff]  ;;  %v3957_v13 = vld [vmem:[#allocation3 + $0x40] sm:$0xff] }
 0x9b2   : > { %3624 = vst.msk [vmem:[#allocation3 + $0x70] sm:$0xff] %vm556_vm1, %v3608_v39  ;;  %3983 = vperm.xlu1 %5251, %v7983_v52   ;;  %v1910_v39 = vadd.f32 %v9076_v61, %v1862_v40  ;;  %v3234_v16 = vmul.f32 %v7792_v10, %v698_v2  ;;  %5637 = vrcp.f32 %v3954_v51 }
 0x9b3   : > { %v1212_v22 = vadd.f32 %v9078_v41, %v1164_v4 }
 0x9b5   : > { %5259 = vset.pattern.permute.xlu0 %v8977_v57  ;;  %v3575_v45 = vsel %vm3494_vm2, %v1212_v22, %v1910_v39  ;;  %v3958_v33 = vld [vmem:[#allocation3 + $0x48] sm:$0xff] }
 0x9b6   : > { %v3262_v5 = vpop.xlane.xlu0 %3261  ;;  %3988 = vperm.xlu0 %5259, %v5630_v30   ;;  %5253 = vset.pattern.permute.xlu1 %v9052_v35 }
 0x9b7   : > { %v3281_v53 = vadd.f32 %v3262_v5, %v3233_v3  ;;  %4126 = vperm.xlu1 %5253, %v7983_v52   ;;  %v9069_v52 = vld [vmem:[#allocation55_spill] sm:$0xff] }
 0x9b8   : > { %v1166_v9 = vmul.f32 %v9069_v52, %v700_v23  ;;  %v3960_v23 = vld [vmem:[#allocation3 + $0x58] sm:$0xff] }
 0x9b9   : > { %v3606_v18 = vsel %vm3528_vm4, %v3590_v21, %v3281_v53  ;;  %v5634_v10 = vpop.eup %5633  ;;  %v3959_v21 = vld [vmem:[#allocation3 + $0x50] sm:$0xff] }
 0x9ba   : > { %3622 = vst.msk [vmem:[#allocation3 + $0x60] sm:$0xff] %vm556_vm1, %v3606_v18  ;;  %5261 = vset.pattern.permute.xlu0 %v9052_v35  ;;  %v1214_v11 = vadd.f32 %v9072_v12, %v1166_v9  ;;  %5639 = vrcp.f32 %v3959_v21  ;;  %v3963_v14 = vld [vmem:[#allocation3 + $0x70] sm:$0xff] }
 0x9bb   : > { %4130 = vperm.xlu0 %5261, %v5630_v30   ;;  %5255 = vset.pattern.permute.xlu1 %v8977_v57  ;;  %v5636_v53 = vpop.eup %5635  ;;  %5641 = vrcp.f32 %v3957_v13 }
 0x9bc   : > { %3998 = vperm.xlu1 %5255, %v8020_v29   ;;  %v3577_v24 = vsel %vm3494_vm2, %v1214_v11, %v1912_v17  ;;  %5643 = vrcp.f32 %v3960_v23 }
 0x9bd   : > { %v3593_v50 = vsel %vm3511_vm3, %v3577_v24, %v2602_v6  ;;  %5645 = vrcp.f32 %v3958_v33 }
 0x9be   : > { %5647 = vrcp.f32 %v3963_v14 }
 0x9bf   : > { %5263 = vset.pattern.permute.xlu0 %v8977_v57 }
 0x9c0   : > { %4013 = vperm.xlu0 %5263, %v5632_v59   ;;  %5257 = vset.pattern.permute.xlu1 %v9052_v35  ;;  %v3268_v55 = vpop.xlane.xlu1 %3267 }
 0x9c1   : > { %v3284_v8 = vadd.f32 %v3268_v55, %v3236_v7  ;;  %4138 = vperm.xlu1 %5257, %v8020_v29   ;;  %v3591_v29 = vsel %vm3511_vm3, %v3575_v45, %v2600_v1  ;;  %v3961_v9 = vld [vmem:[#allocation3 + $0x60] sm:$0xff] }
 0x9c2   : > { %5649 = vrcp.f32 %v3961_v9 }
 0x9c3   : > { %v3609_v43 = vsel %vm3528_vm4, %v3593_v50, %v3284_v8 }
 0x9c4   : > { %3625 = vst.msk [vmem:[#allocation3 + $0x78] sm:$0xff] %vm556_vm1, %v3609_v43  ;;  %5265 = vset.pattern.permute.xlu0 %v9052_v35  ;;  %v3264_v44 = vpop.xlane.xlu1 %3263 }
 0x9c5   : > { %v3282_v3 = vadd.f32 %v3264_v44, %v3234_v16  ;;  %4150 = vperm.xlu0 %5265, %v5632_v59   ;;  %5260 = vset.pattern.permute.xlu1 %v8747_v54 }
 0x9c6   : > { %4066 = vperm.xlu1 %5260, %v5630_v30  }
 0x9c7   : > { %v3607_v5 = vsel %vm3528_vm4, %v3591_v29, %v3282_v3 }
 0x9c8   : > { %3623 = vst.msk [vmem:[#allocation3 + $0x68] sm:$0xff] %vm556_vm1, %v3607_v5  ;;  %v8120_v2 = vpop.f32.mrf.mxu0 }
 0x9c9   : > { %5267 = vset.pattern.permute.xlu0 %v8977_v57 }
 0x9ca   : > { %4003 = vperm.xlu0 %5267, %v5634_v10   ;;  %5262 = vset.pattern.permute.xlu1 %v9050_v60  ;;  %v8125_v6 = vpop.f32.mrf.mxu0 }
 0x9cb   : > { %4194 = vperm.xlu1 %5262, %v5630_v30   ;;  %v5638_v30 = vpop.eup %5637  ;;  %v3964_v17 = vld [vmem:[#allocation3 + $0x78] sm:$0xff] }
 0x9cc   : > { %v5640_v18 = vpop.eup %5639  ;;  %5651 = vrcp.f32 %v3964_v17  ;;  %v5138_v11 = vpop.f32.mrf.mxu0 }
 0x9cd   : > { %v5642_v46 = vpop.eup %5641 }
 0x9ce   : > { %5269 = vset.pattern.permute.xlu0 %v9052_v35  ;;  %v5644_v27 = vpop.eup %5643  ;;  %v3354_v38 = vpop.f32.mrf.mxu0 }
 0x9cf   : > { %4142 = vperm.xlu0 %5269, %v5634_v10   ;;  %5264 = vset.pattern.permute.xlu1 %v8747_v54  ;;  %v5646_v52 = vpop.eup %5645  ;;  %v3962_v25 = vld [vmem:[#allocation3 + $0x68] sm:$0xff] }
 0x9d0   : > { %4086 = vperm.xlu1 %5264, %v5632_v59   ;;  %v8115_v36 = vpop.eup %5647  ;;  %5653 = vrcp.f32 %v3962_v25 }
 0x9d3   : > { %5272 = vset.pattern.permute.xlu0 %v8747_v54 }
 0x9d4   : > { %4090 = vperm.xlu0 %5272, %v5636_v53   ;;  %5266 = vset.pattern.permute.xlu1 %v9050_v60 }
 0x9d5   : > { %4214 = vperm.xlu1 %5266, %v5632_v59   ;;  %v5650_v59 = vpop.eup %5649 }
 0x9d8   : > { %5274 = vset.pattern.permute.xlu0 %v9050_v60  ;;  %v5141_v37 = vpop.f32.mrf.mxu0 }
 0x9d9   : > { %4218 = vperm.xlu0 %5274, %v5636_v53   ;;  %5268 = vset.pattern.permute.xlu1 %v8747_v54  ;;  %v8135_v0 = vpop.eup %5651 }
 0x9da   : > { %4078 = vperm.xlu1 %5268, %v5634_v10   ;;  %v3367_v24 = vpop.f32.mrf.mxu0 }
 0x9dc   : > { %v5142_v15 = vpop.f32.mrf.mxu0 }
 0x9dd   : > { %5276 = vset.pattern.permute.xlu0 %v8747_v54  ;;  %v5654_v61 = vpop.eup %5653 }
 0x9de   : > { %4082 = vperm.xlu0 %5276, %v5638_v30   ;;  %5270 = vset.pattern.permute.xlu1 %v9050_v60  ;;  %v3370_v41 = vpop.f32.mrf.mxu0 }
 0x9df   : > { %4206 = vperm.xlu1 %5270, %v5634_v10  }
 0x9e0   : > { %v5145_v43 = vpop.f32.mrf.mxu0 }
 0x9e2   : > { %5278 = vset.pattern.permute.xlu0 %v9050_v60  ;;  %v3383_v45 = vpop.f32.mrf.mxu0 }
 0x9e3   : > { %4210 = vperm.xlu0 %5278, %v5638_v30   ;;  %5271 = vset.pattern.permute.xlu1 %v8977_v57 }
 0x9e4   : > { %4018 = vperm.xlu1 %5271, %v5636_v53   ;;  %v5146_v10 = vpop.f32.mrf.mxu0 }
 0x9e7   : > { %5279 = vset.pattern.permute.xlu0 %v8977_v57 }
 0x9e8   : > { %4033 = vperm.xlu0 %5279, %v5640_v18   ;;  %5273 = vset.pattern.permute.xlu1 %v9052_v35 }
 0x9e9   : > { %4154 = vperm.xlu1 %5273, %v5636_v53  }
 0x9ec   : > { %5281 = vset.pattern.permute.xlu0 %v9052_v35 }
 0x9ed   : > { %4166 = vperm.xlu0 %5281, %v5640_v18   ;;  %5275 = vset.pattern.permute.xlu1 %v8977_v57 }
 0x9ee   : > { %4008 = vperm.xlu1 %5275, %v5638_v30  }
 0x9f1   : > { %5283 = vset.pattern.permute.xlu0 %v8977_v57 }
 0x9f2   : > { %4023 = vperm.xlu0 %5283, %v5642_v46   ;;  %5277 = vset.pattern.permute.xlu1 %v9052_v35 }
 0x9f3   : > { %4146 = vperm.xlu1 %5277, %v5638_v30   ;;  %v3386_v30 = vpop.f32.mrf.mxu0 }
 0x9f6   : > { %5285 = vset.pattern.permute.xlu0 %v9052_v35 }
 0x9f7   : > { %4158 = vperm.xlu0 %5285, %v5642_v46   ;;  %5280 = vset.pattern.permute.xlu1 %v8747_v54 }
 0x9f8   : > { %4102 = vperm.xlu1 %5280, %v5640_v18  }
 0x9fb   : > { %5288 = vset.pattern.permute.xlu0 %v8747_v54 }
 0x9fc   : > { %5282 = vset.pattern.permute.xlu1 %v9050_v60  ;;  %4106 = vperm.xlu0 %5288, %v5644_v27  }
 0x9fd   : > { %4230 = vperm.xlu1 %5282, %v5640_v18  }
 0xa00   : > { %5290 = vset.pattern.permute.xlu0 %v9050_v60 }
 0xa01   : > { %5284 = vset.pattern.permute.xlu1 %v8747_v54  ;;  %4234 = vperm.xlu0 %5290, %v5644_v27  }
 0xa02   : > { %4094 = vperm.xlu1 %5284, %v5642_v46  }
 0xa05   : > { %5292 = vset.pattern.permute.xlu0 %v8747_v54 }
 0xa06   : > { %5286 = vset.pattern.permute.xlu1 %v9050_v60  ;;  %4098 = vperm.xlu0 %5292, %v5646_v52  }
 0xa07   : > { %4222 = vperm.xlu1 %5286, %v5642_v46  }
 0xa0a   : > { %5294 = vset.pattern.permute.xlu0 %v9050_v60 }
 0xa0b   : > { %5287 = vset.pattern.permute.xlu1 %v8977_v57  ;;  %4226 = vperm.xlu0 %5294, %v5646_v52  }
 0xa0c   : > { %4038 = vperm.xlu1 %5287, %v5644_v27  }
 0xa0f   : > { %5295 = vset.pattern.permute.xlu0 %v8977_v57 }
 0xa10   : > { %4053 = vperm.xlu0 %5295, %v8115_v36   ;;  %5289 = vset.pattern.permute.xlu1 %v9052_v35 }
 0xa11   : > { %4170 = vperm.xlu1 %5289, %v5644_v27  }
 0xa14   : > { %5297 = vset.pattern.permute.xlu0 %v9052_v35 }
 0xa15   : > { %4182 = vperm.xlu0 %5297, %v8115_v36   ;;  %5291 = vset.pattern.permute.xlu1 %v8977_v57 }
 0xa16   : > { %4028 = vperm.xlu1 %5291, %v5646_v52  }
 0xa19   : > { %5298 = vset.pattern.permute.xlu0 %v8977_v57  ;;  %v3994_v12 = vpop.permute.xlu1 %3993 }
 0xa1a   : > { %4043 = vperm.xlu0 %5298, %v5650_v59   ;;  %5293 = vset.pattern.permute.xlu1 %v9052_v35 }
 0xa1b   : > { %4162 = vperm.xlu1 %5293, %v5646_v52  }
 0xa1d   : > { %v4063_v62 = vpop.permute.xlu0 %4062 }
 0xa1e   : > { %5299 = vset.pattern.permute.xlu0 %v9052_v35  ;;  %v4071_v40 = vpop.permute.xlu1 %4070 }
 0xa1f   : > { %v8131_v7 = vsel %vm781_vm0, %v3994_v12, %v4071_v40  ;;  %4174 = vperm.xlu0 %5299, %v5650_v59   ;;  %5296 = vset.pattern.permute.xlu1 %v8747_v54 }
 0xa20   : > { %4118 = vperm.xlu1 %5296, %v8115_v36  }
 0xa22   : > { %v4191_v55 = vpop.permute.xlu0 %4190 }
 0xa23   : > { %5302 = vset.pattern.permute.xlu0 %v8747_v54  ;;  %v4135_v4 = vpop.permute.xlu1 %4134 }
 0xa24   : > { %4110 = vperm.xlu1 %5296, %v5650_v59   ;;  %4122 = vperm.xlu0 %5302, %v8135_v0  }
 0xa27   : > { %v4075_v39 = vpop.permute.xlu0 %4074 }
 0xa28   : > { %5300 = vset.pattern.permute.xlu1 %v9050_v60  ;;  %4114 = vperm.xlu0 %5302, %v5654_v61   ;;  %v4199_v8 = vpop.permute.xlu1 %4198 }
 0xa29   : > { %v8141_v50 = vsel %vm781_vm0, %v4135_v4, %v4199_v8  ;;  %4238 = vperm.xlu1 %5300, %v5650_v59  }
 0xa2c   : > { %v4203_v1 = vpop.permute.xlu0 %4202  ;;  %5306 = vset.pattern.permute.xlu0 %v9050_v60 }
 0xa2d   : > { %5301 = vset.pattern.permute.xlu1 %v8977_v57  ;;  %4242 = vperm.xlu0 %5306, %v5654_v61   ;;  %v3984_v54 = vpop.permute.xlu1 %3983 }
 0xa2e   : > { %v8146_v22 = vsel %vm781_vm0, %v3984_v54, %v4063_v62  ;;  %4058 = vperm.xlu1 %5301, %v8135_v0  }
 0xa31   : > { %v3989_v49 = vpop.permute.xlu0 %3988  ;;  %3744 = vrot.lane.b32.xlu0 %v5138_v11, %s5730_s27 }
 0xa32   : > { %5303 = vset.pattern.permute.xlu1 %v9052_v35  ;;  %v4127_v16 = vpop.permute.xlu1 %4126 }
 0xa33   : > { %v8152_v44 = vsel %vm781_vm0, %v4127_v16, %v4191_v55  ;;  %4186 = vperm.xlu1 %5303, %v8135_v0  }
 0xa35   : > { %3740 = vrot.lane.b32.xlu0 %v3354_v38, %s5730_s27 }
 0xa36   : > { %v4131_v3 = vpop.permute.xlu0 %4130 }
 0xa37   : > { %5304 = vset.pattern.permute.xlu1 %v8977_v57  ;;  %v3999_v29 = vpop.permute.xlu1 %3998  ;;  %v5149_v57 = vpop.f32.mrf.mxu0 }
 0xa38   : > { %v8158_v5 = vsel %vm781_vm0, %v3999_v29, %v4075_v39  ;;  %4048 = vperm.xlu1 %5304, %v5654_v61  }
 0xa39   : > { %3752 = vrot.lane.b32.xlu0 %v5142_v15, %s5730_s27 }
 0xa3b   : > { %v4014_v51 = vpop.permute.xlu0 %4013 }
 0xa3c   : > { %5305 = vset.pattern.permute.xlu1 %v9052_v35  ;;  %v4139_v53 = vpop.permute.xlu1 %4138  ;;  %v3399_v35 = vpop.f32.mrf.mxu0 }
 0xa3d   : > { %v8163_v21 = vsel %vm781_vm0, %v4139_v53, %v4203_v1  ;;  %3748 = vrot.lane.b32.xlu0 %v3370_v41, %s5730_s27  ;;  %4178 = vperm.xlu1 %5305, %v5654_v61  }
 0xa3e   : > { %v5150_v14 = vpop.f32.mrf.mxu0 }
 0xa40   : > { %v4151_v13 = vpop.permute.xlu0 %4150  ;;  %v3402_v17 = vpop.f32.mrf.mxu0 }
 0xa41   : > { %3760 = vrot.lane.b32.xlu0 %v5146_v10, %s5730_s27  ;;  %3742 = vrot.lane.b32.xlu1 %v8120_v2, %s5730_s27  ;;  %v4067_v18 = vpop.permute.xlu1 %4066 }
 0xa42   : > { %v8170_v23 = vsel %vm781_vm0, %v3989_v49, %v4067_v18  ;;  %5307 = vset.pattern.permute.xlu1 %v9050_v60 }
 0xa45   : > { %v4004_v46 = vpop.permute.xlu0 %4003  ;;  %3756 = vrot.lane.b32.xlu0 %v3386_v30, %s5730_s27  ;;  %3738 = vrot.lane.b32.xlu1 %v8125_v6, %s5730_s27 }
 0xa46   : > { %v4195_v33 = vpop.permute.xlu1 %4194 }
 0xa47   : > { %v8177_v27 = vsel %vm781_vm0, %v4131_v3, %v4195_v33 }
 0xa49   : > { %3768 = vrot.lane.b32.xlu0 %v5150_v14, %s5730_s27  ;;  %3750 = vrot.lane.b32.xlu1 %v5141_v37, %s5730_s27 }
 0xa4a   : > { %v4143_v52 = vpop.permute.xlu0 %4142 }
 0xa4b   : > { %v4087_v9 = vpop.permute.xlu1 %4086 }
 0xa4c   : > { %v8182_v60 = vsel %vm781_vm0, %v4014_v51, %v4087_v9 }
 0xa4d   : > { %3764 = vrot.lane.b32.xlu0 %v3402_v17, %s5730_s27  ;;  %3746 = vrot.lane.b32.xlu1 %v3367_v24, %s5730_s27 }
 0xa4f   : > { %v4091_v2 = vpop.permute.xlu0 %4090 }
 0xa50   : > { %v4215_v25 = vpop.permute.xlu1 %4214 }
 0xa51   : > { %v8187_v6 = vsel %vm781_vm0, %v4151_v13, %v4215_v25  ;;  %4250 = vperm.xlu0 %5306, %v8135_v0   ;;  %3758 = vrot.lane.b32.xlu1 %v5145_v43, %s5730_s27 }
 0xa54   : > { %v4219_v59 = vpop.permute.xlu0 %4218 }
 0xa55   : > { %3754 = vrot.lane.b32.xlu1 %v3383_v45, %s5730_s27  ;;  %v4079_v12 = vpop.permute.xlu1 %4078 }
 0xa56   : > { %v8193_v11 = vsel %vm781_vm0, %v4004_v46, %v4079_v12 }
 0xa57   : > { %9079 = vst [vmem:[#allocation70_spill] sm:$0xff] %v8193_v11  ;;  %v9121_v11 = vld [vmem:[#allocation100_spill] sm:$0xff] }
 0xa59   : > { %v4083_v62 = vpop.permute.xlu0 %4082  ;;  %3766 = vrot.lane.b32.xlu1 %v5149_v57, %s5730_s27 }
 0xa5a   : > { %v4207_v40 = vpop.permute.xlu1 %4206 }
 0xa5b   : > { %v8197_v38 = vsel %vm781_vm0, %v4143_v52, %v4207_v40  ;;  %v9094_v40 = vld [vmem:[#allocation115_spill] sm:$0xff] }
 0xa5c   : > { %9080 = vst [vmem:[#allocation83_spill] sm:$0xff] %v8197_v38  ;;  %v9116_v38 = vld [vmem:[#allocation160_spill] sm:$0xff] }
 0xa5d   : > { %3762 = vrot.lane.b32.xlu1 %v3399_v35, %s5730_s27 }
 0xa5e   : > { %v8200_v37 = vpop.permute.xlu0 %4210 }
 0xa5f   : > { %v4019_v55 = vpop.permute.xlu1 %4018 }
 0xa60   : > { %v8203_v0 = vsel %vm781_vm0, %v4019_v55, %v4091_v2 }
 0xa61   : > { %4246 = vperm.xlu1 %5307, %v8115_v36  }
 0xa63   : > { %v4034_v4 = vpop.permute.xlu0 %4033 }
 0xa64   : > { %v4155_v24 = vpop.permute.xlu1 %4154 }
 0xa65   : > { %v8207_v61 = vsel %vm781_vm0, %v4155_v24, %v4219_v59  ;;  %v9096_v24 = vld [vmem:[#allocation75_spill] sm:$0xff] }
 0xa68   : > { %v4167_v39 = vpop.permute.xlu0 %4166 }
 0xa69   : > { %v4009_v8 = vpop.permute.xlu1 %4008 }
 0xa6a   : > { %v8210_v15 = vsel %vm781_vm0, %v4009_v8, %v4083_v62  ;;  %v9093_v62 = vld [vmem:[#allocation116_spill] sm:$0xff] }
 0xa6b   : > { %v3626_v55 = vsel %vm781_vm0, %v9094_v40, %v9093_v62  ;;  %v9104_v40 = vld [vmem:[#allocation128_spill] sm:$0xff] }
 0xa6d   : > { %v4024_v1 = vpop.permute.xlu0 %4023 }
 0xa6e   : > { %v8212_v54 = vpop.permute.xlu1 %4146 }
 0xa72   : > { %v4159_v41 = vpop.permute.xlu0 %4158 }
 0xa73   : > { %v4103_v49 = vpop.permute.xlu1 %4102 }
 0xa74   : > { %v8215_v43 = vsel %vm781_vm0, %v4034_v4, %v4103_v49  ;;  %v9095_v4 = vld [vmem:[#allocation126_spill] sm:$0xff] }
 0xa75   : > { %9081 = vst [vmem:[#allocation68_spill] sm:$0xff] %v8215_v43 }
 0xa77   : > { %v8217_v16 = vpop.permute.xlu0 %4106 }
 0xa78   : > { %v4231_v36 = vpop.permute.xlu1 %4230 }
 0xa79   : > { %v8220_v45 = vsel %vm781_vm0, %v4167_v39, %v4231_v36  ;;  %v3627_v39 = vsel %vm781_vm0, %v9096_v24, %v9095_v4  ;;  %v9100_v36 = vld [vmem:[#allocation110_spill] sm:$0xff]  ;;  %v8286_v24 = vmul.f32 0.0, %v3626_v55 }
 0xa7a   : > { %9082 = vst [vmem:[#allocation76_spill] sm:$0xff] %v8220_v45 }
 0xa7c   : > { %v8222_v3 = vpop.permute.xlu0 %4234 }
 0xa7d   : > { %v4095_v29 = vpop.permute.xlu1 %4094 }
 0xa7e   : > { %v8225_v10 = vsel %vm781_vm0, %v4024_v1, %v4095_v29  ;;  %v9098_v1 = vld [vmem:[#allocation121_spill] sm:$0xff]  ;;  %v3645_v29 = vsel %vm781_vm0, %v9100_v36, %v7819_v26  ;;  %v9108_v36 = vld [vmem:[#allocation176_spill] sm:$0xff] }
 0xa7f   : > { %9083 = vst [vmem:[#allocation74_spill] sm:$0xff] %v8225_v10  ;;  %v3857_v10 = vmul.f32 0.0, %v3645_v29 }
 0xa81   : > { %v8227_v51 = vpop.permute.xlu0 %4098 }
 0xa82   : > { %v4223_v53 = vpop.permute.xlu1 %4222 }
 0xa83   : > { %v8230_v30 = vsel %vm781_vm0, %v4159_v41, %v4223_v53  ;;  %v9099_v41 = vld [vmem:[#allocation81_spill] sm:$0xff] }
 0xa84   : > { %9084 = vst [vmem:[#allocation82_spill] sm:$0xff] %v8230_v30  ;;  %v3629_v49 = vsel %vm781_vm0, %v9099_v41, %v9098_v1  ;;  %v3852_v1 = vmul.f32 0.0, %v3627_v39  ;;  %v9106_v41 = vld [vmem:[#allocation123_spill] sm:$0xff] }
 0xa86   : > { %v8232_v57 = vpop.permute.xlu0 %4226 }
 0xa87   : > { %v8234_v13 = vpop.permute.xlu1 %4038 }
 0xa8b   : > { %v8236_v18 = vpop.permute.xlu0 %4053 }
 0xa8c   : > { %9085 = vst [vmem:[#allocation80_spill] sm:$0xff] %v8236_v18  ;;  %v8238_v35 = vpop.permute.xlu1 %4170  ;;  %v9107_v18 = vld [vmem:[#allocation86_spill] sm:$0xff] }
 0xa8d   : > { %v3630_v26 = vsel %vm781_vm0, %v9107_v18, %v9106_v41  ;;  %v9115_v18 = vld [vmem:[#allocation107_spill] sm:$0xff] }
 0xa8e   : > { %v3643_v41 = vsel %vm781_vm0, %v9115_v18, %v7831_v28  ;;  %v9122_v18 = vld [vmem:[#allocation174_spill] sm:$0xff] }
 0xa90   : > { %v8240_v46 = vpop.permute.xlu0 %4182 }
 0xa91   : > { %9086 = vst [vmem:[#allocation60_spill] sm:$0xff] %v8240_v46  ;;  %v8242_v33 = vpop.permute.xlu1 %4028  ;;  %v9102_v46 = vld [vmem:[#allocation119_spill] sm:$0xff] }
 0xa95   : > { %v8244_v14 = vpop.permute.xlu0 %4043 }
 0xa96   : > { %9087 = vst [vmem:[#allocation13_spill] sm:$0xff] %v8244_v14  ;;  %v8246_v52 = vpop.permute.xlu1 %4162 }
 0xa9a   : > { %v8248_v9 = vpop.permute.xlu0 %4174 }
 0xa9b   : > { %9088 = vst [vmem:[#allocation130_spill] sm:$0xff] %v8248_v9  ;;  %v8250_v17 = vpop.permute.xlu1 %4118  ;;  %v9103_v9 = vld [vmem:[#allocation78_spill] sm:$0xff] }
 0xa9c   : > { %9089 = vst [vmem:[#allocation85_spill] sm:$0xff] %v8250_v17  ;;  %v3628_v62 = vsel %vm781_vm0, %v9103_v9, %v9102_v46  ;;  %v9109_v17 = vld [vmem:[#allocation21_spill] sm:$0xff] }
 0xa9d   : > { %v3789_v14 = vsel %vm781_vm0, %v9109_v17, %v9108_v36  ;;  %v9110_v46 = vld [vmem:[#allocation125_spill] sm:$0xff]  ;;  %v3854_v39 = vmul.f32 0.0, %v3628_v62 }
 0xa9e   : > { %v9111_v9 = vld [vmem:[#allocation93_spill] sm:$0xff] }
 0xa9f   : > { %v8252_v2 = vpop.permute.xlu0 %4122  ;;  %v8254_v25 = vpop.permute.xlu1 %4110  ;;  %v3632_v30 = vsel %vm781_vm0, %v9111_v9, %v9110_v46  ;;  %v9117_v36 = vld [vmem:[#allocation129_spill] sm:$0xff]  ;;  %v9118_v46 = vld [vmem:[#allocation90_spill] sm:$0xff] }
 0xaa0   : > { %9090 = vst [vmem:[#allocation59_spill] sm:$0xff] %v8252_v2  ;;  %9091 = vst [vmem:[#allocation15_spill] sm:$0xff] %v8254_v25  ;;  %v3856_v25 = vmul.f32 0.0, %v3629_v49  ;;  %v8307_v49 = vmul.f32 0.0, %v3630_v26  ;;  %v3631_v9 = vsel %vm781_vm0, %v9118_v46, %v9117_v36  ;;  %v8315_v62 = vmul.f32 0.0, %v3632_v30  ;;  %v9124_v26 = vld [vmem:[#allocation153_spill] sm:$0xff] }
 0xaa1   : > { %v9127_v46 = vld [vmem:[#allocation109_spill] sm:$0xff] }
 0xaa3   : > { %v8256_v59 = vpop.permute.xlu0 %4114 }
 0xaa4   : > { %v8258_v12 = vpop.permute.xlu1 %4238 }
 0xaa5   : > { %9092 = vst [vmem:[#allocation132_spill] sm:$0xff] %v8258_v12  ;;  %v9105_v12 = vld [vmem:[#allocation120_spill] sm:$0xff] }
 0xaa6   : > { %v3636_v4 = vsel %vm781_vm0, %v9105_v12, %v9104_v40  ;;  %v9112_v12 = vld [vmem:[#allocation127_spill] sm:$0xff]  ;;  %v9113_v40 = vld [vmem:[#allocation97_spill] sm:$0xff] }
 0xaa7   : > { %v3633_v55 = vsel %vm781_vm0, %v9113_v40, %v9112_v12  ;;  %v8300_v43 = vmul.f32 0.0, %v3636_v4  ;;  %v9120_v40 = vld [vmem:[#allocation133_spill] sm:$0xff] }
 0xaa8   : > { %v8267_v8 = vpop.permute.xlu0 %4242  ;;  %v3864_v4 = vmul.f32 0.0, %v3633_v55  ;;  %v3635_v28 = vsel %vm781_vm0, %v9121_v11, %v9120_v40  ;;  %v9126_v55 = vld [vmem:[#allocation95_spill] sm:$0xff] }
 0xaa9   : > { %9097 = vst [vmem:[#allocation61_spill] sm:$0xff] %v8267_v8  ;;  %v8275_v53 = vpop.permute.xlu1 %4058  ;;  %9114 = vst [vmem:[#allocation43_spill] sm:$0xff] %v8300_v43  ;;  %v3888_v8 = vadd.f32 %v3856_v25, %v3789_v14  ;;  %v9125_v43 = vld [vmem:[#allocation106_spill] sm:$0xff]  ;;  %v3853_v14 = vmul.f32 0.0, %v3643_v41  ;;  %v9128_v11 = vld [vmem:[#allocation179_spill] sm:$0xff] }
 0xaaa   : > { %9101 = vst [vmem:[#allocation10_spill] sm:$0xff] %v8275_v53  ;;  %v3637_v36 = vsel %vm781_vm0, %v9125_v43, %v9124_v26  ;;  %v3649_v40 = vsel %vm781_vm0, %v9128_v11, %v7856_v48  ;;  %v9129_v43 = vld [vmem:[#allocation161_spill] sm:$0xff]  ;;  %v9133_v26 = vld [vmem:[#allocation118_spill] sm:$0xff] }
 0xaab   : > { %v9134_v11 = vld [vmem:[#allocation25_spill] sm:$0xff] }
 0xaac   : > { %v3745_v45 = vpop.permute.xlu0 %3744  ;;  %v3793_v53 = vsel %vm781_vm0, %v9134_v11, %v7826_v19  ;;  %v9137_v19 = vld [vmem:[#allocation181_spill] sm:$0xff] }
 0xaad   : > { %v3805_v17 = vsel %vm781_vm0, %v9116_v38, %v3745_v45  ;;  %v9123_v38 = vld [vmem:[#allocation22_spill] sm:$0xff] }
 0xaae   : > { %v3889_v29 = vadd.f32 %v3857_v10, %v3805_v17  ;;  %v8313_v12 = vpop.permute.xlu1 %4186  ;;  %v3787_v45 = vsel %vm781_vm0, %v9123_v38, %v9122_v18  ;;  %v4323_v10 = vmul.f32 %v8158_v5, %v3888_v8  ;;  %v3860_v17 = vmul.f32 0.0, %v3631_v9  ;;  %v9131_v8 = vld [vmem:[#allocation113_spill] sm:$0xff]  ;;  %v9132_v38 = vld [vmem:[#allocation131_spill] sm:$0xff] }
 0xaaf   : > { %9119 = vst [vmem:[#allocation134_spill] sm:$0xff] %v8313_v12  ;;  %v3639_v12 = vsel %vm781_vm0, %v9127_v46, %v9126_v55  ;;  %v3884_v9 = vadd.f32 %v3852_v1, %v3787_v45  ;;  %v8347_v48 = vsel %vm781_vm0, %v9133_v26, %v9132_v38  ;;  %v3868_v55 = vmul.f32 0.0, %v3635_v28  ;;  %v9135_v28 = vld [vmem:[#allocation175_spill] sm:$0xff]  ;;  %v9142_v38 = vld [vmem:[#allocation26_spill] sm:$0xff] }
 0xab0   : > { %v4324_v25 = vmul.f32 %v8163_v21, %v3889_v29  ;;  %v3741_v30 = vpop.permute.xlu0 %3740  ;;  %v9130_v21 = vld [vmem:[#allocation104_spill] sm:$0xff]  ;;  %v3872_v46 = vmul.f32 0.0, %v3637_v36  ;;  %v3791_v26 = vsel %vm781_vm0, %v9142_v38, %v7822_v31  ;;  %v9152_v38 = vld [vmem:[#allocation158_spill] sm:$0xff] }
 0xab1   : > { %v3803_v5 = vsel %vm781_vm0, %v9129_v43, %v3741_v30  ;;  %v3641_v41 = vsel %vm781_vm0, %v9131_v8, %v9130_v21  ;;  %v8354_v30 = vmul.f32 0.0, %v3639_v12  ;;  %v3865_v43 = vmul.f32 0.0, %v3649_v40  ;;  %v9136_v36 = vld [vmem:[#allocation20_spill] sm:$0xff]  ;;  %v9139_v21 = vld [vmem:[#allocation177_spill] sm:$0xff] }
 0xab2   : > { %v4754_v29 = vpack.c.bf16 %v4324_v25, %v4323_v10  ;;  %v3885_v18 = vadd.f32 %v3853_v14, %v3803_v5  ;;  %v4319_v1 = vmul.f32 %v8170_v23, %v3884_v9  ;;  %v8359_v10 = vmul.f32 0.0, %v3641_v41  ;;  %v9138_v12 = vld [vmem:[#allocation164_spill] sm:$0xff]  ;;  %v9140_v23 = vld [vmem:[#allocation19_spill] sm:$0xff]  ;;  %v9141_v41 = vld [vmem:[#allocation101_spill] sm:$0xff] }
 0xab3   : > { %v8352_v2 = vpop.permute.xlu1 %4048  ;;  %v3786_v25 = vsel %vm781_vm0, %v9136_v36, %v9135_v28  ;;  %v3647_v5 = vsel %vm781_vm0, %v9137_v19, %v7860_v32  ;;  %v3788_v8 = vsel %vm781_vm0, %v9140_v23, %v9139_v21  ;;  %v9143_v32 = vld [vmem:[#allocation117_spill] sm:$0xff]  ;;  %v9146_v19 = vld [vmem:[#allocation178_spill] sm:$0xff] }
 0xab4   : > { %4448 = vst [vmem:[%s8337_s30 + $0x18] sm:$0xff] %v4754_v29  ;;  %v4320_v45 = vmul.f32 %v8177_v27, %v3885_v18  ;;  %v3753_v14 = vpop.permute.xlu0 %3752  ;;  %v3896_v27 = vadd.f32 %v3864_v4, %v3793_v53  ;;  %v3642_v18 = vsel %vm781_vm0, %v9141_v41, %v7814_v47  ;;  %v3644_v11 = vsel %vm781_vm0, %v9143_v32, %v7824_v20  ;;  %v9145_v53 = vld [vmem:[#allocation29_spill] sm:$0xff]  ;;  %v9149_v41 = vld [vmem:[#allocation148_spill] sm:$0xff] }
 0xab5   : > { %v3809_v40 = vsel %vm781_vm0, %v9138_v12, %v3753_v14  ;;  %v9144_v14 = vld [vmem:[#allocation30_spill] sm:$0xff]  ;;  %v3797_v4 = vsel %vm781_vm0, %v9145_v53, %v7833_v34  ;;  %v3882_v20 = vadd.f32 %v8286_v24, %v3786_v25  ;;  %v3886_v36 = vadd.f32 %v3854_v39, %v3788_v8  ;;  %v9147_v12 = vld [vmem:[#allocation165_spill] sm:$0xff]  ;;  %v9148_v39 = vld [vmem:[#allocation180_spill] sm:$0xff] }
 0xab6   : > { %v4752_v9 = vpack.c.bf16 %v4320_v45, %v4319_v1  ;;  %v3897_v29 = vadd.f32 %v3865_v43, %v3809_v40  ;;  %v3795_v28 = vsel %vm781_vm0, %v9144_v14, %v7829_v42  ;;  %v3861_v43 = vmul.f32 0.0, %v3647_v5  ;;  %v9155_v53 = vld [vmem:[#allocation9_spill] sm:$0xff] }
 0xab7   : > { %v4331_v1 = vmul.f32 %v8203_v0, %v3896_v27  ;;  %v3653_v42 = vsel %vm781_vm0, %v9146_v19, %v7864_v58  ;;  %v3851_v5 = vmul.f32 0.0, %v3642_v18  ;;  %v3892_v40 = vadd.f32 %v3860_v17, %v3791_v26  ;;  %v9150_v18 = vld [vmem:[#allocation34_spill] sm:$0xff]  ;;  %v9154_v26 = vld [vmem:[#allocation24_spill] sm:$0xff] }
 0xab8   : > { %4446 = vst [vmem:[%s8337_s30 + $0x8] sm:$0xff] %v4752_v9  ;;  %v4332_v47 = vmul.f32 %v8207_v61, %v3897_v29  ;;  %v3749_v45 = vpop.permute.xlu0 %3748  ;;  %v8390_v31 = vpop.permute.xlu1 %4178  ;;  %v3855_v23 = vmul.f32 0.0, %v3644_v11  ;;  %v3900_v61 = vadd.f32 %v3868_v55, %v3795_v28  ;;  %v3904_v27 = vadd.f32 %v3872_v46, %v3797_v4  ;;  %v9156_v4 = vld [vmem:[#allocation33_spill] sm:$0xff] }
 0xab9   : > { %v3807_v34 = vsel %vm781_vm0, %v9147_v12, %v3749_v45  ;;  %v4274_v9 = vsel %vm781_vm0, %v8212_v54, %v8200_v37  ;;  %v3873_v24 = vmul.f32 0.0, %v3653_v42  ;;  %v3651_v25 = vsel %vm781_vm0, %v9148_v39, %v7868_v56  ;;  %v9151_v54 = vld [vmem:[#allocation168_spill] sm:$0xff] }
 0xaba   : > { %v4758_v0 = vpack.c.bf16 %v4332_v47, %v4331_v1  ;;  %v3893_v21 = vadd.f32 %v3861_v43, %v3807_v34  ;;  %v4327_v58 = vmul.f32 %v8210_v15, %v3892_v40  ;;  %v3799_v55 = vsel %vm781_vm0, %v9150_v18, %v9149_v41  ;;  %v9153_v15 = vld [vmem:[#allocation149_spill] sm:$0xff]  ;;  %v9157_v1 = vld [vmem:[#allocation47_spill] sm:$0xff]  ;;  %v9166_v18 = vld [vmem:[#allocation182_spill] sm:$0xff] }
 0xabb   : > { %v4264_v37 = vsel %vm781_vm0, %v8234_v13, %v8217_v16  ;;  %v3790_v32 = vsel %vm781_vm0, %v9154_v26, %v9153_v15  ;;  %v3801_v43 = vsel %vm781_vm0, %v9156_v4, %v9155_v53  ;;  %v9158_v47 = vld [vmem:[#allocation111_spill] sm:$0xff]  ;;  %v3869_v13 = vmul.f32 0.0, %v3651_v25  ;;  %v9165_v41 = vld [vmem:[#allocation77_spill] sm:$0xff] }
 0xabc   : > { %4452 = vst [vmem:[%s8337_s30 + $0x38] sm:$0xff] %v4758_v0  ;;  %v4328_v8 = vmul.f32 %v4274_v9, %v3893_v21  ;;  %v3761_v29 = vpop.permute.xlu0 %3760  ;;  %v3743_v17 = vpop.permute.xlu1 %3742  ;;  %v3648_v16 = vsel %vm781_vm0, %v9158_v47, %v9157_v1  ;;  %v4280_v45 = vsel %vm781_vm0, %v8238_v35, %v8222_v3  ;;  %v4321_v19 = vmul.f32 %v8131_v7, %v3886_v36  ;;  %v9159_v21 = vld [vmem:[#allocation150_spill] sm:$0xff]  ;;  %v9161_v3 = vld [vmem:[#allocation169_spill] sm:$0xff]  ;;  %v9162_v35 = vld [vmem:[#allocation159_spill] sm:$0xff] }
 0xabd   : > { %v3813_v46 = vsel %vm781_vm0, %v9151_v54, %v3761_v29  ;;  %v3804_v56 = vsel %vm781_vm0, %v9152_v38, %v3743_v17  ;;  %v4339_v42 = vmul.f32 %v4264_v37, %v3904_v27  ;;  %v9164_v29 = vld [vmem:[#allocation114_spill] sm:$0xff]  ;;  %v3657_v37 = vsel %vm781_vm0, %v9166_v18, %v9165_v41  ;;  %v9169_v53 = vld [vmem:[#allocation151_spill] sm:$0xff]  ;;  %v9183_v41 = vld [vmem:[#allocation185_spill] sm:$0xff] }
 0xabe   : > { %v4756_v11 = vpack.c.bf16 %v4328_v8, %v4327_v58  ;;  %v3905_v14 = vadd.f32 %v3873_v24, %v3813_v46  ;;  %v3887_v28 = vadd.f32 %v3855_v23, %v3804_v56  ;;  %v9160_v23 = vld [vmem:[#allocation23_spill] sm:$0xff]  ;;  %v4262_v24 = vsel %vm781_vm0, %v8242_v33, %v8227_v51  ;;  %v9163_v8 = vld [vmem:[#allocation45_spill] sm:$0xff] }
 0xabf   : > { %v3792_v9 = vsel %vm781_vm0, %v9160_v23, %v9159_v21  ;;  %v3863_v58 = vmul.f32 0.0, %v3648_v16  ;;  %v3646_v17 = vsel %vm781_vm0, %v9164_v29, %v9163_v8  ;;  %v4278_v51 = vsel %vm781_vm0, %v8246_v52, %v8232_v57  ;;  %v9168_v52 = vld [vmem:[#allocation162_spill] sm:$0xff]  ;;  %v9170_v4 = vld [vmem:[#allocation27_spill] sm:$0xff] }
 0xac0   : > { %4450 = vst [vmem:[%s8337_s30 + $0x28] sm:$0xff] %v4756_v11  ;;  %v4340_v12 = vmul.f32 %v4280_v45, %v3905_v14  ;;  %v4322_v34 = vmul.f32 %v8141_v50, %v3887_v28  ;;  %v3757_v40 = vpop.permute.xlu0 %3756  ;;  %v3739_v0 = vpop.permute.xlu1 %3738  ;;  %v4317_v33 = vmul.f32 %v8146_v22, %v3882_v20  ;;  %v4335_v54 = vmul.f32 %v4262_v24, %v3900_v61  ;;  %v9167_v11 = vld [vmem:[#allocation184_spill] sm:$0xff]  ;;  %v9172_v1 = vld [vmem:[#allocation183_spill] sm:$0xff] }
 0xac1   : > { %v3811_v7 = vsel %vm781_vm0, %v9161_v3, %v3757_v40  ;;  %v3802_v36 = vsel %vm781_vm0, %v9162_v35, %v3739_v0  ;;  %v3908_v15 = vadd.f32 %v8354_v30, %v3799_v55  ;;  %v3890_v26 = vadd.f32 %v8307_v49, %v3790_v32  ;;  %v9171_v32 = vld [vmem:[#allocation73_spill] sm:$0xff]  ;;  %v9173_v45 = vld [vmem:[#allocation172_spill] sm:$0xff]  ;;  %v9176_v40 = vld [vmem:[#allocation59_spill] sm:$0xff] }
 0xac2   : > { %v4762_v27 = vpack.c.bf16 %v4340_v12, %v4339_v42  ;;  %v4753_v50 = vpack.c.bf16 %v4322_v34, %v4321_v19  ;;  %v3901_v39 = vadd.f32 %v3869_v13, %v3811_v7  ;;  %v3883_v25 = vadd.f32 %v3851_v5, %v3802_v36  ;;  %v9174_v42 = vld [vmem:[#allocation173_spill] sm:$0xff]  ;;  %v9175_v34 = vld [vmem:[#allocation163_spill] sm:$0xff]  ;;  %v9177_v0 = vld [vmem:[#allocation10_spill] sm:$0xff] }
 0xac3   : > { %v3655_v57 = vsel %vm781_vm0, %v9167_v11, %v7893_v63  ;;  %v3894_v20 = vadd.f32 %v8315_v62, %v3792_v9  ;;  %v3912_v28 = vadd.f32 %v8359_v10, %v3801_v43  ;;  %v3796_v30 = vsel %vm781_vm0, %v9170_v4, %v9169_v53  ;;  %v9178_v24 = vld [vmem:[#allocation43_spill] sm:$0xff]  ;;  %v9180_v35 = vld [vmem:[#allocation61_spill] sm:$0xff]  ;;  %v9187_v11 = vld [vmem:[#allocation28_spill] sm:$0xff] }
 0xac4   : > { %4456 = vst [vmem:[%s8337_s30 + $0x58] sm:$0xff] %v4762_v27  ;;  %4447 = vst [vmem:[%s8337_s30 + $0x10] sm:$0xff] %v4753_v50  ;;  %v4336_v46 = vmul.f32 %v4278_v51, %v3901_v39  ;;  %v4318_v5 = vmul.f32 %v8152_v44, %v3883_v25  ;;  %v3769_v38 = vpop.permute.xlu0 %3768  ;;  %v3751_v56 = vpop.permute.xlu1 %3750  ;;  %v3859_v55 = vmul.f32 0.0, %v3646_v17  ;;  %v3881_v49 = vmul.f32 0.0, %v3657_v37  ;;  %v9181_v25 = vld [vmem:[#allocation83_spill] sm:$0xff]  ;;  %v9184_v51 = vld [vmem:[#allocation134_spill] sm:$0xff] }
 0xac5   : > { %v3808_v22 = vsel %vm781_vm0, %v9168_v52, %v3751_v56  ;;  %v3652_v63 = vsel %vm781_vm0, %v9172_v1, %v9171_v32  ;;  %v3877_v47 = vmul.f32 0.0, %v3655_v57  ;;  %v4329_v16 = vmul.f32 %v8182_v60, %v3894_v20  ;;  %v9182_v17 = vld [vmem:[#allocation71_spill] sm:$0xff]  ;;  %v9192_v1 = vld [vmem:[#allocation82_spill] sm:$0xff] }
 0xac6   : > { %v4760_v61 = vpack.c.bf16 %v4336_v46, %v4335_v54  ;;  %v4751_v14 = vpack.c.bf16 %v4318_v5, %v4317_v33  ;;  %v3895_v44 = vadd.f32 %v3863_v58, %v3808_v22  ;;  %v4266_v43 = vsel %vm781_vm0, %v8352_v2, %v8256_v59  ;;  %v9179_v2 = vld [vmem:[#allocation70_spill] sm:$0xff]  ;;  %v9188_v22 = vld [vmem:[#allocation68_spill] sm:$0xff]  ;;  %v9190_v53 = vld [vmem:[#allocation167_spill] sm:$0xff] }
 0xac7   : > { %v3817_v19 = vsel %vm781_vm0, %v9173_v45, %v3769_v38  ;;  %v3902_v3 = vadd.f32 %v9178_v24, %v3796_v30  ;;  %v3871_v7 = vmul.f32 0.0, %v3652_v63  ;;  %v4325_v59 = vmul.f32 %v9179_v2, %v3890_v26  ;;  %v9185_v54 = vld [vmem:[#allocation166_spill] sm:$0xff]  ;;  %v9186_v26 = vld [vmem:[#allocation152_spill] sm:$0xff]  ;;  %v9204_v2 = vld [vmem:[#allocation31_spill] sm:$0xff] }
 0xac8   : > { %4454 = vst [vmem:[%s8337_s30 + $0x48] sm:$0xff] %v4760_v61  ;;  %4445 = vst [vmem:[%s8337_s30] sm:$0xff] %v4751_v14  ;;  %v4330_v62 = vmul.f32 %v8187_v6, %v3895_v44  ;;  %v3765_v13 = vpop.permute.xlu0 %3764  ;;  %v3747_v10 = vpop.permute.xlu1 %3746  ;;  %v4268_v6 = vsel %vm781_vm0, %v9177_v0, %v9176_v40  ;;  %v4282_v36 = vsel %vm781_vm0, %v8390_v31, %v9180_v35  ;;  %v9189_v14 = vld [vmem:[#allocation76_spill] sm:$0xff]  ;;  %v9205_v35 = vld [vmem:[#allocation15_spill] sm:$0xff] }
 0xac9   : > { %v3815_v12 = vsel %vm781_vm0, %v9174_v42, %v3765_v13  ;;  %v3806_v60 = vsel %vm781_vm0, %v9175_v34, %v3747_v10  ;;  %v4343_v27 = vmul.f32 %v4266_v43, %v3908_v15  ;;  %v3913_v50 = vadd.f32 %v3881_v49, %v3817_v19  ;;  %v9191_v49 = vld [vmem:[#allocation74_spill] sm:$0xff]  ;;  %v9195_v10 = vld [vmem:[#allocation84_spill] sm:$0xff]  ;;  %v9196_v43 = vld [vmem:[#allocation187_spill] sm:$0xff] }
 0xaca   : > { %v4757_v21 = vpack.c.bf16 %v4330_v62, %v4329_v16  ;;  %v3909_v23 = vadd.f32 %v3877_v47, %v3815_v12  ;;  %v3891_v9 = vadd.f32 %v3859_v55, %v3806_v60  ;;  %v3650_v18 = vsel %vm781_vm0, %v9183_v41, %v9182_v17  ;;  %v9193_v16 = vld [vmem:[#allocation98_spill] sm:$0xff]  ;;  %v9198_v12 = vld [vmem:[#allocation124_spill] sm:$0xff] }
 0xacb   : > { %v4347_v37 = vmul.f32 %v4268_v6, %v3912_v28  ;;  %v3866_v15 = vmul.f32 0.0, %v8347_v48  ;;  %v3794_v57 = vsel %vm781_vm0, %v9187_v11, %v9186_v26  ;;  %v3867_v52 = vmul.f32 0.0, %v3650_v18  ;;  %v9194_v62 = vld [vmem:[#allocation122_spill] sm:$0xff]  ;;  %v9199_v60 = vld [vmem:[#allocation48_spill] sm:$0xff]  ;;  %v9201_v6 = vld [vmem:[#allocation79_spill] sm:$0xff] }
 0xacc   : > { %4451 = vst [vmem:[%s8337_s30 + $0x30] sm:$0xff] %v4757_v21  ;;  %v4344_v39 = vmul.f32 %v4282_v36, %v3909_v23  ;;  %v4326_v58 = vmul.f32 %v9181_v25, %v3891_v9  ;;  %v4251_v8 = vpop.permute.xlu0 %4250  ;;  %v3759_v29 = vpop.permute.xlu1 %3758  ;;  %v4337_v20 = vmul.f32 %v9188_v22, %v3902_v3  ;;  %v3638_v13 = vsel %vm781_vm0, %v9194_v62, %v9193_v16  ;;  %v9197_v42 = vld [vmem:[#allocation102_spill] sm:$0xff]  ;;  %v9200_v40 = vld [vmem:[#allocation32_spill] sm:$0xff]  ;;  %v9206_v36 = vld [vmem:[#allocation13_spill] sm:$0xff] }
 0xacd   : > { %v4284_v33 = vsel %vm781_vm0, %v9184_v51, %v4251_v8  ;;  %v3812_v31 = vsel %vm781_vm0, %v9185_v54, %v3759_v29  ;;  %v3898_v30 = vadd.f32 %v3866_v15, %v3794_v57  ;;  %v3654_v45 = vsel %vm781_vm0, %v9196_v43, %v9195_v10  ;;  %v9202_v21 = vld [vmem:[#allocation186_spill] sm:$0xff]  ;;  %v9208_v25 = vld [vmem:[#allocation171_spill] sm:$0xff]  ;;  %v9209_v18 = vld [vmem:[#allocation85_spill] sm:$0xff] }
 0xace   : > { %v4764_v46 = vpack.c.bf16 %v4344_v39, %v4343_v27  ;;  %v4755_v5 = vpack.c.bf16 %v4326_v58, %v4325_v59  ;;  %v4348_v38 = vmul.f32 %v4284_v33, %v3913_v50  ;;  %v3903_v56 = vadd.f32 %v3871_v7, %v3812_v31  ;;  %v9203_v7 = vld [vmem:[#allocation49_spill] sm:$0xff]  ;;  %v9207_v50 = vld [vmem:[#allocation170_spill] sm:$0xff]  ;;  %v9211_v33 = vld [vmem:[#allocation132_spill] sm:$0xff] }
 0xacf   : > { %v4333_v32 = vmul.f32 %v9191_v49, %v3898_v30  ;;  %v3640_v34 = vsel %vm781_vm0, %v9198_v12, %v9197_v42  ;;  %v3798_v0 = vsel %vm781_vm0, %v9200_v40, %v9199_v60  ;;  %v3656_v23 = vsel %vm781_vm0, %v9202_v21, %v9201_v6  ;;  %v9212_v54 = vld [vmem:[#allocation130_spill] sm:$0xff]  ;;  %v9213_v26 = vld [vmem:[#allocation60_spill] sm:$0xff] }
 0xad0   : > { %4458 = vst [vmem:[%s8337_s30 + $0x68] sm:$0xff] %v4764_v46  ;;  %4449 = vst [vmem:[%s8337_s30 + $0x20] sm:$0xff] %v4755_v5  ;;  %v4766_v61 = vpack.c.bf16 %v4348_v38, %v4347_v37  ;;  %v4338_v44 = vmul.f32 %v9189_v14, %v3903_v56  ;;  %v3755_v28 = vpop.permute.xlu1 %3754  ;;  %v3874_v9 = vmul.f32 0.0, %v3638_v13  ;;  %v3875_v24 = vmul.f32 0.0, %v3654_v45  ;;  %v9210_v37 = vld [vmem:[#allocation80_spill] sm:$0xff] }
 0xad1   : > { %v3810_v4 = vsel %vm781_vm0, %v9190_v53, %v3755_v28  ;;  %v3800_v59 = vsel %vm781_vm0, %v9204_v2, %v9203_v7  ;;  %v4265_v27 = vsel %vm781_vm0, %v9206_v36, %v9205_v35  ;;  %v3878_v8 = vmul.f32 0.0, %v3640_v34 }
 0xad2   : > { %4460 = vst [vmem:[%s8337_s30 + $0x78] sm:$0xff] %v4766_v61  ;;  %v4761_v48 = vpack.c.bf16 %v4338_v44, %v4337_v20  ;;  %v3899_v55 = vadd.f32 %v3867_v52, %v3810_v4  ;;  %v3906_v29 = vadd.f32 %v3874_v9, %v3798_v0  ;;  %v3879_v17 = vmul.f32 0.0, %v3656_v23 }
 0xad3   : > { %v4267_v51 = vsel %vm781_vm0, %v9210_v37, %v9209_v18  ;;  %v4281_v31 = vsel %vm781_vm0, %v9212_v54, %v9211_v33  ;;  %v3910_v46 = vadd.f32 %v3878_v8, %v3800_v59 }
 0xad4   : > { %4455 = vst [vmem:[%s8337_s30 + $0x50] sm:$0xff] %v4761_v48  ;;  %v4334_v63 = vmul.f32 %v9192_v1, %v3899_v55  ;;  %v3767_v47 = vpop.permute.xlu1 %3766  ;;  %v4341_v5 = vmul.f32 %v4265_v27, %v3906_v29 }
 0xad5   : > { %v3816_v39 = vsel %vm781_vm0, %v9207_v50, %v3767_v47  ;;  %v4345_v57 = vmul.f32 %v4267_v51, %v3910_v46 }
 0xad6   : > { %v4759_v19 = vpack.c.bf16 %v4334_v63, %v4333_v32  ;;  %v3911_v38 = vadd.f32 %v3879_v17, %v3816_v39 }
 0xad8   : > { %4453 = vst [vmem:[%s8337_s30 + $0x40] sm:$0xff] %v4759_v19  ;;  %v3763_v3 = vpop.permute.xlu1 %3762 }
 0xad9   : > { %v3814_v58 = vsel %vm781_vm0, %v9208_v25, %v3763_v3 }
 0xada   : > { %v3907_v41 = vadd.f32 %v3875_v24, %v3814_v58 }
 0xadc   : > { %v4342_v56 = vmul.f32 %v4281_v31, %v3907_v41  ;;  %v4247_v15 = vpop.permute.xlu1 %4246 }
 0xadd   : > { %v4283_v11 = vsel %vm781_vm0, %v9213_v26, %v4247_v15 }
 0xade   : > { %v4763_v52 = vpack.c.bf16 %v4342_v56, %v4341_v5  ;;  %v4346_v22 = vmul.f32 %v4283_v11, %v3911_v38 }
 0xae0   : > { %4457 = vst [vmem:[%s8337_s30 + $0x60] sm:$0xff] %v4763_v52  ;;  %v4765_v20 = vpack.c.bf16 %v4346_v22, %v4345_v57 }
 0xae2   : > { %4459 = vst [vmem:[%s8337_s30 + $0x70] sm:$0xff] %v4765_v20 }
 0xae3 PF: > { %s13_s16 = sadd.s32 1, %s5725_s16   ;;  %s9214_s12 = smov %s5713_s13 }
 0xae4   : > { %p10_p10 = scmp.ge.s32.totalorder %s13_s16, 4   ;;  %s9215_s13 = smov %s5793_s21 }
 0xae5   : > { %s9216_s14 = smov %s5721_s15  ;;  %s9217_s15 = smov %s9219_s17 }
 0xae6   :  { %12 = sbr.rel (!%p10_p10) target bundleno = 3 (0x3), region = 205 }

</bundles_post_ra>
